<compile_context>
chip_gen: v7x
topology: tpu7x:2x2x1
jax: 0.10.0
libtpu: 0.0.40
codegen_flags: <defaults>
</compile_context>

<pallas_src>
from functools import partial

import jax
import jax.numpy as jnp
from jax.experimental import pallas as pl
from jax.experimental.pallas import tpu as pltpu

_VMEM_LIMIT = 32 * 1024 * 1024   # fits v5e/v6e (128 MiB) and v7x (64 MiB physical)


def _ceil_to(x, m):
    return ((x + m - 1) // m) * m


def _tile(dim, max_tile, align):
    """Pick (tile, padded_dim): full dim if it fits; else the largest aligned
    divisor (preferring MXU-friendly multiples of 256); pad only as a rare
    fallback when the best divisor would make tiles pathologically small."""
    if dim <= max_tile:
        return dim, dim
    cap = (max_tile // align) * align
    best = 0
    t = cap
    while t >= align:
        if dim % t == 0:
            if t % 256 == 0:
                best = t
                break
            if best == 0:
                best = t
        t -= align
    if best >= max_tile // 2:
        return best, dim
    return cap, _ceil_to(dim, cap)   # ragged fallback (never hit in this config)


# ----------------------------- Pallas kernels ------------------------------

def _linear_kernel(*refs, activation, has_res, has_ln, nk, eps):
    idx = 0
    a_ref = refs[idx]; idx += 1
    w_ref = refs[idx]; idx += 1
    bias_ref = refs[idx]; idx += 1
    if has_ln:
        g_ref, beta_ref = refs[idx], refs[idx + 1]; idx += 2
    if has_res:
        res_ref = refs[idx]; idx += 1
    o_ref = refs[idx]; idx += 1
    acc_ref = refs[idx] if nk > 1 else None

    a = a_ref[...]
    if has_ln:                                    # fused LayerNorm prologue
        x = a.astype(jnp.float32)
        mu = jnp.mean(x, axis=-1, keepdims=True)
        xc = x - mu
        var = jnp.mean(xc * xc, axis=-1, keepdims=True)
        a = (xc * jax.lax.rsqrt(var + eps)) * g_ref[...] + beta_ref[...]
    part = jnp.dot(a.astype(jnp.bfloat16), w_ref[...],
                   preferred_element_type=jnp.float32)

    def epilogue(acc):
        out = acc + bias_ref[...]
        if activation == "relu":
            out = jnp.maximum(out, 0.0)
        elif activation == "gelu":   # exact (erf) GELU, matches PyTorch default
            out = 0.5 * out * (1.0 + jax.lax.erf(out * 0.7071067811865476))
        if has_res:
            out = out + res_ref[...].astype(jnp.float32)
        o_ref[...] = out.astype(o_ref.dtype)

    if nk == 1:
        epilogue(part)
    else:
        k = pl.program_id(2)

        @pl.when(k == 0)
        def _():
            acc_ref[...] = jnp.zeros_like(acc_ref)

        acc_ref[...] += part

        @pl.when(k == nk - 1)
        def _():
            epilogue(acc_ref[...])


def pallas_linear(a, w, b, activation=None, residual=None, ln=None,
                  out_dtype=jnp.float32, eps=1e-5):
    """a: (M, K) f32/bf16, w: (K, N) [bf16], b: (N,) -> (M, N) out_dtype.

    Fused epilogue: +bias, optional relu/gelu, optional residual add.
    Fused prologue: optional LayerNorm over K (ln=(gamma, beta)) with a single
    whole-K tile, so the normalized activation never round-trips HBM."""
    M, K = a.shape
    K2, N = w.shape
    assert K == K2
    w = w.astype(jnp.bfloat16)              # no-op if already prepared as bf16

    tm, Mp = _tile(M, 512, 8)
    if ln is not None:
        tk, Kp = K, K                        # LN needs the full row in one block
    else:
        tk, Kp = _tile(K, 1024, 128)
    if N < 128:                              # lane-dense output: pad narrow N
        tn, Np = 128, 128
    else:
        tn, Np = _tile(N, 512, 128)
    nk = Kp // tk

    a_p = a if (Mp == M and Kp == K) else jnp.pad(a, ((0, Mp - M), (0, Kp - K)))
    w_p = w if (Kp == K and Np == N) else jnp.pad(w, ((0, Kp - K), (0, Np - N)))
    b2 = b.reshape(1, N).astype(jnp.float32)
    b_p = b2 if Np == N else jnp.pad(b2, ((0, 0), (0, Np - N)))

    inputs = [a_p, w_p, b_p]
    in_specs = [
        pl.BlockSpec((tm, tk), lambda i, j, k: (i, k)),
        pl.BlockSpec((tk, tn), lambda i, j, k: (k, j)),
        pl.BlockSpec((1, tn), lambda i, j, k: (0, j)),
    ]
    has_ln = ln is not None
    if has_ln:
        inputs += [ln[0].reshape(1, K).astype(jnp.float32),
                   ln[1].reshape(1, K).astype(jnp.float32)]
        in_specs += [pl.BlockSpec((1, tk), lambda i, j, k: (0, 0)),
                     pl.BlockSpec((1, tk), lambda i, j, k: (0, 0))]
    has_res = residual is not None
    if has_res:
        r_p = residual if (Mp == M and Np == N) else jnp.pad(
            residual, ((0, Mp - M), (0, Np - N)))
        inputs.append(r_p)
        in_specs.append(pl.BlockSpec((tm, tn), lambda i, j, k: (i, j)))

    scratch = [pltpu.VMEM((tm, tn), jnp.float32)] if nk > 1 else []

    flops = 2 * M * N * K
    bytes_accessed = (a_p.size * a_p.dtype.itemsize + w_p.size * 2 + b_p.size * 4
                      + Mp * Np * jnp.dtype(out_dtype).itemsize
                      + (Mp * Np * 4 if has_res else 0))

    out = pl.pallas_call(
        partial(_linear_kernel, activation=activation, has_res=has_res,
                has_ln=has_ln, nk=nk, eps=eps),
        out_shape=jax.ShapeDtypeStruct((Mp, Np), out_dtype),
        grid_spec=pltpu.PrefetchScalarGridSpec(
            num_scalar_prefetch=0,
            grid=(Mp // tm, Np // tn, nk),
            in_specs=in_specs,
            out_specs=pl.BlockSpec((tm, tn), lambda i, j, k: (i, j)),
            scratch_shapes=scratch),
        compiler_params=pltpu.CompilerParams(
            dimension_semantics=("parallel", "parallel", "arbitrary"),
            vmem_limit_bytes=_VMEM_LIMIT),
        cost_estimate=pl.CostEstimate(
            flops=int(flops),
            transcendentals=int(M * N) if activation == "gelu" else 0,
            bytes_accessed=int(bytes_accessed)),
    )(*inputs)

    if Mp != M or Np != N:
        out = out[:M, :N]
    return out


def _layernorm_kernel(x_ref, g_ref, b_ref, o_ref, *, eps):
    x = x_ref[...].astype(jnp.float32)
    mu = jnp.mean(x, axis=-1, keepdims=True)
    xc = x - mu
    var = jnp.mean(xc * xc, axis=-1, keepdims=True)
    y = xc * jax.lax.rsqrt(var + eps)
    o_ref[...] = (y * g_ref[...] + b_ref[...]).astype(o_ref.dtype)


def pallas_layernorm(x, g, b, eps=1e-5):
    """Standalone LayerNorm (used only on the post-norm weight-generator path;
    ViT-block LayerNorms are fused into the following matmul)."""
    M, E = x.shape
    tm, Mp = _tile(M, 1024, 8)
    x_p = x if Mp == M else jnp.pad(x, ((0, Mp - M), (0, 0)))
    out = pl.pallas_call(
        partial(_layernorm_kernel, eps=eps),
        out_shape=jax.ShapeDtypeStruct((Mp, E), jnp.float32),
        grid_spec=pltpu.PrefetchScalarGridSpec(
            num_scalar_prefetch=0,
            grid=(Mp // tm,),
            in_specs=[pl.BlockSpec((tm, E), lambda i: (i, 0)),
                      pl.BlockSpec((1, E), lambda i: (0, 0)),
                      pl.BlockSpec((1, E), lambda i: (0, 0))],
            out_specs=pl.BlockSpec((tm, E), lambda i: (i, 0))),
        compiler_params=pltpu.CompilerParams(
            dimension_semantics=("parallel",),
            vmem_limit_bytes=_VMEM_LIMIT),
    )(x_p, g.reshape(1, E), b.reshape(1, E))
    return out if Mp == M else out[:M]


def _attention_kernel(q_ref, k_ref, v_ref, o_ref):
    q = q_ref[0, 0]                                     # (S, D) bf16, pre-scaled
    k = k_ref[0, 0]
    v = v_ref[0, 0]
    s = jnp.einsum("qd,kd->qk", q, k,
                   preferred_element_type=jnp.float32)  # (S, S) f32 scores
    m = jnp.max(s, axis=-1, keepdims=True)
    p = jnp.exp(s - m)
    denom = jnp.sum(p, axis=-1, keepdims=True)
    p = p * pl.reciprocal(denom, approx=True)           # EUP, not VALU divide
    o = jnp.dot(p.astype(jnp.bfloat16), v, preferred_element_type=jnp.float32)
    o_ref[0, 0] = o.astype(o_ref.dtype)


def pallas_attention(q, k, v):
    """q, k, v: (B, H, S, D) with the 1/sqrt(D) scale pre-folded into q (done in
    prepare_params).  One (batch, head) pair per grid step: only an (S, S) f32
    score tile in VMEM, and the B*H grid pipelines / splits across TensorCores.
    TODO(synk): for long sequences add a KV grid axis with online (flash) softmax.
    """
    B, H, S, D = q.shape
    q = q.astype(jnp.bfloat16)
    k = k.astype(jnp.bfloat16)
    v = v.astype(jnp.bfloat16)
    spec = pl.BlockSpec((1, 1, S, D), lambda b, h: (b, h, 0, 0))
    return pl.pallas_call(
        _attention_kernel,
        out_shape=jax.ShapeDtypeStruct((B, H, S, D), jnp.bfloat16),
        grid_spec=pltpu.PrefetchScalarGridSpec(
            num_scalar_prefetch=0,
            grid=(B, H),
            in_specs=[spec, spec, spec],
            out_specs=spec),
        compiler_params=pltpu.CompilerParams(
            dimension_semantics=("parallel", "parallel"),
            vmem_limit_bytes=_VMEM_LIMIT),
        cost_estimate=pl.CostEstimate(
            flops=int(4 * B * H * S * S * D),
            transcendentals=int(B * H * S * S),
            bytes_accessed=int(8 * B * H * S * D)),
    )(q, k, v)


# ----------------------------- model pieces --------------------------------

def sincos_1d(embed_dim, pos):
    """get_1d_sincos_pos_embed_from_grid_torch: pos (M,) -> (M, embed_dim)."""
    omega = jnp.arange(embed_dim // 2, dtype=jnp.float32) / (embed_dim / 2.0)
    omega = 1.0 / (10000.0 ** omega)
    out = pos.reshape(-1)[:, None] * omega[None, :]
    return jnp.concatenate([jnp.sin(out), jnp.cos(out)], axis=1)


def fc_res_layer(x, p):
    y = pallas_linear(x, p["w1"], p["b1"], activation="relu",
                      out_dtype=jnp.bfloat16)
    # out = x + relu(w2(y) + b2), residual fused into the epilogue
    return pallas_linear(y, p["w2"], p["b2"], activation="relu", residual=x)


def multihead_attention(x, p, num_heads):
    """nn.MultiheadAttention on unbatched (S, E) input, Q=K=V=x.
    Returns x + out_proj(attn) (residual fused into the out_proj epilogue)."""
    S, E = x.shape
    D = E // num_heads
    qkv = pallas_linear(x, p["in_proj_w"], p["in_proj_b"],
                        out_dtype=jnp.bfloat16)
    qkv = qkv.reshape(S, 3, num_heads, D).transpose(1, 2, 0, 3)   # (3,H,S,D) bf16
    o = pallas_attention(qkv[0][None], qkv[1][None], qkv[2][None])  # (1,H,S,D)
    o = o[0].transpose(1, 0, 2).reshape(S, E)                       # bf16
    return pallas_linear(o, p["out_proj_w"], p["out_proj_b"], residual=x)


def transformer_encoder_layer(x, p, num_heads):
    # norm_first=False (post-norm), activation='gelu', dropout disabled (p=0)
    x = pallas_layernorm(multihead_attention(x, p, num_heads),
                         p["ln1_g"], p["ln1_b"])
    h = pallas_linear(x, p["lin1_w"], p["lin1_b"], activation="gelu",
                      out_dtype=jnp.bfloat16)
    h = pallas_linear(h, p["lin2_w"], p["lin2_b"], residual=x)
    return pallas_layernorm(h, p["ln2_g"], p["ln2_b"])


def transformer_weight_generator(waves, p, num_heads=4):
    x = jnp.concatenate([p["weight_tokens"], waves, p["bias_token"]], axis=0)
    x = transformer_encoder_layer(x, p["enc"], num_heads)
    wt = p["weight_tokens"].shape[0]  # 128
    weights = pallas_linear(x[wt:-1] + waves, p["fcw_w"], p["fcw_b"])
    bias = pallas_linear(x[-1:], p["fcb_w"], p["fcb_b"])[0]
    return weights, bias


def dynamic_patch_embed(img, wvs, p, *, kernel_size, embed_dim, wv_planes=128,
                        scaler=0.01):
    """Dynamic_MLP_OFA.forward: dynamic conv2d (stride=k, padding=1) as im2col."""
    B, C, H, W = img.shape
    waves = sincos_1d(wv_planes, wvs * 1000.0)
    waves = fc_res_layer(waves, p["fclayer"])
    weight, bias = transformer_weight_generator(waves, p["wg"])
    # weight: (C, k*k*E); matmul layout (C*k*k, E) matches conv weight (E,C,k,k)
    w_mat = (weight.reshape(C * kernel_size * kernel_size, embed_dim)
             * scaler).astype(jnp.bfloat16)
    b_vec = bias * scaler

    # stride == kernel -> non-overlapping tiles of the (cropped) padded image.
    pad = jnp.pad(img, ((0, 0), (0, 0), (1, 1), (1, 1)))
    Ph = (H + 2 - kernel_size) // kernel_size + 1
    Pw = (W + 2 - kernel_size) // kernel_size + 1
    pad = pad[:, :, :Ph * kernel_size, :Pw * kernel_size]
    patches = pad.reshape(B, C, Ph, kernel_size, Pw, kernel_size)
    patches = patches.transpose(0, 2, 4, 1, 3, 5).reshape(
        B * Ph * Pw, C * kernel_size * kernel_size).astype(jnp.bfloat16)

    out = pallas_linear(patches, w_mat, b_vec)   # == conv2d + flatten(2).T(1,2)
    return out.reshape(B, Ph * Pw, embed_dim), waves


def vit_block(x, p, num_heads):
    """timm-style ViT Block: x + Attn(LN1(x)); x + MLP(LN2(x)).
    LN1/LN2 are fused into the qkv / fc1 matmul prologues; residual adds are
    fused into the proj / fc2 matmul epilogues; intermediates are bf16."""
    B, N, E = x.shape
    D = E // num_heads
    x2 = x.reshape(B * N, E)                                        # f32 stream
    qkv = pallas_linear(x2, p["qkv_w"], p["qkv_b"],
                        ln=(p["ln1_g"], p["ln1_b"]), out_dtype=jnp.bfloat16)
    qkv = qkv.reshape(B, N, 3, num_heads, D).transpose(2, 0, 3, 1, 4)  # bf16
    o = pallas_attention(qkv[0], qkv[1], qkv[2])                       # (B,H,N,D)
    o = o.transpose(0, 2, 1, 3).reshape(B * N, E)                      # bf16
    x2 = pallas_linear(o, p["proj_w"], p["proj_b"], residual=x2)       # x + attn
    h = pallas_linear(x2, p["fc1_w"], p["fc1_b"], activation="gelu",
                      ln=(p["ln2_g"], p["ln2_b"]), out_dtype=jnp.bfloat16)
    x2 = pallas_linear(h, p["fc2_w"], p["fc2_b"], residual=x2)         # x + mlp
    return x2.reshape(B, N, E)


def ofa_vit_forward(params, img, wvs, *, kernel_size, embed_dim, num_heads):
    x, _waves = dynamic_patch_embed(img, wvs, params["patch_embed"],
                                    kernel_size=kernel_size,
                                    embed_dim=embed_dim)
    x = x + params["pos_embed"][:, 1:, :]
    cls = params["cls_token"] + params["pos_embed"][:, :1, :]
    cls = jnp.broadcast_to(cls, (x.shape[0], 1, embed_dim))
    x = jnp.concatenate([cls, x], axis=1)
    for bp in params["blocks"]:
        x = vit_block(x, bp, num_heads)
    # global_pool=False, head = Identity -> return full token sequence
    return x


# ----------------------------- parameters ----------------------------------

def init_params(key, *, embed_dim, depth, kernel_size, num_patches,
                wv_planes=128, wg_ffn=2048, mlp_ratio=4.0):
    ks = iter(jax.random.split(key, 64))

    def nrm(shape, std=0.02):
        return jax.random.normal(next(ks), shape, jnp.float32) * std

    def bias(n, val=0.01):
        return jnp.full((n,), val, jnp.float32)

    num_kernel = kernel_size * kernel_size * embed_dim
    hidden = int(embed_dim * mlp_ratio)

    params = {
        "patch_embed": {
            "fclayer": {
                "w1": nrm((wv_planes, wv_planes)), "b1": bias(wv_planes),
                "w2": nrm((wv_planes, wv_planes)), "b2": bias(wv_planes),
            },
            "wg": {
                "weight_tokens": nrm((128, wv_planes)),
                "bias_token": nrm((1, wv_planes)),
                "enc": {
                    "in_proj_w": nrm((wv_planes, 3 * wv_planes)),
                    "in_proj_b": jnp.zeros((3 * wv_planes,), jnp.float32),
                    "out_proj_w": nrm((wv_planes, wv_planes)),
                    "out_proj_b": jnp.zeros((wv_planes,), jnp.float32),
                    "lin1_w": nrm((wv_planes, wg_ffn)), "lin1_b": bias(wg_ffn),
                    "lin2_w": nrm((wg_ffn, wv_planes)), "lin2_b": bias(wv_planes),
                    "ln1_g": jnp.ones((wv_planes,), jnp.float32),
                    "ln1_b": jnp.zeros((wv_planes,), jnp.float32),
                    "ln2_g": jnp.ones((wv_planes,), jnp.float32),
                    "ln2_b": jnp.zeros((wv_planes,), jnp.float32),
                },
                "fcw_w": nrm((wv_planes, num_kernel)), "fcw_b": bias(num_kernel),
                "fcb_w": nrm((wv_planes, embed_dim)), "fcb_b": bias(embed_dim),
            },
        },
        "cls_token": nrm((1, 1, embed_dim)),
        "pos_embed": nrm((1, num_patches + 1, embed_dim)),
        "blocks": [],
    }
    for _ in range(depth):
        params["blocks"].append({
            "ln1_g": jnp.ones((embed_dim,), jnp.float32),
            "ln1_b": jnp.zeros((embed_dim,), jnp.float32),
            "qkv_w": nrm((embed_dim, 3 * embed_dim)),
            "qkv_b": jnp.zeros((3 * embed_dim,), jnp.float32),
            "proj_w": nrm((embed_dim, embed_dim)),
            "proj_b": jnp.zeros((embed_dim,), jnp.float32),
            "ln2_g": jnp.ones((embed_dim,), jnp.float32),
            "ln2_b": jnp.zeros((embed_dim,), jnp.float32),
            "fc1_w": nrm((embed_dim, int(embed_dim * mlp_ratio))),
            "fc1_b": jnp.zeros((int(embed_dim * mlp_ratio),), jnp.float32),
            "fc2_w": nrm((int(embed_dim * mlp_ratio), embed_dim)),
            "fc2_b": jnp.zeros((embed_dim,), jnp.float32),
        })
    return params


def prepare_params(p, *, embed_dim, num_heads, wv_planes=128, wg_heads=4):
    """One-time preprocessing (outside the per-step forward):
    * cast all matmul weights to bf16 (halves weight HBM/DMA bytes),
    * pre-fold the 1/sqrt(head_dim) attention scale into the q projections."""
    bf = lambda w: w.astype(jnp.bfloat16)

    pe = p["patch_embed"]
    wg = pe["wg"]
    enc = wg["enc"]
    fc = pe["fclayer"]

    s_wg = 1.0 / float(wv_planes // wg_heads) ** 0.5
    in_w = enc["in_proj_w"].at[:, :wv_planes].multiply(s_wg)
    in_b = enc["in_proj_b"].at[:wv_planes].multiply(s_wg)

    out = {
        "patch_embed": {
            "fclayer": {"w1": bf(fc["w1"]), "b1": fc["b1"],
                        "w2": bf(fc["w2"]), "b2": fc["b2"]},
            "wg": {
                "weight_tokens": wg["weight_tokens"],
                "bias_token": wg["bias_token"],
                "enc": {
                    "in_proj_w": bf(in_w), "in_proj_b": in_b,
                    "out_proj_w": bf(enc["out_proj_w"]),
                    "out_proj_b": enc["out_proj_b"],
                    "lin1_w": bf(enc["lin1_w"]), "lin1_b": enc["lin1_b"],
                    "lin2_w": bf(enc["lin2_w"]), "lin2_b": enc["lin2_b"],
                    "ln1_g": enc["ln1_g"], "ln1_b": enc["ln1_b"],
                    "ln2_g": enc["ln2_g"], "ln2_b": enc["ln2_b"],
                },
                "fcw_w": bf(wg["fcw_w"]), "fcw_b": wg["fcw_b"],
                "fcb_w": bf(wg["fcb_w"]), "fcb_b": wg["fcb_b"],
            },
        },
        "cls_token": p["cls_token"],
        "pos_embed": p["pos_embed"],
        "blocks": [],
    }

    s = 1.0 / float(embed_dim // num_heads) ** 0.5
    for bp in p["blocks"]:
        qkv_w = bp["qkv_w"].at[:, :embed_dim].multiply(s)
        qkv_b = bp["qkv_b"].at[:embed_dim].multiply(s)
        out["blocks"].append({
            "ln1_g": bp["ln1_g"], "ln1_b": bp["ln1_b"],
            "qkv_w": bf(qkv_w), "qkv_b": qkv_b,
            "proj_w": bf(bp["proj_w"]), "proj_b": bp["proj_b"],
            "ln2_g": bp["ln2_g"], "ln2_b": bp["ln2_b"],
            "fc1_w": bf(bp["fc1_w"]), "fc1_b": bp["fc1_b"],
            "fc2_w": bf(bp["fc2_w"]), "fc2_b": bp["fc2_b"],
        })
    return out


# ------------------------- pure-JAX f32 reference ---------------------------

def _ref_ln(x, g, b, eps=1e-5):
    mu = jnp.mean(x, axis=-1, keepdims=True)
    xc = x - mu
    var = jnp.mean(xc * xc, axis=-1, keepdims=True)
    return xc * jax.lax.rsqrt(var + eps) * g + b


def _ref_gelu(x):
    return 0.5 * x * (1.0 + jax.lax.erf(x * 0.7071067811865476))


def ref_forward(params, img, wvs, *, kernel_size, embed_dim, num_heads,
                wv_planes=128, wg_heads=4, scaler=0.01):
    """Pure-JAX f32 reference of OFAViT.forward (uses the raw f32 params)."""
    pe = params["patch_embed"]
    waves = sincos_1d(wv_planes, wvs * 1000.0)
    fc = pe["fclayer"]
    y = jnp.maximum(waves @ fc["w1"] + fc["b1"], 0.0)
    y = jnp.maximum(y @ fc["w2"] + fc["b2"], 0.0)
    waves = waves + y

    wg, enc = pe["wg"], pe["wg"]["enc"]
    x = jnp.concatenate([wg["weight_tokens"], waves, wg["bias_token"]], axis=0)
    S, E = x.shape
    D = E // wg_heads
    qkv = x @ enc["in_proj_w"] + enc["in_proj_b"]
    split = lambda t: t.reshape(S, wg_heads, D).transpose(1, 0, 2)
    att = jax.nn.softmax(jnp.einsum("hqd,hkd->hqk", split(qkv[:, :E]),
                                    split(qkv[:, E:2 * E])) / (D ** 0.5), axis=-1)
    o = jnp.einsum("hqk,hkd->hqd", att, split(qkv[:, 2 * E:]))
    o = o.transpose(1, 0, 2).reshape(S, E) @ enc["out_proj_w"] + enc["out_proj_b"]
    x = _ref_ln(x + o, enc["ln1_g"], enc["ln1_b"])
    h = _ref_gelu(x @ enc["lin1_w"] + enc["lin1_b"])
    x = _ref_ln(x + (h @ enc["lin2_w"] + enc["lin2_b"]), enc["ln2_g"], enc["ln2_b"])
    wt = wg["weight_tokens"].shape[0]
    weight = (x[wt:-1] + waves) @ wg["fcw_w"] + wg["fcw_b"]
    bias = x[-1] @ wg["fcb_w"] + wg["fcb_b"]

    B, C, Him, Wim = img.shape
    ks = kernel_size
    w_mat = weight.reshape(C * ks * ks, embed_dim) * scaler
    b_vec = bias * scaler
    padded = jnp.pad(img, ((0, 0), (0, 0), (1, 1), (1, 1)))
    Ph = (Him + 2 - ks) // ks + 1
    Pw = (Wim + 2 - ks) // ks + 1
    padded = padded[:, :, :Ph * ks, :Pw * ks]
    patches = padded.reshape(B, C, Ph, ks, Pw, ks).transpose(0, 2, 4, 1, 3, 5)
    patches = patches.reshape(B * Ph * Pw, C * ks * ks)
    tok = (patches @ w_mat + b_vec).reshape(B, Ph * Pw, embed_dim)

    x = tok + params["pos_embed"][:, 1:, :]
    cls = params["cls_token"] + params["pos_embed"][:, :1, :]
    x = jnp.concatenate([jnp.broadcast_to(cls, (B, 1, embed_dim)), x], axis=1)
    Dh = embed_dim // num_heads
    for bp in params["blocks"]:
        Bn, N, E_ = x.shape
        qkv = _ref_ln(x, bp["ln1_g"], bp["ln1_b"]) @ bp["qkv_w"] + bp["qkv_b"]
        qkv = qkv.reshape(Bn, N, 3, num_heads, Dh).transpose(2, 0, 3, 1, 4)
        att = jax.nn.softmax(
            jnp.einsum("bhqd,bhkd->bhqk", qkv[0], qkv[1]) / (Dh ** 0.5), axis=-1)
        o = jnp.einsum("bhqk,bhkd->bhqd", att, qkv[2])
        o = o.transpose(0, 2, 1, 3).reshape(Bn, N, E_)
        x = x + (o @ bp["proj_w"] + bp["proj_b"])
        h2 = _ref_gelu(_ref_ln(x, bp["ln2_g"], bp["ln2_b"]) @ bp["fc1_w"]
                       + bp["fc1_b"])
        x = x + (h2 @ bp["fc2_w"] + bp["fc2_b"])
    return x


# --------------------------------- main -------------------------------------

if __name__ == "__main__":
    # Scaled-down config consistent with OFAViT: kernel/patch size 16 and
    # wv_planes=128 are hard-coded in Dynamic_MLP_OFA; embed_dim/depth/img_size
    # are shrunk for a small synthetic run.
    IMG = 32
    PATCH = 16          # = Dynamic_MLP_OFA kernel_size (fixed at 16)
    EMBED = 32
    DEPTH = 2
    HEADS = 4
    B = 2
    C = 3               # number of input spectral channels / wavelengths
    NUM_PATCHES = (IMG // PATCH) ** 2

    key = jax.random.PRNGKey(0)
    kp, kx = jax.random.split(key)
    raw_params = init_params(kp, embed_dim=EMBED, depth=DEPTH,
                             kernel_size=PATCH, num_patches=NUM_PATCHES)
    params = prepare_params(raw_params, embed_dim=EMBED, num_heads=HEADS)

    img = jax.random.normal(kx, (B, C, IMG, IMG), jnp.float32)
    wave_list = jnp.array([0.665, 0.560, 0.490], jnp.float32)  # RGB wavelengths (um)

    fwd = jax.jit(partial(ofa_vit_forward, kernel_size=PATCH, embed_dim=EMBED,
                          num_heads=HEADS))
    out = jax.block_until_ready(fwd(params, img, wave_list))

    assert out.shape == (B, NUM_PATCHES + 1, EMBED), out.shape
    assert bool(jnp.all(jnp.isfinite(out)))

    # Tolerance-asserted pure-JAX f32 reference (bf16 + approx-reciprocal path
    # deviates slightly from exact f32 math).
    ref = jax.jit(partial(ref_forward, kernel_size=PATCH, embed_dim=EMBED,
                          num_heads=HEADS))(raw_params, img, wave_list)
    err = float(jnp.max(jnp.abs(out - ref)) / (jnp.max(jnp.abs(ref)) + 1e-6))
    assert err < 6e-2, f"mismatch vs pure-JAX reference: {err}"

    print("KERNEL_OK")
</pallas_src>

<mosaic_0001>
module attributes {stable_mosaic.version = 11 : i64} {
  func.func @_linear_kernel(%arg0: i32, %arg1: i32, %arg2: i32, %arg3: memref<3x128xf32, #tpu.memory_space<vmem>>, %arg4: memref<128x128xbf16, #tpu.memory_space<vmem>>, %arg5: memref<1x128xf32, #tpu.memory_space<vmem>>, %arg6: memref<3x128xbf16, #tpu.memory_space<vmem>>) attributes {dimension_semantics = [#tpu.dimension_semantics<parallel>, #tpu.dimension_semantics<parallel>, #tpu.dimension_semantics<arbitrary>], iteration_bounds = array<i64: 1, 1, 1>, scalar_prefetch = 0 : i64, scratch_operands = 0 : i64, tpu.core_type = #tpu.core_type<tc>, window_params = [{transform_indices = @transform_0, window_bounds = array<i64: 3, 128>}, {transform_indices = @transform_1, window_bounds = array<i64: 128, 128>}, {transform_indices = @transform_2, window_bounds = array<i64: 1, 128>}, {transform_indices = @transform_3, window_bounds = array<i64: 3, 128>}]} {
    %c0 = arith.constant 0 : index
    %c0_0 = arith.constant 0 : index
    %0 = vector.load %arg3[%c0, %c0_0] : memref<3x128xf32, #tpu.memory_space<vmem>>, vector<3x128xf32>
    %1 = arith.truncf %0 : vector<3x128xf32> to vector<3x128xbf16>
    %c0_1 = arith.constant 0 : index
    %c0_2 = arith.constant 0 : index
    %2 = vector.load %arg4[%c0_1, %c0_2] : memref<128x128xbf16, #tpu.memory_space<vmem>>, vector<128x128xbf16>
    %cst = arith.constant dense<0.000000e+00> : vector<3x128xf32>
    %3 = tpu.matmul %1, %2, %cst {dimension_numbers = #tpu.dot_dimension_numbers<[1], [0], [0], [1], [0, 0, 1, 1], [], []>} : vector<3x128xbf16>, vector<128x128xbf16>, vector<3x128xf32> -> vector<3x128xf32>
    %c0_3 = arith.constant 0 : index
    %c0_4 = arith.constant 0 : index
    %4 = vector.load %arg5[%c0_3, %c0_4] : memref<1x128xf32, #tpu.memory_space<vmem>>, vector<1x128xf32>
    %5 = vector.broadcast %4 : vector<1x128xf32> to vector<3x128xf32>
    %6 = arith.addf %3, %5 : vector<3x128xf32>
    %cst_5 = arith.constant 0.000000e+00 : f32
    %7 = vector.broadcast %cst_5 : f32 to vector<3x128xf32>
    %8 = arith.maximumf %6, %7 : vector<3x128xf32>
    %9 = arith.truncf %8 : vector<3x128xf32> to vector<3x128xbf16>
    %c0_6 = arith.constant 0 : index
    %c0_7 = arith.constant 0 : index
    %10 = vector.load %arg6[%c0_6, %c0_7] : memref<3x128xbf16, #tpu.memory_space<vmem>>, vector<3x128xbf16>
    tpu.vector_store %arg6[%c0_6, %c0_7], %9 {strides = array<i32>} : memref<3x128xbf16, #tpu.memory_space<vmem>>, vector<3x128xbf16>,
    return
  }
  func.func @transform_0(%arg0: i32, %arg1: i32, %arg2: i32) -> (i32, i32) {
    %c0_i32 = arith.constant 0 : i32
    return %arg0, %arg2 : i32, i32
  }
  func.func @transform_1(%arg0: i32, %arg1: i32, %arg2: i32) -> (i32, i32) {
    %c0_i32 = arith.constant 0 : i32
    return %arg2, %arg1 : i32, i32
  }
  func.func @transform_2(%arg0: i32, %arg1: i32, %arg2: i32) -> (i32, i32) {
    %c0_i32 = arith.constant 0 : i32
    %c0_i32_0 = arith.constant 0 : i32
    return %c0_i32, %arg1 : i32, i32
  }
  func.func @transform_3(%arg0: i32, %arg1: i32, %arg2: i32) -> (i32, i32) {
    %c0_i32 = arith.constant 0 : i32
    return %arg0, %arg1 : i32, i32
  }
}

module attributes {stable_mosaic.version = 11 : i64} {
  func.func @_linear_kernel(%arg0: i32, %arg1: i32, %arg2: i32, %arg3: memref<3x128xbf16, #tpu.memory_space<vmem>>, %arg4: memref<128x128xbf16, #tpu.memory_space<vmem>>, %arg5: memref<1x128xf32, #tpu.memory_space<vmem>>, %arg6: memref<3x128xf32, #tpu.memory_space<vmem>>, %arg7: memref<3x128xf32, #tpu.memory_space<vmem>>) attributes {dimension_semantics = [#tpu.dimension_semantics<parallel>, #tpu.dimension_semantics<parallel>, #tpu.dimension_semantics<arbitrary>], iteration_bounds = array<i64: 1, 1, 1>, scalar_prefetch = 0 : i64, scratch_operands = 0 : i64, tpu.core_type = #tpu.core_type<tc>, window_params = [{transform_indices = @transform_0, window_bounds = array<i64: 3, 128>}, {transform_indices = @transform_1, window_bounds = array<i64: 128, 128>}, {transform_indices = @transform_2, window_bounds = array<i64: 1, 128>}, {transform_indices = @transform_3, window_bounds = array<i64: 3, 128>}, {transform_indices = @transform_4, window_bounds = array<i64: 3, 128>}]} {
    %c0 = arith.constant 0 : index
    %c0_0 = arith.constant 0 : index
    %0 = vector.load %arg3[%c0, %c0_0] : memref<3x128xbf16, #tpu.memory_space<vmem>>, vector<3x128xbf16>
    %c0_1 = arith.constant 0 : index
    %c0_2 = arith.constant 0 : index
    %1 = vector.load %arg4[%c0_1, %c0_2] : memref<128x128xbf16, #tpu.memory_space<vmem>>, vector<128x128xbf16>
    %cst = arith.constant dense<0.000000e+00> : vector<3x128xf32>
    %2 = tpu.matmul %0, %1, %cst {dimension_numbers = #tpu.dot_dimension_numbers<[1], [0], [0], [1], [0, 0, 1, 1], [], []>} : vector<3x128xbf16>, vector<128x128xbf16>, vector<3x128xf32> -> vector<3x128xf32>
    %c0_3 = arith.constant 0 : index
    %c0_4 = arith.constant 0 : index
    %3 = vector.load %arg5[%c0_3, %c0_4] : memref<1x128xf32, #tpu.memory_space<vmem>>, vector<1x128xf32>
    %4 = vector.broadcast %3 : vector<1x128xf32> to vector<3x128xf32>
    %5 = arith.addf %2, %4 : vector<3x128xf32>
    %cst_5 = arith.constant 0.000000e+00 : f32
    %6 = vector.broadcast %cst_5 : f32 to vector<3x128xf32>
    %7 = arith.maximumf %5, %6 : vector<3x128xf32>
    %c0_6 = arith.constant 0 : index
    %c0_7 = arith.constant 0 : index
    %8 = vector.load %arg6[%c0_6, %c0_7] : memref<3x128xf32, #tpu.memory_space<vmem>>, vector<3x128xf32>
    %9 = arith.addf %7, %8 : vector<3x128xf32>
    %c0_8 = arith.constant 0 : index
    %c0_9 = arith.constant 0 : index
    %10 = vector.load %arg7[%c0_8, %c0_9] : memref<3x128xf32, #tpu.memory_space<vmem>>, vector<3x128xf32>
    tpu.vector_store %arg7[%c0_8, %c0_9], %9 {strides = array<i32>} : memref<3x128xf32, #tpu.memory_space<vmem>>, vector<3x128xf32>,
    return
  }
  func.func @transform_0(%arg0: i32, %arg1: i32, %arg2: i32) -> (i32, i32) {
    %c0_i32 = arith.constant 0 : i32
    return %arg0, %arg2 : i32, i32
  }
  func.func @transform_1(%arg0: i32, %arg1: i32, %arg2: i32) -> (i32, i32) {
    %c0_i32 = arith.constant 0 : i32
    return %arg2, %arg1 : i32, i32
  }
  func.func @transform_2(%arg0: i32, %arg1: i32, %arg2: i32) -> (i32, i32) {
    %c0_i32 = arith.constant 0 : i32
    %c0_i32_0 = arith.constant 0 : i32
    return %c0_i32, %arg1 : i32, i32
  }
  func.func @transform_3(%arg0: i32, %arg1: i32, %arg2: i32) -> (i32, i32) {
    %c0_i32 = arith.constant 0 : i32
    return %arg0, %arg1 : i32, i32
  }
  func.func @transform_4(%arg0: i32, %arg1: i32, %arg2: i32) -> (i32, i32) {
    %c0_i32 = arith.constant 0 : i32
    return %arg0, %arg1 : i32, i32
  }
}

module attributes {stable_mosaic.version = 11 : i64} {
  func.func @_linear_kernel(%arg0: i32, %arg1: i32, %arg2: i32, %arg3: memref<132x128xf32, #tpu.memory_space<vmem>>, %arg4: memref<128x384xbf16, #tpu.memory_space<vmem>>, %arg5: memref<1x384xf32, #tpu.memory_space<vmem>>, %arg6: memref<132x384xbf16, #tpu.memory_space<vmem>>) attributes {dimension_semantics = [#tpu.dimension_semantics<parallel>, #tpu.dimension_semantics<parallel>, #tpu.dimension_semantics<arbitrary>], iteration_bounds = array<i64: 1, 1, 1>, scalar_prefetch = 0 : i64, scratch_operands = 0 : i64, tpu.core_type = #tpu.core_type<tc>, window_params = [{transform_indices = @transform_0, window_bounds = array<i64: 132, 128>}, {transform_indices = @transform_1, window_bounds = array<i64: 128, 384>}, {transform_indices = @transform_2, window_bounds = array<i64: 1, 384>}, {transform_indices = @transform_3, window_bounds = array<i64: 132, 384>}]} {
    %c0 = arith.constant 0 : index
    %c0_0 = arith.constant 0 : index
    %0 = vector.load %arg3[%c0, %c0_0] : memref<132x128xf32, #tpu.memory_space<vmem>>, vector<132x128xf32>
    %1 = arith.truncf %0 : vector<132x128xf32> to vector<132x128xbf16>
    %c0_1 = arith.constant 0 : index
    %c0_2 = arith.constant 0 : index
    %2 = vector.load %arg4[%c0_1, %c0_2] : memref<128x384xbf16, #tpu.memory_space<vmem>>, vector<128x384xbf16>
    %cst = arith.constant dense<0.000000e+00> : vector<132x384xf32>
    %3 = tpu.matmul %1, %2, %cst {dimension_numbers = #tpu.dot_dimension_numbers<[1], [0], [0], [1], [0, 0, 1, 1], [], []>} : vector<132x128xbf16>, vector<128x384xbf16>, vector<132x384xf32> -> vector<132x384xf32>
    %c0_3 = arith.constant 0 : index
    %c0_4 = arith.constant 0 : index
    %4 = vector.load %arg5[%c0_3, %c0_4] : memref<1x384xf32, #tpu.memory_space<vmem>>, vector<1x384xf32>
    %5 = vector.broadcast %4 : vector<1x384xf32> to vector<132x384xf32>
    %6 = arith.addf %3, %5 : vector<132x384xf32>
    %7 = arith.truncf %6 : vector<132x384xf32> to vector<132x384xbf16>
    %c0_5 = arith.constant 0 : index
    %c0_6 = arith.constant 0 : index
    %8 = vector.load %arg6[%c0_5, %c0_6] : memref<132x384xbf16, #tpu.memory_space<vmem>>, vector<132x384xbf16>
    tpu.vector_store %arg6[%c0_5, %c0_6], %7 {strides = array<i32>} : memref<132x384xbf16, #tpu.memory_space<vmem>>, vector<132x384xbf16>,
    return
  }
  func.func @transform_0(%arg0: i32, %arg1: i32, %arg2: i32) -> (i32, i32) {
    %c0_i32 = arith.constant 0 : i32
    return %arg0, %arg2 : i32, i32
  }
  func.func @transform_1(%arg0: i32, %arg1: i32, %arg2: i32) -> (i32, i32) {
    %c0_i32 = arith.constant 0 : i32
    return %arg2, %arg1 : i32, i32
  }
  func.func @transform_2(%arg0: i32, %arg1: i32, %arg2: i32) -> (i32, i32) {
    %c0_i32 = arith.constant 0 : i32
    %c0_i32_0 = arith.constant 0 : i32
    return %c0_i32, %arg1 : i32, i32
  }
  func.func @transform_3(%arg0: i32, %arg1: i32, %arg2: i32) -> (i32, i32) {
    %c0_i32 = arith.constant 0 : i32
    return %arg0, %arg1 : i32, i32
  }
}

module attributes {stable_mosaic.version = 11 : i64} {
  func.func @_attention_kernel(%arg0: i32, %arg1: i32, %arg2: memref<1x1x132x32xbf16, #tpu.memory_space<vmem>>, %arg3: memref<1x1x132x32xbf16, #tpu.memory_space<vmem>>, %arg4: memref<1x1x132x32xbf16, #tpu.memory_space<vmem>>, %arg5: memref<1x1x132x32xbf16, #tpu.memory_space<vmem>>) attributes {dimension_semantics = [#tpu.dimension_semantics<parallel>, #tpu.dimension_semantics<parallel>], iteration_bounds = array<i64: 1, 4>, scalar_prefetch = 0 : i64, scratch_operands = 0 : i64, tpu.core_type = #tpu.core_type<tc>, window_params = [{transform_indices = @transform_0, window_bounds = array<i64: 1, 1, 132, 32>}, {transform_indices = @transform_1, window_bounds = array<i64: 1, 1, 132, 32>}, {transform_indices = @transform_2, window_bounds = array<i64: 1, 1, 132, 32>}, {transform_indices = @transform_3, window_bounds = array<i64: 1, 1, 132, 32>}]} {
    %c0 = arith.constant 0 : index
    %c0_0 = arith.constant 0 : index
    %c0_1 = arith.constant 0 : index
    %c0_2 = arith.constant 0 : index
    %0 = vector.load %arg2[%c0, %c0_0, %c0_1, %c0_2] : memref<1x1x132x32xbf16, #tpu.memory_space<vmem>>, vector<1x1x132x32xbf16>
    %1 = vector.shape_cast %0 : vector<1x1x132x32xbf16> to vector<132x32xbf16>
    %c0_3 = arith.constant 0 : index
    %c0_4 = arith.constant 0 : index
    %c0_5 = arith.constant 0 : index
    %c0_6 = arith.constant 0 : index
    %2 = vector.load %arg3[%c0_3, %c0_4, %c0_5, %c0_6] : memref<1x1x132x32xbf16, #tpu.memory_space<vmem>>, vector<1x1x132x32xbf16>
    %3 = vector.shape_cast %2 : vector<1x1x132x32xbf16> to vector<132x32xbf16>
    %c0_7 = arith.constant 0 : index
    %c0_8 = arith.constant 0 : index
    %c0_9 = arith.constant 0 : index
    %c0_10 = arith.constant 0 : index
    %4 = vector.load %arg4[%c0_7, %c0_8, %c0_9, %c0_10] : memref<1x1x132x32xbf16, #tpu.memory_space<vmem>>, vector<1x1x132x32xbf16>
    %5 = vector.shape_cast %4 : vector<1x1x132x32xbf16> to vector<132x32xbf16>
    "tpu.trace_start"() <{level = 10 : i32, message = "qd,kd->qk"}> : () -> ()
    %cst = arith.constant dense<0.000000e+00> : vector<132x132xf32>
    %6 = tpu.matmul %1, %3, %cst {dimension_numbers = #tpu.dot_dimension_numbers<[1], [1], [0], [0], [0, 0, 1, 0], [], []>} : vector<132x32xbf16>, vector<132x32xbf16>, vector<132x132xf32> -> vector<132x132xf32>
    "tpu.trace_stop"() : () -> ()
    %cst_11 = arith.constant dense<0xFF800000> : vector<132xf32>
    %7 = vector.multi_reduction <maximumf>, %6, %cst_11 [1] : vector<132x132xf32> to vector<132xf32>
    %8 = vector.shape_cast %7 : vector<132xf32> to vector<132x1xf32>
    %9 = vector.broadcast %8 : vector<132x1xf32> to vector<132x132xf32>
    %10 = arith.subf %6, %9 : vector<132x132xf32>
    %11 = math.exp %10 : vector<132x132xf32>
    %cst_12 = arith.constant dense<0.000000e+00> : vector<132xf32>
    %12 = vector.multi_reduction <add>, %11, %cst_12 [1] : vector<132x132xf32> to vector<132xf32>
    %13 = vector.shape_cast %12 : vector<132xf32> to vector<132x1xf32>
    %14 = tpu.reciprocal %13 {approx = true} : vector<132x1xf32> -> vector<132x1xf32>
    %15 = vector.broadcast %14 : vector<132x1xf32> to vector<132x132xf32>
    %16 = arith.mulf %11, %15 : vector<132x132xf32>
    %17 = arith.truncf %16 : vector<132x132xf32> to vector<132x132xbf16>
    %cst_13 = arith.constant dense<0.000000e+00> : vector<132x32xf32>
    %18 = tpu.matmul %17, %5, %cst_13 {dimension_numbers = #tpu.dot_dimension_numbers<[1], [0], [0], [1], [0, 0, 1, 1], [], []>} : vector<132x132xbf16>, vector<132x32xbf16>, vector<132x32xf32> -> vector<132x32xf32>
    %19 = arith.truncf %18 : vector<132x32xf32> to vector<132x32xbf16>
    %c0_14 = arith.constant 0 : index
    %c0_15 = arith.constant 0 : index
    %c0_16 = arith.constant 0 : index
    %c0_17 = arith.constant 0 : index
    %20 = vector.load %arg5[%c0_14, %c0_15, %c0_16, %c0_17] : memref<1x1x132x32xbf16, #tpu.memory_space<vmem>>, vector<1x1x132x32xbf16>
    %21 = vector.shape_cast %20 : vector<1x1x132x32xbf16> to vector<132x32xbf16>
    %22 = vector.shape_cast %19 : vector<132x32xbf16> to vector<1x1x132x32xbf16>
    tpu.vector_store %arg5[%c0_14, %c0_15, %c0_16, %c0_17], %22 {strides = array<i32>} : memref<1x1x132x32xbf16, #tpu.memory_space<vmem>>, vector<1x1x132x32xbf16>,
    return
  }
  func.func @transform_0(%arg0: i32, %arg1: i32) -> (i32, i32, i32, i32) {
    %c0_i32 = arith.constant 0 : i32
    %c0_i32_0 = arith.constant 0 : i32
    %c0_i32_1 = arith.constant 0 : i32
    return %arg0, %arg1, %c0_i32, %c0_i32_0 : i32, i32, i32, i32
  }
  func.func @transform_1(%arg0: i32, %arg1: i32) -> (i32, i32, i32, i32) {
    %c0_i32 = arith.constant 0 : i32
    %c0_i32_0 = arith.constant 0 : i32
    %c0_i32_1 = arith.constant 0 : i32
    return %arg0, %arg1, %c0_i32, %c0_i32_0 : i32, i32, i32, i32
  }
  func.func @transform_2(%arg0: i32, %arg1: i32) -> (i32, i32, i32, i32) {
    %c0_i32 = arith.constant 0 : i32
    %c0_i32_0 = arith.constant 0 : i32
    %c0_i32_1 = arith.constant 0 : i32
    return %arg0, %arg1, %c0_i32, %c0_i32_0 : i32, i32, i32, i32
  }
  func.func @transform_3(%arg0: i32, %arg1: i32) -> (i32, i32, i32, i32) {
    %c0_i32 = arith.constant 0 : i32
    %c0_i32_0 = arith.constant 0 : i32
    %c0_i32_1 = arith.constant 0 : i32
    return %arg0, %arg1, %c0_i32, %c0_i32_0 : i32, i32, i32, i32
  }
}

module attributes {stable_mosaic.version = 11 : i64} {
  func.func @_linear_kernel(%arg0: i32, %arg1: i32, %arg2: i32, %arg3: memref<132x128xbf16, #tpu.memory_space<vmem>>, %arg4: memref<128x128xbf16, #tpu.memory_space<vmem>>, %arg5: memref<1x128xf32, #tpu.memory_space<vmem>>, %arg6: memref<132x128xf32, #tpu.memory_space<vmem>>, %arg7: memref<132x128xf32, #tpu.memory_space<vmem>>) attributes {dimension_semantics = [#tpu.dimension_semantics<parallel>, #tpu.dimension_semantics<parallel>, #tpu.dimension_semantics<arbitrary>], iteration_bounds = array<i64: 1, 1, 1>, scalar_prefetch = 0 : i64, scratch_operands = 0 : i64, tpu.core_type = #tpu.core_type<tc>, window_params = [{transform_indices = @transform_0, window_bounds = array<i64: 132, 128>}, {transform_indices = @transform_1, window_bounds = array<i64: 128, 128>}, {transform_indices = @transform_2, window_bounds = array<i64: 1, 128>}, {transform_indices = @transform_3, window_bounds = array<i64: 132, 128>}, {transform_indices = @transform_4, window_bounds = array<i64: 132, 128>}]} {
    %c0 = arith.constant 0 : index
    %c0_0 = arith.constant 0 : index
    %0 = vector.load %arg3[%c0, %c0_0] : memref<132x128xbf16, #tpu.memory_space<vmem>>, vector<132x128xbf16>
    %c0_1 = arith.constant 0 : index
    %c0_2 = arith.constant 0 : index
    %1 = vector.load %arg4[%c0_1, %c0_2] : memref<128x128xbf16, #tpu.memory_space<vmem>>, vector<128x128xbf16>
    %cst = arith.constant dense<0.000000e+00> : vector<132x128xf32>
    %2 = tpu.matmul %0, %1, %cst {dimension_numbers = #tpu.dot_dimension_numbers<[1], [0], [0], [1], [0, 0, 1, 1], [], []>} : vector<132x128xbf16>, vector<128x128xbf16>, vector<132x128xf32> -> vector<132x128xf32>
    %c0_3 = arith.constant 0 : index
    %c0_4 = arith.constant 0 : index
    %3 = vector.load %arg5[%c0_3, %c0_4] : memref<1x128xf32, #tpu.memory_space<vmem>>, vector<1x128xf32>
    %4 = vector.broadcast %3 : vector<1x128xf32> to vector<132x128xf32>
    %5 = arith.addf %2, %4 : vector<132x128xf32>
    %c0_5 = arith.constant 0 : index
    %c0_6 = arith.constant 0 : index
    %6 = vector.load %arg6[%c0_5, %c0_6] : memref<132x128xf32, #tpu.memory_space<vmem>>, vector<132x128xf32>
    %7 = arith.addf %5, %6 : vector<132x128xf32>
    %c0_7 = arith.constant 0 : index
    %c0_8 = arith.constant 0 : index
    %8 = vector.load %arg7[%c0_7, %c0_8] : memref<132x128xf32, #tpu.memory_space<vmem>>, vector<132x128xf32>
    tpu.vector_store %arg7[%c0_7, %c0_8], %7 {strides = array<i32>} : memref<132x128xf32, #tpu.memory_space<vmem>>, vector<132x128xf32>,
    return
  }
  func.func @transform_0(%arg0: i32, %arg1: i32, %arg2: i32) -> (i32, i32) {
    %c0_i32 = arith.constant 0 : i32
    return %arg0, %arg2 : i32, i32
  }
  func.func @transform_1(%arg0: i32, %arg1: i32, %arg2: i32) -> (i32, i32) {
    %c0_i32 = arith.constant 0 : i32
    return %arg2, %arg1 : i32, i32
  }
  func.func @transform_2(%arg0: i32, %arg1: i32, %arg2: i32) -> (i32, i32) {
    %c0_i32 = arith.constant 0 : i32
    %c0_i32_0 = arith.constant 0 : i32
    return %c0_i32, %arg1 : i32, i32
  }
  func.func @transform_3(%arg0: i32, %arg1: i32, %arg2: i32) -> (i32, i32) {
    %c0_i32 = arith.constant 0 : i32
    return %arg0, %arg1 : i32, i32
  }
  func.func @transform_4(%arg0: i32, %arg1: i32, %arg2: i32) -> (i32, i32) {
    %c0_i32 = arith.constant 0 : i32
    return %arg0, %arg1 : i32, i32
  }
}

module attributes {stable_mosaic.version = 11 : i64} {
  func.func @_layernorm_kernel(%arg0: i32, %arg1: memref<132x128xf32, #tpu.memory_space<vmem>>, %arg2: memref<1x128xf32, #tpu.memory_space<vmem>>, %arg3: memref<1x128xf32, #tpu.memory_space<vmem>>, %arg4: memref<132x128xf32, #tpu.memory_space<vmem>>) attributes {dimension_semantics = [#tpu.dimension_semantics<parallel>], iteration_bounds = array<i64: 1>, scalar_prefetch = 0 : i64, scratch_operands = 0 : i64, tpu.core_type = #tpu.core_type<tc>, window_params = [{transform_indices = @transform_0, window_bounds = array<i64: 132, 128>}, {pipeline_mode = #tpu.pipeline_mode<synchronous>, transform_indices = @transform_1, window_bounds = array<i64: 1, 128>}, {pipeline_mode = #tpu.pipeline_mode<synchronous>, transform_indices = @transform_2, window_bounds = array<i64: 1, 128>}, {transform_indices = @transform_3, window_bounds = array<i64: 132, 128>}]} {
    %c0 = arith.constant 0 : index
    %c0_0 = arith.constant 0 : index
    %0 = vector.load %arg1[%c0, %c0_0] : memref<132x128xf32, #tpu.memory_space<vmem>>, vector<132x128xf32>
    %cst = arith.constant dense<0.000000e+00> : vector<132xf32>
    %1 = vector.multi_reduction <add>, %0, %cst [1] : vector<132x128xf32> to vector<132xf32>
    %2 = vector.shape_cast %1 : vector<132xf32> to vector<132x1xf32>
    %cst_1 = arith.constant 1.280000e+02 : f32
    %3 = vector.broadcast %cst_1 : f32 to vector<132x1xf32>
    %4 = arith.divf %2, %3 : vector<132x1xf32>
    %5 = vector.broadcast %4 : vector<132x1xf32> to vector<132x128xf32>
    %6 = arith.subf %0, %5 : vector<132x128xf32>
    %7 = arith.mulf %6, %6 : vector<132x128xf32>
    %cst_2 = arith.constant dense<0.000000e+00> : vector<132xf32>
    %8 = vector.multi_reduction <add>, %7, %cst_2 [1] : vector<132x128xf32> to vector<132xf32>
    %9 = vector.shape_cast %8 : vector<132xf32> to vector<132x1xf32>
    %cst_3 = arith.constant 1.280000e+02 : f32
    %10 = vector.broadcast %cst_3 : f32 to vector<132x1xf32>
    %11 = arith.divf %9, %10 : vector<132x1xf32>
    %cst_4 = arith.constant 9.99999974E-6 : f32
    %12 = vector.broadcast %cst_4 : f32 to vector<132x1xf32>
    %13 = arith.addf %11, %12 : vector<132x1xf32>
    %14 = math.rsqrt %13 : vector<132x1xf32>
    %15 = vector.broadcast %14 : vector<132x1xf32> to vector<132x128xf32>
    %16 = arith.mulf %6, %15 : vector<132x128xf32>
    %c0_5 = arith.constant 0 : index
    %c0_6 = arith.constant 0 : index
    %17 = vector.load %arg2[%c0_5, %c0_6] : memref<1x128xf32, #tpu.memory_space<vmem>>, vector<1x128xf32>
    %18 = vector.broadcast %17 : vector<1x128xf32> to vector<132x128xf32>
    %19 = arith.mulf %16, %18 : vector<132x128xf32>
    %c0_7 = arith.constant 0 : index
    %c0_8 = arith.constant 0 : index
    %20 = vector.load %arg3[%c0_7, %c0_8] : memref<1x128xf32, #tpu.memory_space<vmem>>, vector<1x128xf32>
    %21 = vector.broadcast %20 : vector<1x128xf32> to vector<132x128xf32>
    %22 = arith.addf %19, %21 : vector<132x128xf32>
    %c0_9 = arith.constant 0 : index
    %c0_10 = arith.constant 0 : index
    %23 = vector.load %arg4[%c0_9, %c0_10] : memref<132x128xf32, #tpu.memory_space<vmem>>, vector<132x128xf32>
    tpu.vector_store %arg4[%c0_9, %c0_10], %22 {strides = array<i32>} : memref<132x128xf32, #tpu.memory_space<vmem>>, vector<132x128xf32>,
    return
  }
  func.func @transform_0(%arg0: i32) -> (i32, i32) {
    %c0_i32 = arith.constant 0 : i32
    %c0_i32_0 = arith.constant 0 : i32
    return %arg0, %c0_i32 : i32, i32
  }
  func.func @transform_1(%arg0: i32) -> (i32, i32) {
    %c0_i32 = arith.constant 0 : i32
    %c0_i32_0 = arith.constant 0 : i32
    %c0_i32_1 = arith.constant 0 : i32
    return %c0_i32, %c0_i32_0 : i32, i32
  }
  func.func @transform_2(%arg0: i32) -> (i32, i32) {
    %c0_i32 = arith.constant 0 : i32
    %c0_i32_0 = arith.constant 0 : i32
    %c0_i32_1 = arith.constant 0 : i32
    return %c0_i32, %c0_i32_0 : i32, i32
  }
  func.func @transform_3(%arg0: i32) -> (i32, i32) {
    %c0_i32 = arith.constant 0 : i32
    %c0_i32_0 = arith.constant 0 : i32
    return %arg0, %c0_i32 : i32, i32
  }
}

module attributes {stable_mosaic.version = 11 : i64} {
  func.func @_linear_kernel(%arg0: i32, %arg1: i32, %arg2: i32, %arg3: memref<132x128xf32, #tpu.memory_space<vmem>>, %arg4: memref<128x512xbf16, #tpu.memory_space<vmem>>, %arg5: memref<1x512xf32, #tpu.memory_space<vmem>>, %arg6: memref<132x512xbf16, #tpu.memory_space<vmem>>) attributes {dimension_semantics = [#tpu.dimension_semantics<parallel>, #tpu.dimension_semantics<parallel>, #tpu.dimension_semantics<arbitrary>], iteration_bounds = array<i64: 1, 4, 1>, scalar_prefetch = 0 : i64, scratch_operands = 0 : i64, tpu.core_type = #tpu.core_type<tc>, window_params = [{transform_indices = @transform_0, window_bounds = array<i64: 132, 128>}, {transform_indices = @transform_1, window_bounds = array<i64: 128, 512>}, {transform_indices = @transform_2, window_bounds = array<i64: 1, 512>}, {transform_indices = @transform_3, window_bounds = array<i64: 132, 512>}]} {
    %c0 = arith.constant 0 : index
    %c0_0 = arith.constant 0 : index
    %0 = vector.load %arg3[%c0, %c0_0] : memref<132x128xf32, #tpu.memory_space<vmem>>, vector<132x128xf32>
    %1 = arith.truncf %0 : vector<132x128xf32> to vector<132x128xbf16>
    %c0_1 = arith.constant 0 : index
    %c0_2 = arith.constant 0 : index
    %2 = vector.load %arg4[%c0_1, %c0_2] : memref<128x512xbf16, #tpu.memory_space<vmem>>, vector<128x512xbf16>
    %cst = arith.constant dense<0.000000e+00> : vector<132x512xf32>
    %3 = tpu.matmul %1, %2, %cst {dimension_numbers = #tpu.dot_dimension_numbers<[1], [0], [0], [1], [0, 0, 1, 1], [], []>} : vector<132x128xbf16>, vector<128x512xbf16>, vector<132x512xf32> -> vector<132x512xf32>
    %c0_3 = arith.constant 0 : index
    %c0_4 = arith.constant 0 : index
    %4 = vector.load %arg5[%c0_3, %c0_4] : memref<1x512xf32, #tpu.memory_space<vmem>>, vector<1x512xf32>
    %5 = vector.broadcast %4 : vector<1x512xf32> to vector<132x512xf32>
    %6 = arith.addf %3, %5 : vector<132x512xf32>
    %cst_5 = arith.constant 5.000000e-01 : f32
    %7 = vector.broadcast %cst_5 : f32 to vector<132x512xf32>
    %8 = arith.mulf %7, %6 : vector<132x512xf32>
    %cst_6 = arith.constant 0.707106769 : f32
    %9 = vector.broadcast %cst_6 : f32 to vector<132x512xf32>
    %10 = arith.mulf %6, %9 : vector<132x512xf32>
    %11 = math.erf %10 : vector<132x512xf32>
    %cst_7 = arith.constant 1.000000e+00 : f32
    %12 = vector.broadcast %cst_7 : f32 to vector<132x512xf32>
    %13 = arith.addf %12, %11 : vector<132x512xf32>
    %14 = arith.mulf %8, %13 : vector<132x512xf32>
    %15 = arith.truncf %14 : vector<132x512xf32> to vector<132x512xbf16>
    %c0_8 = arith.constant 0 : index
    %c0_9 = arith.constant 0 : index
    %16 = vector.load %arg6[%c0_8, %c0_9] : memref<132x512xbf16, #tpu.memory_space<vmem>>, vector<132x512xbf16>
    tpu.vector_store %arg6[%c0_8, %c0_9], %15 {strides = array<i32>} : memref<132x512xbf16, #tpu.memory_space<vmem>>, vector<132x512xbf16>,
    return
  }
  func.func @transform_0(%arg0: i32, %arg1: i32, %arg2: i32) -> (i32, i32) {
    %c0_i32 = arith.constant 0 : i32
    return %arg0, %arg2 : i32, i32
  }
  func.func @transform_1(%arg0: i32, %arg1: i32, %arg2: i32) -> (i32, i32) {
    %c0_i32 = arith.constant 0 : i32
    return %arg2, %arg1 : i32, i32
  }
  func.func @transform_2(%arg0: i32, %arg1: i32, %arg2: i32) -> (i32, i32) {
    %c0_i32 = arith.constant 0 : i32
    %c0_i32_0 = arith.constant 0 : i32
    return %c0_i32, %arg1 : i32, i32
  }
  func.func @transform_3(%arg0: i32, %arg1: i32, %arg2: i32) -> (i32, i32) {
    %c0_i32 = arith.constant 0 : i32
    return %arg0, %arg1 : i32, i32
  }
}

module attributes {stable_mosaic.version = 11 : i64} {
  func.func @_linear_kernel(%arg0: i32, %arg1: i32, %arg2: i32, %arg3: memref<132x1024xbf16, #tpu.memory_space<vmem>>, %arg4: memref<1024x128xbf16, #tpu.memory_space<vmem>>, %arg5: memref<1x128xf32, #tpu.memory_space<vmem>>, %arg6: memref<132x128xf32, #tpu.memory_space<vmem>>, %arg7: memref<132x128xf32, #tpu.memory_space<vmem>>, %arg8: memref<132x128xf32, #tpu.memory_space<vmem>>) attributes {dimension_semantics = [#tpu.dimension_semantics<parallel>, #tpu.dimension_semantics<parallel>, #tpu.dimension_semantics<arbitrary>], iteration_bounds = array<i64: 1, 1, 2>, scalar_prefetch = 0 : i64, scratch_operands = 1 : i64, tpu.core_type = #tpu.core_type<tc>, window_params = [{transform_indices = @transform_0, window_bounds = array<i64: 132, 1024>}, {transform_indices = @transform_1, window_bounds = array<i64: 1024, 128>}, {transform_indices = @transform_2, window_bounds = array<i64: 1, 128>}, {transform_indices = @transform_3, window_bounds = array<i64: 132, 128>}, {transform_indices = @transform_4, window_bounds = array<i64: 132, 128>}]} {
    %c0 = arith.constant 0 : index
    %c0_0 = arith.constant 0 : index
    %0 = vector.load %arg3[%c0, %c0_0] : memref<132x1024xbf16, #tpu.memory_space<vmem>>, vector<132x1024xbf16>
    %c0_1 = arith.constant 0 : index
    %c0_2 = arith.constant 0 : index
    %1 = vector.load %arg4[%c0_1, %c0_2] : memref<1024x128xbf16, #tpu.memory_space<vmem>>, vector<1024x128xbf16>
    %cst = arith.constant dense<0.000000e+00> : vector<132x128xf32>
    %2 = tpu.matmul %0, %1, %cst {dimension_numbers = #tpu.dot_dimension_numbers<[1], [0], [0], [1], [0, 0, 1, 1], [], []>} : vector<132x1024xbf16>, vector<1024x128xbf16>, vector<132x128xf32> -> vector<132x128xf32>
    %c0_i32 = arith.constant 0 : i32
    %3 = arith.cmpi eq, %arg2, %c0_i32 : i32
    %4 = arith.extui %3 : i1 to i32
    %c0_i32_3 = arith.constant 0 : i32
    %5 = arith.cmpi ne, %4, %c0_i32_3 : i32
    scf.if %5 {
      %cst_9 = arith.constant 0.000000e+00 : f32
      %12 = vector.broadcast %cst_9 : f32 to vector<132x128xf32>
      %c0_10 = arith.constant 0 : index
      %c0_11 = arith.constant 0 : index
      %13 = vector.load %arg8[%c0_10, %c0_11] : memref<132x128xf32, #tpu.memory_space<vmem>>, vector<132x128xf32>
      tpu.vector_store %arg8[%c0_10, %c0_11], %12 {strides = array<i32>} : memref<132x128xf32, #tpu.memory_space<vmem>>, vector<132x128xf32>,
    } else {
    }
    %c0_4 = arith.constant 0 : index
    %c0_5 = arith.constant 0 : index
    %6 = vector.load %arg8[%c0_4, %c0_5] : memref<132x128xf32, #tpu.memory_space<vmem>>, vector<132x128xf32>
    %7 = arith.addf %6, %2 : vector<132x128xf32>
    %c0_6 = arith.constant 0 : index
    %c0_7 = arith.constant 0 : index
    %8 = vector.load %arg8[%c0_6, %c0_7] : memref<132x128xf32, #tpu.memory_space<vmem>>, vector<132x128xf32>
    tpu.vector_store %arg8[%c0_6, %c0_7], %7 {strides = array<i32>} : memref<132x128xf32, #tpu.memory_space<vmem>>, vector<132x128xf32>,
    %c1_i32 = arith.constant 1 : i32
    %9 = arith.cmpi eq, %arg2, %c1_i32 : i32
    %10 = arith.extui %9 : i1 to i32
    %c0_i32_8 = arith.constant 0 : i32
    %11 = arith.cmpi ne, %10, %c0_i32_8 : i32
    scf.if %11 {
      %c0_9 = arith.constant 0 : index
      %c0_10 = arith.constant 0 : index
      %12 = vector.load %arg8[%c0_9, %c0_10] : memref<132x128xf32, #tpu.memory_space<vmem>>, vector<132x128xf32>
      %c0_11 = arith.constant 0 : index
      %c0_12 = arith.constant 0 : index
      %13 = vector.load %arg5[%c0_11, %c0_12] : memref<1x128xf32, #tpu.memory_space<vmem>>, vector<1x128xf32>
      %14 = vector.broadcast %13 : vector<1x128xf32> to vector<132x128xf32>
      %15 = arith.addf %12, %14 : vector<132x128xf32>
      %c0_13 = arith.constant 0 : index
      %c0_14 = arith.constant 0 : index
      %16 = vector.load %arg6[%c0_13, %c0_14] : memref<132x128xf32, #tpu.memory_space<vmem>>, vector<132x128xf32>
      %17 = arith.addf %15, %16 : vector<132x128xf32>
      %c0_15 = arith.constant 0 : index
      %c0_16 = arith.constant 0 : index
      %18 = vector.load %arg7[%c0_15, %c0_16] : memref<132x128xf32, #tpu.memory_space<vmem>>, vector<132x128xf32>
      tpu.vector_store %arg7[%c0_15, %c0_16], %17 {strides = array<i32>} : memref<132x128xf32, #tpu.memory_space<vmem>>, vector<132x128xf32>,
    } else {
    }
    return
  }
  func.func @transform_0(%arg0: i32, %arg1: i32, %arg2: i32) -> (i32, i32) {
    %c0_i32 = arith.constant 0 : i32
    return %arg0, %arg2 : i32, i32
  }
  func.func @transform_1(%arg0: i32, %arg1: i32, %arg2: i32) -> (i32, i32) {
    %c0_i32 = arith.constant 0 : i32
    return %arg2, %arg1 : i32, i32
  }
  func.func @transform_2(%arg0: i32, %arg1: i32, %arg2: i32) -> (i32, i32) {
    %c0_i32 = arith.constant 0 : i32
    %c0_i32_0 = arith.constant 0 : i32
    return %c0_i32, %arg1 : i32, i32
  }
  func.func @transform_3(%arg0: i32, %arg1: i32, %arg2: i32) -> (i32, i32) {
    %c0_i32 = arith.constant 0 : i32
    return %arg0, %arg1 : i32, i32
  }
  func.func @transform_4(%arg0: i32, %arg1: i32, %arg2: i32) -> (i32, i32) {
    %c0_i32 = arith.constant 0 : i32
    return %arg0, %arg1 : i32, i32
  }
}

module attributes {stable_mosaic.version = 11 : i64} {
  func.func @_linear_kernel(%arg0: i32, %arg1: i32, %arg2: i32, %arg3: memref<3x128xf32, #tpu.memory_space<vmem>>, %arg4: memref<128x512xbf16, #tpu.memory_space<vmem>>, %arg5: memref<1x512xf32, #tpu.memory_space<vmem>>, %arg6: memref<3x512xf32, #tpu.memory_space<vmem>>) attributes {dimension_semantics = [#tpu.dimension_semantics<parallel>, #tpu.dimension_semantics<parallel>, #tpu.dimension_semantics<arbitrary>], iteration_bounds = array<i64: 1, 16, 1>, scalar_prefetch = 0 : i64, scratch_operands = 0 : i64, tpu.core_type = #tpu.core_type<tc>, window_params = [{transform_indices = @transform_0, window_bounds = array<i64: 3, 128>}, {transform_indices = @transform_1, window_bounds = array<i64: 128, 512>}, {transform_indices = @transform_2, window_bounds = array<i64: 1, 512>}, {transform_indices = @transform_3, window_bounds = array<i64: 3, 512>}]} {
    %c0 = arith.constant 0 : index
    %c0_0 = arith.constant 0 : index
    %0 = vector.load %arg3[%c0, %c0_0] : memref<3x128xf32, #tpu.memory_space<vmem>>, vector<3x128xf32>
    %1 = arith.truncf %0 : vector<3x128xf32> to vector<3x128xbf16>
    %c0_1 = arith.constant 0 : index
    %c0_2 = arith.constant 0 : index
    %2 = vector.load %arg4[%c0_1, %c0_2] : memref<128x512xbf16, #tpu.memory_space<vmem>>, vector<128x512xbf16>
    %cst = arith.constant dense<0.000000e+00> : vector<3x512xf32>
    %3 = tpu.matmul %1, %2, %cst {dimension_numbers = #tpu.dot_dimension_numbers<[1], [0], [0], [1], [0, 0, 1, 1], [], []>} : vector<3x128xbf16>, vector<128x512xbf16>, vector<3x512xf32> -> vector<3x512xf32>
    %c0_3 = arith.constant 0 : index
    %c0_4 = arith.constant 0 : index
    %4 = vector.load %arg5[%c0_3, %c0_4] : memref<1x512xf32, #tpu.memory_space<vmem>>, vector<1x512xf32>
    %5 = vector.broadcast %4 : vector<1x512xf32> to vector<3x512xf32>
    %6 = arith.addf %3, %5 : vector<3x512xf32>
    %c0_5 = arith.constant 0 : index
    %c0_6 = arith.constant 0 : index
    %7 = vector.load %arg6[%c0_5, %c0_6] : memref<3x512xf32, #tpu.memory_space<vmem>>, vector<3x512xf32>
    tpu.vector_store %arg6[%c0_5, %c0_6], %6 {strides = array<i32>} : memref<3x512xf32, #tpu.memory_space<vmem>>, vector<3x512xf32>,
    return
  }
  func.func @transform_0(%arg0: i32, %arg1: i32, %arg2: i32) -> (i32, i32) {
    %c0_i32 = arith.constant 0 : i32
    return %arg0, %arg2 : i32, i32
  }
  func.func @transform_1(%arg0: i32, %arg1: i32, %arg2: i32) -> (i32, i32) {
    %c0_i32 = arith.constant 0 : i32
    return %arg2, %arg1 : i32, i32
  }
  func.func @transform_2(%arg0: i32, %arg1: i32, %arg2: i32) -> (i32, i32) {
    %c0_i32 = arith.constant 0 : i32
    %c0_i32_0 = arith.constant 0 : i32
    return %c0_i32, %arg1 : i32, i32
  }
  func.func @transform_3(%arg0: i32, %arg1: i32, %arg2: i32) -> (i32, i32) {
    %c0_i32 = arith.constant 0 : i32
    return %arg0, %arg1 : i32, i32
  }
}

module attributes {stable_mosaic.version = 11 : i64} {
  func.func @_linear_kernel(%arg0: i32, %arg1: i32, %arg2: i32, %arg3: memref<1x128xf32, #tpu.memory_space<vmem>>, %arg4: memref<128x128xbf16, #tpu.memory_space<vmem>>, %arg5: memref<1x128xf32, #tpu.memory_space<vmem>>, %arg6: memref<1x128xf32, #tpu.memory_space<vmem>>) attributes {dimension_semantics = [#tpu.dimension_semantics<parallel>, #tpu.dimension_semantics<parallel>, #tpu.dimension_semantics<arbitrary>], iteration_bounds = array<i64: 1, 1, 1>, scalar_prefetch = 0 : i64, scratch_operands = 0 : i64, tpu.core_type = #tpu.core_type<tc>, window_params = [{transform_indices = @transform_0, window_bounds = array<i64: 1, 128>}, {transform_indices = @transform_1, window_bounds = array<i64: 128, 128>}, {transform_indices = @transform_2, window_bounds = array<i64: 1, 128>}, {transform_indices = @transform_3, window_bounds = array<i64: 1, 128>}]} {
    %c0 = arith.constant 0 : index
    %c0_0 = arith.constant 0 : index
    %0 = vector.load %arg3[%c0, %c0_0] : memref<1x128xf32, #tpu.memory_space<vmem>>, vector<1x128xf32>
    %1 = arith.truncf %0 : vector<1x128xf32> to vector<1x128xbf16>
    %c0_1 = arith.constant 0 : index
    %c0_2 = arith.constant 0 : index
    %2 = vector.load %arg4[%c0_1, %c0_2] : memref<128x128xbf16, #tpu.memory_space<vmem>>, vector<128x128xbf16>
    %cst = arith.constant dense<0.000000e+00> : vector<1x128xf32>
    %3 = tpu.matmul %1, %2, %cst {dimension_numbers = #tpu.dot_dimension_numbers<[1], [0], [0], [1], [0, 0, 1, 1], [], []>} : vector<1x128xbf16>, vector<128x128xbf16>, vector<1x128xf32> -> vector<1x128xf32>
    %c0_3 = arith.constant 0 : index
    %c0_4 = arith.constant 0 : index
    %4 = vector.load %arg5[%c0_3, %c0_4] : memref<1x128xf32, #tpu.memory_space<vmem>>, vector<1x128xf32>
    %5 = arith.addf %3, %4 : vector<1x128xf32>
    %c0_5 = arith.constant 0 : index
    %c0_6 = arith.constant 0 : index
    %6 = vector.load %arg6[%c0_5, %c0_6] : memref<1x128xf32, #tpu.memory_space<vmem>>, vector<1x128xf32>
    tpu.vector_store %arg6[%c0_5, %c0_6], %5 {strides = array<i32>} : memref<1x128xf32, #tpu.memory_space<vmem>>, vector<1x128xf32>,
    return
  }
  func.func @transform_0(%arg0: i32, %arg1: i32, %arg2: i32) -> (i32, i32) {
    %c0_i32 = arith.constant 0 : i32
    return %arg0, %arg2 : i32, i32
  }
  func.func @transform_1(%arg0: i32, %arg1: i32, %arg2: i32) -> (i32, i32) {
    %c0_i32 = arith.constant 0 : i32
    return %arg2, %arg1 : i32, i32
  }
  func.func @transform_2(%arg0: i32, %arg1: i32, %arg2: i32) -> (i32, i32) {
    %c0_i32 = arith.constant 0 : i32
    %c0_i32_0 = arith.constant 0 : i32
    return %c0_i32, %arg1 : i32, i32
  }
  func.func @transform_3(%arg0: i32, %arg1: i32, %arg2: i32) -> (i32, i32) {
    %c0_i32 = arith.constant 0 : i32
    return %arg0, %arg1 : i32, i32
  }
}

module attributes {stable_mosaic.version = 11 : i64} {
  func.func @_linear_kernel(%arg0: i32, %arg1: i32, %arg2: i32, %arg3: memref<8x768xbf16, #tpu.memory_space<vmem>>, %arg4: memref<768x128xbf16, #tpu.memory_space<vmem>>, %arg5: memref<1x128xf32, #tpu.memory_space<vmem>>, %arg6: memref<8x128xf32, #tpu.memory_space<vmem>>) attributes {dimension_semantics = [#tpu.dimension_semantics<parallel>, #tpu.dimension_semantics<parallel>, #tpu.dimension_semantics<arbitrary>], iteration_bounds = array<i64: 1, 1, 1>, scalar_prefetch = 0 : i64, scratch_operands = 0 : i64, tpu.core_type = #tpu.core_type<tc>, window_params = [{transform_indices = @transform_0, window_bounds = array<i64: 8, 768>}, {transform_indices = @transform_1, window_bounds = array<i64: 768, 128>}, {transform_indices = @transform_2, window_bounds = array<i64: 1, 128>}, {transform_indices = @transform_3, window_bounds = array<i64: 8, 128>}]} {
    %c0 = arith.constant 0 : index
    %c0_0 = arith.constant 0 : index
    %0 = vector.load %arg3[%c0, %c0_0] : memref<8x768xbf16, #tpu.memory_space<vmem>>, vector<8x768xbf16>
    %c0_1 = arith.constant 0 : index
    %c0_2 = arith.constant 0 : index
    %1 = vector.load %arg4[%c0_1, %c0_2] : memref<768x128xbf16, #tpu.memory_space<vmem>>, vector<768x128xbf16>
    %cst = arith.constant dense<0.000000e+00> : vector<8x128xf32>
    %2 = tpu.matmul %0, %1, %cst {dimension_numbers = #tpu.dot_dimension_numbers<[1], [0], [0], [1], [0, 0, 1, 1], [], []>} : vector<8x768xbf16>, vector<768x128xbf16>, vector<8x128xf32> -> vector<8x128xf32>
    %c0_3 = arith.constant 0 : index
    %c0_4 = arith.constant 0 : index
    %3 = vector.load %arg5[%c0_3, %c0_4] : memref<1x128xf32, #tpu.memory_space<vmem>>, vector<1x128xf32>
    %4 = vector.broadcast %3 : vector<1x128xf32> to vector<8x128xf32>
    %5 = arith.addf %2, %4 : vector<8x128xf32>
    %c0_5 = arith.constant 0 : index
    %c0_6 = arith.constant 0 : index
    %6 = vector.load %arg6[%c0_5, %c0_6] : memref<8x128xf32, #tpu.memory_space<vmem>>, vector<8x128xf32>
    tpu.vector_store %arg6[%c0_5, %c0_6], %5 {strides = array<i32>} : memref<8x128xf32, #tpu.memory_space<vmem>>, vector<8x128xf32>,
    return
  }
  func.func @transform_0(%arg0: i32, %arg1: i32, %arg2: i32) -> (i32, i32) {
    %c0_i32 = arith.constant 0 : i32
    return %arg0, %arg2 : i32, i32
  }
  func.func @transform_1(%arg0: i32, %arg1: i32, %arg2: i32) -> (i32, i32) {
    %c0_i32 = arith.constant 0 : i32
    return %arg2, %arg1 : i32, i32
  }
  func.func @transform_2(%arg0: i32, %arg1: i32, %arg2: i32) -> (i32, i32) {
    %c0_i32 = arith.constant 0 : i32
    %c0_i32_0 = arith.constant 0 : i32
    return %c0_i32, %arg1 : i32, i32
  }
  func.func @transform_3(%arg0: i32, %arg1: i32, %arg2: i32) -> (i32, i32) {
    %c0_i32 = arith.constant 0 : i32
    return %arg0, %arg1 : i32, i32
  }
}

module attributes {stable_mosaic.version = 11 : i64} {
  func.func @_linear_kernel(%arg0: i32, %arg1: i32, %arg2: i32, %arg3: memref<10x32xf32, #tpu.memory_space<vmem>>, %arg4: memref<32x128xbf16, #tpu.memory_space<vmem>>, %arg5: memref<1x128xf32, #tpu.memory_space<vmem>>, %arg6: memref<1x32xf32, #tpu.memory_space<vmem>>, %arg7: memref<1x32xf32, #tpu.memory_space<vmem>>, %arg8: memref<10x128xbf16, #tpu.memory_space<vmem>>) attributes {dimension_semantics = [#tpu.dimension_semantics<parallel>, #tpu.dimension_semantics<parallel>, #tpu.dimension_semantics<arbitrary>], iteration_bounds = array<i64: 1, 1, 1>, scalar_prefetch = 0 : i64, scratch_operands = 0 : i64, tpu.core_type = #tpu.core_type<tc>, window_params = [{transform_indices = @transform_0, window_bounds = array<i64: 10, 32>}, {transform_indices = @transform_1, window_bounds = array<i64: 32, 128>}, {transform_indices = @transform_2, window_bounds = array<i64: 1, 128>}, {pipeline_mode = #tpu.pipeline_mode<synchronous>, transform_indices = @transform_3, window_bounds = array<i64: 1, 32>}, {pipeline_mode = #tpu.pipeline_mode<synchronous>, transform_indices = @transform_4, window_bounds = array<i64: 1, 32>}, {transform_indices = @transform_5, window_bounds = array<i64: 10, 128>}]} {
    %c0 = arith.constant 0 : index
    %c0_0 = arith.constant 0 : index
    %0 = vector.load %arg3[%c0, %c0_0] : memref<10x32xf32, #tpu.memory_space<vmem>>, vector<10x32xf32>
    %cst = arith.constant dense<0.000000e+00> : vector<10xf32>
    %1 = vector.multi_reduction <add>, %0, %cst [1] : vector<10x32xf32> to vector<10xf32>
    %2 = vector.shape_cast %1 : vector<10xf32> to vector<10x1xf32>
    %cst_1 = arith.constant 3.200000e+01 : f32
    %3 = vector.broadcast %cst_1 : f32 to vector<10x1xf32>
    %4 = arith.divf %2, %3 : vector<10x1xf32>
    %5 = vector.broadcast %4 : vector<10x1xf32> to vector<10x32xf32>
    %6 = arith.subf %0, %5 : vector<10x32xf32>
    %7 = arith.mulf %6, %6 : vector<10x32xf32>
    %cst_2 = arith.constant dense<0.000000e+00> : vector<10xf32>
    %8 = vector.multi_reduction <add>, %7, %cst_2 [1] : vector<10x32xf32> to vector<10xf32>
    %9 = vector.shape_cast %8 : vector<10xf32> to vector<10x1xf32>
    %cst_3 = arith.constant 3.200000e+01 : f32
    %10 = vector.broadcast %cst_3 : f32 to vector<10x1xf32>
    %11 = arith.divf %9, %10 : vector<10x1xf32>
    %cst_4 = arith.constant 9.99999974E-6 : f32
    %12 = vector.broadcast %cst_4 : f32 to vector<10x1xf32>
    %13 = arith.addf %11, %12 : vector<10x1xf32>
    %14 = math.rsqrt %13 : vector<10x1xf32>
    %15 = vector.broadcast %14 : vector<10x1xf32> to vector<10x32xf32>
    %16 = arith.mulf %6, %15 : vector<10x32xf32>
    %c0_5 = arith.constant 0 : index
    %c0_6 = arith.constant 0 : index
    %17 = vector.load %arg6[%c0_5, %c0_6] : memref<1x32xf32, #tpu.memory_space<vmem>>, vector<1x32xf32>
    %18 = vector.broadcast %17 : vector<1x32xf32> to vector<10x32xf32>
    %19 = arith.mulf %16, %18 : vector<10x32xf32>
    %c0_7 = arith.constant 0 : index
    %c0_8 = arith.constant 0 : index
    %20 = vector.load %arg7[%c0_7, %c0_8] : memref<1x32xf32, #tpu.memory_space<vmem>>, vector<1x32xf32>
    %21 = vector.broadcast %20 : vector<1x32xf32> to vector<10x32xf32>
    %22 = arith.addf %19, %21 : vector<10x32xf32>
    %23 = arith.truncf %22 : vector<10x32xf32> to vector<10x32xbf16>
    %c0_9 = arith.constant 0 : index
    %c0_10 = arith.constant 0 : index
    %24 = vector.load %arg4[%c0_9, %c0_10] : memref<32x128xbf16, #tpu.memory_space<vmem>>, vector<32x128xbf16>
    %cst_11 = arith.constant dense<0.000000e+00> : vector<10x128xf32>
    %25 = tpu.matmul %23, %24, %cst_11 {dimension_numbers = #tpu.dot_dimension_numbers<[1], [0], [0], [1], [0, 0, 1, 1], [], []>} : vector<10x32xbf16>, vector<32x128xbf16>, vector<10x128xf32> -> vector<10x128xf32>
    %c0_12 = arith.constant 0 : index
    %c0_13 = arith.constant 0 : index
    %26 = vector.load %arg5[%c0_12, %c0_13] : memref<1x128xf32, #tpu.memory_space<vmem>>, vector<1x128xf32>
    %27 = vector.broadcast %26 : vector<1x128xf32> to vector<10x128xf32>
    %28 = arith.addf %25, %27 : vector<10x128xf32>
    %29 = arith.truncf %28 : vector<10x128xf32> to vector<10x128xbf16>
    %c0_14 = arith.constant 0 : index
    %c0_15 = arith.constant 0 : index
    %30 = vector.load %arg8[%c0_14, %c0_15] : memref<10x128xbf16, #tpu.memory_space<vmem>>, vector<10x128xbf16>
    tpu.vector_store %arg8[%c0_14, %c0_15], %29 {strides = array<i32>} : memref<10x128xbf16, #tpu.memory_space<vmem>>, vector<10x128xbf16>,
    return
  }
  func.func @transform_0(%arg0: i32, %arg1: i32, %arg2: i32) -> (i32, i32) {
    %c0_i32 = arith.constant 0 : i32
    return %arg0, %arg2 : i32, i32
  }
  func.func @transform_1(%arg0: i32, %arg1: i32, %arg2: i32) -> (i32, i32) {
    %c0_i32 = arith.constant 0 : i32
    return %arg2, %arg1 : i32, i32
  }
  func.func @transform_2(%arg0: i32, %arg1: i32, %arg2: i32) -> (i32, i32) {
    %c0_i32 = arith.constant 0 : i32
    %c0_i32_0 = arith.constant 0 : i32
    return %c0_i32, %arg1 : i32, i32
  }
  func.func @transform_3(%arg0: i32, %arg1: i32, %arg2: i32) -> (i32, i32) {
    %c0_i32 = arith.constant 0 : i32
    %c0_i32_0 = arith.constant 0 : i32
    %c0_i32_1 = arith.constant 0 : i32
    return %c0_i32, %c0_i32_0 : i32, i32
  }
  func.func @transform_4(%arg0: i32, %arg1: i32, %arg2: i32) -> (i32, i32) {
    %c0_i32 = arith.constant 0 : i32
    %c0_i32_0 = arith.constant 0 : i32
    %c0_i32_1 = arith.constant 0 : i32
    return %c0_i32, %c0_i32_0 : i32, i32
  }
  func.func @transform_5(%arg0: i32, %arg1: i32, %arg2: i32) -> (i32, i32) {
    %c0_i32 = arith.constant 0 : i32
    return %arg0, %arg1 : i32, i32
  }
}

module attributes {stable_mosaic.version = 11 : i64} {
  func.func @_attention_kernel(%arg0: i32, %arg1: i32, %arg2: memref<1x1x5x8xbf16, #tpu.memory_space<vmem>>, %arg3: memref<1x1x5x8xbf16, #tpu.memory_space<vmem>>, %arg4: memref<1x1x5x8xbf16, #tpu.memory_space<vmem>>, %arg5: memref<1x1x5x8xbf16, #tpu.memory_space<vmem>>) attributes {dimension_semantics = [#tpu.dimension_semantics<parallel>, #tpu.dimension_semantics<parallel>], iteration_bounds = array<i64: 2, 4>, scalar_prefetch = 0 : i64, scratch_operands = 0 : i64, tpu.core_type = #tpu.core_type<tc>, window_params = [{transform_indices = @transform_0, window_bounds = array<i64: 1, 1, 5, 8>}, {transform_indices = @transform_1, window_bounds = array<i64: 1, 1, 5, 8>}, {transform_indices = @transform_2, window_bounds = array<i64: 1, 1, 5, 8>}, {transform_indices = @transform_3, window_bounds = array<i64: 1, 1, 5, 8>}]} {
    %c0 = arith.constant 0 : index
    %c0_0 = arith.constant 0 : index
    %c0_1 = arith.constant 0 : index
    %c0_2 = arith.constant 0 : index
    %0 = vector.load %arg2[%c0, %c0_0, %c0_1, %c0_2] : memref<1x1x5x8xbf16, #tpu.memory_space<vmem>>, vector<1x1x5x8xbf16>
    %1 = vector.shape_cast %0 : vector<1x1x5x8xbf16> to vector<5x8xbf16>
    %c0_3 = arith.constant 0 : index
    %c0_4 = arith.constant 0 : index
    %c0_5 = arith.constant 0 : index
    %c0_6 = arith.constant 0 : index
    %2 = vector.load %arg3[%c0_3, %c0_4, %c0_5, %c0_6] : memref<1x1x5x8xbf16, #tpu.memory_space<vmem>>, vector<1x1x5x8xbf16>
    %3 = vector.shape_cast %2 : vector<1x1x5x8xbf16> to vector<5x8xbf16>
    %c0_7 = arith.constant 0 : index
    %c0_8 = arith.constant 0 : index
    %c0_9 = arith.constant 0 : index
    %c0_10 = arith.constant 0 : index
    %4 = vector.load %arg4[%c0_7, %c0_8, %c0_9, %c0_10] : memref<1x1x5x8xbf16, #tpu.memory_space<vmem>>, vector<1x1x5x8xbf16>
    %5 = vector.shape_cast %4 : vector<1x1x5x8xbf16> to vector<5x8xbf16>
    "tpu.trace_start"() <{level = 10 : i32, message = "qd,kd->qk"}> : () -> ()
    %cst = arith.constant dense<0.000000e+00> : vector<5x5xf32>
    %6 = tpu.matmul %1, %3, %cst {dimension_numbers = #tpu.dot_dimension_numbers<[1], [1], [0], [0], [0, 0, 1, 0], [], []>} : vector<5x8xbf16>, vector<5x8xbf16>, vector<5x5xf32> -> vector<5x5xf32>
    "tpu.trace_stop"() : () -> ()
    %cst_11 = arith.constant dense<0xFF800000> : vector<5xf32>
    %7 = vector.multi_reduction <maximumf>, %6, %cst_11 [1] : vector<5x5xf32> to vector<5xf32>
    %8 = vector.shape_cast %7 : vector<5xf32> to vector<5x1xf32>
    %9 = vector.broadcast %8 : vector<5x1xf32> to vector<5x5xf32>
    %10 = arith.subf %6, %9 : vector<5x5xf32>
    %11 = math.exp %10 : vector<5x5xf32>
    %cst_12 = arith.constant dense<0.000000e+00> : vector<5xf32>
    %12 = vector.multi_reduction <add>, %11, %cst_12 [1] : vector<5x5xf32> to vector<5xf32>
    %13 = vector.shape_cast %12 : vector<5xf32> to vector<5x1xf32>
    %14 = tpu.reciprocal %13 {approx = true} : vector<5x1xf32> -> vector<5x1xf32>
    %15 = vector.broadcast %14 : vector<5x1xf32> to vector<5x5xf32>
    %16 = arith.mulf %11, %15 : vector<5x5xf32>
    %17 = arith.truncf %16 : vector<5x5xf32> to vector<5x5xbf16>
    %cst_13 = arith.constant dense<0.000000e+00> : vector<5x8xf32>
    %18 = tpu.matmul %17, %5, %cst_13 {dimension_numbers = #tpu.dot_dimension_numbers<[1], [0], [0], [1], [0, 0, 1, 1], [], []>} : vector<5x5xbf16>, vector<5x8xbf16>, vector<5x8xf32> -> vector<5x8xf32>
    %19 = arith.truncf %18 : vector<5x8xf32> to vector<5x8xbf16>
    %c0_14 = arith.constant 0 : index
    %c0_15 = arith.constant 0 : index
    %c0_16 = arith.constant 0 : index
    %c0_17 = arith.constant 0 : index
    %20 = vector.load %arg5[%c0_14, %c0_15, %c0_16, %c0_17] : memref<1x1x5x8xbf16, #tpu.memory_space<vmem>>, vector<1x1x5x8xbf16>
    %21 = vector.shape_cast %20 : vector<1x1x5x8xbf16> to vector<5x8xbf16>
    %22 = vector.shape_cast %19 : vector<5x8xbf16> to vector<1x1x5x8xbf16>
    tpu.vector_store %arg5[%c0_14, %c0_15, %c0_16, %c0_17], %22 {strides = array<i32>} : memref<1x1x5x8xbf16, #tpu.memory_space<vmem>>, vector<1x1x5x8xbf16>,
    return
  }
  func.func @transform_0(%arg0: i32, %arg1: i32) -> (i32, i32, i32, i32) {
    %c0_i32 = arith.constant 0 : i32
    %c0_i32_0 = arith.constant 0 : i32
    %c0_i32_1 = arith.constant 0 : i32
    return %arg0, %arg1, %c0_i32, %c0_i32_0 : i32, i32, i32, i32
  }
  func.func @transform_1(%arg0: i32, %arg1: i32) -> (i32, i32, i32, i32) {
    %c0_i32 = arith.constant 0 : i32
    %c0_i32_0 = arith.constant 0 : i32
    %c0_i32_1 = arith.constant 0 : i32
    return %arg0, %arg1, %c0_i32, %c0_i32_0 : i32, i32, i32, i32
  }
  func.func @transform_2(%arg0: i32, %arg1: i32) -> (i32, i32, i32, i32) {
    %c0_i32 = arith.constant 0 : i32
    %c0_i32_0 = arith.constant 0 : i32
    %c0_i32_1 = arith.constant 0 : i32
    return %arg0, %arg1, %c0_i32, %c0_i32_0 : i32, i32, i32, i32
  }
  func.func @transform_3(%arg0: i32, %arg1: i32) -> (i32, i32, i32, i32) {
    %c0_i32 = arith.constant 0 : i32
    %c0_i32_0 = arith.constant 0 : i32
    %c0_i32_1 = arith.constant 0 : i32
    return %arg0, %arg1, %c0_i32, %c0_i32_0 : i32, i32, i32, i32
  }
}

module attributes {stable_mosaic.version = 11 : i64} {
  func.func @_linear_kernel(%arg0: i32, %arg1: i32, %arg2: i32, %arg3: memref<10x32xbf16, #tpu.memory_space<vmem>>, %arg4: memref<32x128xbf16, #tpu.memory_space<vmem>>, %arg5: memref<1x128xf32, #tpu.memory_space<vmem>>, %arg6: memref<10x128xf32, #tpu.memory_space<vmem>>, %arg7: memref<10x128xf32, #tpu.memory_space<vmem>>) attributes {dimension_semantics = [#tpu.dimension_semantics<parallel>, #tpu.dimension_semantics<parallel>, #tpu.dimension_semantics<arbitrary>], iteration_bounds = array<i64: 1, 1, 1>, scalar_prefetch = 0 : i64, scratch_operands = 0 : i64, tpu.core_type = #tpu.core_type<tc>, window_params = [{transform_indices = @transform_0, window_bounds = array<i64: 10, 32>}, {transform_indices = @transform_1, window_bounds = array<i64: 32, 128>}, {transform_indices = @transform_2, window_bounds = array<i64: 1, 128>}, {transform_indices = @transform_3, window_bounds = array<i64: 10, 128>}, {transform_indices = @transform_4, window_bounds = array<i64: 10, 128>}]} {
    %c0 = arith.constant 0 : index
    %c0_0 = arith.constant 0 : index
    %0 = vector.load %arg3[%c0, %c0_0] : memref<10x32xbf16, #tpu.memory_space<vmem>>, vector<10x32xbf16>
    %c0_1 = arith.constant 0 : index
    %c0_2 = arith.constant 0 : index
    %1 = vector.load %arg4[%c0_1, %c0_2] : memref<32x128xbf16, #tpu.memory_space<vmem>>, vector<32x128xbf16>
    %cst = arith.constant dense<0.000000e+00> : vector<10x128xf32>
    %2 = tpu.matmul %0, %1, %cst {dimension_numbers = #tpu.dot_dimension_numbers<[1], [0], [0], [1], [0, 0, 1, 1], [], []>} : vector<10x32xbf16>, vector<32x128xbf16>, vector<10x128xf32> -> vector<10x128xf32>
    %c0_3 = arith.constant 0 : index
    %c0_4 = arith.constant 0 : index
    %3 = vector.load %arg5[%c0_3, %c0_4] : memref<1x128xf32, #tpu.memory_space<vmem>>, vector<1x128xf32>
    %4 = vector.broadcast %3 : vector<1x128xf32> to vector<10x128xf32>
    %5 = arith.addf %2, %4 : vector<10x128xf32>
    %c0_5 = arith.constant 0 : index
    %c0_6 = arith.constant 0 : index
    %6 = vector.load %arg6[%c0_5, %c0_6] : memref<10x128xf32, #tpu.memory_space<vmem>>, vector<10x128xf32>
    %7 = arith.addf %5, %6 : vector<10x128xf32>
    %c0_7 = arith.constant 0 : index
    %c0_8 = arith.constant 0 : index
    %8 = vector.load %arg7[%c0_7, %c0_8] : memref<10x128xf32, #tpu.memory_space<vmem>>, vector<10x128xf32>
    tpu.vector_store %arg7[%c0_7, %c0_8], %7 {strides = array<i32>} : memref<10x128xf32, #tpu.memory_space<vmem>>, vector<10x128xf32>,
    return
  }
  func.func @transform_0(%arg0: i32, %arg1: i32, %arg2: i32) -> (i32, i32) {
    %c0_i32 = arith.constant 0 : i32
    return %arg0, %arg2 : i32, i32
  }
  func.func @transform_1(%arg0: i32, %arg1: i32, %arg2: i32) -> (i32, i32) {
    %c0_i32 = arith.constant 0 : i32
    return %arg2, %arg1 : i32, i32
  }
  func.func @transform_2(%arg0: i32, %arg1: i32, %arg2: i32) -> (i32, i32) {
    %c0_i32 = arith.constant 0 : i32
    %c0_i32_0 = arith.constant 0 : i32
    return %c0_i32, %arg1 : i32, i32
  }
  func.func @transform_3(%arg0: i32, %arg1: i32, %arg2: i32) -> (i32, i32) {
    %c0_i32 = arith.constant 0 : i32
    return %arg0, %arg1 : i32, i32
  }
  func.func @transform_4(%arg0: i32, %arg1: i32, %arg2: i32) -> (i32, i32) {
    %c0_i32 = arith.constant 0 : i32
    return %arg0, %arg1 : i32, i32
  }
}

module attributes {stable_mosaic.version = 11 : i64} {
  func.func @_linear_kernel(%arg0: i32, %arg1: i32, %arg2: i32, %arg3: memref<10x32xf32, #tpu.memory_space<vmem>>, %arg4: memref<32x128xbf16, #tpu.memory_space<vmem>>, %arg5: memref<1x128xf32, #tpu.memory_space<vmem>>, %arg6: memref<1x32xf32, #tpu.memory_space<vmem>>, %arg7: memref<1x32xf32, #tpu.memory_space<vmem>>, %arg8: memref<10x128xbf16, #tpu.memory_space<vmem>>) attributes {dimension_semantics = [#tpu.dimension_semantics<parallel>, #tpu.dimension_semantics<parallel>, #tpu.dimension_semantics<arbitrary>], iteration_bounds = array<i64: 1, 1, 1>, scalar_prefetch = 0 : i64, scratch_operands = 0 : i64, tpu.core_type = #tpu.core_type<tc>, window_params = [{transform_indices = @transform_0, window_bounds = array<i64: 10, 32>}, {transform_indices = @transform_1, window_bounds = array<i64: 32, 128>}, {transform_indices = @transform_2, window_bounds = array<i64: 1, 128>}, {pipeline_mode = #tpu.pipeline_mode<synchronous>, transform_indices = @transform_3, window_bounds = array<i64: 1, 32>}, {pipeline_mode = #tpu.pipeline_mode<synchronous>, transform_indices = @transform_4, window_bounds = array<i64: 1, 32>}, {transform_indices = @transform_5, window_bounds = array<i64: 10, 128>}]} {
    %c0 = arith.constant 0 : index
    %c0_0 = arith.constant 0 : index
    %0 = vector.load %arg3[%c0, %c0_0] : memref<10x32xf32, #tpu.memory_space<vmem>>, vector<10x32xf32>
    %cst = arith.constant dense<0.000000e+00> : vector<10xf32>
    %1 = vector.multi_reduction <add>, %0, %cst [1] : vector<10x32xf32> to vector<10xf32>
    %2 = vector.shape_cast %1 : vector<10xf32> to vector<10x1xf32>
    %cst_1 = arith.constant 3.200000e+01 : f32
    %3 = vector.broadcast %cst_1 : f32 to vector<10x1xf32>
    %4 = arith.divf %2, %3 : vector<10x1xf32>
    %5 = vector.broadcast %4 : vector<10x1xf32> to vector<10x32xf32>
    %6 = arith.subf %0, %5 : vector<10x32xf32>
    %7 = arith.mulf %6, %6 : vector<10x32xf32>
    %cst_2 = arith.constant dense<0.000000e+00> : vector<10xf32>
    %8 = vector.multi_reduction <add>, %7, %cst_2 [1] : vector<10x32xf32> to vector<10xf32>
    %9 = vector.shape_cast %8 : vector<10xf32> to vector<10x1xf32>
    %cst_3 = arith.constant 3.200000e+01 : f32
    %10 = vector.broadcast %cst_3 : f32 to vector<10x1xf32>
    %11 = arith.divf %9, %10 : vector<10x1xf32>
    %cst_4 = arith.constant 9.99999974E-6 : f32
    %12 = vector.broadcast %cst_4 : f32 to vector<10x1xf32>
    %13 = arith.addf %11, %12 : vector<10x1xf32>
    %14 = math.rsqrt %13 : vector<10x1xf32>
    %15 = vector.broadcast %14 : vector<10x1xf32> to vector<10x32xf32>
    %16 = arith.mulf %6, %15 : vector<10x32xf32>
    %c0_5 = arith.constant 0 : index
    %c0_6 = arith.constant 0 : index
    %17 = vector.load %arg6[%c0_5, %c0_6] : memref<1x32xf32, #tpu.memory_space<vmem>>, vector<1x32xf32>
    %18 = vector.broadcast %17 : vector<1x32xf32> to vector<10x32xf32>
    %19 = arith.mulf %16, %18 : vector<10x32xf32>
    %c0_7 = arith.constant 0 : index
    %c0_8 = arith.constant 0 : index
    %20 = vector.load %arg7[%c0_7, %c0_8] : memref<1x32xf32, #tpu.memory_space<vmem>>, vector<1x32xf32>
    %21 = vector.broadcast %20 : vector<1x32xf32> to vector<10x32xf32>
    %22 = arith.addf %19, %21 : vector<10x32xf32>
    %23 = arith.truncf %22 : vector<10x32xf32> to vector<10x32xbf16>
    %c0_9 = arith.constant 0 : index
    %c0_10 = arith.constant 0 : index
    %24 = vector.load %arg4[%c0_9, %c0_10] : memref<32x128xbf16, #tpu.memory_space<vmem>>, vector<32x128xbf16>
    %cst_11 = arith.constant dense<0.000000e+00> : vector<10x128xf32>
    %25 = tpu.matmul %23, %24, %cst_11 {dimension_numbers = #tpu.dot_dimension_numbers<[1], [0], [0], [1], [0, 0, 1, 1], [], []>} : vector<10x32xbf16>, vector<32x128xbf16>, vector<10x128xf32> -> vector<10x128xf32>
    %c0_12 = arith.constant 0 : index
    %c0_13 = arith.constant 0 : index
    %26 = vector.load %arg5[%c0_12, %c0_13] : memref<1x128xf32, #tpu.memory_space<vmem>>, vector<1x128xf32>
    %27 = vector.broadcast %26 : vector<1x128xf32> to vector<10x128xf32>
    %28 = arith.addf %25, %27 : vector<10x128xf32>
    %cst_14 = arith.constant 5.000000e-01 : f32
    %29 = vector.broadcast %cst_14 : f32 to vector<10x128xf32>
    %30 = arith.mulf %29, %28 : vector<10x128xf32>
    %cst_15 = arith.constant 0.707106769 : f32
    %31 = vector.broadcast %cst_15 : f32 to vector<10x128xf32>
    %32 = arith.mulf %28, %31 : vector<10x128xf32>
    %33 = math.erf %32 : vector<10x128xf32>
    %cst_16 = arith.constant 1.000000e+00 : f32
    %34 = vector.broadcast %cst_16 : f32 to vector<10x128xf32>
    %35 = arith.addf %34, %33 : vector<10x128xf32>
    %36 = arith.mulf %30, %35 : vector<10x128xf32>
    %37 = arith.truncf %36 : vector<10x128xf32> to vector<10x128xbf16>
    %c0_17 = arith.constant 0 : index
    %c0_18 = arith.constant 0 : index
    %38 = vector.load %arg8[%c0_17, %c0_18] : memref<10x128xbf16, #tpu.memory_space<vmem>>, vector<10x128xbf16>
    tpu.vector_store %arg8[%c0_17, %c0_18], %37 {strides = array<i32>} : memref<10x128xbf16, #tpu.memory_space<vmem>>, vector<10x128xbf16>,
    return
  }
  func.func @transform_0(%arg0: i32, %arg1: i32, %arg2: i32) -> (i32, i32) {
    %c0_i32 = arith.constant 0 : i32
    return %arg0, %arg2 : i32, i32
  }
  func.func @transform_1(%arg0: i32, %arg1: i32, %arg2: i32) -> (i32, i32) {
    %c0_i32 = arith.constant 0 : i32
    return %arg2, %arg1 : i32, i32
  }
  func.func @transform_2(%arg0: i32, %arg1: i32, %arg2: i32) -> (i32, i32) {
    %c0_i32 = arith.constant 0 : i32
    %c0_i32_0 = arith.constant 0 : i32
    return %c0_i32, %arg1 : i32, i32
  }
  func.func @transform_3(%arg0: i32, %arg1: i32, %arg2: i32) -> (i32, i32) {
    %c0_i32 = arith.constant 0 : i32
    %c0_i32_0 = arith.constant 0 : i32
    %c0_i32_1 = arith.constant 0 : i32
    return %c0_i32, %c0_i32_0 : i32, i32
  }
  func.func @transform_4(%arg0: i32, %arg1: i32, %arg2: i32) -> (i32, i32) {
    %c0_i32 = arith.constant 0 : i32
    %c0_i32_0 = arith.constant 0 : i32
    %c0_i32_1 = arith.constant 0 : i32
    return %c0_i32, %c0_i32_0 : i32, i32
  }
  func.func @transform_5(%arg0: i32, %arg1: i32, %arg2: i32) -> (i32, i32) {
    %c0_i32 = arith.constant 0 : i32
    return %arg0, %arg1 : i32, i32
  }
}

module attributes {stable_mosaic.version = 11 : i64} {
  func.func @_linear_kernel(%arg0: i32, %arg1: i32, %arg2: i32, %arg3: memref<10x128xbf16, #tpu.memory_space<vmem>>, %arg4: memref<128x128xbf16, #tpu.memory_space<vmem>>, %arg5: memref<1x128xf32, #tpu.memory_space<vmem>>, %arg6: memref<10x128xf32, #tpu.memory_space<vmem>>, %arg7: memref<10x128xf32, #tpu.memory_space<vmem>>) attributes {dimension_semantics = [#tpu.dimension_semantics<parallel>, #tpu.dimension_semantics<parallel>, #tpu.dimension_semantics<arbitrary>], iteration_bounds = array<i64: 1, 1, 1>, scalar_prefetch = 0 : i64, scratch_operands = 0 : i64, tpu.core_type = #tpu.core_type<tc>, window_params = [{transform_indices = @transform_0, window_bounds = array<i64: 10, 128>}, {transform_indices = @transform_1, window_bounds = array<i64: 128, 128>}, {transform_indices = @transform_2, window_bounds = array<i64: 1, 128>}, {transform_indices = @transform_3, window_bounds = array<i64: 10, 128>}, {transform_indices = @transform_4, window_bounds = array<i64: 10, 128>}]} {
    %c0 = arith.constant 0 : index
    %c0_0 = arith.constant 0 : index
    %0 = vector.load %arg3[%c0, %c0_0] : memref<10x128xbf16, #tpu.memory_space<vmem>>, vector<10x128xbf16>
    %c0_1 = arith.constant 0 : index
    %c0_2 = arith.constant 0 : index
    %1 = vector.load %arg4[%c0_1, %c0_2] : memref<128x128xbf16, #tpu.memory_space<vmem>>, vector<128x128xbf16>
    %cst = arith.constant dense<0.000000e+00> : vector<10x128xf32>
    %2 = tpu.matmul %0, %1, %cst {dimension_numbers = #tpu.dot_dimension_numbers<[1], [0], [0], [1], [0, 0, 1, 1], [], []>} : vector<10x128xbf16>, vector<128x128xbf16>, vector<10x128xf32> -> vector<10x128xf32>
    %c0_3 = arith.constant 0 : index
    %c0_4 = arith.constant 0 : index
    %3 = vector.load %arg5[%c0_3, %c0_4] : memref<1x128xf32, #tpu.memory_space<vmem>>, vector<1x128xf32>
    %4 = vector.broadcast %3 : vector<1x128xf32> to vector<10x128xf32>
    %5 = arith.addf %2, %4 : vector<10x128xf32>
    %c0_5 = arith.constant 0 : index
    %c0_6 = arith.constant 0 : index
    %6 = vector.load %arg6[%c0_5, %c0_6] : memref<10x128xf32, #tpu.memory_space<vmem>>, vector<10x128xf32>
    %7 = arith.addf %5, %6 : vector<10x128xf32>
    %c0_7 = arith.constant 0 : index
    %c0_8 = arith.constant 0 : index
    %8 = vector.load %arg7[%c0_7, %c0_8] : memref<10x128xf32, #tpu.memory_space<vmem>>, vector<10x128xf32>
    tpu.vector_store %arg7[%c0_7, %c0_8], %7 {strides = array<i32>} : memref<10x128xf32, #tpu.memory_space<vmem>>, vector<10x128xf32>,
    return
  }
  func.func @transform_0(%arg0: i32, %arg1: i32, %arg2: i32) -> (i32, i32) {
    %c0_i32 = arith.constant 0 : i32
    return %arg0, %arg2 : i32, i32
  }
  func.func @transform_1(%arg0: i32, %arg1: i32, %arg2: i32) -> (i32, i32) {
    %c0_i32 = arith.constant 0 : i32
    return %arg2, %arg1 : i32, i32
  }
  func.func @transform_2(%arg0: i32, %arg1: i32, %arg2: i32) -> (i32, i32) {
    %c0_i32 = arith.constant 0 : i32
    %c0_i32_0 = arith.constant 0 : i32
    return %c0_i32, %arg1 : i32, i32
  }
  func.func @transform_3(%arg0: i32, %arg1: i32, %arg2: i32) -> (i32, i32) {
    %c0_i32 = arith.constant 0 : i32
    return %arg0, %arg1 : i32, i32
  }
  func.func @transform_4(%arg0: i32, %arg1: i32, %arg2: i32) -> (i32, i32) {
    %c0_i32 = arith.constant 0 : i32
    return %arg0, %arg1 : i32, i32
  }
}

</mosaic_0001>

<bundles_post_ra>
// kernel: ofa_vit_forward.23
= control target key start
LH: loop header
LB: loop body
LE: loop exit
PB: predicated region body
PF: predicated region fallthrough
CT: control target
= control target key end

     0   :  { %9 = vsyncpa [#allocation3], 0  ;;  %s330_s0 = inlined_call_operand.vmem [shape: bf16[3,128], index: 0, kind: input, shape index: {}]   ;;  %s331_s1 = inlined_call_operand.hbm [shape: bf16[128,128], index: 1, kind: input, shape index: {}]   ;;  %s332_s2 = inlined_call_operand.hbm [shape: f32[1,128], index: 2, kind: input, shape index: {}]   ;;  %s333_s3 = inlined_call_operand.vmem [shape: f32[3,128], index: 3, kind: input, shape index: {}]   ;;  %s334_s4 = inlined_call_operand.vmem [shape: f32[3,128], index: 4, kind: output, shape index: {}]  }
   0x1   :  { %10 = vsyncpa [#allocation5], 0  ;;  %s266_s15 = smov [#allocation2]   ;;  %s218_s19 = scalar_lea.hbm %s331_s1, 1024 }
   0x2   :  { %s18_s16 = sshll.u32 %s266_s15, 4  ;;  %p219_p0 = scmp.ne.s32.totalorder %s331_s1, %s218_s19  ;;  %s19_s16 = int_to_ptr.vmem [resolvable:$true] %s18_s16 }
   0x3   :  { %p222_p1 = scmp.lt.u32.totalorder %s218_s19, %s331_s1 }
   0x5   :  { %p224_p2 = pnand %p222_p1, %p219_p0 }
   0x7   :  { %227 = shalt.err (!%p224_p2)
}
   0x8   :  { %s228_s24 = scalar_lea.vmem %s19_s16, 1024  ;;  %p233_p4 = scmp.lt.s32.totalorder %s19_s16, %s19_s16 }
   0x9   :  { %p229_p3 = scmp.ne.s32.totalorder %s19_s16, %s228_s24  ;;  %p234_p5 = scmp.lt.s32.totalorder %s228_s24, %s228_s24 }
   0xb   :  { %p235_p6 = por %p234_p5, %p233_p4 }
   0xd   :  { %p236_p7 = pnand %p235_p6, %p229_p3 }
   0xf   :  { %239 = shalt.err (!%p236_p7)
}
  0x10   :  { %s267_s25 = smov 64   ;;  %s268_s26 = smov 4  }
  0x11   :  { %24 = dma.hbm_to_vmem [thread:$0]  %s331_s1, 1024, %s19_s16, [#allocation3], %s267_s25, %s267_s25, %s268_s26  }
  0x12   :  { %s269_s29 = smov [#allocation4]   ;;  %s240_s7 = scalar_lea.hbm %s332_s2, 16 }
  0x13   :  { %s31_s30 = sshll.u32 %s269_s29, 4  ;;  %p241_p8 = scmp.ne.s32.totalorder %s332_s2, %s240_s7  ;;  %s32_s30 = int_to_ptr.vmem [resolvable:$true] %s31_s30 }
  0x14   :  { %p244_p9 = scmp.lt.u32.totalorder %s240_s7, %s332_s2 }
  0x16   :  { %p246_p10 = pnand %p244_p9, %p241_p8 }
  0x18   :  { %249 = shalt.err (!%p246_p10)
}
  0x19   :  { %s250_s12 = scalar_lea.vmem %s32_s30, 16  ;;  %s254_s1 = scalar_lea.vmem %s32_s30, 32 }
  0x1a   :  { %p251_p11 = scmp.ne.s32.totalorder %s32_s30, %s250_s12  ;;  %p255_p12 = scmp.lt.s32.totalorder %s32_s30, %s32_s30 }
  0x1b   :  { %p256_p13 = scmp.lt.s32.totalorder %s254_s1, %s250_s12 }
  0x1d   :  { %p257_p0 = por %p256_p13, %p255_p12 }
  0x1f   :  { %p258_p1 = pnand %p257_p0, %p251_p11 }
  0x21   :  { %261 = shalt.err (!%p258_p1)
}
  0x22   :  { %34 = dma.hbm_to_vmem [thread:$0]  %s332_s2, 16, %s32_s30, [#allocation5]  }
  0x23   :  { %262 = dma.done.wait [#allocation3], 1024  }
  0x24   :  { %263 = vsyncadd [#allocation3], 4294966272 }
  0x25   :  { %264 = dma.done.wait [#allocation5], 16  }
  0x26   :  { %265 = vsyncadd [#allocation5], 4294967280  ;;  %v270_v0 = vmov 0.0   ;;  %vm271_vm0 = vmmov 0   ;;  %v210_v1 = vld [vmem:[#allocation2] sm:$0xff]   ;;  %v211_v2 = vld [vmem:[#allocation2 + $0x8] sm:$0xff]  }
  0x27   :  { %184 = vmatprep.subr.bf16.mxu0 %v270_v0  ;;  %200 = vmatprep.mubr.msk.bf16.mxu0 %vm271_vm0, %v270_v0  ;;  %v212_v3 = vld [vmem:[#allocation2 + $0x10] sm:$0xff]   ;;  %v213_v4 = vld [vmem:[#allocation2 + $0x18] sm:$0xff]   ;;  %v214_v5 = vld [vmem:[#allocation2 + $0x20] sm:$0xff]  }
  0x28   :  { %185 = vmatpush3.bf16.msra.mxu0 %v210_v1  ;;  %v215_v6 = vld [vmem:[#allocation2 + $0x28] sm:$0xff]   ;;  %v216_v7 = vld [vmem:[#allocation2 + $0x30] sm:$0xff]   ;;  %v217_v8 = vld [vmem:[#allocation2 + $0x38] sm:$0xff]  }
  0x29   :  { %186 = vmatprep.subr.bf16.mxu0 %v270_v0  ;;  %v44_v9 = vld [vmem:[%s330_s0] sm:$0x3] }
  0x2a   :  { %v166_v10 = vld [vmem:[#allocation4] ss:$0 sm:$0xff] }
  0x2b   :  { %v157_v14 = vld [vmem:[%s333_s3] sm:$0x7] }
  0x2c   :  { %187 = vmatpush3.bf16.msra.mxu0 %v211_v2 }
  0x2d   :  { %188 = vmatprep.subr.bf16.mxu0 %v270_v0 }
  0x30   :  { %189 = vmatpush3.bf16.msra.mxu0 %v212_v3 }
  0x31   :  { %190 = vmatprep.subr.bf16.mxu0 %v270_v0 }
  0x34   :  { %191 = vmatpush3.bf16.msra.mxu0 %v213_v4 }
  0x35   :  { %192 = vmatprep.subr.bf16.mxu0 %v270_v0 }
  0x38   :  { %193 = vmatpush3.bf16.msra.mxu0 %v214_v5 }
  0x39   :  { %194 = vmatprep.subr.bf16.mxu0 %v270_v0 }
  0x3c   :  { %195 = vmatpush3.bf16.msra.mxu0 %v215_v6 }
  0x3d   :  { %196 = vmatprep.subr.bf16.mxu0 %v270_v0 }
  0x40   :  { %197 = vmatpush3.bf16.msra.mxu0 %v216_v7 }
  0x41   :  { %198 = vmatprep.subr.bf16.mxu0 %v270_v0 }
  0x44   :  { %199 = vmatpush3.bf16.msra.mxu0 %v217_v8 }
  0x47   :  { %201 = vmatmul.mubr.bf16.vlgmr.msra.gmra.mrb[0].mxu0 %v44_v9 }
 0x11a   :  { %v150_v11 = vpop.f32.mrb[0].mxu0 }
 0x11b   :  { %v151_v12 = vadd.f32 %v166_v10, %v150_v11  ;;  %v202_v13 = vpop.f32.mrb[1].mxu0 }
 0x11c   :  { %v153_v15 = vpop.f32.mrb[2].mxu0 }
 0x11d   :  { %v156_v16 = vmax.f32 %v151_v12, 0.0  ;;  %v203_v17 = vpop.f32.mrb[3].mxu0 }
 0x11f   :  { %v158_v18 = vadd.f32 %v157_v14, %v156_v16 }
 0x121   :  { %159 = vst [vmem:[%s334_s4] sm:$0x7] %v158_v18 }
 0x122   :  { %164 = vsyncpa [#allocation3], 1 }
 0x123   :  { %165 = vsyncpa [#allocation5], 1 }

// kernel: ofa_vit_forward.22
= control target key start
LH: loop header
LB: loop body
LE: loop exit
PB: predicated region body
PF: predicated region fallthrough
CT: control target
= control target key end

     0   :  { %8 = vsyncpa [#allocation3], 0  ;;  %s327_s0 = inlined_call_operand.vmem [shape: f32[3,128], index: 0, kind: input, shape index: {}]   ;;  %s328_s1 = inlined_call_operand.hbm [shape: bf16[128,128], index: 1, kind: input, shape index: {}]   ;;  %s329_s2 = inlined_call_operand.hbm [shape: f32[1,128], index: 2, kind: input, shape index: {}]   ;;  %s330_s3 = inlined_call_operand.vmem [shape: bf16[3,128], index: 3, kind: output, shape index: {}]  }
   0x1   :  { %9 = vsyncpa [#allocation5], 0  ;;  %s268_s12 = smov [#allocation2]   ;;  %s220_s16 = scalar_lea.hbm %s328_s1, 1024 }
   0x2   :  { %s17_s13 = sshll.u32 %s268_s12, 4  ;;  %p221_p0 = scmp.ne.s32.totalorder %s328_s1, %s220_s16  ;;  %s18_s13 = int_to_ptr.vmem [resolvable:$true] %s17_s13 }
   0x3   :  { %p224_p1 = scmp.lt.u32.totalorder %s220_s16, %s328_s1 }
   0x5   :  { %p226_p2 = pnand %p224_p1, %p221_p0 }
   0x7   :  { %229 = shalt.err (!%p226_p2)
}
   0x8   :  { %s230_s21 = scalar_lea.vmem %s18_s13, 1024  ;;  %p235_p4 = scmp.lt.s32.totalorder %s18_s13, %s18_s13 }
   0x9   :  { %p231_p3 = scmp.ne.s32.totalorder %s18_s13, %s230_s21  ;;  %p236_p5 = scmp.lt.s32.totalorder %s230_s21, %s230_s21 }
   0xb   :  { %p237_p6 = por %p236_p5, %p235_p4 }
   0xd   :  { %p238_p7 = pnand %p237_p6, %p231_p3 }
   0xf   :  { %241 = shalt.err (!%p238_p7)
}
  0x10   :  { %s269_s22 = smov 64   ;;  %s270_s23 = smov 4  }
  0x11   :  { %23 = dma.hbm_to_vmem [thread:$0]  %s328_s1, 1024, %s18_s13, [#allocation3], %s269_s22, %s269_s22, %s270_s23  }
  0x12   :  { %s271_s26 = smov [#allocation4]   ;;  %s242_s30 = scalar_lea.hbm %s329_s2, 16 }
  0x13   :  { %s30_s27 = sshll.u32 %s271_s26, 4  ;;  %p243_p8 = scmp.ne.s32.totalorder %s329_s2, %s242_s30  ;;  %s31_s27 = int_to_ptr.vmem [resolvable:$true] %s30_s27 }
  0x14   :  { %p246_p9 = scmp.lt.u32.totalorder %s242_s30, %s329_s2 }
  0x16   :  { %p248_p10 = pnand %p246_p9, %p243_p8 }
  0x18   :  { %251 = shalt.err (!%p248_p10)
}
  0x19   :  { %s252_s8 = scalar_lea.vmem %s31_s27, 16  ;;  %s256_s1 = scalar_lea.vmem %s31_s27, 32 }
  0x1a   :  { %p253_p11 = scmp.ne.s32.totalorder %s31_s27, %s252_s8  ;;  %p257_p12 = scmp.lt.s32.totalorder %s31_s27, %s31_s27 }
  0x1b   :  { %p258_p13 = scmp.lt.s32.totalorder %s256_s1, %s252_s8 }
  0x1d   :  { %p259_p0 = por %p258_p13, %p257_p12 }
  0x1f   :  { %p260_p1 = pnand %p259_p0, %p253_p11 }
  0x21   :  { %263 = shalt.err (!%p260_p1)
}
  0x22   :  { %33 = dma.hbm_to_vmem [thread:$0]  %s329_s2, 16, %s31_s27, [#allocation5]  }
  0x23   :  { %264 = dma.done.wait [#allocation3], 1024  }
  0x24   :  { %265 = vsyncadd [#allocation3], 4294966272 }
  0x25   :  { %266 = dma.done.wait [#allocation5], 16  }
  0x26   :  { %267 = vsyncadd [#allocation5], 4294967280  ;;  %v272_v0 = vmov 0.0   ;;  %vm273_vm0 = vmmov 0   ;;  %v212_v1 = vld [vmem:[#allocation2] sm:$0xff]   ;;  %v213_v2 = vld [vmem:[#allocation2 + $0x8] sm:$0xff]  }
  0x27   :  { %186 = vmatprep.subr.bf16.mxu0 %v272_v0  ;;  %202 = vmatprep.mubr.msk.bf16.mxu0 %vm273_vm0, %v272_v0  ;;  %v214_v3 = vld [vmem:[#allocation2 + $0x10] sm:$0xff]   ;;  %v215_v4 = vld [vmem:[#allocation2 + $0x18] sm:$0xff]   ;;  %v216_v5 = vld [vmem:[#allocation2 + $0x20] sm:$0xff]   ;;  %vm156_vm1 = vcmask 1041408   ;;  %vm157_vm2 = vsmask.f32 1280 }
  0x28   :  { %187 = vmatpush3.bf16.msra.mxu0 %v212_v1  ;;  %v217_v6 = vld [vmem:[#allocation2 + $0x28] sm:$0xff]   ;;  %v218_v7 = vld [vmem:[#allocation2 + $0x30] sm:$0xff]   ;;  %v219_v8 = vld [vmem:[#allocation2 + $0x38] sm:$0xff]  }
  0x29   :  { %188 = vmatprep.subr.bf16.mxu0 %v272_v0  ;;  %v41_v9 = vld [vmem:[%s327_s0] sm:$0x7]  ;;  %vm158_vm3 = vmand %vm156_vm1, %vm157_vm2 }
  0x2a   :  { %v42_v10 = vpack.c.bf16 %v41_v9, %v41_v9  ;;  %v168_v11 = vld [vmem:[#allocation4] ss:$0 sm:$0xff] }
  0x2b   :  { %v159_v18 = vld [vmem:[%s330_s3] sm:$0x3] }
  0x2c   :  { %189 = vmatpush3.bf16.msra.mxu0 %v213_v2 }
  0x2d   :  { %190 = vmatprep.subr.bf16.mxu0 %v272_v0 }
  0x30   :  { %191 = vmatpush3.bf16.msra.mxu0 %v214_v3 }
  0x31   :  { %192 = vmatprep.subr.bf16.mxu0 %v272_v0 }
  0x34   :  { %193 = vmatpush3.bf16.msra.mxu0 %v215_v4 }
  0x35   :  { %194 = vmatprep.subr.bf16.mxu0 %v272_v0 }
  0x38   :  { %195 = vmatpush3.bf16.msra.mxu0 %v216_v5 }
  0x39   :  { %196 = vmatprep.subr.bf16.mxu0 %v272_v0 }
  0x3c   :  { %197 = vmatpush3.bf16.msra.mxu0 %v217_v6 }
  0x3d   :  { %198 = vmatprep.subr.bf16.mxu0 %v272_v0 }
  0x40   :  { %199 = vmatpush3.bf16.msra.mxu0 %v218_v7 }
  0x41   :  { %200 = vmatprep.subr.bf16.mxu0 %v272_v0 }
  0x44   :  { %201 = vmatpush3.bf16.msra.mxu0 %v219_v8 }
  0x47   :  { %203 = vmatmul.mubr.bf16.vlgmr.msra.gmra.mrb[0].mxu0 %v42_v10 }
 0x11a   :  { %v148_v12 = vpop.f32.mrb[0].mxu0 }
 0x11b   :  { %v149_v13 = vadd.f32 %v168_v11, %v148_v12  ;;  %v204_v14 = vpop.f32.mrb[1].mxu0 }
 0x11c   :  { %v151_v15 = vpop.f32.mrb[2].mxu0 }
 0x11d   :  { %v154_v16 = vmax.f32 %v149_v13, 0.0  ;;  %v205_v17 = vpop.f32.mrb[3].mxu0 }
 0x11f   :  { %v155_v19 = vpack.c.bf16 %v154_v16, %v154_v16 }
 0x121   :  { %v160_v20 = vsel %vm158_vm3, %v155_v19, %v159_v18 }
 0x122   :  { %161 = vst [vmem:[%s330_s3] sm:$0x3] %v160_v20 }
 0x123   :  { %166 = vsyncpa [#allocation3], 1 }
 0x124   :  { %167 = vsyncpa [#allocation5], 1 }

// kernel: ofa_vit_forward.24
= control target key start
LH: loop header
LB: loop body
LE: loop exit
PB: predicated region body
PF: predicated region fallthrough
CT: control target
= control target key end

     0   :  { %8 = vsyncpa [#allocation3], 0  ;;  %s892_s12 = smov [#allocation2]   ;;  %s1178_s0 = inlined_call_operand.vmem [shape: f32[132,128], index: 0, kind: input, shape index: {}]   ;;  %s1179_s1 = inlined_call_operand.hbm [shape: bf16[128,384], index: 1, kind: input, shape index: {}]   ;;  %s1180_s2 = inlined_call_operand.vmem [shape: f32[1,384], index: 2, kind: input, shape index: {}]   ;;  %s1181_s3 = inlined_call_operand.vmem [shape: bf16[132,384], index: 3, kind: output, shape index: {}]  }
   0x1   :  { %s16_s13 = sshll.u32 %s892_s12, 4  ;;  %s868_s16 = scalar_lea.hbm %s1179_s1, 3072  ;;  %s17_s13 = int_to_ptr.vmem [resolvable:$true] %s16_s13 }
   0x2   :  { %p869_p0 = scmp.ne.s32.totalorder %s1179_s1, %s868_s16  ;;  %p872_p1 = scmp.lt.u32.totalorder %s868_s16, %s1179_s1 }
   0x4   :  { %p874_p2 = pnand %p872_p1, %p869_p0 }
   0x6   :  { %877 = shalt.err (!%p874_p2)
}
   0x7   :  { %s878_s21 = scalar_lea.vmem %s17_s13, 3072  ;;  %p883_p4 = scmp.lt.s32.totalorder %s17_s13, %s17_s13 }
   0x8   :  { %p879_p3 = scmp.ne.s32.totalorder %s17_s13, %s878_s21  ;;  %p884_p5 = scmp.lt.s32.totalorder %s878_s21, %s878_s21 }
   0xa   :  { %p885_p6 = por %p884_p5, %p883_p4 }
   0xc   :  { %p886_p7 = pnand %p885_p6, %p879_p3 }
   0xe   :  { %889 = shalt.err (!%p886_p7)
}
   0xf   :  { %s893_s22 = smov 192   ;;  %s894_s23 = smov 12  }
  0x10   :  { %22 = dma.hbm_to_vmem [thread:$0]  %s1179_s1, 3072, %s17_s13, [#allocation3], %s893_s22, %s893_s22, %s894_s23  }
  0x11   :  { %890 = dma.done.wait [#allocation3], 3072  }
  0x12   :  { %891 = vsyncadd [#allocation3], 4294964224  ;;  %v895_v0 = vmov 0.0   ;;  %vm896_vm0 = vmmov 0   ;;  %v897_v1 = vmov 0   ;;  %v29_v25 = vld [vmem:[%s1178_s0] sm:$0xff]  ;;  %v89_v52 = vlaneseq }
  0x13   :  { %778 = vmatprep.subr.bf16.mxu1 %v895_v0  ;;  %794 = vmatprep.mubr.msk.bf16.mxu1 %vm896_vm0, %v895_v0  ;;  %v836_v2 = vld [vmem:[#allocation2 + $0x4] ss:$12 sps:$4 sm:$0xff]   ;;  %v838_v3 = vld [vmem:[#allocation2 + $0x8] ss:$12 sps:$4 sm:$0xff]   ;;  %v839_v4 = vld [vmem:[#allocation2] ss:$12 sps:$4 sm:$0xff]  }
  0x14   :  { %264 = vmatprep.mubr.bf16.mxu0 %v897_v1  ;;  %232 = vmatprep.subr.bf16.mxu0 %v836_v2  ;;  %v840_v5 = vld [vmem:[#allocation2 + $0x1c] ss:$12 sps:$4 sm:$0xff]   ;;  %v842_v6 = vld [vmem:[#allocation2 + $0x20] ss:$12 sps:$4 sm:$0xff]   ;;  %v843_v7 = vld [vmem:[#allocation2 + $0x18] ss:$12 sps:$4 sm:$0xff]  }
  0x15   :  { %779 = vmatpush3.bf16.msra.mxu1 %v838_v3  ;;  %233 = vmatpush1.bf16.msra.mxu0 %v839_v4  ;;  %v844_v8 = vld [vmem:[#allocation2 + $0x34] ss:$12 sps:$4 sm:$0xff]   ;;  %v846_v9 = vld [vmem:[#allocation2 + $0x38] ss:$12 sps:$4 sm:$0xff]   ;;  %v847_v10 = vld [vmem:[#allocation2 + $0x30] ss:$12 sps:$4 sm:$0xff]  }
  0x16   :  { %780 = vmatprep.subr.bf16.mxu1 %v895_v0  ;;  %234 = vmatprep.subr.bf16.mxu0 %v840_v5  ;;  %v848_v11 = vld [vmem:[#allocation2 + $0x4c] ss:$12 sps:$4 sm:$0xff]   ;;  %v850_v12 = vld [vmem:[#allocation2 + $0x50] ss:$12 sps:$4 sm:$0xff]   ;;  %v851_v13 = vld [vmem:[#allocation2 + $0x48] ss:$12 sps:$4 sm:$0xff]  }
  0x17   :  { %v852_v14 = vld [vmem:[#allocation2 + $0x64] ss:$12 sps:$4 sm:$0xff]   ;;  %v854_v15 = vld [vmem:[#allocation2 + $0x68] ss:$12 sps:$4 sm:$0xff]   ;;  %v855_v16 = vld [vmem:[#allocation2 + $0x60] ss:$12 sps:$4 sm:$0xff]  }
  0x18   :  { %v856_v17 = vld [vmem:[#allocation2 + $0x7c] ss:$12 sps:$4 sm:$0xff]   ;;  %v858_v18 = vld [vmem:[#allocation2 + $0x80] ss:$12 sps:$4 sm:$0xff]   ;;  %v859_v19 = vld [vmem:[#allocation2 + $0x78] ss:$12 sps:$4 sm:$0xff]  }
  0x19   :  { %781 = vmatpush3.bf16.msra.mxu1 %v842_v6  ;;  %235 = vmatpush1.bf16.msra.mxu0 %v843_v7  ;;  %v860_v20 = vld [vmem:[#allocation2 + $0x94] ss:$12 sps:$4 sm:$0xff]   ;;  %v862_v21 = vld [vmem:[#allocation2 + $0x98] ss:$12 sps:$4 sm:$0xff]   ;;  %v863_v22 = vld [vmem:[#allocation2 + $0x90] ss:$12 sps:$4 sm:$0xff]  }
  0x1a   :  { %782 = vmatprep.subr.bf16.mxu1 %v895_v0  ;;  %236 = vmatprep.subr.bf16.mxu0 %v844_v8  ;;  %v864_v23 = vld [vmem:[#allocation2 + $0xac] ss:$12 sps:$4 sm:$0xff]   ;;  %v866_v24 = vld [vmem:[#allocation2 + $0xb0] ss:$12 sps:$4 sm:$0xff]   ;;  %v867_v27 = vld [vmem:[#allocation2 + $0xa8] ss:$12 sps:$4 sm:$0xff]  }
  0x1b   :  { %v30_v26 = vld [vmem:[%s1178_s0 + $0x8] sm:$0xff]  ;;  %v31_v29 = vld [vmem:[%s1178_s0 + $0x10] sm:$0xff]  ;;  %v32_v30 = vld [vmem:[%s1178_s0 + $0x18] sm:$0xff]  ;;  %v90_v53 = vshrl.u32 %v89_v52, 7 }
  0x1c   :  { %v46_v28 = vpack.c.bf16 %v30_v26, %v29_v25  ;;  %v47_v31 = vpack.c.bf16 %v32_v30, %v31_v29  ;;  %v33_v32 = vld [vmem:[%s1178_s0 + $0x20] sm:$0xff]  ;;  %v34_v33 = vld [vmem:[%s1178_s0 + $0x28] sm:$0xff]  ;;  %v35_v35 = vld [vmem:[%s1178_s0 + $0x30] sm:$0xff] }
  0x1d   :  { %783 = vmatpush3.bf16.msra.mxu1 %v846_v9  ;;  %237 = vmatpush1.bf16.msra.mxu0 %v847_v10  ;;  %v48_v34 = vpack.c.bf16 %v34_v33, %v33_v32  ;;  %v36_v36 = vld [vmem:[%s1178_s0 + $0x38] sm:$0xff]  ;;  %v37_v38 = vld [vmem:[%s1178_s0 + $0x40] sm:$0xff]  ;;  %v38_v39 = vld [vmem:[%s1178_s0 + $0x48] sm:$0xff]  ;;  %v99_v54 = vsub.s32 2, %v90_v53  ;;  %v91_v56 = vsub.s32 0, %v90_v53  ;;  %v95_v57 = vsub.s32 1, %v90_v53 }
  0x1e   :  { %784 = vmatprep.subr.bf16.mxu1 %v895_v0  ;;  %238 = vmatprep.subr.bf16.mxu0 %v848_v11  ;;  %v49_v37 = vpack.c.bf16 %v36_v36, %v35_v35  ;;  %v50_v40 = vpack.c.bf16 %v38_v39, %v37_v38  ;;  %v39_v41 = vld [vmem:[%s1178_s0 + $0x50] sm:$0xff]  ;;  %v40_v42 = vld [vmem:[%s1178_s0 + $0x58] sm:$0xff]  ;;  %v41_v44 = vld [vmem:[%s1178_s0 + $0x60] sm:$0xff] }
  0x1f   :  { %v51_v43 = vpack.c.bf16 %v40_v42, %v39_v41  ;;  %v42_v45 = vld [vmem:[%s1178_s0 + $0x68] sm:$0xff]  ;;  %v43_v47 = vld [vmem:[%s1178_s0 + $0x70] sm:$0xff]  ;;  %v44_v48 = vld [vmem:[%s1178_s0 + $0x78] sm:$0xff] }
  0x20   :  { %v52_v46 = vpack.c.bf16 %v42_v45, %v41_v44  ;;  %v53_v49 = vpack.c.bf16 %v44_v48, %v43_v47  ;;  %v45_v50 = vld [vmem:[%s1178_s0 + $0x80] sm:$0xf] }
  0x21   :  { %785 = vmatpush3.bf16.msra.mxu1 %v850_v12  ;;  %239 = vmatpush1.bf16.msra.mxu0 %v851_v13  ;;  %v54_v51 = vpack.c.bf16 %v45_v50, %v45_v50  ;;  %v87_v55 = vld [vmem:[%s1180_s2] sm:$0x7] }
  0x22   :  { %786 = vmatprep.subr.bf16.mxu1 %v895_v0  ;;  %240 = vmatprep.subr.bf16.mxu0 %v852_v14  ;;  %v1019_v58 = vrot.slane %v87_v55, %v99_v54  ;;  %v1021_v59 = vrot.slane %v87_v55, %v91_v56  ;;  %v1023_v60 = vrot.slane %v87_v55, %v95_v57 }
  0x25   :  { %787 = vmatpush3.bf16.msra.mxu1 %v854_v15  ;;  %241 = vmatpush1.bf16.msra.mxu0 %v855_v16 }
  0x26   :  { %788 = vmatprep.subr.bf16.mxu1 %v895_v0  ;;  %242 = vmatprep.subr.bf16.mxu0 %v856_v17 }
  0x29   :  { %789 = vmatpush3.bf16.msra.mxu1 %v858_v18  ;;  %243 = vmatpush1.bf16.msra.mxu0 %v859_v19 }
  0x2a   :  { %790 = vmatprep.subr.bf16.mxu1 %v895_v0  ;;  %244 = vmatprep.subr.bf16.mxu0 %v860_v20 }
  0x2d   :  { %791 = vmatpush3.bf16.msra.mxu1 %v862_v21  ;;  %245 = vmatpush1.bf16.msra.mxu0 %v863_v22 }
  0x2e   :  { %792 = vmatprep.subr.bf16.mxu1 %v895_v0  ;;  %246 = vmatprep.subr.bf16.mxu0 %v864_v23 }
  0x31   :  { %793 = vmatpush3.bf16.msra.mxu1 %v866_v24  ;;  %247 = vmatpush1.bf16.msra.mxu0 %v867_v27 }
  0x34   :  { %795 = vmatmul.mubr.bf16.vlgmr.msra.gmra.mrb[0].mxu1 %v46_v28  ;;  %265 = vmatmul.mubr.bf16.vlgmr.msra.gmra.mrb[0].mxu0 %v46_v28 }
  0x35   :  { %798 = vmatprep.mubr.msk.bf16.mxu1 %vm896_vm0, %v895_v0  ;;  %274 = vmatprep.mubr.bf16.mxu0 %v897_v1 }
  0x3c   :  { %799 = vmatmul.mubr.bf16.gmra.mrb[4].mxu1 %v47_v31  ;;  %275 = vmatmul.mubr.bf16.gmra.mrb[4].mxu0 %v47_v31 }
  0x3d   :  { %802 = vmatprep.mubr.msk.bf16.mxu1 %vm896_vm0, %v895_v0  ;;  %284 = vmatprep.mubr.bf16.mxu0 %v897_v1 }
  0x44   :  { %803 = vmatmul.mubr.bf16.gmra.mrb[8].mxu1 %v48_v34  ;;  %285 = vmatmul.mubr.bf16.gmra.mrb[8].mxu0 %v48_v34 }
  0x45   :  { %806 = vmatprep.mubr.msk.bf16.mxu1 %vm896_vm0, %v895_v0  ;;  %294 = vmatprep.mubr.bf16.mxu0 %v897_v1 }
  0x4c   :  { %807 = vmatmul.mubr.bf16.gmra.mrb[12].mxu1 %v49_v37  ;;  %295 = vmatmul.mubr.bf16.gmra.mrb[12].mxu0 %v49_v37 }
  0x4d   :  { %810 = vmatprep.mubr.msk.bf16.mxu1 %vm896_vm0, %v895_v0  ;;  %304 = vmatprep.mubr.bf16.mxu0 %v897_v1 }
  0x54   :  { %811 = vmatmul.mubr.bf16.gmra.mrb[16].mxu1 %v50_v40  ;;  %305 = vmatmul.mubr.bf16.gmra.mrb[16].mxu0 %v50_v40 }
  0x55   :  { %814 = vmatprep.mubr.msk.bf16.mxu1 %vm896_vm0, %v895_v0  ;;  %314 = vmatprep.mubr.bf16.mxu0 %v897_v1 }
  0x5c   :  { %815 = vmatmul.mubr.bf16.gmra.mrb[20].mxu1 %v51_v43  ;;  %315 = vmatmul.mubr.bf16.gmra.mrb[20].mxu0 %v51_v43 }
  0x5d   :  { %818 = vmatprep.mubr.msk.bf16.mxu1 %vm896_vm0, %v895_v0  ;;  %324 = vmatprep.mubr.bf16.mxu0 %v897_v1 }
  0x64   :  { %819 = vmatmul.mubr.bf16.gmra.mrb[24].mxu1 %v52_v46  ;;  %325 = vmatmul.mubr.bf16.gmra.mrb[24].mxu0 %v52_v46 }
  0x65   :  { %822 = vmatprep.mubr.msk.bf16.mxu1 %vm896_vm0, %v895_v0  ;;  %334 = vmatprep.mubr.bf16.mxu0 %v897_v1 }
  0x6c   :  { %823 = vmatmul.mubr.bf16.gmra.mrb[28].mxu1 %v53_v49  ;;  %335 = vmatmul.mubr.bf16.gmra.mrb[28].mxu0 %v53_v49 }
  0x6d   :  { %826 = vmatprep.mubr.msk.bf16.mxu1 %vm896_vm0, %v895_v0  ;;  %344 = vmatprep.mubr.bf16.mxu0 %v897_v1 }
  0x74   :  { %827 = vmatmul.mubr.bf16.gmra.mrb[32].mxu1 %v54_v51  ;;  %345 = vmatmul.mubr.bf16.gmra.mrb[32].mxu0 %v54_v51 }
 0x107   :  { %v387_v61 = vpop.f32.mrb[0].mxu1  ;;  %v266_v63 = vpop.f32.mrb[0].mxu0 }
 0x108   :  { %v388_v62 = vadd.f32 %v387_v61, %v1019_v58  ;;  %v796_v0 = vpop.f32.mrb[1].mxu1  ;;  %v267_v1 = vadd.f32 %v266_v63, %v1021_v59  ;;  %v268_v2 = vpop.f32.mrb[1].mxu0 }
 0x109   :  { %v390_v3 = vpop.f32.mrb[2].mxu1  ;;  %v269_v5 = vadd.f32 %v268_v2, %v1023_v60  ;;  %v270_v7 = vpop.f32.mrb[2].mxu0 }
 0x10a   :  { %v728_v4 = vpack.c.bf16 %v388_v62, %v388_v62  ;;  %v391_v6 = vadd.f32 %v390_v3, %v1019_v58  ;;  %v797_v8 = vpop.f32.mrb[3].mxu1  ;;  %v271_v9 = vadd.f32 %v270_v7, %v1021_v59  ;;  %v272_v10 = vpop.f32.mrb[3].mxu0 }
 0x10b   :  { %v727_v11 = vpack.c.bf16 %v269_v5, %v267_v1  ;;  %v273_v13 = vadd.f32 %v272_v10, %v1023_v60 }
 0x10c   :  { %631 = vst [vmem:[%s1181_s3 + $0x8] sm:$0xf] %v728_v4  ;;  %v730_v12 = vpack.c.bf16 %v391_v6, %v391_v6 }
 0x10d   :  { %630 = vst [vmem:[%s1181_s3] sm:$0xff] %v727_v11  ;;  %v729_v14 = vpack.c.bf16 %v273_v13, %v271_v9 }
 0x10e   :  { %633 = vst [vmem:[%s1181_s3 + $0x14] sm:$0xf] %v730_v12 }
 0x10f   :  { %v395_v15 = vpop.f32.mrb[4].mxu1  ;;  %632 = vst [vmem:[%s1181_s3 + $0xc] sm:$0xff] %v729_v14  ;;  %v276_v17 = vpop.f32.mrb[4].mxu0 }
 0x110   :  { %v396_v16 = vadd.f32 %v395_v15, %v1019_v58  ;;  %v800_v18 = vpop.f32.mrb[5].mxu1  ;;  %v277_v19 = vadd.f32 %v276_v17, %v1021_v59  ;;  %v278_v20 = vpop.f32.mrb[5].mxu0 }
 0x111   :  { %v398_v21 = vpop.f32.mrb[6].mxu1  ;;  %v279_v23 = vadd.f32 %v278_v20, %v1023_v60  ;;  %v280_v25 = vpop.f32.mrb[6].mxu0 }
 0x112   :  { %v732_v22 = vpack.c.bf16 %v396_v16, %v396_v16  ;;  %v399_v24 = vadd.f32 %v398_v21, %v1019_v58  ;;  %v801_v26 = vpop.f32.mrb[7].mxu1  ;;  %v281_v27 = vadd.f32 %v280_v25, %v1021_v59  ;;  %v282_v28 = vpop.f32.mrb[7].mxu0 }
 0x113   :  { %v731_v29 = vpack.c.bf16 %v279_v23, %v277_v19  ;;  %v283_v31 = vadd.f32 %v282_v28, %v1023_v60 }
 0x114   :  { %635 = vst [vmem:[%s1181_s3 + $0x20] sm:$0xf] %v732_v22  ;;  %v734_v30 = vpack.c.bf16 %v399_v24, %v399_v24 }
 0x115   :  { %634 = vst [vmem:[%s1181_s3 + $0x18] sm:$0xff] %v731_v29  ;;  %v733_v32 = vpack.c.bf16 %v283_v31, %v281_v27 }
 0x116   :  { %637 = vst [vmem:[%s1181_s3 + $0x2c] sm:$0xf] %v734_v30 }
 0x117   :  { %v403_v33 = vpop.f32.mrb[8].mxu1  ;;  %636 = vst [vmem:[%s1181_s3 + $0x24] sm:$0xff] %v733_v32  ;;  %v286_v35 = vpop.f32.mrb[8].mxu0 }
 0x118   :  { %v404_v34 = vadd.f32 %v403_v33, %v1019_v58  ;;  %v804_v36 = vpop.f32.mrb[9].mxu1  ;;  %v287_v37 = vadd.f32 %v286_v35, %v1021_v59  ;;  %v288_v38 = vpop.f32.mrb[9].mxu0 }
 0x119   :  { %v406_v39 = vpop.f32.mrb[10].mxu1  ;;  %v289_v41 = vadd.f32 %v288_v38, %v1023_v60  ;;  %v290_v43 = vpop.f32.mrb[10].mxu0 }
 0x11a   :  { %v736_v40 = vpack.c.bf16 %v404_v34, %v404_v34  ;;  %v407_v42 = vadd.f32 %v406_v39, %v1019_v58  ;;  %v805_v44 = vpop.f32.mrb[11].mxu1  ;;  %v291_v45 = vadd.f32 %v290_v43, %v1021_v59  ;;  %v292_v46 = vpop.f32.mrb[11].mxu0 }
 0x11b   :  { %v735_v47 = vpack.c.bf16 %v289_v41, %v287_v37  ;;  %v293_v49 = vadd.f32 %v292_v46, %v1023_v60 }
 0x11c   :  { %639 = vst [vmem:[%s1181_s3 + $0x38] sm:$0xf] %v736_v40  ;;  %v738_v48 = vpack.c.bf16 %v407_v42, %v407_v42 }
 0x11d   :  { %638 = vst [vmem:[%s1181_s3 + $0x30] sm:$0xff] %v735_v47  ;;  %v737_v50 = vpack.c.bf16 %v293_v49, %v291_v45 }
 0x11e   :  { %641 = vst [vmem:[%s1181_s3 + $0x44] sm:$0xf] %v738_v48 }
 0x11f   :  { %v411_v51 = vpop.f32.mrb[12].mxu1  ;;  %640 = vst [vmem:[%s1181_s3 + $0x3c] sm:$0xff] %v737_v50  ;;  %v296_v53 = vpop.f32.mrb[12].mxu0 }
 0x120   :  { %v412_v52 = vadd.f32 %v411_v51, %v1019_v58  ;;  %v808_v54 = vpop.f32.mrb[13].mxu1  ;;  %v297_v55 = vadd.f32 %v296_v53, %v1021_v59  ;;  %v298_v56 = vpop.f32.mrb[13].mxu0 }
 0x121   :  { %v414_v57 = vpop.f32.mrb[14].mxu1  ;;  %v299_v62 = vadd.f32 %v298_v56, %v1023_v60  ;;  %v300_v0 = vpop.f32.mrb[14].mxu0 }
 0x122   :  { %v740_v61 = vpack.c.bf16 %v412_v52, %v412_v52  ;;  %v415_v63 = vadd.f32 %v414_v57, %v1019_v58  ;;  %v809_v1 = vpop.f32.mrb[15].mxu1  ;;  %v301_v2 = vadd.f32 %v300_v0, %v1021_v59  ;;  %v302_v3 = vpop.f32.mrb[15].mxu0 }
 0x123   :  { %v739_v4 = vpack.c.bf16 %v299_v62, %v297_v55  ;;  %v303_v6 = vadd.f32 %v302_v3, %v1023_v60 }
 0x124   :  { %643 = vst [vmem:[%s1181_s3 + $0x50] sm:$0xf] %v740_v61  ;;  %v742_v5 = vpack.c.bf16 %v415_v63, %v415_v63 }
 0x125   :  { %642 = vst [vmem:[%s1181_s3 + $0x48] sm:$0xff] %v739_v4  ;;  %v741_v7 = vpack.c.bf16 %v303_v6, %v301_v2 }
 0x126   :  { %645 = vst [vmem:[%s1181_s3 + $0x5c] sm:$0xf] %v742_v5 }
 0x127   :  { %v419_v8 = vpop.f32.mrb[16].mxu1  ;;  %644 = vst [vmem:[%s1181_s3 + $0x54] sm:$0xff] %v741_v7  ;;  %v306_v10 = vpop.f32.mrb[16].mxu0 }
 0x128   :  { %v420_v9 = vadd.f32 %v419_v8, %v1019_v58  ;;  %v812_v11 = vpop.f32.mrb[17].mxu1  ;;  %v307_v12 = vadd.f32 %v306_v10, %v1021_v59  ;;  %v308_v13 = vpop.f32.mrb[17].mxu0 }
 0x129   :  { %v422_v14 = vpop.f32.mrb[18].mxu1  ;;  %v309_v16 = vadd.f32 %v308_v13, %v1023_v60  ;;  %v310_v18 = vpop.f32.mrb[18].mxu0 }
 0x12a   :  { %v744_v15 = vpack.c.bf16 %v420_v9, %v420_v9  ;;  %v423_v17 = vadd.f32 %v422_v14, %v1019_v58  ;;  %v813_v19 = vpop.f32.mrb[19].mxu1  ;;  %v311_v20 = vadd.f32 %v310_v18, %v1021_v59  ;;  %v312_v21 = vpop.f32.mrb[19].mxu0 }
 0x12b   :  { %v743_v22 = vpack.c.bf16 %v309_v16, %v307_v12  ;;  %v313_v24 = vadd.f32 %v312_v21, %v1023_v60 }
 0x12c   :  { %647 = vst [vmem:[%s1181_s3 + $0x68] sm:$0xf] %v744_v15  ;;  %v746_v23 = vpack.c.bf16 %v423_v17, %v423_v17 }
 0x12d   :  { %646 = vst [vmem:[%s1181_s3 + $0x60] sm:$0xff] %v743_v22  ;;  %v745_v25 = vpack.c.bf16 %v313_v24, %v311_v20 }
 0x12e   :  { %649 = vst [vmem:[%s1181_s3 + $0x74] sm:$0xf] %v746_v23 }
 0x12f   :  { %v427_v26 = vpop.f32.mrb[20].mxu1  ;;  %648 = vst [vmem:[%s1181_s3 + $0x6c] sm:$0xff] %v745_v25  ;;  %v316_v28 = vpop.f32.mrb[20].mxu0 }
 0x130   :  { %v428_v27 = vadd.f32 %v427_v26, %v1019_v58  ;;  %v816_v29 = vpop.f32.mrb[21].mxu1  ;;  %v317_v30 = vadd.f32 %v316_v28, %v1021_v59  ;;  %v318_v31 = vpop.f32.mrb[21].mxu0 }
 0x131   :  { %v430_v32 = vpop.f32.mrb[22].mxu1  ;;  %v319_v34 = vadd.f32 %v318_v31, %v1023_v60  ;;  %v320_v36 = vpop.f32.mrb[22].mxu0 }
 0x132   :  { %v748_v33 = vpack.c.bf16 %v428_v27, %v428_v27  ;;  %v431_v35 = vadd.f32 %v430_v32, %v1019_v58  ;;  %v817_v37 = vpop.f32.mrb[23].mxu1  ;;  %v321_v38 = vadd.f32 %v320_v36, %v1021_v59  ;;  %v322_v39 = vpop.f32.mrb[23].mxu0 }
 0x133   :  { %v747_v40 = vpack.c.bf16 %v319_v34, %v317_v30  ;;  %v323_v42 = vadd.f32 %v322_v39, %v1023_v60 }
 0x134   :  { %651 = vst [vmem:[%s1181_s3 + $0x80] sm:$0xf] %v748_v33  ;;  %v750_v41 = vpack.c.bf16 %v431_v35, %v431_v35 }
 0x135   :  { %650 = vst [vmem:[%s1181_s3 + $0x78] sm:$0xff] %v747_v40  ;;  %v749_v43 = vpack.c.bf16 %v323_v42, %v321_v38 }
 0x136   :  { %653 = vst [vmem:[%s1181_s3 + $0x8c] sm:$0xf] %v750_v41 }
 0x137   :  { %v435_v44 = vpop.f32.mrb[24].mxu1  ;;  %652 = vst [vmem:[%s1181_s3 + $0x84] sm:$0xff] %v749_v43  ;;  %v326_v46 = vpop.f32.mrb[24].mxu0 }
 0x138   :  { %v436_v45 = vadd.f32 %v435_v44, %v1019_v58  ;;  %v820_v47 = vpop.f32.mrb[25].mxu1  ;;  %v327_v48 = vadd.f32 %v326_v46, %v1021_v59  ;;  %v328_v49 = vpop.f32.mrb[25].mxu0 }
 0x139   :  { %v438_v50 = vpop.f32.mrb[26].mxu1  ;;  %v329_v52 = vadd.f32 %v328_v49, %v1023_v60  ;;  %v330_v54 = vpop.f32.mrb[26].mxu0 }
 0x13a   :  { %v752_v51 = vpack.c.bf16 %v436_v45, %v436_v45  ;;  %v439_v53 = vadd.f32 %v438_v50, %v1019_v58  ;;  %v821_v55 = vpop.f32.mrb[27].mxu1  ;;  %v331_v56 = vadd.f32 %v330_v54, %v1021_v59  ;;  %v332_v57 = vpop.f32.mrb[27].mxu0 }
 0x13b   :  { %v751_v61 = vpack.c.bf16 %v329_v52, %v327_v48  ;;  %v333_v63 = vadd.f32 %v332_v57, %v1023_v60 }
 0x13c   :  { %655 = vst [vmem:[%s1181_s3 + $0x98] sm:$0xf] %v752_v51  ;;  %v754_v62 = vpack.c.bf16 %v439_v53, %v439_v53 }
 0x13d   :  { %654 = vst [vmem:[%s1181_s3 + $0x90] sm:$0xff] %v751_v61  ;;  %v753_v0 = vpack.c.bf16 %v333_v63, %v331_v56 }
 0x13e   :  { %657 = vst [vmem:[%s1181_s3 + $0xa4] sm:$0xf] %v754_v62 }
 0x13f   :  { %v443_v1 = vpop.f32.mrb[28].mxu1  ;;  %656 = vst [vmem:[%s1181_s3 + $0x9c] sm:$0xff] %v753_v0  ;;  %v336_v3 = vpop.f32.mrb[28].mxu0 }
 0x140   :  { %v444_v2 = vadd.f32 %v443_v1, %v1019_v58  ;;  %v824_v4 = vpop.f32.mrb[29].mxu1  ;;  %v337_v5 = vadd.f32 %v336_v3, %v1021_v59  ;;  %v338_v6 = vpop.f32.mrb[29].mxu0 }
 0x141   :  { %v446_v7 = vpop.f32.mrb[30].mxu1  ;;  %v339_v9 = vadd.f32 %v338_v6, %v1023_v60  ;;  %v340_v11 = vpop.f32.mrb[30].mxu0 }
 0x142   :  { %v756_v8 = vpack.c.bf16 %v444_v2, %v444_v2  ;;  %v447_v10 = vadd.f32 %v446_v7, %v1019_v58  ;;  %v825_v12 = vpop.f32.mrb[31].mxu1  ;;  %v341_v13 = vadd.f32 %v340_v11, %v1021_v59  ;;  %v342_v14 = vpop.f32.mrb[31].mxu0 }
 0x143   :  { %v755_v15 = vpack.c.bf16 %v339_v9, %v337_v5  ;;  %v343_v17 = vadd.f32 %v342_v14, %v1023_v60 }
 0x144   :  { %659 = vst [vmem:[%s1181_s3 + $0xb0] sm:$0xf] %v756_v8  ;;  %v758_v16 = vpack.c.bf16 %v447_v10, %v447_v10 }
 0x145   :  { %658 = vst [vmem:[%s1181_s3 + $0xa8] sm:$0xff] %v755_v15  ;;  %v757_v18 = vpack.c.bf16 %v343_v17, %v341_v13 }
 0x146   :  { %661 = vst [vmem:[%s1181_s3 + $0xbc] sm:$0xf] %v758_v16 }
 0x147   :  { %v451_v19 = vpop.f32.mrb[32].mxu1  ;;  %660 = vst [vmem:[%s1181_s3 + $0xb4] sm:$0xff] %v757_v18  ;;  %v346_v21 = vpop.f32.mrb[32].mxu0 }
 0x148   :  { %v452_v20 = vadd.f32 %v451_v19, %v1019_v58  ;;  %v828_v22 = vpop.f32.mrb[33].mxu1  ;;  %v347_v23 = vadd.f32 %v346_v21, %v1021_v59  ;;  %v348_v24 = vpop.f32.mrb[33].mxu0 }
 0x149   :  { %v454_v25 = vpop.f32.mrb[34].mxu1  ;;  %v349_v27 = vadd.f32 %v348_v24, %v1023_v60  ;;  %v350_v28 = vpop.f32.mrb[34].mxu0 }
 0x14a   :  { %v760_v26 = vpack.c.bf16 %v452_v20, %v452_v20  ;;  %v829_v29 = vpop.f32.mrb[35].mxu1  ;;  %v351_v30 = vpop.f32.mrb[35].mxu0 }
 0x14b   :  { %v759_v31 = vpack.c.bf16 %v349_v27, %v347_v23 }
 0x14c   :  { %663 = vst [vmem:[%s1181_s3 + $0xc8] sm:$0x3] %v760_v26 }
 0x14d   :  { %662 = vst [vmem:[%s1181_s3 + $0xc0] sm:$0x33] %v759_v31 }
 0x14e   :  { %668 = vsyncpa [#allocation3], 1 }

// kernel: ofa_vit_forward.26
= control target key start
LH: loop header
LB: loop body
LE: loop exit
PB: predicated region body
PF: predicated region fallthrough
CT: control target
= control target key end

     0   :  { %v439_v0 = vmov 0.0   ;;  %vm440_vm0 = vmmov 0   ;;  %s675_s1 = inlined_call_operand.vmem [shape: bf16[128,128], index: 1, kind: input, shape index: {}]   ;;  %s676_s0 = inlined_call_operand.vmem [shape: bf16[132,128], index: 0, kind: input, shape index: {}]   ;;  %s677_s2 = inlined_call_operand.vmem [shape: f32[1,128], index: 2, kind: input, shape index: {}]   ;;  %s678_s3 = inlined_call_operand.vmem [shape: f32[132,128], index: 3, kind: input, shape index: {}]   ;;  %s679_s4 = inlined_call_operand.vmem [shape: f32[132,128], index: 4, kind: output, shape index: {}]  }
   0x1   :  { %352 = vmatprep.subr.bf16.mxu0 %v439_v0  ;;  %v422_v1 = vld [vmem:[%s675_s1] sm:$0xff]   ;;  %404 = vmatprep.subr.bf16.mxu1 %v439_v0  ;;  %v423_v2 = vld [vmem:[%s675_s1 + $0x8] sm:$0xff]   ;;  %v424_v3 = vld [vmem:[%s675_s1 + $0x10] sm:$0xff]  }
   0x2   :  { %368 = vmatprep.mubr.msk.bf16.mxu0 %vm440_vm0, %v439_v0  ;;  %388 = vmatprep.mubr.msk.bf16.mxu1 %vm440_vm0, %v439_v0  ;;  %v425_v4 = vld [vmem:[%s675_s1 + $0x18] sm:$0xff]   ;;  %v426_v5 = vld [vmem:[%s675_s1 + $0x20] sm:$0xff]   ;;  %v427_v6 = vld [vmem:[%s675_s1 + $0x28] sm:$0xff]  }
   0x3   :  { %353 = vmatpush3.bf16.msra.mxu0 %v422_v1  ;;  %412 = vmatpush3.bf16.msra.mxu1 %v422_v1  ;;  %v428_v7 = vld [vmem:[%s675_s1 + $0x30] sm:$0xff]   ;;  %v429_v8 = vld [vmem:[%s675_s1 + $0x38] sm:$0xff]   ;;  %v430_v9 = vld [vmem:[%s676_s0] sm:$0xff]  }
   0x4   :  { %354 = vmatprep.subr.bf16.mxu0 %v439_v0  ;;  %405 = vmatprep.subr.bf16.mxu1 %v439_v0  ;;  %v431_v10 = vld [vmem:[%s676_s0 + $0x28] sm:$0xff]   ;;  %v433_v12 = vld [vmem:[%s676_s0 + $0x30] sm:$0xff]   ;;  %v435_v14 = vld [vmem:[%s676_s0 + $0x38] sm:$0xff]  }
   0x5   :  { %v432_v11 = vld [vmem:[%s676_s0 + $0x8] sm:$0xff]   ;;  %v434_v13 = vld [vmem:[%s676_s0 + $0x10] sm:$0xff]   ;;  %v436_v15 = vld [vmem:[%s676_s0 + $0x18] sm:$0xff]  }
   0x6   :  { %v437_v16 = vld [vmem:[%s676_s0 + $0x40] ss:$0 sps:$4 sm:$0x33]   ;;  %v272_v22 = vld [vmem:[%s678_s3 + $0x50] sm:$0xff]  ;;  %v263_v28 = vld [vmem:[%s678_s3 + $0x8] sm:$0xff] }
   0x7   :  { %355 = vmatpush3.bf16.msra.mxu0 %v423_v2  ;;  %413 = vmatpush3.bf16.msra.mxu1 %v423_v2  ;;  %v438_v17 = vld [vmem:[%s676_s0 + $0x20] sm:$0xff]   ;;  %v273_v30 = vld [vmem:[%s678_s3 + $0x58] sm:$0xff]  ;;  %v264_v40 = vld [vmem:[%s678_s3 + $0x10] sm:$0xff] }
   0x8   :  { %356 = vmatprep.subr.bf16.mxu0 %v439_v0  ;;  %406 = vmatprep.subr.bf16.mxu1 %v439_v0  ;;  %v554_v18 = vld [vmem:[%s677_s2] ss:$0 sm:$0xff]  ;;  %v265_v48 = vld [vmem:[%s678_s3 + $0x18] sm:$0xff]  ;;  %v275_v50 = vld [vmem:[%s678_s3 + $0x68] sm:$0xff] }
   0x9   :  { %v262_v20 = vld [vmem:[%s678_s3] sm:$0xff]  ;;  %v276_v62 = vld [vmem:[%s678_s3 + $0x70] sm:$0xff] }
   0xa   :  { %v274_v42 = vld [vmem:[%s678_s3 + $0x60] sm:$0xff] }
   0xb   :  { %357 = vmatpush3.bf16.msra.mxu0 %v424_v3  ;;  %414 = vmatpush3.bf16.msra.mxu1 %v424_v3  ;;  %v266_v60 = vld [vmem:[%s678_s3 + $0x20] sm:$0xff] }
   0xc   :  { %358 = vmatprep.subr.bf16.mxu0 %v439_v0  ;;  %407 = vmatprep.subr.bf16.mxu1 %v439_v0 }
   0xf   :  { %359 = vmatpush3.bf16.msra.mxu0 %v425_v4  ;;  %415 = vmatpush3.bf16.msra.mxu1 %v425_v4  ;;  %v267_v4 = vld [vmem:[%s678_s3 + $0x28] sm:$0xff] }
  0x10   :  { %360 = vmatprep.subr.bf16.mxu0 %v439_v0  ;;  %408 = vmatprep.subr.bf16.mxu1 %v439_v0 }
  0x13   :  { %361 = vmatpush3.bf16.msra.mxu0 %v426_v5  ;;  %416 = vmatpush3.bf16.msra.mxu1 %v426_v5 }
  0x14   :  { %362 = vmatprep.subr.bf16.mxu0 %v439_v0  ;;  %409 = vmatprep.subr.bf16.mxu1 %v439_v0 }
  0x17   :  { %363 = vmatpush3.bf16.msra.mxu0 %v427_v6  ;;  %417 = vmatpush3.bf16.msra.mxu1 %v427_v6  ;;  %v277_v6 = vld [vmem:[%s678_s3 + $0x78] sm:$0xff] }
  0x18   :  { %364 = vmatprep.subr.bf16.mxu0 %v439_v0  ;;  %410 = vmatprep.subr.bf16.mxu1 %v439_v0 }
  0x1b   :  { %365 = vmatpush3.bf16.msra.mxu0 %v428_v7  ;;  %418 = vmatpush3.bf16.msra.mxu1 %v428_v7 }
  0x1c   :  { %366 = vmatprep.subr.bf16.mxu0 %v439_v0  ;;  %411 = vmatprep.subr.bf16.mxu1 %v439_v0 }
  0x1f   :  { %367 = vmatpush3.bf16.msra.mxu0 %v429_v8  ;;  %419 = vmatpush3.bf16.msra.mxu1 %v429_v8 }
  0x22   :  { %369 = vmatmul.mubr.bf16.vlgmr.msra.gmra.mrb[0].mxu0 %v430_v9  ;;  %389 = vmatmul.mubr.bf16.vlgmr.msra.gmra.mrb[0].mxu1 %v431_v10 }
  0x23   :  { %372 = vmatprep.mubr.msk.bf16.mxu0 %vm440_vm0, %v439_v0  ;;  %392 = vmatprep.mubr.msk.bf16.mxu1 %vm440_vm0, %v439_v0 }
  0x2a   :  { %373 = vmatmul.mubr.bf16.gmra.mrb[4].mxu0 %v432_v11  ;;  %393 = vmatmul.mubr.bf16.gmra.mrb[4].mxu1 %v433_v12 }
  0x2b   :  { %376 = vmatprep.mubr.msk.bf16.mxu0 %vm440_vm0, %v439_v0  ;;  %396 = vmatprep.mubr.msk.bf16.mxu1 %vm440_vm0, %v439_v0 }
  0x32   :  { %377 = vmatmul.mubr.bf16.gmra.mrb[8].mxu0 %v434_v13  ;;  %397 = vmatmul.mubr.bf16.gmra.mrb[8].mxu1 %v435_v14 }
  0x33   :  { %380 = vmatprep.mubr.msk.bf16.mxu0 %vm440_vm0, %v439_v0  ;;  %400 = vmatprep.mubr.msk.bf16.mxu1 %vm440_vm0, %v439_v0 }
  0x3a   :  { %381 = vmatmul.mubr.bf16.gmra.mrb[12].mxu0 %v436_v15  ;;  %401 = vmatmul.mubr.bf16.gmra.mrb[12].mxu1 %v437_v16  ;;  %v268_v16 = vld [vmem:[%s678_s3 + $0x30] sm:$0xff] }
  0x3b   :  { %384 = vmatprep.mubr.msk.bf16.mxu0 %vm440_vm0, %v439_v0 }
  0x42   :  { %385 = vmatmul.mubr.bf16.gmra.mrb[16].mxu0 %v438_v17 }
  0xf5   :  { %v192_v19 = vpop.f32.mrb[0].mxu0  ;;  %v232_v21 = vpop.f32.mrb[0].mxu1 }
  0xf6   :  { %v193_v23 = vadd.f32 %v554_v18, %v192_v19  ;;  %v370_v24 = vpop.f32.mrb[1].mxu0  ;;  %v233_v25 = vadd.f32 %v554_v18, %v232_v21  ;;  %v390_v26 = vpop.f32.mrb[1].mxu1  ;;  %v278_v19 = vld [vmem:[%s678_s3 + $0x80] sm:$0xf] }
  0xf7   :  { %v195_v27 = vpop.f32.mrb[2].mxu0  ;;  %v235_v29 = vpop.f32.mrb[2].mxu1 }
  0xf8   :  { %v279_v31 = vadd.f32 %v262_v20, %v193_v23  ;;  %v196_v32 = vadd.f32 %v554_v18, %v195_v27  ;;  %v371_v33 = vpop.f32.mrb[3].mxu0  ;;  %v289_v34 = vadd.f32 %v272_v22, %v233_v25  ;;  %v236_v35 = vadd.f32 %v554_v18, %v235_v29  ;;  %v391_v36 = vpop.f32.mrb[3].mxu1  ;;  %v269_v25 = vld [vmem:[%s678_s3 + $0x38] sm:$0xff] }
  0xfa   :  { %296 = vst [vmem:[%s679_s4] sm:$0xff] %v279_v31  ;;  %v280_v37 = vadd.f32 %v263_v28, %v196_v32  ;;  %306 = vst [vmem:[%s679_s4 + $0x50] sm:$0xff] %v289_v34  ;;  %v290_v38 = vadd.f32 %v273_v30, %v236_v35  ;;  %v270_v34 = vld [vmem:[%s678_s3 + $0x40] sm:$0xff] }
  0xfc   :  { %297 = vst [vmem:[%s679_s4 + $0x8] sm:$0xff] %v280_v37  ;;  %307 = vst [vmem:[%s679_s4 + $0x58] sm:$0xff] %v290_v38  ;;  %v271_v38 = vld [vmem:[%s678_s3 + $0x48] sm:$0xff] }
  0xfd   :  { %v200_v39 = vpop.f32.mrb[4].mxu0  ;;  %v240_v41 = vpop.f32.mrb[4].mxu1 }
  0xfe   :  { %v201_v43 = vadd.f32 %v554_v18, %v200_v39  ;;  %v374_v44 = vpop.f32.mrb[5].mxu0  ;;  %v241_v45 = vadd.f32 %v554_v18, %v240_v41  ;;  %v394_v46 = vpop.f32.mrb[5].mxu1 }
  0xff   :  { %v203_v47 = vpop.f32.mrb[6].mxu0  ;;  %v243_v49 = vpop.f32.mrb[6].mxu1 }
 0x100   :  { %v281_v51 = vadd.f32 %v264_v40, %v201_v43  ;;  %v204_v52 = vadd.f32 %v554_v18, %v203_v47  ;;  %v375_v53 = vpop.f32.mrb[7].mxu0  ;;  %v291_v54 = vadd.f32 %v274_v42, %v241_v45  ;;  %v244_v55 = vadd.f32 %v554_v18, %v243_v49  ;;  %v395_v56 = vpop.f32.mrb[7].mxu1 }
 0x102   :  { %298 = vst [vmem:[%s679_s4 + $0x10] sm:$0xff] %v281_v51  ;;  %v282_v57 = vadd.f32 %v265_v48, %v204_v52  ;;  %308 = vst [vmem:[%s679_s4 + $0x60] sm:$0xff] %v291_v54  ;;  %v292_v58 = vadd.f32 %v275_v50, %v244_v55 }
 0x104   :  { %299 = vst [vmem:[%s679_s4 + $0x18] sm:$0xff] %v282_v57  ;;  %309 = vst [vmem:[%s679_s4 + $0x68] sm:$0xff] %v292_v58 }
 0x105   :  { %v208_v59 = vpop.f32.mrb[8].mxu0  ;;  %v248_v61 = vpop.f32.mrb[8].mxu1 }
 0x106   :  { %v209_v63 = vadd.f32 %v554_v18, %v208_v59  ;;  %v378_v0 = vpop.f32.mrb[9].mxu0  ;;  %v249_v1 = vadd.f32 %v554_v18, %v248_v61  ;;  %v398_v2 = vpop.f32.mrb[9].mxu1 }
 0x107   :  { %v211_v3 = vpop.f32.mrb[10].mxu0  ;;  %v251_v5 = vpop.f32.mrb[10].mxu1 }
 0x108   :  { %v283_v7 = vadd.f32 %v266_v60, %v209_v63  ;;  %v212_v8 = vadd.f32 %v554_v18, %v211_v3  ;;  %v379_v9 = vpop.f32.mrb[11].mxu0  ;;  %v293_v10 = vadd.f32 %v276_v62, %v249_v1  ;;  %v252_v11 = vadd.f32 %v554_v18, %v251_v5  ;;  %v399_v12 = vpop.f32.mrb[11].mxu1 }
 0x10a   :  { %300 = vst [vmem:[%s679_s4 + $0x20] sm:$0xff] %v283_v7  ;;  %v284_v13 = vadd.f32 %v267_v4, %v212_v8  ;;  %310 = vst [vmem:[%s679_s4 + $0x70] sm:$0xff] %v293_v10  ;;  %v294_v14 = vadd.f32 %v277_v6, %v252_v11 }
 0x10c   :  { %301 = vst [vmem:[%s679_s4 + $0x28] sm:$0xff] %v284_v13  ;;  %311 = vst [vmem:[%s679_s4 + $0x78] sm:$0xff] %v294_v14 }
 0x10d   :  { %v216_v15 = vpop.f32.mrb[12].mxu0  ;;  %v256_v17 = vpop.f32.mrb[12].mxu1 }
 0x10e   :  { %v217_v20 = vadd.f32 %v554_v18, %v216_v15  ;;  %v382_v21 = vpop.f32.mrb[13].mxu0  ;;  %v257_v22 = vadd.f32 %v554_v18, %v256_v17  ;;  %v402_v23 = vpop.f32.mrb[13].mxu1 }
 0x10f   :  { %v219_v24 = vpop.f32.mrb[14].mxu0  ;;  %v259_v26 = vpop.f32.mrb[14].mxu1 }
 0x110   :  { %v285_v27 = vadd.f32 %v268_v16, %v217_v20  ;;  %v220_v28 = vadd.f32 %v554_v18, %v219_v24  ;;  %v383_v29 = vpop.f32.mrb[15].mxu0  ;;  %v295_v30 = vadd.f32 %v278_v19, %v257_v22  ;;  %v403_v31 = vpop.f32.mrb[15].mxu1 }
 0x112   :  { %302 = vst [vmem:[%s679_s4 + $0x30] sm:$0xff] %v285_v27  ;;  %v286_v32 = vadd.f32 %v269_v25, %v220_v28  ;;  %312 = vst [vmem:[%s679_s4 + $0x80] sm:$0xf] %v295_v30 }
 0x114   :  { %303 = vst [vmem:[%s679_s4 + $0x38] sm:$0xff] %v286_v32 }
 0x115   :  { %v224_v33 = vpop.f32.mrb[16].mxu0 }
 0x116   :  { %v225_v35 = vadd.f32 %v554_v18, %v224_v33  ;;  %v386_v36 = vpop.f32.mrb[17].mxu0 }
 0x117   :  { %v227_v37 = vpop.f32.mrb[18].mxu0 }
 0x118   :  { %v287_v39 = vadd.f32 %v270_v34, %v225_v35  ;;  %v228_v40 = vadd.f32 %v554_v18, %v227_v37  ;;  %v387_v41 = vpop.f32.mrb[19].mxu0 }
 0x11a   :  { %304 = vst [vmem:[%s679_s4 + $0x40] sm:$0xff] %v287_v39  ;;  %v288_v42 = vadd.f32 %v271_v38, %v228_v40 }
 0x11c   :  { %305 = vst [vmem:[%s679_s4 + $0x48] sm:$0xff] %v288_v42 }

// kernel: ofa_vit_forward.27
= control target key start
LH: loop header
LB: loop body
LE: loop exit
PB: predicated region body
PF: predicated region fallthrough
CT: control target
= control target key end

     0   :  { %vm63_vm0 = vcmask 1043456   ;;  %s611_s0 = inlined_call_operand.vmem [shape: f32[132,128], index: 0, kind: input, shape index: {}]   ;;  %s612_s1 = inlined_call_operand.vmem [shape: f32[1,128], index: 1, kind: input, shape index: {}]   ;;  %s613_s2 = inlined_call_operand.vmem [shape: f32[1,128], index: 2, kind: input, shape index: {}]   ;;  %s614_s3 = inlined_call_operand.vmem [shape: f32[132,128], index: 3, kind: output, shape index: {}]  }
   0x1   :  { %v15_v0 = vld [vmem:[%s611_s0 + $0x8] sm:$0xff]  ;;  %v353_v1 = vld [vmem:[%s611_s0 + $0x80] sm:$0xf]  ;;  %v16_v3 = vld [vmem:[%s611_s0 + $0x10] sm:$0xff] }
   0x2   :  { %33 = vadd.xlane.f32.xlu1 %v15_v0  ;;  %v64_v2 = vsel %vm63_vm0, %v353_v1, 0.0  ;;  %v14_v4 = vld [vmem:[%s611_s0] sm:$0xff]  ;;  %v17_v6 = vld [vmem:[%s611_s0 + $0x18] sm:$0xff]  ;;  %v20_v7 = vld [vmem:[%s611_s0 + $0x30] sm:$0xff] }
   0x3   :  { %65 = vadd.xlane.f32.xlu0 %v64_v2  ;;  %v18_v5 = vld [vmem:[%s611_s0 + $0x20] sm:$0xff]  ;;  %v19_v8 = vld [vmem:[%s611_s0 + $0x28] sm:$0xff]  ;;  %v21_v10 = vld [vmem:[%s611_s0 + $0x38] sm:$0xff] }
   0x4   :  { %v22_v9 = vld [vmem:[%s611_s0 + $0x40] sm:$0xff]  ;;  %v384_v11 = vld [vmem:[%s611_s0 + $0x50] sm:$0xff]  ;;  %v23_v12 = vld [vmem:[%s611_s0 + $0x48] sm:$0xff] }
   0x5   :  { %v393_v13 = vld [vmem:[%s611_s0 + $0x60] sm:$0xff]  ;;  %v398_v14 = vld [vmem:[%s611_s0 + $0x58] sm:$0xff]  ;;  %v405_v15 = vld [vmem:[%s611_s0 + $0x70] sm:$0xff] }
   0x6   :  { %35 = vadd.xlane.f32.xlu1 %v16_v3  ;;  %v410_v16 = vld [vmem:[%s611_s0 + $0x68] sm:$0xff]  ;;  %v417_v17 = vld [vmem:[%s611_s0 + $0x78] sm:$0xff] }
   0x7   :  { %31 = vadd.xlane.f32.xlu0 %v14_v4 }
   0xa   :  { %39 = vadd.xlane.f32.xlu1 %v18_v5 }
   0xb   :  { %37 = vadd.xlane.f32.xlu0 %v17_v6 }
   0xe   :  { %43 = vadd.xlane.f32.xlu1 %v20_v7 }
   0xf   :  { %41 = vadd.xlane.f32.xlu0 %v19_v8 }
  0x12   :  { %47 = vadd.xlane.f32.xlu1 %v22_v9 }
  0x13   :  { %45 = vadd.xlane.f32.xlu0 %v21_v10 }
  0x16   :  { %51 = vadd.xlane.f32.xlu1 %v384_v11 }
  0x17   :  { %49 = vadd.xlane.f32.xlu0 %v23_v12 }
  0x1a   :  { %55 = vadd.xlane.f32.xlu1 %v393_v13 }
  0x1b   :  { %53 = vadd.xlane.f32.xlu0 %v398_v14 }
  0x1e   :  { %59 = vadd.xlane.f32.xlu1 %v405_v15 }
  0x1f   :  { %57 = vadd.xlane.f32.xlu0 %v410_v16 }
  0x23   :  { %61 = vadd.xlane.f32.xlu0 %v417_v17 }
  0x8f   :  { %v34_v18 = vpop.xlane.xlu1 %33 }
  0x90   :  { %v69_v19 = vmul.f32 0.0078125, %v34_v18  ;;  %v420_v20 = vpop.xlane.xlu0 %65 }
  0x92   :  { %v422_v21 = vsub.f32 %v15_v0, %v69_v19 }
  0x93   :  { %v36_v22 = vpop.xlane.xlu1 %35 }
  0x94   :  { %v32_v23 = vpop.xlane.xlu0 %31  ;;  %v103_v24 = vmul.f32 %v422_v21, %v422_v21  ;;  %v70_v25 = vmul.f32 0.0078125, %v36_v22 }
  0x95   :  { %v68_v26 = vmul.f32 0.0078125, %v32_v23 }
  0x96   :  { %121 = vadd.xlane.f32.xlu0 %v103_v24  ;;  %v428_v28 = vsub.f32 %v16_v3, %v70_v25 }
  0x97   :  { %v426_v27 = vsub.f32 %v14_v4, %v68_v26  ;;  %v40_v29 = vpop.xlane.xlu1 %39 }
  0x98   :  { %v38_v30 = vpop.xlane.xlu0 %37  ;;  %v72_v31 = vmul.f32 0.0078125, %v40_v29  ;;  %v104_v36 = vmul.f32 %v428_v28, %v428_v28 }
  0x99   :  { %v71_v32 = vmul.f32 0.0078125, %v38_v30  ;;  %v102_v33 = vmul.f32 %v426_v27, %v426_v27 }
  0x9a   :  { %v434_v35 = vsub.f32 %v18_v5, %v72_v31 }
  0x9b   :  { %v432_v34 = vsub.f32 %v17_v6, %v71_v32  ;;  %119 = vadd.xlane.f32.xlu1 %v102_v33  ;;  %v44_v37 = vpop.xlane.xlu1 %43 }
  0x9c   :  { %v42_v38 = vpop.xlane.xlu0 %41  ;;  %v74_v39 = vmul.f32 0.0078125, %v44_v37  ;;  %v106_v44 = vmul.f32 %v434_v35, %v434_v35 }
  0x9d   :  { %v73_v40 = vmul.f32 0.0078125, %v42_v38  ;;  %v105_v41 = vmul.f32 %v432_v34, %v432_v34 }
  0x9e   :  { %v442_v43 = vsub.f32 %v20_v7, %v74_v39 }
  0x9f   :  { %v440_v42 = vsub.f32 %v19_v8, %v73_v40  ;;  %123 = vadd.xlane.f32.xlu1 %v104_v36  ;;  %125 = vadd.xlane.f32.xlu0 %v105_v41  ;;  %v48_v45 = vpop.xlane.xlu1 %47 }
  0xa0   :  { %v46_v46 = vpop.xlane.xlu0 %45  ;;  %v76_v47 = vmul.f32 0.0078125, %v48_v45  ;;  %v108_v52 = vmul.f32 %v442_v43, %v442_v43 }
  0xa1   :  { %v75_v48 = vmul.f32 0.0078125, %v46_v46  ;;  %v107_v49 = vmul.f32 %v440_v42, %v440_v42 }
  0xa2   :  { %v450_v51 = vsub.f32 %v22_v9, %v76_v47  ;;  %v502_v47 = vld [vmem:[%s612_s1] ss:$0 sm:$0xff] }
  0xa3   :  { %v448_v50 = vsub.f32 %v21_v10, %v75_v48  ;;  %127 = vadd.xlane.f32.xlu1 %v106_v44  ;;  %129 = vadd.xlane.f32.xlu0 %v107_v49  ;;  %v52_v53 = vpop.xlane.xlu1 %51 }
  0xa4   :  { %v50_v54 = vpop.xlane.xlu0 %49  ;;  %v78_v55 = vmul.f32 0.0078125, %v52_v53  ;;  %v110_v60 = vmul.f32 %v450_v51, %v450_v51  ;;  %v508_v53 = vld [vmem:[%s613_s2] ss:$0 sm:$0xff] }
  0xa5   :  { %v77_v56 = vmul.f32 0.0078125, %v50_v54  ;;  %v109_v57 = vmul.f32 %v448_v50, %v448_v50 }
  0xa6   :  { %v459_v59 = vsub.f32 %v384_v11, %v78_v55  ;;  %v84_v11 = vmul.f32 0.0078125, %v420_v20 }
  0xa7   :  { %v456_v58 = vsub.f32 %v23_v12, %v77_v56  ;;  %131 = vadd.xlane.f32.xlu1 %v108_v52  ;;  %133 = vadd.xlane.f32.xlu0 %v109_v57  ;;  %v56_v61 = vpop.xlane.xlu1 %55 }
  0xa8   :  { %v54_v62 = vpop.xlane.xlu0 %53  ;;  %v80_v63 = vmul.f32 0.0078125, %v56_v61  ;;  %v112_v5 = vmul.f32 %v459_v59, %v459_v59  ;;  %v487_v23 = vsub.f32 %v353_v1, %v84_v11 }
  0xa9   :  { %v79_v0 = vmul.f32 0.0078125, %v54_v62  ;;  %v111_v2 = vmul.f32 %v456_v58, %v456_v58 }
  0xaa   :  { %v469_v4 = vsub.f32 %v393_v13, %v80_v63  ;;  %v118_v24 = vmul.f32 %v487_v23, %v487_v23 }
  0xab   :  { %v466_v3 = vsub.f32 %v398_v14, %v79_v0  ;;  %135 = vadd.xlane.f32.xlu1 %v110_v60  ;;  %137 = vadd.xlane.f32.xlu0 %v111_v2  ;;  %v60_v6 = vpop.xlane.xlu1 %59 }
  0xac   :  { %v58_v7 = vpop.xlane.xlu0 %57  ;;  %v82_v8 = vmul.f32 0.0078125, %v60_v6  ;;  %v114_v14 = vmul.f32 %v469_v4, %v469_v4  ;;  %v151_v25 = vsel %vm63_vm0, %v118_v24, 0.0 }
  0xad   :  { %v81_v9 = vmul.f32 0.0078125, %v58_v7  ;;  %v113_v10 = vmul.f32 %v466_v3, %v466_v3 }
  0xae   :  { %v480_v13 = vsub.f32 %v405_v15, %v82_v8 }
  0xaf   :  { %v477_v12 = vsub.f32 %v410_v16, %v81_v9  ;;  %139 = vadd.xlane.f32.xlu1 %v112_v5  ;;  %141 = vadd.xlane.f32.xlu0 %v113_v10 }
  0xb0   :  { %v62_v18 = vpop.xlane.xlu0 %61  ;;  %v116_v15 = vmul.f32 %v480_v13, %v480_v13 }
  0xb1   :  { %v83_v19 = vmul.f32 0.0078125, %v62_v18  ;;  %v115_v22 = vmul.f32 %v477_v12, %v477_v12 }
  0xb3   :  { %v490_v20 = vsub.f32 %v417_v17, %v83_v19  ;;  %143 = vadd.xlane.f32.xlu1 %v114_v14  ;;  %145 = vadd.xlane.f32.xlu0 %v115_v22 }
  0xb5   :  { %v117_v16 = vmul.f32 %v490_v20, %v490_v20 }
  0xb7   :  { %147 = vadd.xlane.f32.xlu1 %v116_v15  ;;  %149 = vadd.xlane.f32.xlu0 %v117_v16 }
  0xbb   :  { %152 = vadd.xlane.f32.xlu1 %v151_v25 }
 0x123   :  { %v122_v1 = vpop.xlane.xlu0 %121 }
 0x124   :  { %v155_v26 = vmul.f32 0.0078125, %v122_v1 }
 0x126   :  { %v172_v17 = vadd.f32 1e-05, %v155_v26 }
 0x128   :  { %293 = vrsqrt.f32 %v172_v17  ;;  %v120_v29 = vpop.xlane.xlu1 %119 }
 0x129   :  { %v154_v30 = vmul.f32 0.0078125, %v120_v29 }
 0x12b   :  { %v171_v31 = vadd.f32 1e-05, %v154_v30 }
 0x12c   :  { %v124_v32 = vpop.xlane.xlu1 %123  ;;  %v126_v33 = vpop.xlane.xlu0 %125 }
 0x12d   :  { %295 = vrsqrt.f32 %v171_v31  ;;  %v156_v36 = vmul.f32 0.0078125, %v124_v32  ;;  %v157_v37 = vmul.f32 0.0078125, %v126_v33 }
 0x12f   :  { %v173_v38 = vadd.f32 1e-05, %v156_v36  ;;  %v174_v39 = vadd.f32 1e-05, %v157_v37 }
 0x130   :  { %v128_v40 = vpop.xlane.xlu1 %127  ;;  %v130_v41 = vpop.xlane.xlu0 %129 }
 0x131   :  { %297 = vrsqrt.f32 %v173_v38  ;;  %v158_v44 = vmul.f32 0.0078125, %v128_v40  ;;  %v159_v45 = vmul.f32 0.0078125, %v130_v41 }
 0x132   :  { %v294_v46 = vpop.eup %293  ;;  %299 = vrsqrt.f32 %v174_v39 }
 0x133   :  { %v206_v48 = vmul.f32 %v294_v46, %v422_v21  ;;  %v175_v49 = vadd.f32 1e-05, %v158_v44  ;;  %v176_v52 = vadd.f32 1e-05, %v159_v45 }
 0x134   :  { %v132_v54 = vpop.xlane.xlu1 %131  ;;  %v134_v55 = vpop.xlane.xlu0 %133 }
 0x135   :  { %v230_v56 = vmul.f32 %v502_v47, %v206_v48  ;;  %301 = vrsqrt.f32 %v175_v49  ;;  %v160_v57 = vmul.f32 0.0078125, %v132_v54  ;;  %v161_v60 = vmul.f32 0.0078125, %v134_v55 }
 0x136   :  { %303 = vrsqrt.f32 %v176_v52 }
 0x137   :  { %v296_v61 = vpop.eup %295  ;;  %v254_v62 = vadd.f32 %v508_v53, %v230_v56  ;;  %v177_v63 = vadd.f32 1e-05, %v160_v57  ;;  %v178_v21 = vadd.f32 1e-05, %v161_v60 }
 0x138   :  { %v205_v0 = vmul.f32 %v296_v61, %v426_v27  ;;  %v136_v2 = vpop.xlane.xlu1 %135  ;;  %v138_v5 = vpop.xlane.xlu0 %137 }
 0x139   :  { %271 = vst [vmem:[%s614_s3 + $0x8] sm:$0xff] %v254_v62  ;;  %305 = vrsqrt.f32 %v177_v63  ;;  %v162_v6 = vmul.f32 0.0078125, %v136_v2  ;;  %v163_v7 = vmul.f32 0.0078125, %v138_v5 }
 0x13a   :  { %v229_v8 = vmul.f32 %v502_v47, %v205_v0  ;;  %307 = vrsqrt.f32 %v178_v21 }
 0x13b   :  { %v298_v9 = vpop.eup %297  ;;  %v179_v10 = vadd.f32 1e-05, %v162_v6  ;;  %v180_v11 = vadd.f32 1e-05, %v163_v7 }
 0x13c   :  { %v300_v14 = vpop.eup %299  ;;  %v253_v18 = vadd.f32 %v508_v53, %v229_v8  ;;  %v207_v27 = vmul.f32 %v298_v9, %v428_v28  ;;  %v140_v19 = vpop.xlane.xlu1 %139 }
 0x13d   :  { %v142_v22 = vpop.xlane.xlu0 %141  ;;  %v208_v15 = vmul.f32 %v300_v14, %v432_v34  ;;  %309 = vrsqrt.f32 %v179_v10  ;;  %v164_v16 = vmul.f32 0.0078125, %v140_v19 }
 0x13e   :  { %v165_v24 = vmul.f32 0.0078125, %v142_v22  ;;  %270 = vst [vmem:[%s614_s3] sm:$0xff] %v253_v18  ;;  %v231_v25 = vmul.f32 %v502_v47, %v207_v27  ;;  %311 = vrsqrt.f32 %v180_v11 }
 0x13f   :  { %v302_v1 = vpop.eup %301  ;;  %v232_v26 = vmul.f32 %v502_v47, %v208_v15  ;;  %v181_v17 = vadd.f32 1e-05, %v164_v16 }
 0x140   :  { %v182_v29 = vadd.f32 1e-05, %v165_v24  ;;  %v304_v28 = vpop.eup %303  ;;  %v255_v30 = vadd.f32 %v508_v53, %v231_v25  ;;  %v209_v34 = vmul.f32 %v302_v1, %v434_v35  ;;  %v144_v31 = vpop.xlane.xlu1 %143 }
 0x141   :  { %v146_v32 = vpop.xlane.xlu0 %145  ;;  %v256_v33 = vadd.f32 %v508_v53, %v232_v26  ;;  %v210_v36 = vmul.f32 %v304_v28, %v440_v42  ;;  %313 = vrsqrt.f32 %v181_v17  ;;  %v166_v37 = vmul.f32 0.0078125, %v144_v31 }
 0x142   :  { %272 = vst [vmem:[%s614_s3 + $0x10] sm:$0xff] %v255_v30  ;;  %v233_v38 = vmul.f32 %v502_v47, %v209_v34  ;;  %315 = vrsqrt.f32 %v182_v29  ;;  %v167_v39 = vmul.f32 0.0078125, %v146_v32 }
 0x143   :  { %v306_v40 = vpop.eup %305  ;;  %273 = vst [vmem:[%s614_s3 + $0x18] sm:$0xff] %v256_v33  ;;  %v234_v35 = vmul.f32 %v502_v47, %v210_v36  ;;  %v183_v41 = vadd.f32 1e-05, %v166_v37 }
 0x144   :  { %v308_v44 = vpop.eup %307  ;;  %v257_v42 = vadd.f32 %v508_v53, %v233_v38  ;;  %v211_v45 = vmul.f32 %v306_v40, %v442_v43  ;;  %v184_v46 = vadd.f32 1e-05, %v167_v39  ;;  %v148_v48 = vpop.xlane.xlu1 %147 }
 0x145   :  { %v150_v49 = vpop.xlane.xlu0 %149  ;;  %v258_v52 = vadd.f32 %v508_v53, %v234_v35  ;;  %v212_v54 = vmul.f32 %v308_v44, %v448_v50  ;;  %317 = vrsqrt.f32 %v183_v41  ;;  %v168_v55 = vmul.f32 0.0078125, %v148_v48 }
 0x146   :  { %274 = vst [vmem:[%s614_s3 + $0x20] sm:$0xff] %v257_v42  ;;  %v235_v56 = vmul.f32 %v502_v47, %v211_v45  ;;  %319 = vrsqrt.f32 %v184_v46  ;;  %v169_v57 = vmul.f32 0.0078125, %v150_v49 }
 0x147   :  { %v310_v60 = vpop.eup %309  ;;  %275 = vst [vmem:[%s614_s3 + $0x28] sm:$0xff] %v258_v52  ;;  %v236_v43 = vmul.f32 %v502_v47, %v212_v54  ;;  %v185_v61 = vadd.f32 1e-05, %v168_v55 }
 0x148   :  { %v312_v62 = vpop.eup %311  ;;  %v259_v50 = vadd.f32 %v508_v53, %v235_v56  ;;  %v213_v63 = vmul.f32 %v310_v60, %v450_v51  ;;  %v186_v21 = vadd.f32 1e-05, %v169_v57  ;;  %v153_v0 = vpop.xlane.xlu1 %152 }
 0x149   :  { %v260_v2 = vadd.f32 %v508_v53, %v236_v43  ;;  %v214_v5 = vmul.f32 %v312_v62, %v456_v58  ;;  %321 = vrsqrt.f32 %v185_v61  ;;  %v170_v6 = vmul.f32 0.0078125, %v153_v0 }
 0x14a   :  { %276 = vst [vmem:[%s614_s3 + $0x30] sm:$0xff] %v259_v50  ;;  %v237_v7 = vmul.f32 %v502_v47, %v213_v63  ;;  %323 = vrsqrt.f32 %v186_v21 }
 0x14b   :  { %v314_v8 = vpop.eup %313  ;;  %277 = vst [vmem:[%s614_s3 + $0x38] sm:$0xff] %v260_v2  ;;  %v238_v51 = vmul.f32 %v502_v47, %v214_v5  ;;  %v187_v9 = vadd.f32 1e-05, %v170_v6 }
 0x14c   :  { %v316_v10 = vpop.eup %315  ;;  %v261_v58 = vadd.f32 %v508_v53, %v237_v7  ;;  %v215_v11 = vmul.f32 %v314_v8, %v459_v59 }
 0x14d   :  { %v262_v14 = vadd.f32 %v508_v53, %v238_v51  ;;  %v216_v18 = vmul.f32 %v316_v10, %v466_v3  ;;  %325 = vrsqrt.f32 %v187_v9 }
 0x14e   :  { %278 = vst [vmem:[%s614_s3 + $0x40] sm:$0xff] %v261_v58  ;;  %v239_v27 = vmul.f32 %v502_v47, %v215_v11 }
 0x14f   :  { %v318_v19 = vpop.eup %317  ;;  %279 = vst [vmem:[%s614_s3 + $0x48] sm:$0xff] %v262_v14  ;;  %v240_v22 = vmul.f32 %v502_v47, %v216_v18 }
 0x150   :  { %v320_v15 = vpop.eup %319  ;;  %v263_v59 = vadd.f32 %v508_v53, %v239_v27  ;;  %v217_v16 = vmul.f32 %v318_v19, %v469_v4 }
 0x151   :  { %v264_v3 = vadd.f32 %v508_v53, %v240_v22  ;;  %v218_v24 = vmul.f32 %v320_v15, %v477_v12 }
 0x152   :  { %280 = vst [vmem:[%s614_s3 + $0x50] sm:$0xff] %v263_v59  ;;  %v241_v25 = vmul.f32 %v502_v47, %v217_v16 }
 0x153   :  { %v322_v1 = vpop.eup %321  ;;  %281 = vst [vmem:[%s614_s3 + $0x58] sm:$0xff] %v264_v3  ;;  %v242_v26 = vmul.f32 %v502_v47, %v218_v24 }
 0x154   :  { %v324_v17 = vpop.eup %323  ;;  %v265_v4 = vadd.f32 %v508_v53, %v241_v25  ;;  %v219_v29 = vmul.f32 %v322_v1, %v480_v13 }
 0x155   :  { %v266_v12 = vadd.f32 %v508_v53, %v242_v26  ;;  %v220_v28 = vmul.f32 %v324_v17, %v490_v20 }
 0x156   :  { %282 = vst [vmem:[%s614_s3 + $0x60] sm:$0xff] %v265_v4  ;;  %v243_v30 = vmul.f32 %v502_v47, %v219_v29 }
 0x157   :  { %v326_v34 = vpop.eup %325  ;;  %283 = vst [vmem:[%s614_s3 + $0x68] sm:$0xff] %v266_v12  ;;  %v244_v31 = vmul.f32 %v502_v47, %v220_v28 }
 0x158   :  { %v267_v32 = vadd.f32 %v508_v53, %v243_v30  ;;  %v221_v13 = vmul.f32 %v326_v34, %v487_v23 }
 0x159   :  { %v268_v33 = vadd.f32 %v508_v53, %v244_v31 }
 0x15a   :  { %284 = vst [vmem:[%s614_s3 + $0x70] sm:$0xff] %v267_v32  ;;  %v245_v20 = vmul.f32 %v502_v47, %v221_v13 }
 0x15b   :  { %285 = vst [vmem:[%s614_s3 + $0x78] sm:$0xff] %v268_v33 }
 0x15c   :  { %v269_v36 = vadd.f32 %v508_v53, %v245_v20 }
 0x15e   :  { %286 = vst [vmem:[%s614_s3 + $0x80] sm:$0xf] %v269_v36 }

// kernel: ofa_vit_forward.25
= control target key start
LH: loop header
LB: loop body
LE: loop exit
PB: predicated region body
PF: predicated region fallthrough
CT: control target
= control target key end

     0   :  { %s1599_s12 = smov 0   ;;  %s1601_s13 = smov 0   ;;  %s2074_s0 = inlined_call_operand.vmem [shape: bf16[1,4,132,32], index: 0, kind: input, shape index: {}]   ;;  %s2075_s1 = inlined_call_operand.vmem [shape: bf16[1,4,132,32], index: 1, kind: input, shape index: {}]   ;;  %s2076_s2 = inlined_call_operand.vmem [shape: bf16[1,4,132,32], index: 2, kind: input, shape index: {}]   ;;  %s2077_s3 = inlined_call_operand.vmem [shape: bf16[1,4,132,32], index: 3, kind: output, shape index: {}]  }
   0x1   :  { %s1603_s14 = smov 0  }
   0x2 LB: > { %s22_s15 = sadd.s32 1, %s1572_s13  ;;  %p1313_p0 = scmp.ge.s32.totalorder %s1576_s14, 1  ;;  %s1576_s14 = sphi %s1603_s14, %s13_s14   ;;  %s1572_s13 = sphi %s1601_s13, %s2079_s13   ;;  %s1568_s12 = sphi %s1599_s12, %s2078_s12  }
   0x3   : > { %p23_p1 = scmp.ge.s32.totalorder %s22_s15, 4  ;;  %p189_p2 = scmp.lt.s32.totalorder %s1576_s14, 5 }
   0x5   : > { %s2081_s15 = smov (%p23_p1, %s22_s15), 0  ;;  %p190_p3 = pnand %p1313_p0, %p189_p2 }
   0x6   : > { %p241_p4 = scmp.lt.s32.totalorder (!%p190_p3), %s1568_s12, 3  ;;  %v1578_v0 = vmov (!%p190_p3), 0   ;;  %vm413_vm0 = vcmask (!%p190_p3), 261120   ;;  %vm589_vm1 = vcmask (!%p190_p3), 31744   ;;  %vm654_vm2 = vcmask (!%p190_p3), 1043456  }
   0x7   : > { %193 = sbr.rel (%p190_p3) target bundleno = 909 (0x38d), region = 32  ;;  %468 = vmatprep.subr.bf16.mxu0 (!%p190_p3), %v1578_v0  ;;  %500 = vmatprep.mubr.bf16.mxu0 (!%p190_p3), %v1578_v0  ;;  %vm656_vm3 = vcmask (!%p190_p3), 27648   ;;  %vm979_vm4 = vcmask (!%p190_p3), 1041408   ;;  %vm1156_vm5 = vcmask (!%p190_p3), 257024   ;;  %vm1173_vm6 = vcmask (!%p190_p3), 254976  }
   0x8   : > { %983 = vmatprep.subr.bf16.mxu1 (!%p190_p3), %v1578_v0 }
   0xe   : > { %s2083_s12 = smov (!%p241_p4, %s1568_s12), 3 }
   0xf   : > { %s1620_s16 = smul.u32 68, %s2083_s12 }
  0x11   : > { %s1626_s19 = scalar_lea.vmem %s2075_s1, %s1620_s16  ;;  %s1637_s22 = scalar_lea.vmem %s2074_s0, %s1620_s16 }
  0x12   : > { %v1425_v1 = vld [vmem:[%s1626_s19] sm:$0xff]   ;;  %v1426_v3 = vld [vmem:[%s1626_s19 + $0x8] sm:$0xff]   ;;  %v1427_v5 = vld [vmem:[%s1626_s19 + $0x10] sm:$0xff]   ;;  %s1810_s25 = scalar_lea.vmem %s2076_s2, %s1620_s16  ;;  %s2030_s28 = scalar_lea.vmem %s2077_s3, %s1620_s16 }
  0x13   : > { %v442_v2 = vsel %vm413_vm0, %v1425_v1, 0  ;;  %v445_v4 = vsel %vm413_vm0, %v1426_v3, 0  ;;  %v448_v6 = vsel %vm413_vm0, %v1427_v5, 0  ;;  %v1428_v7 = vld [vmem:[%s1626_s19 + $0x18] sm:$0xff]   ;;  %v1429_v9 = vld [vmem:[%s1626_s19 + $0x20] sm:$0xff]   ;;  %v1430_v11 = vld [vmem:[%s1626_s19 + $0x28] sm:$0xff]  }
  0x14   : > { %469 = vmatpush1.bf16.xpose.msra.mxu0 %v442_v2  ;;  %v451_v8 = vsel %vm413_vm0, %v1428_v7, 0  ;;  %v454_v10 = vsel %vm413_vm0, %v1429_v9, 0  ;;  %v457_v12 = vsel %vm413_vm0, %v1430_v11, 0  ;;  %v1431_v13 = vld [vmem:[%s1626_s19 + $0x30] sm:$0xff]   ;;  %v1432_v15 = vld [vmem:[%s1626_s19 + $0x38] sm:$0xff]   ;;  %v1434_v19 = vld [vmem:[%s1637_s22] sm:$0xff]  }
  0x15   : > { %470 = vmatprep.subr.bf16.mxu0 %v1578_v0  ;;  %v460_v14 = vsel %vm413_vm0, %v1431_v13, 0  ;;  %v463_v16 = vsel %vm413_vm0, %v1432_v15, 0  ;;  %v1433_v17 = vld [vmem:[%s1626_s19 + $0x40] ss:$0 sps:$4 sm:$0x33]   ;;  %v1435_v20 = vld [vmem:[%s1637_s22 + $0x8] sm:$0xff]  }
  0x16   : > { %v466_v18 = vsel %vm413_vm0, %v1433_v17, 0  ;;  %v1436_v21 = vld [vmem:[%s1637_s22 + $0x10] sm:$0xff]   ;;  %v1437_v22 = vld [vmem:[%s1637_s22 + $0x18] sm:$0xff]   ;;  %v1438_v23 = vld [vmem:[%s1637_s22 + $0x20] sm:$0xff]  }
  0x17   : > { %v1439_v24 = vld [vmem:[%s1637_s22 + $0x28] sm:$0xff]   ;;  %v1440_v25 = vld [vmem:[%s1637_s22 + $0x30] sm:$0xff]   ;;  %v1441_v26 = vld [vmem:[%s1637_s22 + $0x38] sm:$0xff]  }
  0x18   : > { %v1442_v27 = vld [vmem:[%s1637_s22 + $0x40] ss:$0 sps:$4 sm:$0x33]  }
  0x1c   : > { %471 = vmatpush1.bf16.xpose.msra.mxu0 %v445_v4 }
  0x1d   : > { %472 = vmatprep.subr.bf16.mxu0 %v1578_v0 }
  0x24   : > { %473 = vmatpush1.bf16.xpose.msra.mxu0 %v448_v6 }
  0x25   : > { %474 = vmatprep.subr.bf16.mxu0 %v1578_v0 }
  0x2c   : > { %475 = vmatpush1.bf16.xpose.msra.mxu0 %v451_v8 }
  0x2d   : > { %476 = vmatprep.subr.bf16.mxu0 %v1578_v0 }
  0x34   : > { %477 = vmatpush1.bf16.xpose.msra.mxu0 %v454_v10 }
  0x35   : > { %478 = vmatprep.subr.bf16.mxu0 %v1578_v0 }
  0x3c   : > { %479 = vmatpush1.bf16.xpose.msra.mxu0 %v457_v12 }
  0x3d   : > { %480 = vmatprep.subr.bf16.mxu0 %v1578_v0 }
  0x44   : > { %481 = vmatpush1.bf16.xpose.msra.mxu0 %v460_v14 }
  0x45   : > { %482 = vmatprep.subr.bf16.mxu0 %v1578_v0 }
  0x4c   : > { %483 = vmatpush1.bf16.xpose.msra.mxu0 %v463_v16 }
  0x4d   : > { %484 = vmatprep.subr.bf16.mxu0 %v1578_v0 }
  0x54   : > { %485 = vmatpush1.bf16.xpose.msra.mxu0 %v466_v18 }
  0x5b   : > { %1336 = vmatmul.mubr.msk.bf16.vlgmr.msra.gmra.mrb[0].mxu0 %vm413_vm0, %v1434_v19 }
  0x5c   : > { %510 = vmatprep.mubr.bf16.mxu0 %v1578_v0 }
  0x63   : > { %1337 = vmatmul.mubr.msk.bf16.gmra.mrb[4].mxu0 %vm413_vm0, %v1435_v20 }
  0x64   : > { %520 = vmatprep.mubr.bf16.mxu0 %v1578_v0 }
  0x6b   : > { %1338 = vmatmul.mubr.msk.bf16.gmra.mrb[8].mxu0 %vm413_vm0, %v1436_v21 }
  0x6c   : > { %530 = vmatprep.mubr.bf16.mxu0 %v1578_v0 }
  0x73   : > { %1339 = vmatmul.mubr.msk.bf16.gmra.mrb[12].mxu0 %vm413_vm0, %v1437_v22 }
  0x74   : > { %540 = vmatprep.mubr.bf16.mxu0 %v1578_v0 }
  0x7b   : > { %1340 = vmatmul.mubr.msk.bf16.gmra.mrb[16].mxu0 %vm413_vm0, %v1438_v23 }
  0x7c   : > { %550 = vmatprep.mubr.bf16.mxu0 %v1578_v0 }
  0x83   : > { %1341 = vmatmul.mubr.msk.bf16.gmra.mrb[20].mxu0 %vm413_vm0, %v1439_v24 }
  0x84   : > { %560 = vmatprep.mubr.bf16.mxu0 %v1578_v0 }
  0x8b   : > { %1342 = vmatmul.mubr.msk.bf16.gmra.mrb[24].mxu0 %vm413_vm0, %v1440_v25 }
  0x8c   : > { %570 = vmatprep.mubr.bf16.mxu0 %v1578_v0 }
  0x93   : > { %1343 = vmatmul.mubr.msk.bf16.gmra.mrb[28].mxu0 %vm413_vm0, %v1441_v26 }
  0x94   : > { %580 = vmatprep.mubr.bf16.mxu0 %v1578_v0 }
  0x9b   : > { %1344 = vmatmul.mubr.msk.bf16.gmra.mrb[32].mxu0 %vm413_vm0, %v1442_v27 }
 0x12e   : > { %v1686_v28 = vpop.f32.mrb[0].mxu0 }
 0x12f   : > { %v1688_v29 = vpop.f32.mrb[1].mxu0 }
 0x130   : > { %v1690_v30 = vpop.f32.mrb[2].mxu0  ;;  %v590_v31 = vsel %vm589_vm1, %v1688_v29, -inf }
 0x131   : > { %v1694_v32 = vpop.f32.mrb[3].mxu0  ;;  %v591_v33 = vmax.f32 %v1686_v28, %v590_v31 }
 0x132   : > { %v594_v34 = vsel %vm589_vm1, %v1694_v32, -inf }
 0x133   : > { %592 = vmax.xlane.f32.xlu0 %v591_v33  ;;  %v595_v35 = vmax.f32 %v1690_v30, %v594_v34 }
 0x136   : > { %v1700_v36 = vpop.f32.mrb[4].mxu0 }
 0x137   : > { %596 = vmax.xlane.f32.xlu0 %v595_v35  ;;  %v1702_v37 = vpop.f32.mrb[5].mxu0 }
 0x138   : > { %v1704_v38 = vpop.f32.mrb[6].mxu0  ;;  %v598_v39 = vsel %vm589_vm1, %v1702_v37, -inf }
 0x139   : > { %v1708_v40 = vpop.f32.mrb[7].mxu0  ;;  %v599_v41 = vmax.f32 %v1700_v36, %v598_v39 }
 0x13a   : > { %v602_v42 = vsel %vm589_vm1, %v1708_v40, -inf }
 0x13b   : > { %600 = vmax.xlane.f32.xlu1 %v599_v41  ;;  %v603_v43 = vmax.f32 %v1704_v38, %v602_v42 }
 0x13e   : > { %v1714_v44 = vpop.f32.mrb[8].mxu0 }
 0x13f   : > { %604 = vmax.xlane.f32.xlu1 %v603_v43  ;;  %v1716_v45 = vpop.f32.mrb[9].mxu0 }
 0x140   : > { %v606_v46 = vsel %vm589_vm1, %v1716_v45, -inf  ;;  %v1720_v47 = vpop.f32.mrb[10].mxu0 }
 0x141   : > { %v1722_v48 = vpop.f32.mrb[11].mxu0  ;;  %v607_v49 = vmax.f32 %v1714_v44, %v606_v46  ;;  %v1443_v46 = vld [vmem:[%s1810_s25] sm:$0xff]  }
 0x142   : > { %v610_v50 = vsel %vm589_vm1, %v1722_v48, -inf  ;;  %984 = vmatpush1.bf16.msra.mxu1 %v1443_v46 }
 0x143   : > { %608 = vmax.xlane.f32.xlu0 %v607_v49  ;;  %v611_v51 = vmax.f32 %v1720_v47, %v610_v50  ;;  %v1444_v49 = vld [vmem:[%s1810_s25 + $0x8] sm:$0xff]   ;;  %985 = vmatprep.subr.bf16.mxu1 %v1578_v0  ;;  %v1445_v50 = vld [vmem:[%s1810_s25 + $0x10] sm:$0xff]  }
 0x145   : > { %612 = vmax.xlane.f32.xlu1 %v611_v51  ;;  %v1446_v51 = vld [vmem:[%s1810_s25 + $0x18] sm:$0xff]  }
 0x146   : > { %v1728_v52 = vpop.f32.mrb[12].mxu0  ;;  %986 = vmatpush1.bf16.msra.mxu1 %v1444_v49 }
 0x147   : > { %v1730_v53 = vpop.f32.mrb[13].mxu0  ;;  %987 = vmatprep.subr.bf16.mxu1 %v1578_v0 }
 0x148   : > { %v614_v54 = vsel %vm589_vm1, %v1730_v53, -inf  ;;  %v1734_v55 = vpop.f32.mrb[14].mxu0 }
 0x149   : > { %v1736_v56 = vpop.f32.mrb[15].mxu0  ;;  %v615_v57 = vmax.f32 %v1728_v52, %v614_v54 }
 0x14a   : > { %v618_v58 = vsel %vm589_vm1, %v1736_v56, -inf  ;;  %988 = vmatpush1.bf16.msra.mxu1 %v1445_v50 }
 0x14b   : > { %616 = vmax.xlane.f32.xlu0 %v615_v57  ;;  %v619_v59 = vmax.f32 %v1734_v55, %v618_v58  ;;  %989 = vmatprep.subr.bf16.mxu1 %v1578_v0 }
 0x14d   : > { %620 = vmax.xlane.f32.xlu1 %v619_v59 }
 0x14e   : > { %v1742_v60 = vpop.f32.mrb[16].mxu0  ;;  %990 = vmatpush1.bf16.msra.mxu1 %v1446_v51 }
 0x14f   : > { %v1744_v61 = vpop.f32.mrb[17].mxu0  ;;  %991 = vmatprep.subr.bf16.mxu1 %v1578_v0 }
 0x150   : > { %v622_v62 = vsel %vm589_vm1, %v1744_v61, -inf  ;;  %v1748_v63 = vpop.f32.mrb[18].mxu0 }
 0x151   : > { %v1750_v1 = vpop.f32.mrb[19].mxu0  ;;  %v623_v2 = vmax.f32 %v1742_v60, %v622_v62 }
 0x152   : > { %v626_v3 = vsel %vm589_vm1, %v1750_v1, -inf }
 0x153   : > { %624 = vmax.xlane.f32.xlu0 %v623_v2  ;;  %v627_v4 = vmax.f32 %v1748_v63, %v626_v3 }
 0x155   : > { %628 = vmax.xlane.f32.xlu1 %v627_v4 }
 0x156   : > { %v1756_v5 = vpop.f32.mrb[20].mxu0 }
 0x157   : > { %v1758_v6 = vpop.f32.mrb[21].mxu0 }
 0x158   : > { %v630_v7 = vsel %vm589_vm1, %v1758_v6, -inf  ;;  %v1762_v8 = vpop.f32.mrb[22].mxu0 }
 0x159   : > { %v1764_v9 = vpop.f32.mrb[23].mxu0  ;;  %v631_v10 = vmax.f32 %v1756_v5, %v630_v7 }
 0x15a   : > { %v634_v11 = vsel %vm589_vm1, %v1764_v9, -inf }
 0x15b   : > { %632 = vmax.xlane.f32.xlu0 %v631_v10  ;;  %v635_v12 = vmax.f32 %v1762_v8, %v634_v11 }
 0x15d   : > { %636 = vmax.xlane.f32.xlu1 %v635_v12 }
 0x15e   : > { %v1770_v13 = vpop.f32.mrb[24].mxu0 }
 0x15f   : > { %v1772_v14 = vpop.f32.mrb[25].mxu0 }
 0x160   : > { %v638_v15 = vsel %vm589_vm1, %v1772_v14, -inf  ;;  %v1776_v16 = vpop.f32.mrb[26].mxu0 }
 0x161   : > { %v1778_v17 = vpop.f32.mrb[27].mxu0  ;;  %v639_v18 = vmax.f32 %v1770_v13, %v638_v15 }
 0x162   : > { %v642_v19 = vsel %vm589_vm1, %v1778_v17, -inf }
 0x163   : > { %640 = vmax.xlane.f32.xlu0 %v639_v18  ;;  %v643_v20 = vmax.f32 %v1776_v16, %v642_v19 }
 0x165   : > { %644 = vmax.xlane.f32.xlu1 %v643_v20 }
 0x166   : > { %v1784_v21 = vpop.f32.mrb[28].mxu0 }
 0x167   : > { %v1786_v22 = vpop.f32.mrb[29].mxu0 }
 0x168   : > { %v646_v23 = vsel %vm589_vm1, %v1786_v22, -inf  ;;  %v1790_v24 = vpop.f32.mrb[30].mxu0 }
 0x169   : > { %v1792_v25 = vpop.f32.mrb[31].mxu0  ;;  %v647_v26 = vmax.f32 %v1784_v21, %v646_v23 }
 0x16a   : > { %v650_v27 = vsel %vm589_vm1, %v1792_v25, -inf }
 0x16b   : > { %648 = vmax.xlane.f32.xlu0 %v647_v26  ;;  %v651_v31 = vmax.f32 %v1790_v24, %v650_v27 }
 0x16d   : > { %652 = vmax.xlane.f32.xlu1 %v651_v31 }
 0x16e   : > { %v1798_v33 = vpop.f32.mrb[32].mxu0 }
 0x16f   : > { %v655_v34 = vsel %vm654_vm2, %v1798_v33, -inf  ;;  %v1802_v35 = vpop.f32.mrb[33].mxu0 }
 0x170   : > { %v657_v39 = vsel %vm656_vm3, %v1802_v35, -inf  ;;  %v586_v41 = vpop.f32.mrb[34].mxu0 }
 0x171   : > { %v587_v42 = vpop.f32.mrb[35].mxu0  ;;  %v658_v43 = vmax.f32 %v655_v34, %v657_v39 }
 0x173   : > { %659 = vmax.xlane.f32.xlu0 %v658_v43 }
 0x1c0   : > { %v593_v54 = vpop.xlane.xlu0 %592 }
 0x1c1   : > { %v661_v57 = vsub.f32 %v1686_v28, %v593_v54  ;;  %v662_v58 = vsub.f32 %v1688_v29, %v593_v54 }
 0x1c3   : > { %v695_v59 = vmul.f32 1.442695, %v661_v57  ;;  %v697_v62 = vmul.f32 1.442695, %v662_v58 }
 0x1c4   : > { %v597_v2 = vpop.xlane.xlu0 %596 }
 0x1c5   : > { %1452 = vpow2.f32 %v695_v59  ;;  %v663_v3 = vsub.f32 %v1690_v30, %v597_v2  ;;  %v664_v4 = vsub.f32 %v1694_v32, %v597_v2 }
 0x1c6   : > { %1454 = vpow2.f32 %v697_v62 }
 0x1c7   : > { %v699_v7 = vmul.f32 1.442695, %v663_v3  ;;  %v701_v10 = vmul.f32 1.442695, %v664_v4 }
 0x1c8   : > { %v601_v11 = vpop.xlane.xlu1 %600 }
 0x1c9   : > { %1456 = vpow2.f32 %v699_v7  ;;  %v665_v12 = vsub.f32 %v1700_v36, %v601_v11  ;;  %v666_v15 = vsub.f32 %v1702_v37, %v601_v11 }
 0x1ca   : > { %1458 = vpow2.f32 %v701_v10 }
 0x1cb   : > { %v703_v28 = vmul.f32 1.442695, %v665_v12  ;;  %v705_v29 = vmul.f32 1.442695, %v666_v15 }
 0x1cc   : > { %v605_v18 = vpop.xlane.xlu1 %604 }
 0x1cd   : > { %1460 = vpow2.f32 %v703_v28  ;;  %v667_v19 = vsub.f32 %v1704_v38, %v605_v18  ;;  %v668_v30 = vsub.f32 %v1708_v40, %v605_v18 }
 0x1ce   : > { %1462 = vpow2.f32 %v705_v29 }
 0x1cf   : > { %v1828_v32 = vpop.eup %1452  ;;  %v707_v20 = vmul.f32 1.442695, %v667_v19  ;;  %v709_v23 = vmul.f32 1.442695, %v668_v30 }
 0x1d0   : > { %v1830_v26 = vpop.eup %1454  ;;  %v609_v27 = vpop.xlane.xlu0 %608 }
 0x1d1   : > { %1464 = vpow2.f32 %v707_v20  ;;  %v669_v36 = vsub.f32 %v1714_v44, %v609_v27  ;;  %v670_v37 = vsub.f32 %v1716_v45, %v609_v27  ;;  %v763_v31 = vsel %vm589_vm1, %v1830_v26, 0.0 }
 0x1d2   : > { %1466 = vpow2.f32 %v709_v23  ;;  %v613_v38 = vpop.xlane.xlu1 %612  ;;  %v764_v40 = vadd.f32 %v1828_v32, %v763_v31 }
 0x1d3   : > { %v1837_v34 = vpop.eup %1456  ;;  %v711_v39 = vmul.f32 1.442695, %v669_v36  ;;  %v713_v41 = vmul.f32 1.442695, %v670_v37  ;;  %v671_v42 = vsub.f32 %v1720_v47, %v613_v38  ;;  %v672_v43 = vsub.f32 %v1722_v48, %v613_v38  ;;  %v1447_v36 = vld [vmem:[%s1810_s25 + $0x20] sm:$0xff]  }
 0x1d4   : > { %v1841_v46 = vpop.eup %1458  ;;  %765 = vadd.xlane.f32.xlu1 %v764_v40  ;;  %992 = vmatpush1.bf16.msra.mxu1 %v1447_v36 }
 0x1d5   : > { %1468 = vpow2.f32 %v711_v39  ;;  %v715_v44 = vmul.f32 1.442695, %v671_v42  ;;  %v717_v45 = vmul.f32 1.442695, %v672_v43  ;;  %v767_v49 = vsel %vm589_vm1, %v1841_v46, 0.0  ;;  %993 = vmatprep.subr.bf16.mxu1 %v1578_v0  ;;  %v1448_v42 = vld [vmem:[%s1810_s25 + $0x28] sm:$0xff]  }
 0x1d6   : > { %1470 = vpow2.f32 %v713_v41  ;;  %v768_v50 = vadd.f32 %v1837_v34, %v767_v49 }
 0x1d7   : > { %v1846_v51 = vpop.eup %1460  ;;  %1472 = vpow2.f32 %v715_v44 }
 0x1d8   : > { %v1848_v54 = vpop.eup %1462  ;;  %1474 = vpow2.f32 %v717_v45  ;;  %769 = vadd.xlane.f32.xlu0 %v768_v50  ;;  %v617_v47 = vpop.xlane.xlu0 %616  ;;  %994 = vmatpush1.bf16.msra.mxu1 %v1448_v42 }
 0x1d9   : > { %v673_v48 = vsub.f32 %v1728_v52, %v617_v47  ;;  %v674_v57 = vsub.f32 %v1730_v53, %v617_v47  ;;  %v771_v58 = vsel %vm589_vm1, %v1848_v54, 0.0  ;;  %995 = vmatprep.subr.bf16.mxu1 %v1578_v0 }
 0x1da   : > { %v621_v59 = vpop.xlane.xlu1 %620  ;;  %v772_v62 = vadd.f32 %v1846_v51, %v771_v58  ;;  %v1449_v58 = vld [vmem:[%s1810_s25 + $0x30] sm:$0xff]  }
 0x1db   : > { %v1855_v2 = vpop.eup %1464  ;;  %v719_v3 = vmul.f32 1.442695, %v673_v48  ;;  %v721_v4 = vmul.f32 1.442695, %v674_v57  ;;  %v675_v7 = vsub.f32 %v1734_v55, %v621_v59  ;;  %v676_v10 = vsub.f32 %v1736_v56, %v621_v59 }
 0x1dc   : > { %v1859_v11 = vpop.eup %1466  ;;  %773 = vadd.xlane.f32.xlu1 %v772_v62  ;;  %996 = vmatpush1.bf16.msra.mxu1 %v1449_v58 }
 0x1dd   : > { %1476 = vpow2.f32 %v719_v3  ;;  %v723_v52 = vmul.f32 1.442695, %v675_v7  ;;  %v725_v53 = vmul.f32 1.442695, %v676_v10  ;;  %v775_v12 = vsel %vm589_vm1, %v1859_v11, 0.0  ;;  %997 = vmatprep.subr.bf16.mxu1 %v1578_v0 }
 0x1de   : > { %1478 = vpow2.f32 %v721_v4  ;;  %v776_v15 = vadd.f32 %v1855_v2, %v775_v12 }
 0x1df   : > { %v1864_v28 = vpop.eup %1468  ;;  %1480 = vpow2.f32 %v723_v52  ;;  %v1450_v52 = vld [vmem:[%s1810_s25 + $0x38] sm:$0xff]  }
 0x1e0   : > { %v1866_v29 = vpop.eup %1470  ;;  %1482 = vpow2.f32 %v725_v53  ;;  %777 = vadd.xlane.f32.xlu0 %v776_v15  ;;  %v625_v55 = vpop.xlane.xlu0 %624  ;;  %998 = vmatpush1.bf16.msra.mxu1 %v1450_v52 }
 0x1e1   : > { %v1868_v56 = vpop.eup %1472  ;;  %v677_v18 = vsub.f32 %v1742_v60, %v625_v55  ;;  %v678_v19 = vsub.f32 %v1744_v61, %v625_v55  ;;  %v779_v30 = vsel %vm589_vm1, %v1866_v29, 0.0  ;;  %999 = vmatprep.subr.bf16.mxu1 %v1578_v0 }
 0x1e2   : > { %v1874_v20 = vpop.eup %1474  ;;  %v629_v23 = vpop.xlane.xlu1 %628  ;;  %v780_v27 = vadd.f32 %v1864_v28, %v779_v30 }
 0x1e3   : > { %v727_v37 = vmul.f32 1.442695, %v677_v18  ;;  %v729_v31 = vmul.f32 1.442695, %v678_v19  ;;  %v679_v38 = vsub.f32 %v1748_v63, %v629_v23  ;;  %v680_v40 = vsub.f32 %v1750_v1, %v629_v23 }
 0x1e4   : > { %781 = vadd.xlane.f32.xlu1 %v780_v27  ;;  %v783_v60 = vsel %vm589_vm1, %v1874_v20, 0.0  ;;  %v1451_v19 = vld [vmem:[%s1810_s25 + $0x40] ss:$0 sps:$4 sm:$0x33]  }
 0x1e5   : > { %1484 = vpow2.f32 %v727_v37  ;;  %v731_v61 = vmul.f32 1.442695, %v679_v38  ;;  %v733_v39 = vmul.f32 1.442695, %v680_v40  ;;  %v784_v41 = vadd.f32 %v1868_v56, %v783_v60 }
 0x1e6   : > { %1486 = vpow2.f32 %v729_v31  ;;  %v981_v38 = vsel %vm979_vm4, %v1451_v19, 0 }
 0x1e7   : > { %v1885_v43 = vpop.eup %1476  ;;  %1488 = vpow2.f32 %v731_v61  ;;  %785 = vadd.xlane.f32.xlu0 %v784_v41  ;;  %1000 = vmatpush1.bf16.msra.mxu1 %v981_v38 }
 0x1e8   : > { %v1887_v63 = vpop.eup %1478  ;;  %1490 = vpow2.f32 %v733_v39  ;;  %v633_v1 = vpop.xlane.xlu0 %632 }
 0x1e9   : > { %v1889_v44 = vpop.eup %1480  ;;  %v681_v45 = vsub.f32 %v1756_v5, %v633_v1  ;;  %v682_v49 = vsub.f32 %v1758_v6, %v633_v1  ;;  %v787_v50 = vsel %vm589_vm1, %v1887_v63, 0.0 }
 0x1ea   : > { %v1896_v47 = vpop.eup %1482  ;;  %v637_v48 = vpop.xlane.xlu1 %636  ;;  %v788_v57 = vadd.f32 %v1885_v43, %v787_v50 }
 0x1eb   : > { %v735_v59 = vmul.f32 1.442695, %v681_v45  ;;  %v737_v62 = vmul.f32 1.442695, %v682_v49  ;;  %v683_v3 = vsub.f32 %v1762_v8, %v637_v48  ;;  %v684_v5 = vsub.f32 %v1764_v9, %v637_v48 }
 0x1ec   : > { %789 = vadd.xlane.f32.xlu1 %v788_v57  ;;  %v791_v6 = vsel %vm589_vm1, %v1896_v47, 0.0 }
 0x1ed   : > { %1492 = vpow2.f32 %v735_v59  ;;  %v739_v4 = vmul.f32 1.442695, %v683_v3  ;;  %v741_v7 = vmul.f32 1.442695, %v684_v5  ;;  %v792_v10 = vadd.f32 %v1889_v44, %v791_v6 }
 0x1ee   : > { %1494 = vpow2.f32 %v737_v62 }
 0x1ef   : > { %v1907_v53 = vpop.eup %1484  ;;  %1496 = vpow2.f32 %v739_v4  ;;  %793 = vadd.xlane.f32.xlu0 %v792_v10 }
 0x1f0   : > { %v1909_v8 = vpop.eup %1486  ;;  %1498 = vpow2.f32 %v741_v7  ;;  %v641_v9 = vpop.xlane.xlu0 %640 }
 0x1f1   : > { %v1911_v12 = vpop.eup %1488  ;;  %v685_v15 = vsub.f32 %v1770_v13, %v641_v9  ;;  %v686_v55 = vsub.f32 %v1772_v14, %v641_v9  ;;  %v795_v18 = vsel %vm589_vm1, %v1909_v8, 0.0 }
 0x1f2   : > { %v1919_v30 = vpop.eup %1490  ;;  %v645_v23 = vpop.xlane.xlu1 %644  ;;  %v796_v27 = vadd.f32 %v1907_v53, %v795_v18 }
 0x1f3   : > { %v743_v36 = vmul.f32 1.442695, %v685_v15  ;;  %v745_v37 = vmul.f32 1.442695, %v686_v55  ;;  %v687_v31 = vsub.f32 %v1776_v16, %v645_v23  ;;  %v688_v13 = vsub.f32 %v1778_v17, %v645_v23 }
 0x1f4   : > { %797 = vadd.xlane.f32.xlu1 %v796_v27  ;;  %v799_v14 = vsel %vm589_vm1, %v1919_v30, 0.0 }
 0x1f5   : > { %1500 = vpow2.f32 %v743_v36  ;;  %v747_v0 = vmul.f32 1.442695, %v687_v31  ;;  %v749_v40 = vmul.f32 1.442695, %v688_v13  ;;  %v800_v60 = vadd.f32 %v1911_v12, %v799_v14 }
 0x1f6   : > { %1502 = vpow2.f32 %v745_v37 }
 0x1f7   : > { %v1927_v61 = vpop.eup %1492  ;;  %1504 = vpow2.f32 %v747_v0  ;;  %801 = vadd.xlane.f32.xlu0 %v800_v60 }
 0x1f8   : > { %v1929_v39 = vpop.eup %1494  ;;  %1506 = vpow2.f32 %v749_v40  ;;  %v649_v16 = vpop.xlane.xlu0 %648 }
 0x1f9   : > { %v1931_v17 = vpop.eup %1496  ;;  %v689_v41 = vsub.f32 %v1784_v21, %v649_v16  ;;  %v690_v42 = vsub.f32 %v1786_v22, %v649_v16  ;;  %v803_v1 = vsel %vm589_vm1, %v1929_v39, 0.0 }
 0x1fa   : > { %v1937_v45 = vpop.eup %1498  ;;  %v653_v49 = vpop.xlane.xlu1 %652  ;;  %v804_v50 = vadd.f32 %v1927_v61, %v803_v1 }
 0x1fb   : > { %v751_v48 = vmul.f32 1.442695, %v689_v41  ;;  %v753_v57 = vmul.f32 1.442695, %v690_v42  ;;  %v691_v58 = vsub.f32 %v1790_v24, %v653_v49  ;;  %v692_v59 = vsub.f32 %v1792_v25, %v653_v49 }
 0x1fc   : > { %805 = vadd.xlane.f32.xlu1 %v804_v50  ;;  %v807_v21 = vsel %vm589_vm1, %v1937_v45, 0.0 }
 0x1fd   : > { %1508 = vpow2.f32 %v751_v48  ;;  %v755_v22 = vmul.f32 1.442695, %v691_v58  ;;  %v757_v62 = vmul.f32 1.442695, %v692_v59  ;;  %v808_v3 = vadd.f32 %v1931_v17, %v807_v21 }
 0x1fe   : > { %1510 = vpow2.f32 %v753_v57 }
 0x1ff   : > { %v1945_v5 = vpop.eup %1500  ;;  %1512 = vpow2.f32 %v755_v22  ;;  %809 = vadd.xlane.f32.xlu0 %v808_v3 }
 0x200   : > { %v1947_v6 = vpop.eup %1502  ;;  %1514 = vpow2.f32 %v757_v62  ;;  %v660_v24 = vpop.xlane.xlu0 %659 }
 0x201   : > { %v1949_v4 = vpop.eup %1504  ;;  %v693_v25 = vsub.f32 %v1798_v33, %v660_v24  ;;  %v694_v7 = vsub.f32 %v1802_v35, %v660_v24  ;;  %v811_v10 = vsel %vm589_vm1, %v1947_v6, 0.0 }
 0x202   : > { %v1955_v52 = vpop.eup %1506  ;;  %v812_v9 = vadd.f32 %v1945_v5, %v811_v10 }
 0x203   : > { %v759_v15 = vmul.f32 1.442695, %v693_v25  ;;  %v761_v55 = vmul.f32 1.442695, %v694_v7  ;;  %v815_v18 = vsel %vm589_vm1, %v1955_v52, 0.0 }
 0x204   : > { %813 = vadd.xlane.f32.xlu1 %v812_v9  ;;  %v816_v19 = vadd.f32 %v1949_v4, %v815_v18 }
 0x205   : > { %1516 = vpow2.f32 %v759_v15 }
 0x206   : > { %1518 = vpow2.f32 %v761_v55  ;;  %817 = vadd.xlane.f32.xlu0 %v816_v19 }
 0x207   : > { %v1961_v33 = vpop.eup %1508 }
 0x208   : > { %v1963_v35 = vpop.eup %1510 }
 0x209   : > { %v1965_v23 = vpop.eup %1512  ;;  %v819_v27 = vsel %vm589_vm1, %v1963_v35, 0.0 }
 0x20a   : > { %v1969_v36 = vpop.eup %1514  ;;  %v820_v37 = vadd.f32 %v1961_v33, %v819_v27 }
 0x20b   : > { %v823_v31 = vsel %vm589_vm1, %v1969_v36, 0.0 }
 0x20c   : > { %821 = vadd.xlane.f32.xlu1 %v820_v37  ;;  %v824_v13 = vadd.f32 %v1965_v23, %v823_v31 }
 0x20e   : > { %825 = vadd.xlane.f32.xlu0 %v824_v13 }
 0x20f   : > { %v1975_v14 = vpop.eup %1516 }
 0x210   : > { %v1977_v38 = vpop.eup %1518  ;;  %v827_v0 = vsel %vm654_vm2, %v1975_v14, 0.0 }
 0x211   : > { %v828_v40 = vsel %vm656_vm3, %v1977_v38, 0.0 }
 0x212   : > { %v829_v60 = vadd.f32 %v828_v40, %v827_v0 }
 0x214   : > { %830 = vadd.xlane.f32.xlu1 %v829_v60 }
 0x261   : > { %v766_v16 = vpop.xlane.xlu1 %765 }
 0x262   : > { %1520 = vrcp.f32 %v766_v16 }
 0x265   : > { %v770_v41 = vpop.xlane.xlu0 %769 }
 0x266   : > { %1522 = vrcp.f32 %v770_v41 }
 0x269   : > { %v774_v42 = vpop.xlane.xlu1 %773 }
 0x26a   : > { %1524 = vrcp.f32 %v774_v42 }
 0x26c   : > { %v1521_v49 = vpop.eup %1520 }
 0x26d   : > { %v778_v1 = vpop.xlane.xlu0 %777  ;;  %v850_v57 = vmul.f32 %v1521_v49, %v1830_v26  ;;  %v849_v59 = vmul.f32 %v1521_v49, %v1828_v32 }
 0x26e   : > { %1526 = vrcp.f32 %v778_v1 }
 0x270   : > { %v1523_v50 = vpop.eup %1522 }
 0x271   : > { %v782_v48 = vpop.xlane.xlu1 %781  ;;  %v852_v58 = vmul.f32 %v1523_v50, %v1841_v46  ;;  %v851_v21 = vmul.f32 %v1523_v50, %v1837_v34 }
 0x272   : > { %1528 = vrcp.f32 %v782_v48 }
 0x273   : > { %v884_v22 = vpack.c.bf16 %v852_v58, %v850_v57  ;;  %v883_v62 = vpack.c.bf16 %v851_v21, %v849_v59 }
 0x274   : > { %v786_v3 = vpop.xlane.xlu0 %785  ;;  %v1525_v24 = vpop.eup %1524 }
 0x275   : > { %1530 = vrcp.f32 %v786_v3  ;;  %1354 = vmatprep.mubr.msk.bf16.mxu1 %vm589_vm1, %v884_v22  ;;  %v854_v10 = vmul.f32 %v1525_v24, %v1848_v54  ;;  %v853_v46 = vmul.f32 %v1525_v24, %v1846_v51 }
 0x276   : > { %1016 = vmatmul.mubr.bf16.vlgmr.msra.gmra.mrb[0].mxu1 %v883_v62 }
 0x278   : > { %v1527_v25 = vpop.eup %1526 }
 0x279   : > { %v790_v7 = vpop.xlane.xlu1 %789  ;;  %v856_v26 = vmul.f32 %v1527_v25, %v1859_v11  ;;  %v855_v32 = vmul.f32 %v1527_v25, %v1855_v2 }
 0x27a   : > { %1532 = vrcp.f32 %v790_v7 }
 0x27b   : > { %v886_v34 = vpack.c.bf16 %v856_v26, %v854_v10  ;;  %v885_v9 = vpack.c.bf16 %v855_v32, %v853_v46 }
 0x27c   : > { %v794_v15 = vpop.xlane.xlu0 %793  ;;  %v1529_v55 = vpop.eup %1528 }
 0x27d   : > { %1534 = vrcp.f32 %v794_v15  ;;  %1355 = vmatprep.mubr.msk.bf16.mxu1 %vm589_vm1, %v886_v34  ;;  %v858_v19 = vmul.f32 %v1529_v55, %v1866_v29  ;;  %v857_v2 = vmul.f32 %v1529_v55, %v1864_v28 }
 0x27e   : > { %1024 = vmatmul.mubr.bf16.gmra.mrb[4].mxu1 %v885_v9 }
 0x27f   : > { %v1531_v18 = vpop.eup %1530 }
 0x280   : > { %v860_v54 = vmul.f32 %v1531_v18, %v1874_v20  ;;  %v859_v11 = vmul.f32 %v1531_v18, %v1868_v56 }
 0x281   : > { %v798_v27 = vpop.xlane.xlu1 %797 }
 0x282   : > { %v888_v51 = vpack.c.bf16 %v860_v54, %v858_v19  ;;  %1536 = vrcp.f32 %v798_v27  ;;  %v887_v31 = vpack.c.bf16 %v859_v11, %v857_v2 }
 0x284   : > { %1356 = vmatprep.mubr.msk.bf16.mxu1 %vm589_vm1, %v888_v51  ;;  %v802_v37 = vpop.xlane.xlu0 %801  ;;  %v1533_v13 = vpop.eup %1532 }
 0x285   : > { %1538 = vrcp.f32 %v802_v37  ;;  %v862_v40 = vmul.f32 %v1533_v13, %v1887_v63  ;;  %v861_v16 = vmul.f32 %v1533_v13, %v1885_v43 }
 0x286   : > { %1032 = vmatmul.mubr.bf16.gmra.mrb[8].mxu1 %v887_v31 }
 0x287   : > { %v1535_v0 = vpop.eup %1534 }
 0x288   : > { %v864_v29 = vmul.f32 %v1535_v0, %v1896_v47  ;;  %v863_v20 = vmul.f32 %v1535_v0, %v1889_v44 }
 0x289   : > { %v806_v56 = vpop.xlane.xlu1 %805 }
 0x28a   : > { %v890_v60 = vpack.c.bf16 %v864_v29, %v862_v40  ;;  %1540 = vrcp.f32 %v806_v56  ;;  %v889_v41 = vpack.c.bf16 %v863_v20, %v861_v16 }
 0x28c   : > { %1357 = vmatprep.mubr.msk.bf16.mxu1 %vm589_vm1, %v890_v60  ;;  %v810_v28 = vpop.xlane.xlu0 %809  ;;  %v1537_v42 = vpop.eup %1536 }
 0x28d   : > { %1542 = vrcp.f32 %v810_v28  ;;  %v866_v49 = vmul.f32 %v1537_v42, %v1909_v8  ;;  %v865_v43 = vmul.f32 %v1537_v42, %v1907_v53 }
 0x28e   : > { %1040 = vmatmul.mubr.bf16.gmra.mrb[12].mxu1 %v889_v41 }
 0x28f   : > { %v1539_v1 = vpop.eup %1538 }
 0x290   : > { %v868_v63 = vmul.f32 %v1539_v1, %v1919_v30  ;;  %v867_v47 = vmul.f32 %v1539_v1, %v1911_v12 }
 0x291   : > { %v814_v44 = vpop.xlane.xlu1 %813 }
 0x292   : > { %1544 = vrcp.f32 %v814_v44  ;;  %v892_v50 = vpack.c.bf16 %v868_v63, %v866_v49  ;;  %v891_v57 = vpack.c.bf16 %v867_v47, %v865_v43 }
 0x293   : > { %v818_v48 = vpop.xlane.xlu0 %817 }
 0x294   : > { %1358 = vmatprep.mubr.msk.bf16.mxu1 %vm589_vm1, %v892_v50  ;;  %1546 = vrcp.f32 %v818_v48  ;;  %v1541_v58 = vpop.eup %1540 }
 0x295   : > { %v870_v21 = vmul.f32 %v1541_v58, %v1929_v39  ;;  %v869_v62 = vmul.f32 %v1541_v58, %v1927_v61 }
 0x296   : > { %1048 = vmatmul.mubr.bf16.gmra.mrb[16].mxu1 %v891_v57 }
 0x297   : > { %v1543_v59 = vpop.eup %1542 }
 0x298   : > { %v872_v8 = vmul.f32 %v1543_v59, %v1937_v45  ;;  %v871_v30 = vmul.f32 %v1543_v59, %v1931_v17 }
 0x299   : > { %v822_v12 = vpop.xlane.xlu1 %821 }
 0x29a   : > { %1548 = vrcp.f32 %v822_v12  ;;  %v894_v22 = vpack.c.bf16 %v872_v8, %v870_v21  ;;  %v893_v24 = vpack.c.bf16 %v871_v30, %v869_v62 }
 0x29b   : > { %v826_v53 = vpop.xlane.xlu0 %825 }
 0x29c   : > { %v1545_v3 = vpop.eup %1544  ;;  %1359 = vmatprep.mubr.msk.bf16.mxu1 %vm589_vm1, %v894_v22  ;;  %1550 = vrcp.f32 %v826_v53 }
 0x29d   : > { %v874_v7 = vmul.f32 %v1545_v3, %v1947_v6  ;;  %v873_v26 = vmul.f32 %v1545_v3, %v1945_v5 }
 0x29e   : > { %v1547_v25 = vpop.eup %1546  ;;  %1056 = vmatmul.mubr.bf16.gmra.mrb[20].mxu1 %v893_v24 }
 0x29f   : > { %v876_v39 = vmul.f32 %v1547_v25, %v1955_v52  ;;  %v875_v45 = vmul.f32 %v1547_v25, %v1949_v4 }
 0x2a1   : > { %v831_v17 = vpop.xlane.xlu1 %830  ;;  %v896_v10 = vpack.c.bf16 %v876_v39, %v874_v7  ;;  %v895_v46 = vpack.c.bf16 %v875_v45, %v873_v26 }
 0x2a2   : > { %1552 = vrcp.f32 %v831_v17 }
 0x2a3   : > { %1360 = vmatprep.mubr.msk.bf16.mxu1 %vm589_vm1, %v896_v10 }
 0x2a4   : > { %v1549_v61 = vpop.eup %1548 }
 0x2a5   : > { %v878_v34 = vmul.f32 %v1549_v61, %v1963_v35  ;;  %v877_v4 = vmul.f32 %v1549_v61, %v1961_v33 }
 0x2a6   : > { %v1551_v32 = vpop.eup %1550  ;;  %1064 = vmatmul.mubr.bf16.gmra.mrb[24].mxu1 %v895_v46 }
 0x2a7   : > { %v880_v6 = vmul.f32 %v1551_v32, %v1969_v36  ;;  %v879_v52 = vmul.f32 %v1551_v32, %v1965_v23 }
 0x2a9   : > { %v898_v9 = vpack.c.bf16 %v880_v6, %v878_v34  ;;  %v897_v5 = vpack.c.bf16 %v879_v52, %v877_v4 }
 0x2ab   : > { %1361 = vmatprep.mubr.msk.bf16.mxu1 %vm589_vm1, %v898_v9 }
 0x2ac   : > { %v1553_v15 = vpop.eup %1552 }
 0x2ad   : > { %v882_v55 = vmul.f32 %v1553_v15, %v1977_v38  ;;  %v881_v19 = vmul.f32 %v1553_v15, %v1975_v14 }
 0x2ae   : > { %1072 = vmatmul.mubr.bf16.gmra.mrb[28].mxu1 %v897_v5 }
 0x2af   : > { %v900_v18 = vpack.c.bf16 %v882_v55, %v882_v55  ;;  %v899_v35 = vpack.c.bf16 %v881_v19, %v881_v19 }
 0x2b1   : > { %1362 = vmatprep.mubr.msk.bf16.mxu1 %vm589_vm1, %v900_v18 }
 0x2b6   : > { %1080 = vmatmul.mubr.bf16.gmra.mrb[32].mxu1 %v899_v35 }
 0x349   : > { %v1017_v33 = vpop.f32.mrb[0].mxu1 }
 0x34a   : > { %v1382_v23 = vpack.c.bf16 %v1017_v33, %v1017_v33  ;;  %v1019_v36 = vpop.f32.mrb[1].mxu1 }
 0x34b   : > { %v1020_v38 = vpop.f32.mrb[2].mxu1 }
 0x34c   : > { %1157 = vst.msk [vmem:[%s2030_s28] sm:$0xf] %vm1156_vm5, %v1382_v23  ;;  %v1383_v14 = vpack.c.bf16 %v1020_v38, %v1020_v38  ;;  %v1022_v54 = vpop.f32.mrb[3].mxu1 }
 0x34e   : > { %1158 = vst.msk [vmem:[%s2030_s28 + $0x4] sm:$0xf] %vm1156_vm5, %v1383_v14 }
 0x351   : > { %v1025_v11 = vpop.f32.mrb[4].mxu1 }
 0x352   : > { %v1384_v27 = vpack.c.bf16 %v1025_v11, %v1025_v11  ;;  %v1027_v51 = vpop.f32.mrb[5].mxu1 }
 0x353   : > { %v1028_v2 = vpop.f32.mrb[6].mxu1 }
 0x354   : > { %1159 = vst.msk [vmem:[%s2030_s28 + $0x8] sm:$0xf] %vm1156_vm5, %v1384_v27  ;;  %v1385_v37 = vpack.c.bf16 %v1028_v2, %v1028_v2  ;;  %v1030_v31 = vpop.f32.mrb[7].mxu1 }
 0x356   : > { %1160 = vst.msk [vmem:[%s2030_s28 + $0xc] sm:$0xf] %vm1156_vm5, %v1385_v37 }
 0x359   : > { %v1033_v13 = vpop.f32.mrb[8].mxu1 }
 0x35a   : > { %v1386_v0 = vpack.c.bf16 %v1033_v13, %v1033_v13  ;;  %v1035_v40 = vpop.f32.mrb[9].mxu1 }
 0x35b   : > { %v1036_v29 = vpop.f32.mrb[10].mxu1 }
 0x35c   : > { %1161 = vst.msk [vmem:[%s2030_s28 + $0x10] sm:$0xf] %vm1156_vm5, %v1386_v0  ;;  %v1387_v20 = vpack.c.bf16 %v1036_v29, %v1036_v29  ;;  %v1038_v56 = vpop.f32.mrb[11].mxu1 }
 0x35e   : > { %1162 = vst.msk [vmem:[%s2030_s28 + $0x14] sm:$0xf] %vm1156_vm5, %v1387_v20 }
 0x361   : > { %v1041_v60 = vpop.f32.mrb[12].mxu1 }
 0x362   : > { %v1388_v16 = vpack.c.bf16 %v1041_v60, %v1041_v60  ;;  %v1043_v28 = vpop.f32.mrb[13].mxu1 }
 0x363   : > { %v1044_v41 = vpop.f32.mrb[14].mxu1 }
 0x364   : > { %1163 = vst.msk [vmem:[%s2030_s28 + $0x18] sm:$0xf] %vm1156_vm5, %v1388_v16  ;;  %v1389_v42 = vpack.c.bf16 %v1044_v41, %v1044_v41  ;;  %v1046_v1 = vpop.f32.mrb[15].mxu1 }
 0x366   : > { %1164 = vst.msk [vmem:[%s2030_s28 + $0x1c] sm:$0xf] %vm1156_vm5, %v1389_v42 }
 0x369   : > { %v1049_v49 = vpop.f32.mrb[16].mxu1 }
 0x36a   : > { %v1390_v63 = vpack.c.bf16 %v1049_v49, %v1049_v49  ;;  %v1051_v47 = vpop.f32.mrb[17].mxu1 }
 0x36b   : > { %v1052_v44 = vpop.f32.mrb[18].mxu1 }
 0x36c   : > { %1165 = vst.msk [vmem:[%s2030_s28 + $0x20] sm:$0xf] %vm1156_vm5, %v1390_v63  ;;  %v1391_v50 = vpack.c.bf16 %v1052_v44, %v1052_v44  ;;  %v1054_v43 = vpop.f32.mrb[19].mxu1 }
 0x36e   : > { %1166 = vst.msk [vmem:[%s2030_s28 + $0x24] sm:$0xf] %vm1156_vm5, %v1391_v50 }
 0x371   : > { %v1057_v48 = vpop.f32.mrb[20].mxu1 }
 0x372   : > { %v1392_v57 = vpack.c.bf16 %v1057_v48, %v1057_v48  ;;  %v1059_v58 = vpop.f32.mrb[21].mxu1 }
 0x373   : > { %v1060_v59 = vpop.f32.mrb[22].mxu1 }
 0x374   : > { %1167 = vst.msk [vmem:[%s2030_s28 + $0x28] sm:$0xf] %vm1156_vm5, %v1392_v57  ;;  %v1393_v21 = vpack.c.bf16 %v1060_v59, %v1060_v59  ;;  %v1062_v8 = vpop.f32.mrb[23].mxu1 }
 0x376   : > { %1168 = vst.msk [vmem:[%s2030_s28 + $0x2c] sm:$0xf] %vm1156_vm5, %v1393_v21 }
 0x379   : > { %v1065_v30 = vpop.f32.mrb[24].mxu1 }
 0x37a   : > { %v1394_v12 = vpack.c.bf16 %v1065_v30, %v1065_v30  ;;  %v1067_v22 = vpop.f32.mrb[25].mxu1 }
 0x37b   : > { %v1068_v62 = vpop.f32.mrb[26].mxu1 }
 0x37c   : > { %1169 = vst.msk [vmem:[%s2030_s28 + $0x30] sm:$0xf] %vm1156_vm5, %v1394_v12  ;;  %v1395_v53 = vpack.c.bf16 %v1068_v62, %v1068_v62  ;;  %v1070_v3 = vpop.f32.mrb[27].mxu1 }
 0x37e   : > { %1170 = vst.msk [vmem:[%s2030_s28 + $0x34] sm:$0xf] %vm1156_vm5, %v1395_v53 }
 0x381   : > { %v1073_v24 = vpop.f32.mrb[28].mxu1 }
 0x382   : > { %v1396_v25 = vpack.c.bf16 %v1073_v24, %v1073_v24  ;;  %v1075_v7 = vpop.f32.mrb[29].mxu1 }
 0x383   : > { %v1076_v39 = vpop.f32.mrb[30].mxu1 }
 0x384   : > { %1171 = vst.msk [vmem:[%s2030_s28 + $0x38] sm:$0xf] %vm1156_vm5, %v1396_v25  ;;  %v1397_v45 = vpack.c.bf16 %v1076_v39, %v1076_v39  ;;  %v1078_v17 = vpop.f32.mrb[31].mxu1 }
 0x386   : > { %1172 = vst.msk [vmem:[%s2030_s28 + $0x3c] sm:$0xf] %vm1156_vm5, %v1397_v45 }
 0x389   : > { %v1081_v10 = vpop.f32.mrb[32].mxu1 }
 0x38a   : > { %v1398_v26 = vpack.c.bf16 %v1081_v10, %v1081_v10  ;;  %v1083_v61 = vpop.f32.mrb[33].mxu1 }
 0x38b   : > { %v1084_v46 = vpop.f32.mrb[34].mxu1 }
 0x38c   : > { %1174 = vst.msk [vmem:[%s2030_s28 + $0x40] sm:$0x3] %vm1173_vm6, %v1398_v26  ;;  %v1085_v32 = vpop.f32.mrb[35].mxu1 }
 0x38d PF: > { %s13_s14 = sadd.s32 1, %s1576_s14   ;;  %s2078_s12 = smov %s1572_s13 }
 0x38e   : > { %p10_p5 = scmp.ge.s32.totalorder %s13_s14, 6   ;;  %s2079_s13 = smov %s2081_s15 }
 0x390   :  { %12 = sbr.rel (!%p10_p5) target bundleno = 2 (0x2), region = 68 }

// kernel: ofa_vit_forward.31
= control target key start
LH: loop header
LB: loop body
LE: loop exit
PB: predicated region body
PF: predicated region fallthrough
CT: control target
= control target key end

     0   :  { %s964_s12 = smov 0   ;;  %s966_s13 = smov 0   ;;  %s1137_s0 = inlined_call_operand.vmem [shape: f32[3,128], index: 0, kind: input, shape index: {}]   ;;  %s1138_s1 = inlined_call_operand.vmem [shape: bf16[128,8192], index: 1, kind: input, shape index: {}]   ;;  %s1139_s2 = inlined_call_operand.vmem [shape: f32[1,8192], index: 2, kind: input, shape index: {}]   ;;  %s1140_s3 = inlined_call_operand.vmem [shape: f32[3,8192], index: 3, kind: output, shape index: {}]  }
   0x1   :  { %s968_s14 = smov 0   ;;  %s970_s15 = smov 0  }
   0x2   :  { %s972_s16 = smov 0  }
   0x3 LB: > { %s28_s17 = sadd.s32 1, %s937_s15  ;;  %p76_p1 = scmp.ne.s32.totalorder %s929_s13, %s925_s12  ;;  %s941_s16 = sphi %s972_s16, %s13_s16   ;;  %s937_s15 = sphi %s970_s15, %s1144_s15   ;;  %s933_s14 = sphi %s968_s14, %s1143_s14   ;;  %s929_s13 = sphi %s966_s13, %s1142_s13   ;;  %s925_s12 = sphi %s964_s12, %s1141_s12  }
   0x4   : > { %p30_p0 = scmp.ge.s32.totalorder %s28_s17, 16  ;;  %p77_p2 = scmp.eq.s32.totalorder %s941_s16, 0 }
   0x5   : > { %s69_s19 = sadd.s32 1, %s929_s13  ;;  %p770_p5 = scmp.ge.s32.totalorder %s941_s16, 16 }
   0x6   : > { %s1146_s17 = smov (%p30_p0, %s28_s17), 0  ;;  %p78_p3 = por %p77_p2, %p76_p1 }
   0x7   : > { %s65_s18 = ssub.s32 %s937_s15, %s1146_s17  ;;  %166 = sbr.rel (%p770_p5) target bundleno = 34 (0x22), region = 20 }
   0x8   : > { %p67_p4 = scmp.eq.s32.totalorder %s65_s18, 0 }
   0xa   : > { %s999_s20 = scalar_select %p67_p4, %s929_s13, %s69_s19  }
   0xe   : > { %169 = sbr.rel (!%p78_p3) target bundleno = 34 (0x22), region = 24  ;;  %s171_s21 = sand.u32 (%p78_p3), 1, %s929_s13  }
   0xf   : > { %s813_s22 = sshll.u32 (%p78_p3), %s937_s15, 4  ;;  %s771_s23 = sshll.u32 (%p78_p3), %s171_s21, 8 }
  0x10   : > { %s1007_s26 = scalar_lea.vmem (%p78_p3), %s1138_s1, %s813_s22  ;;  %s1012_s27 = scalar_lea.vmem (%p78_p3), [#allocation2], %s771_s23 }
  0x11   : > { %v192_v0 = vld [vmem:[%s1007_s26] sm:$0xff] (%p78_p3)  ;;  %v194_v1 = vld [vmem:[%s1007_s26 + $0x8] sm:$0xff] (%p78_p3) }
  0x12   : > { %v196_v2 = vld [vmem:[%s1007_s26 + $0x100] sm:$0xff] (%p78_p3)  ;;  %193 = vst [vmem:[%s1012_s27] sm:$0xff] (%p78_p3), %v192_v0  ;;  %195 = vst [vmem:[%s1012_s27 + $0x8] sm:$0xff] (%p78_p3), %v194_v1  ;;  %v198_v3 = vld [vmem:[%s1007_s26 + $0x108] sm:$0xff] (%p78_p3) }
  0x13   : > { %197 = vst [vmem:[%s1012_s27 + $0x10] sm:$0xff] (%p78_p3), %v196_v2  ;;  %v200_v4 = vld [vmem:[%s1007_s26 + $0x200] sm:$0xff] (%p78_p3)  ;;  %v202_v5 = vld [vmem:[%s1007_s26 + $0x208] sm:$0xff] (%p78_p3)  ;;  %199 = vst [vmem:[%s1012_s27 + $0x18] sm:$0xff] (%p78_p3), %v198_v3 }
  0x14   : > { %201 = vst [vmem:[%s1012_s27 + $0x20] sm:$0xff] (%p78_p3), %v200_v4  ;;  %203 = vst [vmem:[%s1012_s27 + $0x28] sm:$0xff] (%p78_p3), %v202_v5  ;;  %v204_v6 = vld [vmem:[%s1007_s26 + $0x300] sm:$0xff] (%p78_p3)  ;;  %v206_v7 = vld [vmem:[%s1007_s26 + $0x308] sm:$0xff] (%p78_p3) }
  0x15   : > { %v208_v8 = vld [vmem:[%s1007_s26 + $0x400] sm:$0xff]  ;;  %205 = vst [vmem:[%s1012_s27 + $0x30] sm:$0xff] %v204_v6  ;;  %207 = vst [vmem:[%s1012_s27 + $0x38] sm:$0xff] %v206_v7  ;;  %v210_v9 = vld [vmem:[%s1007_s26 + $0x408] sm:$0xff] }
  0x16   : > { %209 = vst [vmem:[%s1012_s27 + $0x40] sm:$0xff] %v208_v8  ;;  %v212_v10 = vld [vmem:[%s1007_s26 + $0x500] sm:$0xff]  ;;  %v214_v11 = vld [vmem:[%s1007_s26 + $0x508] sm:$0xff]  ;;  %211 = vst [vmem:[%s1012_s27 + $0x48] sm:$0xff] %v210_v9 }
  0x17   : > { %213 = vst [vmem:[%s1012_s27 + $0x50] sm:$0xff] %v212_v10  ;;  %215 = vst [vmem:[%s1012_s27 + $0x58] sm:$0xff] %v214_v11  ;;  %v216_v12 = vld [vmem:[%s1007_s26 + $0x600] sm:$0xff]  ;;  %v218_v13 = vld [vmem:[%s1007_s26 + $0x608] sm:$0xff] }
  0x18   : > { %v220_v14 = vld [vmem:[%s1007_s26 + $0x700] sm:$0xff]  ;;  %217 = vst [vmem:[%s1012_s27 + $0x60] sm:$0xff] %v216_v12  ;;  %219 = vst [vmem:[%s1012_s27 + $0x68] sm:$0xff] %v218_v13  ;;  %v222_v15 = vld [vmem:[%s1007_s26 + $0x708] sm:$0xff] }
  0x19   : > { %221 = vst [vmem:[%s1012_s27 + $0x70] sm:$0xff] %v220_v14  ;;  %v224_v16 = vld [vmem:[%s1007_s26 + $0x800] sm:$0xff]  ;;  %v226_v17 = vld [vmem:[%s1007_s26 + $0x808] sm:$0xff]  ;;  %223 = vst [vmem:[%s1012_s27 + $0x78] sm:$0xff] %v222_v15 }
  0x1a   : > { %225 = vst [vmem:[%s1012_s27 + $0x80] sm:$0xff] %v224_v16  ;;  %227 = vst [vmem:[%s1012_s27 + $0x88] sm:$0xff] %v226_v17  ;;  %v228_v18 = vld [vmem:[%s1007_s26 + $0x900] sm:$0xff]  ;;  %v230_v19 = vld [vmem:[%s1007_s26 + $0x908] sm:$0xff] }
  0x1b   : > { %v232_v20 = vld [vmem:[%s1007_s26 + $0xa00] sm:$0xff]  ;;  %229 = vst [vmem:[%s1012_s27 + $0x90] sm:$0xff] %v228_v18  ;;  %231 = vst [vmem:[%s1012_s27 + $0x98] sm:$0xff] %v230_v19  ;;  %v234_v21 = vld [vmem:[%s1007_s26 + $0xa08] sm:$0xff] }
  0x1c   : > { %233 = vst [vmem:[%s1012_s27 + $0xa0] sm:$0xff] %v232_v20  ;;  %v236_v22 = vld [vmem:[%s1007_s26 + $0xb00] sm:$0xff]  ;;  %v238_v23 = vld [vmem:[%s1007_s26 + $0xb08] sm:$0xff]  ;;  %235 = vst [vmem:[%s1012_s27 + $0xa8] sm:$0xff] %v234_v21 }
  0x1d   : > { %237 = vst [vmem:[%s1012_s27 + $0xb0] sm:$0xff] %v236_v22  ;;  %239 = vst [vmem:[%s1012_s27 + $0xb8] sm:$0xff] %v238_v23  ;;  %v240_v24 = vld [vmem:[%s1007_s26 + $0xc00] sm:$0xff]  ;;  %v242_v25 = vld [vmem:[%s1007_s26 + $0xc08] sm:$0xff] }
  0x1e   : > { %v244_v26 = vld [vmem:[%s1007_s26 + $0xd00] sm:$0xff]  ;;  %241 = vst [vmem:[%s1012_s27 + $0xc0] sm:$0xff] %v240_v24  ;;  %243 = vst [vmem:[%s1012_s27 + $0xc8] sm:$0xff] %v242_v25  ;;  %v246_v27 = vld [vmem:[%s1007_s26 + $0xd08] sm:$0xff] }
  0x1f   : > { %245 = vst [vmem:[%s1012_s27 + $0xd0] sm:$0xff] %v244_v26  ;;  %v248_v28 = vld [vmem:[%s1007_s26 + $0xe00] sm:$0xff]  ;;  %v250_v29 = vld [vmem:[%s1007_s26 + $0xe08] sm:$0xff]  ;;  %247 = vst [vmem:[%s1012_s27 + $0xd8] sm:$0xff] %v246_v27 }
  0x20   : > { %249 = vst [vmem:[%s1012_s27 + $0xe0] sm:$0xff] %v248_v28  ;;  %251 = vst [vmem:[%s1012_s27 + $0xe8] sm:$0xff] %v250_v29  ;;  %v252_v30 = vld [vmem:[%s1007_s26 + $0xf00] sm:$0xff]  ;;  %v254_v31 = vld [vmem:[%s1007_s26 + $0xf08] sm:$0xff] }
  0x21   : > { %253 = vst [vmem:[%s1012_s27 + $0xf0] sm:$0xff] %v252_v30  ;;  %255 = vst [vmem:[%s1012_s27 + $0xf8] sm:$0xff] %v254_v31 }
  0x22 PF: > { %p774_p6 = scmp.ge.s32.totalorder %s941_s16, 1  ;;  %p268_p7 = scmp.lt.s32.totalorder %s941_s16, 17 }
  0x24   : > { %p269_p8 = pnand %p774_p6, %p268_p7 }
  0x25   : > { %s275_s28 = sand.u32 (!%p269_p8), 1, %s925_s12   ;;  %v943_v32 = vmov (!%p269_p8), 0   ;;  %v338_v1 = vld [vmem:[%s1137_s0] sm:$0x7] (!%p269_p8)  ;;  %s776_s6 = sshll.u32 (!%p269_p8), %s933_s14, 2  ;;  %v374_v3 = vlaneseq (!%p269_p8) }
  0x26   : > { %272 = sbr.rel (%p269_p8) target bundleno = 291 (0x123), region = 51  ;;  %s775_s29 = sshll.u32 (!%p269_p8), %s275_s28, 8  ;;  %586 = vmatprep.mubr.bf16.mxu0 (!%p269_p8), %v943_v32  ;;  %627 = vmatprep.mubr.bf16.mxu1 (!%p269_p8), %v943_v32  ;;  %v339_v2 = vpack.c.bf16 (!%p269_p8), %v338_v1, %v338_v1 }
  0x27   : > { %s1078_s30 = scalar_lea.vmem (!%p269_p8), [#allocation2], %s775_s29  ;;  %p323_p9 = scmp.lt.s32.totalorder (!%p269_p8), %s776_s6, 63  ;;  %v375_v4 = vshrl.u32 (!%p269_p8), %v374_v3, 7 }
  0x28   : > { %v855_v33 = vld [vmem:[%s1078_s30 + $0x4] ss:$16 sps:$4 sm:$0xff] (!%p269_p8)   ;;  %v857_v34 = vld [vmem:[%s1078_s30 + $0xc] ss:$16 sps:$4 sm:$0xff] (!%p269_p8)   ;;  %v859_v35 = vld [vmem:[%s1078_s30] ss:$16 sps:$4 sm:$0xff] (!%p269_p8)  }
  0x29   : > { %554 = vmatprep.subr.bf16.mxu0 (!%p269_p8), %v855_v33  ;;  %v860_v36 = vld [vmem:[%s1078_s30 + $0x8] ss:$16 sps:$4 sm:$0xff] (!%p269_p8)   ;;  %595 = vmatprep.subr.bf16.mxu1 (!%p269_p8), %v857_v34  ;;  %v861_v37 = vld [vmem:[%s1078_s30 + $0x24] ss:$16 sps:$4 sm:$0xff] (!%p269_p8)   ;;  %v863_v38 = vld [vmem:[%s1078_s30 + $0x2c] ss:$16 sps:$4 sm:$0xff] (!%p269_p8)  }
  0x2a   : > { %555 = vmatpush1.bf16.msra.mxu0 (!%p269_p8), %v859_v35  ;;  %596 = vmatpush1.bf16.msra.mxu1 (!%p269_p8), %v860_v36  ;;  %v865_v39 = vld [vmem:[%s1078_s30 + $0x20] ss:$16 sps:$4 sm:$0xff] (!%p269_p8)   ;;  %v866_v40 = vld [vmem:[%s1078_s30 + $0x28] ss:$16 sps:$4 sm:$0xff] (!%p269_p8)   ;;  %v867_v41 = vld [vmem:[%s1078_s30 + $0x44] ss:$16 sps:$4 sm:$0xff] (!%p269_p8)  }
  0x2b   : > { %556 = vmatprep.subr.bf16.mxu0 (!%p269_p8), %v861_v37  ;;  %597 = vmatprep.subr.bf16.mxu1 (!%p269_p8), %v863_v38  ;;  %v869_v42 = vld [vmem:[%s1078_s30 + $0x4c] ss:$16 sps:$4 sm:$0xff] (!%p269_p8)   ;;  %v871_v43 = vld [vmem:[%s1078_s30 + $0x40] ss:$16 sps:$4 sm:$0xff] (!%p269_p8)   ;;  %v872_v44 = vld [vmem:[%s1078_s30 + $0x48] ss:$16 sps:$4 sm:$0xff] (!%p269_p8)  }
  0x2c   : > { %v873_v45 = vld [vmem:[%s1078_s30 + $0x64] ss:$16 sps:$4 sm:$0xff] (!%p269_p8)   ;;  %v875_v46 = vld [vmem:[%s1078_s30 + $0x6c] ss:$16 sps:$4 sm:$0xff] (!%p269_p8)   ;;  %v877_v47 = vld [vmem:[%s1078_s30 + $0x60] ss:$16 sps:$4 sm:$0xff] (!%p269_p8)  }
  0x2d   : > { %v878_v48 = vld [vmem:[%s1078_s30 + $0x68] ss:$16 sps:$4 sm:$0xff]   ;;  %v879_v49 = vld [vmem:[%s1078_s30 + $0x84] ss:$16 sps:$4 sm:$0xff]   ;;  %v881_v50 = vld [vmem:[%s1078_s30 + $0x8c] ss:$16 sps:$4 sm:$0xff]  }
  0x2e   : > { %557 = vmatpush1.bf16.msra.mxu0 %v865_v39  ;;  %598 = vmatpush1.bf16.msra.mxu1 %v866_v40  ;;  %v883_v51 = vld [vmem:[%s1078_s30 + $0x80] ss:$16 sps:$4 sm:$0xff]   ;;  %v884_v52 = vld [vmem:[%s1078_s30 + $0x88] ss:$16 sps:$4 sm:$0xff]   ;;  %v885_v53 = vld [vmem:[%s1078_s30 + $0xa4] ss:$16 sps:$4 sm:$0xff]  }
  0x2f   : > { %558 = vmatprep.subr.bf16.mxu0 %v867_v41  ;;  %599 = vmatprep.subr.bf16.mxu1 %v869_v42  ;;  %v887_v54 = vld [vmem:[%s1078_s30 + $0xac] ss:$16 sps:$4 sm:$0xff]   ;;  %v889_v55 = vld [vmem:[%s1078_s30 + $0xa0] ss:$16 sps:$4 sm:$0xff]   ;;  %v890_v56 = vld [vmem:[%s1078_s30 + $0xa8] ss:$16 sps:$4 sm:$0xff]  }
  0x30   : > { %v891_v57 = vld [vmem:[%s1078_s30 + $0xc4] ss:$16 sps:$4 sm:$0xff]   ;;  %v893_v58 = vld [vmem:[%s1078_s30 + $0xcc] ss:$16 sps:$4 sm:$0xff]   ;;  %v895_v59 = vld [vmem:[%s1078_s30 + $0xc0] ss:$16 sps:$4 sm:$0xff]  }
  0x31   : > { %v896_v60 = vld [vmem:[%s1078_s30 + $0xc8] ss:$16 sps:$4 sm:$0xff]   ;;  %v897_v61 = vld [vmem:[%s1078_s30 + $0xe4] ss:$16 sps:$4 sm:$0xff]   ;;  %v899_v62 = vld [vmem:[%s1078_s30 + $0xec] ss:$16 sps:$4 sm:$0xff]  }
  0x32   : > { %559 = vmatpush1.bf16.msra.mxu0 %v871_v43  ;;  %600 = vmatpush1.bf16.msra.mxu1 %v872_v44  ;;  %v901_v63 = vld [vmem:[%s1078_s30 + $0xe0] ss:$16 sps:$4 sm:$0xff]   ;;  %v902_v0 = vld [vmem:[%s1078_s30 + $0xe8] ss:$16 sps:$4 sm:$0xff]   ;;  %s1148_s6 = smov (!%p323_p9, %s776_s6), 63  ;;  %v376_v5 = vsub.s32 0, %v375_v4 }
  0x33   : > { %560 = vmatprep.subr.bf16.mxu0 %v873_v45  ;;  %601 = vmatprep.subr.bf16.mxu1 %v875_v46  ;;  %s325_s9 = scalar_lea.vmem %s1139_s2, %s1148_s6  ;;  %v384_v6 = vsub.s32 2, %v375_v4  ;;  %v380_v8 = vsub.s32 1, %v375_v4  ;;  %v388_v9 = vsub.s32 3, %v375_v4  ;;  %s778_s10 = sshll.u32 %s1148_s6, 2 }
  0x34   : > { %v372_v7 = vld [vmem:[%s325_s9] sm:$0xf]  ;;  %s335_s14 = scalar_lea.vmem %s1140_s3, %s778_s10 }
  0x35   : > { %v377_v10 = vrot.slane %v372_v7, %v376_v5  ;;  %v385_v11 = vrot.slane %v372_v7, %v384_v6  ;;  %v381_v12 = vrot.slane %v372_v7, %v380_v8  ;;  %v389_v13 = vrot.slane %v372_v7, %v388_v9 }
  0x36   : > { %561 = vmatpush1.bf16.msra.mxu0 %v877_v47  ;;  %602 = vmatpush1.bf16.msra.mxu1 %v878_v48 }
  0x37   : > { %562 = vmatprep.subr.bf16.mxu0 %v879_v49  ;;  %603 = vmatprep.subr.bf16.mxu1 %v881_v50 }
  0x3a   : > { %563 = vmatpush1.bf16.msra.mxu0 %v883_v51  ;;  %604 = vmatpush1.bf16.msra.mxu1 %v884_v52 }
  0x3b   : > { %564 = vmatprep.subr.bf16.mxu0 %v885_v53  ;;  %605 = vmatprep.subr.bf16.mxu1 %v887_v54 }
  0x3e   : > { %565 = vmatpush1.bf16.msra.mxu0 %v889_v55  ;;  %606 = vmatpush1.bf16.msra.mxu1 %v890_v56 }
  0x3f   : > { %566 = vmatprep.subr.bf16.mxu0 %v891_v57  ;;  %607 = vmatprep.subr.bf16.mxu1 %v893_v58 }
  0x42   : > { %567 = vmatpush1.bf16.msra.mxu0 %v895_v59  ;;  %608 = vmatpush1.bf16.msra.mxu1 %v896_v60 }
  0x43   : > { %568 = vmatprep.subr.bf16.mxu0 %v897_v61  ;;  %609 = vmatprep.subr.bf16.mxu1 %v899_v62 }
  0x46   : > { %569 = vmatpush1.bf16.msra.mxu0 %v901_v63  ;;  %610 = vmatpush1.bf16.msra.mxu1 %v902_v0 }
  0x49   : > { %587 = vmatmul.mubr.bf16.vlgmr.msra.gmra.mrb[0].mxu0 %v339_v2  ;;  %628 = vmatmul.mubr.bf16.vlgmr.msra.gmra.mrb[0].mxu1 %v339_v2 }
 0x11c   : > { %v588_v14 = vpop.f32.mrb[0].mxu0  ;;  %v629_v15 = vpop.f32.mrb[0].mxu1 }
 0x11d   : > { %v589_v16 = vadd.f32 %v588_v14, %v377_v10  ;;  %v630_v17 = vadd.f32 %v629_v15, %v385_v11  ;;  %v590_v18 = vpop.f32.mrb[1].mxu0  ;;  %v631_v19 = vpop.f32.mrb[1].mxu1 }
 0x11e   : > { %v591_v20 = vadd.f32 %v590_v18, %v381_v12  ;;  %v632_v21 = vadd.f32 %v631_v19, %v389_v13  ;;  %v592_v22 = vpop.f32.mrb[2].mxu0  ;;  %v633_v23 = vpop.f32.mrb[2].mxu1 }
 0x11f   : > { %v593_v24 = vpop.f32.mrb[3].mxu0  ;;  %v634_v25 = vpop.f32.mrb[3].mxu1 }
 0x120   : > { %v640_v26 = vcombine.low %v589_v16, %v591_v20  ;;  %v641_v27 = vcombine.low %v630_v17, %v632_v21 }
 0x122   : > { %644 = vst [vmem:[%s335_s14] sm:$0x77] %v640_v26  ;;  %645 = vst [vmem:[%s335_s14 + $0x8] sm:$0x77] %v641_v27 }
 0x123 PF: > { %s13_s16 = sadd.s32 1, %s941_s16   ;;  %s1141_s12 = smov %s929_s13 }
 0x124   : > { %p10_p10 = scmp.ge.s32.totalorder %s13_s16, 18   ;;  %s1142_s13 = smov %s999_s20 }
 0x125   : > { %s1143_s14 = smov %s937_s15  ;;  %s1144_s15 = smov %s1146_s17 }
 0x126   :  { %12 = sbr.rel (!%p10_p10) target bundleno = 3 (0x3), region = 96 }

// kernel: ofa_vit_forward.28
= control target key start
LH: loop header
LB: loop body
LE: loop exit
PB: predicated region body
PF: predicated region fallthrough
CT: control target
= control target key end

     0   :  { %s1995_s12 = smov 0   ;;  %s1997_s13 = smov 0   ;;  %s2790_s0 = inlined_call_operand.vmem [shape: f32[132,128], index: 0, kind: input, shape index: {}]   ;;  %s2791_s1 = inlined_call_operand.vmem [shape: bf16[128,2048], index: 1, kind: input, shape index: {}]   ;;  %s2792_s2 = inlined_call_operand.vmem [shape: f32[1,2048], index: 2, kind: input, shape index: {}]   ;;  %s2793_s3 = inlined_call_operand.vmem [shape: bf16[132,2048], index: 3, kind: output, shape index: {}]  }
   0x1   :  { %s1999_s14 = smov 0   ;;  %s2001_s15 = smov 0  }
   0x2   :  { %s2003_s16 = smov 0  }
   0x3 LB: > { %s28_s17 = sadd.s32 1, %s1968_s15  ;;  %s1591_s18 = sadd.s32 4294967295, %s1972_s16   ;;  %s1972_s16 = sphi %s2003_s16, %s13_s16   ;;  %s1968_s15 = sphi %s2001_s15, %s2798_s15   ;;  %s1964_s14 = sphi %s1999_s14, %s2797_s14   ;;  %s1960_s13 = sphi %s1997_s13, %s2796_s13   ;;  %s1956_s12 = sphi %s1995_s12, %s2795_s12  }
   0x4   : > { %p30_p0 = scmp.ge.s32.totalorder %s28_s17, 4  ;;  %p76_p1 = scmp.ne.s32.totalorder %s1960_s13, %s1956_s12 }
   0x5   : > { %p77_p2 = scmp.eq.s32.totalorder %s1972_s16, 0  ;;  %p134_p4 = scmp.eq.s32.totalorder %s1591_s18, 3 }
   0x6   : > { %s2800_s17 = smov (%p30_p0, %s28_s17), 0  ;;  %s69_s20 = sadd.s32 1, %s1960_s13 }
   0x7   : > { %p78_p3 = por %p77_p2, %p76_p1  ;;  %s65_s19 = ssub.s32 %s1968_s15, %s2800_s17 }
   0x8   : > { %p67_p5 = scmp.eq.s32.totalorder %s65_s19, 0  ;;  %p2030_p6 = por %p134_p4, %p76_p1 }
   0x9   : > { %p1595_p7 = scmp.ge.s32.totalorder %s1972_s16, 4 }
   0xa   : > { %s2035_s22 = scalar_select %p67_p5, %s1960_s13, %s69_s20  }
   0xb   : > { %168 = sbr.rel (%p1595_p7) target bundleno = 38 (0x26), region = 20 }
  0x12   : > { %171 = sbr.rel (!%p78_p3) target bundleno = 38 (0x26), region = 24  ;;  %s173_s23 = sand.u32 (%p78_p3), 1, %s1960_s13  }
  0x13   : > { %s1672_s24 = sshll.u32 (%p78_p3), %s1968_s15, 4  ;;  %s1596_s25 = sshll.u32 (%p78_p3), %s173_s23, 8 }
  0x14   : > { %s2043_s28 = scalar_lea.vmem (%p78_p3), %s2791_s1, %s1672_s24  ;;  %s2048_s29 = scalar_lea.vmem (%p78_p3), [#allocation2], %s1596_s25 }
  0x15   : > { %v194_v0 = vld [vmem:[%s2043_s28] sm:$0xff] (%p78_p3)  ;;  %v196_v1 = vld [vmem:[%s2043_s28 + $0x8] sm:$0xff] (%p78_p3) }
  0x16   : > { %v198_v2 = vld [vmem:[%s2043_s28 + $0x40] sm:$0xff] (%p78_p3)  ;;  %195 = vst [vmem:[%s2048_s29] sm:$0xff] (%p78_p3), %v194_v0  ;;  %197 = vst [vmem:[%s2048_s29 + $0x8] sm:$0xff] (%p78_p3), %v196_v1  ;;  %v200_v3 = vld [vmem:[%s2043_s28 + $0x48] sm:$0xff] (%p78_p3) }
  0x17   : > { %199 = vst [vmem:[%s2048_s29 + $0x10] sm:$0xff] (%p78_p3), %v198_v2  ;;  %v202_v4 = vld [vmem:[%s2043_s28 + $0x80] sm:$0xff] (%p78_p3)  ;;  %v204_v5 = vld [vmem:[%s2043_s28 + $0x88] sm:$0xff] (%p78_p3)  ;;  %201 = vst [vmem:[%s2048_s29 + $0x18] sm:$0xff] (%p78_p3), %v200_v3 }
  0x18   : > { %203 = vst [vmem:[%s2048_s29 + $0x20] sm:$0xff] (%p78_p3), %v202_v4  ;;  %205 = vst [vmem:[%s2048_s29 + $0x28] sm:$0xff] (%p78_p3), %v204_v5  ;;  %v206_v6 = vld [vmem:[%s2043_s28 + $0xc0] sm:$0xff] (%p78_p3)  ;;  %v208_v7 = vld [vmem:[%s2043_s28 + $0xc8] sm:$0xff] (%p78_p3) }
  0x19   : > { %v210_v8 = vld [vmem:[%s2043_s28 + $0x100] sm:$0xff]  ;;  %207 = vst [vmem:[%s2048_s29 + $0x30] sm:$0xff] %v206_v6  ;;  %209 = vst [vmem:[%s2048_s29 + $0x38] sm:$0xff] %v208_v7  ;;  %v212_v9 = vld [vmem:[%s2043_s28 + $0x108] sm:$0xff] }
  0x1a   : > { %211 = vst [vmem:[%s2048_s29 + $0x40] sm:$0xff] %v210_v8  ;;  %v214_v10 = vld [vmem:[%s2043_s28 + $0x140] sm:$0xff]  ;;  %v216_v11 = vld [vmem:[%s2043_s28 + $0x148] sm:$0xff]  ;;  %213 = vst [vmem:[%s2048_s29 + $0x48] sm:$0xff] %v212_v9 }
  0x1b   : > { %215 = vst [vmem:[%s2048_s29 + $0x50] sm:$0xff] %v214_v10  ;;  %217 = vst [vmem:[%s2048_s29 + $0x58] sm:$0xff] %v216_v11  ;;  %v218_v12 = vld [vmem:[%s2043_s28 + $0x180] sm:$0xff]  ;;  %v220_v13 = vld [vmem:[%s2043_s28 + $0x188] sm:$0xff] }
  0x1c   : > { %v222_v14 = vld [vmem:[%s2043_s28 + $0x1c0] sm:$0xff]  ;;  %219 = vst [vmem:[%s2048_s29 + $0x60] sm:$0xff] %v218_v12  ;;  %221 = vst [vmem:[%s2048_s29 + $0x68] sm:$0xff] %v220_v13  ;;  %v224_v15 = vld [vmem:[%s2043_s28 + $0x1c8] sm:$0xff] }
  0x1d   : > { %223 = vst [vmem:[%s2048_s29 + $0x70] sm:$0xff] %v222_v14  ;;  %v226_v16 = vld [vmem:[%s2043_s28 + $0x200] sm:$0xff]  ;;  %v228_v17 = vld [vmem:[%s2043_s28 + $0x208] sm:$0xff]  ;;  %225 = vst [vmem:[%s2048_s29 + $0x78] sm:$0xff] %v224_v15 }
  0x1e   : > { %227 = vst [vmem:[%s2048_s29 + $0x80] sm:$0xff] %v226_v16  ;;  %229 = vst [vmem:[%s2048_s29 + $0x88] sm:$0xff] %v228_v17  ;;  %v230_v18 = vld [vmem:[%s2043_s28 + $0x240] sm:$0xff]  ;;  %v232_v19 = vld [vmem:[%s2043_s28 + $0x248] sm:$0xff] }
  0x1f   : > { %v234_v20 = vld [vmem:[%s2043_s28 + $0x280] sm:$0xff]  ;;  %231 = vst [vmem:[%s2048_s29 + $0x90] sm:$0xff] %v230_v18  ;;  %233 = vst [vmem:[%s2048_s29 + $0x98] sm:$0xff] %v232_v19  ;;  %v236_v21 = vld [vmem:[%s2043_s28 + $0x288] sm:$0xff] }
  0x20   : > { %235 = vst [vmem:[%s2048_s29 + $0xa0] sm:$0xff] %v234_v20  ;;  %v238_v22 = vld [vmem:[%s2043_s28 + $0x2c0] sm:$0xff]  ;;  %v240_v23 = vld [vmem:[%s2043_s28 + $0x2c8] sm:$0xff]  ;;  %237 = vst [vmem:[%s2048_s29 + $0xa8] sm:$0xff] %v236_v21 }
  0x21   : > { %239 = vst [vmem:[%s2048_s29 + $0xb0] sm:$0xff] %v238_v22  ;;  %241 = vst [vmem:[%s2048_s29 + $0xb8] sm:$0xff] %v240_v23  ;;  %v242_v24 = vld [vmem:[%s2043_s28 + $0x300] sm:$0xff]  ;;  %v244_v25 = vld [vmem:[%s2043_s28 + $0x308] sm:$0xff] }
  0x22   : > { %v246_v26 = vld [vmem:[%s2043_s28 + $0x340] sm:$0xff]  ;;  %243 = vst [vmem:[%s2048_s29 + $0xc0] sm:$0xff] %v242_v24  ;;  %245 = vst [vmem:[%s2048_s29 + $0xc8] sm:$0xff] %v244_v25  ;;  %v248_v27 = vld [vmem:[%s2043_s28 + $0x348] sm:$0xff] }
  0x23   : > { %247 = vst [vmem:[%s2048_s29 + $0xd0] sm:$0xff] %v246_v26  ;;  %v250_v28 = vld [vmem:[%s2043_s28 + $0x380] sm:$0xff]  ;;  %v252_v29 = vld [vmem:[%s2043_s28 + $0x388] sm:$0xff]  ;;  %249 = vst [vmem:[%s2048_s29 + $0xd8] sm:$0xff] %v248_v27 }
  0x24   : > { %251 = vst [vmem:[%s2048_s29 + $0xe0] sm:$0xff] %v250_v28  ;;  %253 = vst [vmem:[%s2048_s29 + $0xe8] sm:$0xff] %v252_v29  ;;  %v254_v30 = vld [vmem:[%s2043_s28 + $0x3c0] sm:$0xff]  ;;  %v256_v31 = vld [vmem:[%s2043_s28 + $0x3c8] sm:$0xff] }
  0x25   : > { %255 = vst [vmem:[%s2048_s29 + $0xf0] sm:$0xff] %v254_v30  ;;  %257 = vst [vmem:[%s2048_s29 + $0xf8] sm:$0xff] %v256_v31 }
  0x26 PF: > { %p1599_p8 = scmp.ge.s32.totalorder %s1972_s16, 1  ;;  %p270_p9 = scmp.lt.s32.totalorder %s1972_s16, 5 }
  0x28   : > { %p271_p10 = pnand %p1599_p8, %p270_p9 }
  0x29   : > { %s277_s30 = sand.u32 (!%p271_p10), 1, %s1956_s12   ;;  %v1974_v32 = vmov (!%p271_p10), 0   ;;  %v330_v63 = vld [vmem:[%s2790_s0] sm:$0xff] (!%p271_p10)  ;;  %v331_v2 = vld [vmem:[%s2790_s0 + $0x8] sm:$0xff] (!%p271_p10)  ;;  %v332_v4 = vld [vmem:[%s2790_s0 + $0x10] sm:$0xff] (!%p271_p10)  ;;  %v390_v27 = vlaneseq (!%p271_p10) }
  0x2a   : > { %274 = sbr.rel (%p271_p10) target bundleno = 420 (0x1a4), region = 51  ;;  %s1600_s4 = sshll.u32 (!%p271_p10), %s277_s30, 8  ;;  %602 = vmatprep.mubr.bf16.mxu0 (!%p271_p10), %v1974_v32  ;;  %723 = vmatprep.mubr.bf16.mxu1 (!%p271_p10), %v1974_v32  ;;  %v347_v3 = vpack.c.bf16 (!%p271_p10), %v331_v2, %v330_v63  ;;  %v333_v5 = vld [vmem:[%s2790_s0 + $0x18] sm:$0xff] (!%p271_p10)  ;;  %v334_v7 = vld [vmem:[%s2790_s0 + $0x20] sm:$0xff] (!%p271_p10)  ;;  %v335_v8 = vld [vmem:[%s2790_s0 + $0x28] sm:$0xff] (!%p271_p10) }
  0x2b   : > { %s2118_s5 = scalar_lea.vmem (!%p271_p10), [#allocation2], %s1600_s4  ;;  %v348_v6 = vpack.c.bf16 (!%p271_p10), %v333_v5, %v332_v4  ;;  %v349_v9 = vpack.c.bf16 (!%p271_p10), %v335_v8, %v334_v7  ;;  %v336_v10 = vld [vmem:[%s2790_s0 + $0x30] sm:$0xff] (!%p271_p10)  ;;  %v337_v11 = vld [vmem:[%s2790_s0 + $0x38] sm:$0xff] (!%p271_p10)  ;;  %v338_v13 = vld [vmem:[%s2790_s0 + $0x40] sm:$0xff] (!%p271_p10)  ;;  %s1601_s4 = sshll.u32 (!%p271_p10), %s1964_s14, 2  ;;  %v391_v28 = vshrl.u32 (!%p271_p10), %v390_v27, 7 }
  0x2c   : > { %v1750_v33 = vld [vmem:[%s2118_s5 + $0x4] ss:$16 sps:$4 sm:$0xff] (!%p271_p10)   ;;  %v1752_v34 = vld [vmem:[%s2118_s5 + $0xc] ss:$16 sps:$4 sm:$0xff] (!%p271_p10)   ;;  %v1754_v35 = vld [vmem:[%s2118_s5] ss:$16 sps:$4 sm:$0xff] (!%p271_p10)   ;;  %v350_v12 = vpack.c.bf16 (!%p271_p10), %v337_v11, %v336_v10 }
  0x2d   : > { %570 = vmatprep.subr.bf16.mxu0 (!%p271_p10), %v1750_v33  ;;  %v1755_v36 = vld [vmem:[%s2118_s5 + $0x8] ss:$16 sps:$4 sm:$0xff] (!%p271_p10)   ;;  %691 = vmatprep.subr.bf16.mxu1 (!%p271_p10), %v1752_v34  ;;  %v1756_v37 = vld [vmem:[%s2118_s5 + $0x24] ss:$16 sps:$4 sm:$0xff] (!%p271_p10)   ;;  %v1758_v38 = vld [vmem:[%s2118_s5 + $0x2c] ss:$16 sps:$4 sm:$0xff] (!%p271_p10)  }
  0x2e   : > { %571 = vmatpush1.bf16.msra.mxu0 (!%p271_p10), %v1754_v35  ;;  %692 = vmatpush1.bf16.msra.mxu1 (!%p271_p10), %v1755_v36  ;;  %v1760_v39 = vld [vmem:[%s2118_s5 + $0x20] ss:$16 sps:$4 sm:$0xff] (!%p271_p10)   ;;  %v1761_v40 = vld [vmem:[%s2118_s5 + $0x28] ss:$16 sps:$4 sm:$0xff] (!%p271_p10)   ;;  %v1762_v41 = vld [vmem:[%s2118_s5 + $0x44] ss:$16 sps:$4 sm:$0xff] (!%p271_p10)  }
  0x2f   : > { %572 = vmatprep.subr.bf16.mxu0 (!%p271_p10), %v1756_v37  ;;  %693 = vmatprep.subr.bf16.mxu1 (!%p271_p10), %v1758_v38  ;;  %v1764_v42 = vld [vmem:[%s2118_s5 + $0x4c] ss:$16 sps:$4 sm:$0xff] (!%p271_p10)   ;;  %v1766_v43 = vld [vmem:[%s2118_s5 + $0x40] ss:$16 sps:$4 sm:$0xff] (!%p271_p10)   ;;  %v1767_v44 = vld [vmem:[%s2118_s5 + $0x48] ss:$16 sps:$4 sm:$0xff] (!%p271_p10)  }
  0x30   : > { %v1768_v45 = vld [vmem:[%s2118_s5 + $0x64] ss:$16 sps:$4 sm:$0xff] (!%p271_p10)   ;;  %v1770_v46 = vld [vmem:[%s2118_s5 + $0x6c] ss:$16 sps:$4 sm:$0xff] (!%p271_p10)   ;;  %v1772_v47 = vld [vmem:[%s2118_s5 + $0x60] ss:$16 sps:$4 sm:$0xff] (!%p271_p10)  }
  0x31   : > { %v1773_v48 = vld [vmem:[%s2118_s5 + $0x68] ss:$16 sps:$4 sm:$0xff]   ;;  %v1774_v49 = vld [vmem:[%s2118_s5 + $0x84] ss:$16 sps:$4 sm:$0xff]   ;;  %v1776_v50 = vld [vmem:[%s2118_s5 + $0x8c] ss:$16 sps:$4 sm:$0xff]  }
  0x32   : > { %573 = vmatpush1.bf16.msra.mxu0 %v1760_v39  ;;  %694 = vmatpush1.bf16.msra.mxu1 %v1761_v40  ;;  %v1778_v51 = vld [vmem:[%s2118_s5 + $0x80] ss:$16 sps:$4 sm:$0xff]   ;;  %v1779_v52 = vld [vmem:[%s2118_s5 + $0x88] ss:$16 sps:$4 sm:$0xff]   ;;  %v1780_v53 = vld [vmem:[%s2118_s5 + $0xa4] ss:$16 sps:$4 sm:$0xff]  }
  0x33   : > { %574 = vmatprep.subr.bf16.mxu0 %v1762_v41  ;;  %695 = vmatprep.subr.bf16.mxu1 %v1764_v42  ;;  %v1782_v54 = vld [vmem:[%s2118_s5 + $0xac] ss:$16 sps:$4 sm:$0xff]   ;;  %v1784_v55 = vld [vmem:[%s2118_s5 + $0xa0] ss:$16 sps:$4 sm:$0xff]   ;;  %v1785_v56 = vld [vmem:[%s2118_s5 + $0xa8] ss:$16 sps:$4 sm:$0xff]  }
  0x34   : > { %v1786_v57 = vld [vmem:[%s2118_s5 + $0xc4] ss:$16 sps:$4 sm:$0xff]   ;;  %v1788_v58 = vld [vmem:[%s2118_s5 + $0xcc] ss:$16 sps:$4 sm:$0xff]   ;;  %v1790_v59 = vld [vmem:[%s2118_s5 + $0xc0] ss:$16 sps:$4 sm:$0xff]  }
  0x35   : > { %v1791_v60 = vld [vmem:[%s2118_s5 + $0xc8] ss:$16 sps:$4 sm:$0xff]   ;;  %v1792_v61 = vld [vmem:[%s2118_s5 + $0xe4] ss:$16 sps:$4 sm:$0xff]   ;;  %v1794_v62 = vld [vmem:[%s2118_s5 + $0xec] ss:$16 sps:$4 sm:$0xff]  }
  0x36   : > { %575 = vmatpush1.bf16.msra.mxu0 %v1766_v43  ;;  %696 = vmatpush1.bf16.msra.mxu1 %v1767_v44  ;;  %v1796_v0 = vld [vmem:[%s2118_s5 + $0xe0] ss:$16 sps:$4 sm:$0xff]   ;;  %v1797_v1 = vld [vmem:[%s2118_s5 + $0xe8] ss:$16 sps:$4 sm:$0xff]   ;;  %p323_p11 = scmp.lt.s32.totalorder %s1601_s4, 15  ;;  %v392_v29 = vsub.s32 0, %v391_v28 }
  0x37   : > { %576 = vmatprep.subr.bf16.mxu0 %v1768_v45  ;;  %697 = vmatprep.subr.bf16.mxu1 %v1770_v46  ;;  %v339_v14 = vld [vmem:[%s2790_s0 + $0x48] sm:$0xff]  ;;  %v340_v16 = vld [vmem:[%s2790_s0 + $0x50] sm:$0xff]  ;;  %v341_v17 = vld [vmem:[%s2790_s0 + $0x58] sm:$0xff]  ;;  %v400_v30 = vsub.s32 2, %v391_v28  ;;  %v404_v33 = vsub.s32 3, %v391_v28  ;;  %s2255_s8 = smul.u32 272, %s277_s30 }
  0x38   : > { %v351_v15 = vpack.c.bf16 %v339_v14, %v338_v13  ;;  %v352_v18 = vpack.c.bf16 %v341_v17, %v340_v16  ;;  %v342_v19 = vld [vmem:[%s2790_s0 + $0x60] sm:$0xff]  ;;  %v343_v20 = vld [vmem:[%s2790_s0 + $0x68] sm:$0xff]  ;;  %v344_v22 = vld [vmem:[%s2790_s0 + $0x70] sm:$0xff]  ;;  %s2802_s4 = smov (!%p323_p11, %s1601_s4), 15  ;;  %s1707_s30 = sshll.u32 (%p2030_p6), %s1964_s14, 4 }
  0x39   : > { %v353_v21 = vpack.c.bf16 %v343_v20, %v342_v19  ;;  %v345_v23 = vld [vmem:[%s2790_s0 + $0x78] sm:$0xff]  ;;  %v346_v25 = vld [vmem:[%s2790_s0 + $0x80] sm:$0xf]  ;;  %s325_s7 = scalar_lea.vmem %s2792_s2, %s2802_s4  ;;  %s2283_s12 = scalar_lea.vmem [#allocation3], %s2255_s8 }
  0x3a   : > { %577 = vmatpush1.bf16.msra.mxu0 %v1772_v47  ;;  %698 = vmatpush1.bf16.msra.mxu1 %v1773_v48  ;;  %v354_v24 = vpack.c.bf16 %v345_v23, %v344_v22  ;;  %v355_v26 = vpack.c.bf16 %v346_v25, %v346_v25  ;;  %v388_v31 = vld [vmem:[%s325_s7] sm:$0xf]  ;;  %s2708_s11 = scalar_lea.vmem (%p2030_p6), %s2793_s3, %s1707_s30 }
  0x3b   : > { %578 = vmatprep.subr.bf16.mxu0 %v1774_v49  ;;  %699 = vmatprep.subr.bf16.mxu1 %v1776_v50  ;;  %v2223_v34 = vrot.slane %v388_v31, %v392_v29  ;;  %v2225_v35 = vrot.slane %v388_v31, %v400_v30  ;;  %v2229_v37 = vrot.slane %v388_v31, %v404_v33 }
  0x3e   : > { %579 = vmatpush1.bf16.msra.mxu0 %v1778_v51  ;;  %700 = vmatpush1.bf16.msra.mxu1 %v1779_v52 }
  0x3f   : > { %580 = vmatprep.subr.bf16.mxu0 %v1780_v53  ;;  %701 = vmatprep.subr.bf16.mxu1 %v1782_v54 }
  0x42   : > { %581 = vmatpush1.bf16.msra.mxu0 %v1784_v55  ;;  %702 = vmatpush1.bf16.msra.mxu1 %v1785_v56 }
  0x43   : > { %582 = vmatprep.subr.bf16.mxu0 %v1786_v57  ;;  %703 = vmatprep.subr.bf16.mxu1 %v1788_v58 }
  0x46   : > { %583 = vmatpush1.bf16.msra.mxu0 %v1790_v59  ;;  %704 = vmatpush1.bf16.msra.mxu1 %v1791_v60 }
  0x47   : > { %584 = vmatprep.subr.bf16.mxu0 %v1792_v61  ;;  %705 = vmatprep.subr.bf16.mxu1 %v1794_v62 }
  0x4a   : > { %585 = vmatpush1.bf16.msra.mxu0 %v1796_v0  ;;  %706 = vmatpush1.bf16.msra.mxu1 %v1797_v1 }
  0x4d   : > { %603 = vmatmul.mubr.bf16.vlgmr.msra.gmra.mrb[0].mxu0 %v347_v3  ;;  %724 = vmatmul.mubr.bf16.vlgmr.msra.gmra.mrb[0].mxu1 %v347_v3 }
  0x4e   : > { %612 = vmatprep.mubr.bf16.mxu0 %v1974_v32  ;;  %733 = vmatprep.mubr.bf16.mxu1 %v1974_v32 }
  0x55   : > { %613 = vmatmul.mubr.bf16.gmra.mrb[4].mxu0 %v348_v6  ;;  %734 = vmatmul.mubr.bf16.gmra.mrb[4].mxu1 %v348_v6 }
  0x56   : > { %622 = vmatprep.mubr.bf16.mxu0 %v1974_v32  ;;  %743 = vmatprep.mubr.bf16.mxu1 %v1974_v32 }
  0x5d   : > { %623 = vmatmul.mubr.bf16.gmra.mrb[8].mxu0 %v349_v9  ;;  %744 = vmatmul.mubr.bf16.gmra.mrb[8].mxu1 %v349_v9 }
  0x5e   : > { %632 = vmatprep.mubr.bf16.mxu0 %v1974_v32  ;;  %753 = vmatprep.mubr.bf16.mxu1 %v1974_v32 }
  0x65   : > { %633 = vmatmul.mubr.bf16.gmra.mrb[12].mxu0 %v350_v12  ;;  %754 = vmatmul.mubr.bf16.gmra.mrb[12].mxu1 %v350_v12 }
  0x66   : > { %642 = vmatprep.mubr.bf16.mxu0 %v1974_v32  ;;  %763 = vmatprep.mubr.bf16.mxu1 %v1974_v32 }
  0x6d   : > { %643 = vmatmul.mubr.bf16.gmra.mrb[16].mxu0 %v351_v15  ;;  %764 = vmatmul.mubr.bf16.gmra.mrb[16].mxu1 %v351_v15 }
  0x6e   : > { %652 = vmatprep.mubr.bf16.mxu0 %v1974_v32  ;;  %773 = vmatprep.mubr.bf16.mxu1 %v1974_v32 }
  0x75   : > { %653 = vmatmul.mubr.bf16.gmra.mrb[20].mxu0 %v352_v18  ;;  %774 = vmatmul.mubr.bf16.gmra.mrb[20].mxu1 %v352_v18 }
  0x76   : > { %662 = vmatprep.mubr.bf16.mxu0 %v1974_v32  ;;  %783 = vmatprep.mubr.bf16.mxu1 %v1974_v32 }
  0x7d   : > { %663 = vmatmul.mubr.bf16.gmra.mrb[24].mxu0 %v353_v21  ;;  %784 = vmatmul.mubr.bf16.gmra.mrb[24].mxu1 %v353_v21 }
  0x7e   : > { %672 = vmatprep.mubr.bf16.mxu0 %v1974_v32  ;;  %793 = vmatprep.mubr.bf16.mxu1 %v1974_v32 }
  0x85   : > { %673 = vmatmul.mubr.bf16.gmra.mrb[28].mxu0 %v354_v24  ;;  %794 = vmatmul.mubr.bf16.gmra.mrb[28].mxu1 %v354_v24 }
  0x86   : > { %682 = vmatprep.mubr.bf16.mxu0 %v1974_v32  ;;  %803 = vmatprep.mubr.bf16.mxu1 %v1974_v32  ;;  %v396_v32 = vsub.s32 1, %v391_v28 }
  0x88   : > { %v2227_v36 = vrot.slane %v388_v31, %v396_v32 }
  0x8d   : > { %683 = vmatmul.mubr.bf16.gmra.mrb[32].mxu0 %v355_v26  ;;  %804 = vmatmul.mubr.bf16.gmra.mrb[32].mxu1 %v355_v26 }
 0x120   : > { %v604_v38 = vpop.f32.mrb[0].mxu0  ;;  %v725_v39 = vpop.f32.mrb[0].mxu1 }
 0x121   : > { %v605_v40 = vadd.f32 %v604_v38, %v2223_v34  ;;  %v726_v41 = vadd.f32 %v725_v39, %v2225_v35  ;;  %v606_v42 = vpop.f32.mrb[1].mxu0  ;;  %v727_v43 = vpop.f32.mrb[1].mxu1 }
 0x122   : > { %v607_v44 = vadd.f32 %v606_v42, %v2227_v36  ;;  %v728_v45 = vadd.f32 %v727_v43, %v2229_v37  ;;  %v608_v46 = vpop.f32.mrb[2].mxu0  ;;  %v729_v47 = vpop.f32.mrb[2].mxu1 }
 0x123   : > { %v880_v48 = vmul.f32 0.70710677, %v605_v40  ;;  %v882_v49 = vmul.f32 0.70710677, %v726_v41  ;;  %v609_v52 = vadd.f32 %v608_v46, %v2223_v34  ;;  %v730_v53 = vadd.f32 %v729_v47, %v2225_v35  ;;  %v610_v54 = vpop.f32.mrb[3].mxu0  ;;  %v731_v55 = vpop.f32.mrb[3].mxu1 }
 0x124   : > { %v881_v50 = vmul.f32 0.70710677, %v607_v44  ;;  %v883_v51 = vmul.f32 0.70710677, %v728_v45  ;;  %v611_v56 = vadd.f32 %v610_v54, %v2227_v36  ;;  %v732_v57 = vadd.f32 %v731_v55, %v2229_v37 }
 0x125   : > { %1798 = verf.f32 %v880_v48  ;;  %v884_v58 = vmul.f32 0.70710677, %v609_v52  ;;  %v886_v59 = vmul.f32 0.70710677, %v730_v53  ;;  %v812_v2 = vmul.f32 0.5, %v605_v40 }
 0x126   : > { %1800 = verf.f32 %v882_v49  ;;  %v885_v60 = vmul.f32 0.70710677, %v611_v56  ;;  %v887_v62 = vmul.f32 0.70710677, %v732_v57  ;;  %v814_v7 = vmul.f32 0.5, %v726_v41 }
 0x127   : > { %1802 = verf.f32 %v881_v50  ;;  %v813_v12 = vmul.f32 0.5, %v607_v44  ;;  %v815_v13 = vmul.f32 0.5, %v728_v45  ;;  %v816_v16 = vmul.f32 0.5, %v609_v52 }
 0x128   : > { %1804 = verf.f32 %v883_v51  ;;  %v614_v61 = vpop.f32.mrb[4].mxu0  ;;  %v735_v0 = vpop.f32.mrb[4].mxu1  ;;  %v818_v23 = vmul.f32 0.5, %v730_v53  ;;  %v817_v24 = vmul.f32 0.5, %v611_v56  ;;  %v819_v25 = vmul.f32 0.5, %v732_v57 }
 0x129   : > { %1806 = verf.f32 %v884_v58  ;;  %v615_v63 = vadd.f32 %v614_v61, %v2223_v34  ;;  %v616_v1 = vpop.f32.mrb[5].mxu0  ;;  %v736_v3 = vadd.f32 %v735_v0, %v2225_v35  ;;  %v737_v5 = vpop.f32.mrb[5].mxu1 }
 0x12a   : > { %1808 = verf.f32 %v886_v59  ;;  %v617_v4 = vadd.f32 %v616_v1, %v2227_v36  ;;  %v618_v6 = vpop.f32.mrb[6].mxu0  ;;  %v2243_v9 = vadd.f32 %v737_v5, %v2229_v37  ;;  %v739_v10 = vpop.f32.mrb[6].mxu1 }
 0x12b   : > { %1810 = verf.f32 %v885_v60  ;;  %v888_v8 = vmul.f32 0.70710677, %v615_v63  ;;  %v620_v11 = vpop.f32.mrb[7].mxu0  ;;  %v890_v14 = vmul.f32 0.70710677, %v736_v3  ;;  %v741_v15 = vpop.f32.mrb[7].mxu1  ;;  %v619_v19 = vadd.f32 %v618_v6, %v2223_v34 }
 0x12c   : > { %1812 = verf.f32 %v887_v62  ;;  %v889_v17 = vmul.f32 0.70710677, %v617_v4  ;;  %v891_v18 = vmul.f32 0.70710677, %v2243_v9  ;;  %v2248_v20 = vadd.f32 %v739_v10, %v2225_v35 }
 0x12d   : > { %1814 = verf.f32 %v888_v8  ;;  %v2251_v21 = vadd.f32 %v620_v11, %v2227_v36  ;;  %v892_v28 = vmul.f32 0.70710677, %v619_v19  ;;  %v2258_v29 = vadd.f32 %v741_v15, %v2229_v37 }
 0x12e   : > { %1816 = verf.f32 %v890_v14  ;;  %v820_v38 = vmul.f32 0.5, %v615_v63  ;;  %v2260_v39 = vmul.f32 0.5, %v736_v3  ;;  %v894_v40 = vmul.f32 0.70710677, %v2248_v20 }
 0x12f   : > { %v1799_v22 = vpop.eup %1798  ;;  %1818 = verf.f32 %v889_v17  ;;  %v893_v45 = vmul.f32 0.70710677, %v2251_v21  ;;  %v821_v51 = vmul.f32 0.5, %v617_v4  ;;  %v895_v57 = vmul.f32 0.70710677, %v2258_v29 }
 0x130   : > { %v1801_v26 = vpop.eup %1800  ;;  %v1016_v27 = vadd.f32 1.0, %v1799_v22  ;;  %1820 = verf.f32 %v891_v18  ;;  %v624_v30 = vpop.f32.mrb[8].mxu0  ;;  %v823_v8 = vmul.f32 0.5, %v2243_v9 }
 0x131   : > { %v745_v31 = vpop.f32.mrb[8].mxu1  ;;  %v1803_v32 = vpop.eup %1802  ;;  %v1018_v33 = vadd.f32 1.0, %v1801_v26  ;;  %1822 = verf.f32 %v892_v28  ;;  %v2276_v62 = vadd.f32 %v624_v30, %v2223_v34 }
 0x132   : > { %v626_v41 = vpop.f32.mrb[9].mxu0  ;;  %v1805_v42 = vpop.eup %1804  ;;  %v1084_v43 = vmul.f32 %v1016_v27, %v812_v2  ;;  %v1017_v44 = vadd.f32 1.0, %v1803_v32  ;;  %1824 = verf.f32 %v894_v40  ;;  %v2279_v63 = vadd.f32 %v745_v31, %v2225_v35 }
 0x133   : > { %v2264_v46 = vpop.f32.mrb[9].mxu1  ;;  %v2266_v47 = vpop.f32.mrb[10].mxu0  ;;  %v1086_v49 = vmul.f32 %v1018_v33, %v814_v7  ;;  %v1019_v50 = vadd.f32 1.0, %v1805_v42  ;;  %1826 = verf.f32 %v893_v45  ;;  %v896_v14 = vmul.f32 0.70710677, %v2276_v62 }
 0x134   : > { %v1807_v48 = vpop.eup %1806  ;;  %v2268_v52 = vpop.f32.mrb[10].mxu1  ;;  %v1085_v55 = vmul.f32 %v1017_v44, %v813_v12  ;;  %1828 = verf.f32 %v895_v57  ;;  %v898_v9 = vmul.f32 0.70710677, %v2279_v63  ;;  %v825_v57 = vmul.f32 0.5, %v2251_v21 }
 0x135   : > { %v2270_v53 = vpop.f32.mrb[11].mxu0  ;;  %v1809_v54 = vpop.eup %1808  ;;  %v1020_v56 = vadd.f32 1.0, %v1807_v48  ;;  %v1087_v60 = vmul.f32 %v1019_v50, %v815_v13  ;;  %v824_v13 = vmul.f32 0.5, %v619_v19  ;;  %1830 = verf.f32 %v896_v14 }
 0x136   : > { %v2273_v58 = vpop.f32.mrb[11].mxu1  ;;  %v1811_v59 = vpop.eup %1810  ;;  %v1022_v61 = vadd.f32 1.0, %v1809_v54  ;;  %v1673_v1 = vpack.c.bf16 %v1085_v55, %v1084_v43  ;;  %1832 = verf.f32 %v898_v9  ;;  %v748_v48 = vadd.f32 %v2264_v46, %v2229_v37 }
 0x137   : > { %v1813_v0 = vpop.eup %1812  ;;  %v1088_v2 = vmul.f32 %v1020_v56, %v816_v16  ;;  %v1021_v3 = vadd.f32 1.0, %v1811_v59  ;;  %v1674_v5 = vpack.c.bf16 %v1087_v60, %v1086_v49  ;;  %v2315_v54 = vadd.f32 %v2266_v47, %v2223_v34 }
 0x138   : > { %v1815_v4 = vpop.eup %1814  ;;  %v1090_v6 = vmul.f32 %v1022_v61, %v818_v23  ;;  %v1023_v7 = vadd.f32 1.0, %v1813_v0  ;;  %1360 = vst [vmem:[%s2283_s12] sm:$0xff] %v1673_v1  ;;  %v634_v15 = vpop.f32.mrb[12].mxu0  ;;  %v2292_v23 = vadd.f32 %v626_v41, %v2227_v36  ;;  %v2319_v55 = vadd.f32 %v2268_v52, %v2225_v35 }
 0x139   : > { %v1817_v10 = vpop.eup %1816  ;;  %v1089_v11 = vmul.f32 %v1021_v3, %v817_v24  ;;  %v1024_v12 = vadd.f32 1.0, %v1815_v4  ;;  %v2287_v16 = vpop.f32.mrb[12].mxu1  ;;  %1361 = vst [vmem:[%s2283_s12 + $0x8] sm:$0xff] %v1674_v5  ;;  %v899_v61 = vmul.f32 0.70710677, %v748_v48  ;;  %v827_v47 = vmul.f32 0.5, %v2258_v29 }
 0x13a   : > { %v1819_v17 = vpop.eup %1818  ;;  %v1091_v18 = vmul.f32 %v1023_v7, %v819_v25  ;;  %v1026_v22 = vadd.f32 1.0, %v1817_v10  ;;  %v2294_v26 = vpop.f32.mrb[13].mxu0  ;;  %v897_v45 = vmul.f32 0.70710677, %v2292_v23  ;;  %v902_v21 = vmul.f32 0.70710677, %v2319_v55 }
 0x13b   : > { %v2296_v24 = vpop.f32.mrb[13].mxu1  ;;  %v1821_v19 = vpop.eup %1820  ;;  %v1675_v27 = vpack.c.bf16 %v1089_v11, %v1088_v2  ;;  %v1092_v28 = vmul.f32 %v1024_v12, %v820_v38  ;;  %v1025_v30 = vadd.f32 1.0, %v1819_v17  ;;  %v826_v38 = vmul.f32 0.5, %v2248_v20 }
 0x13c   : > { %v2298_v31 = vpop.f32.mrb[14].mxu0  ;;  %v2300_v25 = vpop.f32.mrb[14].mxu1  ;;  %v1676_v32 = vpack.c.bf16 %v1091_v18, %v1090_v6  ;;  %v1094_v33 = vmul.f32 %v1026_v22, %v2260_v39  ;;  %v1027_v40 = vadd.f32 1.0, %v1821_v19  ;;  %1834 = verf.f32 %v897_v45 }
 0x13d   : > { %v2303_v41 = vpop.f32.mrb[15].mxu0  ;;  %v2305_v42 = vpop.f32.mrb[15].mxu1  ;;  %1362 = vst [vmem:[%s2283_s12 + $0x10] sm:$0xff] %v1675_v27  ;;  %v1093_v44 = vmul.f32 %v1025_v30, %v821_v51  ;;  %v900_v2 = vmul.f32 0.70710677, %v2315_v54  ;;  %1836 = verf.f32 %v899_v61  ;;  %v2337_v29 = vadd.f32 %v2270_v53, %v2227_v36 }
 0x13e   : > { %v1823_v43 = vpop.eup %1822  ;;  %1363 = vst [vmem:[%s2283_s12 + $0x18] sm:$0xff] %v1676_v32  ;;  %v1095_v39 = vmul.f32 %v1027_v40, %v823_v8  ;;  %v2341_v8 = vadd.f32 %v2273_v58, %v2229_v37  ;;  %v2344_v10 = vadd.f32 %v634_v15, %v2223_v34  ;;  %v2352_v17 = vadd.f32 %v2287_v16, %v2225_v35 }
 0x13f   : > { %v1825_v49 = vpop.eup %1824  ;;  %v1028_v50 = vadd.f32 1.0, %v1823_v43  ;;  %v1677_v20 = vpack.c.bf16 %v1093_v44, %v1092_v28  ;;  %1838 = verf.f32 %v900_v2  ;;  %v901_v15 = vmul.f32 0.70710677, %v2337_v29 }
 0x140   : > { %v1827_v51 = vpop.eup %1826  ;;  %v1030_v56 = vadd.f32 1.0, %v1825_v49  ;;  %v1678_v46 = vpack.c.bf16 %v1095_v39, %v1094_v33  ;;  %v2325_v52 = vpop.f32.mrb[16].mxu0  ;;  %1840 = verf.f32 %v902_v21  ;;  %v903_v22 = vmul.f32 0.70710677, %v2341_v8 }
 0x141   : > { %v1096_v59 = vmul.f32 %v1028_v50, %v824_v13  ;;  %v1029_v60 = vadd.f32 1.0, %v1827_v51  ;;  %v1829_v0 = vpop.eup %1828  ;;  %1364 = vst [vmem:[%s2283_s12 + $0x20] sm:$0xff] %v1677_v20  ;;  %v2327_v3 = vpop.f32.mrb[16].mxu1  ;;  %v828_v27 = vmul.f32 0.5, %v2276_v62  ;;  %v904_v30 = vmul.f32 0.70710677, %v2344_v10 }
 0x142   : > { %v1098_v1 = vmul.f32 %v1030_v56, %v826_v38  ;;  %1365 = vst [vmem:[%s2283_s12 + $0x28] sm:$0xff] %v1678_v46  ;;  %v1031_v5 = vadd.f32 1.0, %v1829_v0  ;;  %v2331_v6 = vpop.f32.mrb[17].mxu0  ;;  %v2333_v7 = vpop.f32.mrb[17].mxu1  ;;  %v830_v16 = vmul.f32 0.5, %v2279_v63  ;;  %v829_v32 = vmul.f32 0.5, %v2292_v23 }
 0x143   : > { %v1097_v4 = vmul.f32 %v1029_v60, %v825_v57  ;;  %v2346_v11 = vpop.f32.mrb[18].mxu0  ;;  %v2348_v12 = vpop.f32.mrb[18].mxu1  ;;  %1842 = verf.f32 %v901_v15  ;;  %v906_v33 = vmul.f32 0.70710677, %v2352_v17  ;;  %v2369_v43 = vadd.f32 %v2294_v26, %v2227_v36 }
 0x144   : > { %v1099_v14 = vmul.f32 %v1031_v5, %v827_v47  ;;  %v2354_v53 = vpop.f32.mrb[19].mxu0  ;;  %v2356_v18 = vpop.f32.mrb[19].mxu1  ;;  %1844 = verf.f32 %v903_v22  ;;  %v2373_v62 = vadd.f32 %v2296_v24, %v2229_v37  ;;  %v831_v38 = vmul.f32 0.5, %v748_v48 }
 0x145   : > { %v1679_v13 = vpack.c.bf16 %v1097_v4, %v1096_v59  ;;  %v1831_v58 = vpop.eup %1830  ;;  %1846 = verf.f32 %v904_v30  ;;  %v2377_v63 = vadd.f32 %v2298_v31, %v2223_v34  ;;  %v2381_v23 = vadd.f32 %v2300_v25, %v2225_v35 }
 0x146   : > { %v1833_v9 = vpop.eup %1832  ;;  %v1680_v19 = vpack.c.bf16 %v1099_v14, %v1098_v1  ;;  %v1032_v28 = vadd.f32 1.0, %v1831_v58  ;;  %1848 = verf.f32 %v906_v33  ;;  %v905_v24 = vmul.f32 0.70710677, %v2369_v43 }
 0x147   : > { %1366 = vst [vmem:[%s2283_s12 + $0x30] sm:$0xff] %v1679_v13  ;;  %v1034_v40 = vadd.f32 1.0, %v1833_v9  ;;  %v1835_v44 = vpop.eup %1834  ;;  %v832_v31 = vmul.f32 0.5, %v2315_v54  ;;  %v834_v51 = vmul.f32 0.5, %v2319_v55  ;;  %v907_v25 = vmul.f32 0.70710677, %v2373_v62 }
 0x148   : > { %1367 = vst [vmem:[%s2283_s12 + $0x38] sm:$0xff] %v1680_v19  ;;  %v2383_v45 = vpop.f32.mrb[20].mxu0  ;;  %v2385_v49 = vpop.f32.mrb[20].mxu1  ;;  %v1100_v26 = vmul.f32 %v1032_v28, %v828_v27  ;;  %v1033_v39 = vadd.f32 1.0, %v1835_v44  ;;  %v908_v20 = vmul.f32 0.70710677, %v2377_v63  ;;  %1850 = verf.f32 %v905_v24 }
 0x149   : > { %v2388_v50 = vpop.f32.mrb[21].mxu0  ;;  %v2390_v48 = vpop.f32.mrb[21].mxu1  ;;  %v1102_v57 = vmul.f32 %v1034_v40, %v830_v16  ;;  %v910_v59 = vmul.f32 0.70710677, %v2381_v23  ;;  %1852 = verf.f32 %v907_v25  ;;  %v2403_v54 = vadd.f32 %v2303_v41, %v2227_v36 }
 0x14a   : > { %v1837_v56 = vpop.eup %1836  ;;  %v1101_v46 = vmul.f32 %v1033_v39, %v829_v32  ;;  %v2397_v60 = vpop.f32.mrb[22].mxu0  ;;  %v2407_v55 = vadd.f32 %v2305_v42, %v2229_v37  ;;  %1854 = verf.f32 %v908_v20  ;;  %v2415_v13 = vadd.f32 %v2325_v52, %v2223_v34 }
 0x14b   : > { %v2399_v61 = vpop.f32.mrb[22].mxu1  ;;  %v1839_v0 = vpop.eup %1838  ;;  %v1035_v1 = vadd.f32 1.0, %v1837_v56  ;;  %v833_v41 = vmul.f32 0.5, %v2337_v29  ;;  %1856 = verf.f32 %v910_v59  ;;  %v835_v42 = vmul.f32 0.5, %v2341_v8 }
 0x14c   : > { %v2409_v47 = vpop.f32.mrb[23].mxu0  ;;  %v2411_v2 = vpop.f32.mrb[23].mxu1  ;;  %v1681_v5 = vpack.c.bf16 %v1101_v46, %v1100_v26  ;;  %v1036_v21 = vadd.f32 1.0, %v1839_v0  ;;  %v836_v15 = vmul.f32 0.5, %v2344_v10  ;;  %v909_v22 = vmul.f32 0.70710677, %v2403_v54 }
 0x14d   : > { %v1841_v4 = vpop.eup %1840  ;;  %v1103_v14 = vmul.f32 %v1035_v1, %v831_v38  ;;  %v911_v9 = vmul.f32 0.70710677, %v2407_v55  ;;  %v838_v52 = vmul.f32 0.5, %v2352_v17  ;;  %v912_v30 = vmul.f32 0.70710677, %v2415_v13 }
 0x14e   : > { %v1038_v58 = vadd.f32 1.0, %v1841_v4  ;;  %1368 = vst [vmem:[%s2283_s12 + $0x40] sm:$0xff] %v1681_v5  ;;  %v1843_v19 = vpop.eup %1842  ;;  %v1104_v28 = vmul.f32 %v1036_v21, %v832_v31  ;;  %1858 = verf.f32 %v909_v22  ;;  %v2431_v10 = vadd.f32 %v2327_v3, %v2225_v35 }
 0x14f   : > { %v1682_v27 = vpack.c.bf16 %v1103_v14, %v1102_v57  ;;  %v1845_v32 = vpop.eup %1844  ;;  %v1037_v8 = vadd.f32 1.0, %v1843_v19  ;;  %v2435_v33 = vadd.f32 %v2331_v6, %v2227_v36  ;;  %v837_v39 = vmul.f32 0.5, %v2369_v43 }
 0x150   : > { %v2425_v16 = vpop.f32.mrb[24].mxu0  ;;  %v2427_v29 = vpop.f32.mrb[24].mxu1  ;;  %v1106_v38 = vmul.f32 %v1038_v58, %v834_v51  ;;  %v1039_v26 = vadd.f32 1.0, %v1845_v32  ;;  %1860 = verf.f32 %v911_v9  ;;  %v2449_v6 = vadd.f32 %v2333_v7, %v2229_v37 }
 0x151   : > { %v2437_v40 = vpop.f32.mrb[25].mxu0  ;;  %v2439_v17 = vpop.f32.mrb[25].mxu1  ;;  %1369 = vst [vmem:[%s2283_s12 + $0x48] sm:$0xff] %v1682_v27  ;;  %v1105_v25 = vmul.f32 %v1037_v8, %v833_v41  ;;  %1862 = verf.f32 %v912_v30  ;;  %v914_v46 = vmul.f32 0.70710677, %v2431_v10  ;;  %v2458_v59 = vadd.f32 %v2346_v11, %v2223_v34 }
 0x152   : > { %v1847_v44 = vpop.eup %1846  ;;  %v2443_v24 = vpop.f32.mrb[26].mxu0  ;;  %v1107_v51 = vmul.f32 %v1039_v26, %v835_v42  ;;  %v839_v4 = vmul.f32 0.5, %v2373_v62  ;;  %v840_v7 = vmul.f32 0.5, %v2377_v63  ;;  %v913_v5 = vmul.f32 0.70710677, %v2435_v33 }
 0x153   : > { %v2445_v31 = vpop.f32.mrb[26].mxu1  ;;  %v1849_v3 = vpop.eup %1848  ;;  %v1040_v20 = vadd.f32 1.0, %v1847_v44  ;;  %v1683_v1 = vpack.c.bf16 %v1105_v25, %v1104_v28  ;;  %1864 = verf.f32 %v914_v46  ;;  %v915_v11 = vmul.f32 0.70710677, %v2449_v6 }
 0x154   : > { %v2451_v56 = vpop.f32.mrb[27].mxu0  ;;  %v2453_v57 = vpop.f32.mrb[27].mxu1  ;;  %v1042_v43 = vadd.f32 1.0, %v1849_v3  ;;  %v1684_v14 = vpack.c.bf16 %v1107_v51, %v1106_v38  ;;  %1866 = verf.f32 %v913_v5  ;;  %v916_v63 = vmul.f32 0.70710677, %v2458_v59 }
 0x155   : > { %v1851_v0 = vpop.eup %1850  ;;  %v1108_v58 = vmul.f32 %v1040_v20, %v836_v15  ;;  %1370 = vst [vmem:[%s2283_s12 + $0x50] sm:$0xff] %v1683_v1  ;;  %v2469_v28 = vadd.f32 %v2348_v12, %v2225_v35  ;;  %1868 = verf.f32 %v915_v11  ;;  %v2477_v8 = vadd.f32 %v2354_v53, %v2227_v36 }
 0x156   : > { %v1853_v21 = vpop.eup %1852  ;;  %v1041_v41 = vadd.f32 1.0, %v1851_v0  ;;  %v1110_v22 = vmul.f32 %v1042_v43, %v838_v52  ;;  %1371 = vst [vmem:[%s2283_s12 + $0x58] sm:$0xff] %v1684_v14  ;;  %v842_v12 = vmul.f32 0.5, %v2381_v23  ;;  %1870 = verf.f32 %v916_v63 }
 0x157   : > { %v1855_v42 = vpop.eup %1854  ;;  %v1043_v9 = vadd.f32 1.0, %v1853_v21  ;;  %v843_v43 = vmul.f32 0.5, %v2407_v55  ;;  %v918_v46 = vmul.f32 0.70710677, %v2469_v28  ;;  %v2499_v5 = vadd.f32 %v2356_v18, %v2229_v37 }
 0x158   : > { %v1857_v19 = vpop.eup %1856  ;;  %v1109_v27 = vmul.f32 %v1041_v41, %v837_v39  ;;  %v1044_v62 = vadd.f32 1.0, %v1855_v42  ;;  %v2471_v15 = vpop.f32.mrb[28].mxu0  ;;  %v841_v39 = vmul.f32 0.5, %v2403_v54  ;;  %v2512_v18 = vadd.f32 %v2388_v50, %v2227_v36 }
 0x159   : > { %v2473_v30 = vpop.f32.mrb[28].mxu1  ;;  %v1111_v32 = vmul.f32 %v1043_v9, %v839_v4  ;;  %v1046_v52 = vadd.f32 1.0, %v1857_v19  ;;  %v2479_v44 = vpop.f32.mrb[29].mxu0  ;;  %v917_v4 = vmul.f32 0.70710677, %v2477_v8  ;;  %1872 = verf.f32 %v918_v46 }
 0x15a   : > { %v2481_v38 = vpop.f32.mrb[29].mxu1  ;;  %v1685_v26 = vpack.c.bf16 %v1109_v27, %v1108_v58  ;;  %v2485_v3 = vpop.f32.mrb[30].mxu0  ;;  %v1112_v53 = vmul.f32 %v1044_v62, %v840_v7  ;;  %v2503_v7 = vadd.f32 %v2383_v45, %v2223_v34  ;;  %v2508_v58 = vadd.f32 %v2385_v49, %v2225_v35 }
 0x15b   : > { %v2487_v25 = vpop.f32.mrb[30].mxu1  ;;  %v1859_v20 = vpop.eup %1858  ;;  %v1686_v51 = vpack.c.bf16 %v1111_v32, %v1110_v22  ;;  %v1114_v21 = vmul.f32 %v1046_v52, %v842_v12  ;;  %1874 = verf.f32 %v917_v4  ;;  %v844_v45 = vmul.f32 0.5, %v2415_v13 }
 0x15c   : > { %v2491_v0 = vpop.f32.mrb[31].mxu0  ;;  %v2493_v1 = vpop.f32.mrb[31].mxu1  ;;  %1372 = vst [vmem:[%s2283_s12 + $0x60] sm:$0xff] %v1685_v26  ;;  %v1045_v54 = vadd.f32 1.0, %v1859_v20  ;;  %v919_v9 = vmul.f32 0.70710677, %v2499_v5  ;;  %v2542_v4 = vadd.f32 %v2399_v61, %v2225_v35 }
 0x15d   : > { %v1861_v23 = vpop.eup %1860  ;;  %1373 = vst [vmem:[%s2283_s12 + $0x68] sm:$0xff] %v1686_v51  ;;  %v920_v11 = vmul.f32 0.70710677, %v2503_v7  ;;  %v846_v49 = vmul.f32 0.5, %v2431_v10  ;;  %v845_v62 = vmul.f32 0.5, %v2435_v33  ;;  %v2532_v51 = vadd.f32 %v2390_v48, %v2229_v37 }
 0x15e   : > { %v1863_v55 = vpop.eup %1862  ;;  %v1047_v14 = vadd.f32 1.0, %v1861_v23  ;;  %v1113_v41 = vmul.f32 %v1045_v54, %v841_v39  ;;  %v922_v63 = vmul.f32 0.70710677, %v2508_v58  ;;  %1876 = verf.f32 %v919_v9 }
 0x15f   : > { %v1048_v42 = vadd.f32 1.0, %v1863_v55  ;;  %v1865_v19 = vpop.eup %1864  ;;  %1878 = verf.f32 %v920_v11  ;;  %v921_v33 = vmul.f32 0.70710677, %v2512_v18  ;;  %v847_v23 = vmul.f32 0.5, %v2449_v6 }
 0x160   : > { %v1115_v22 = vmul.f32 %v1047_v14, %v843_v43  ;;  %v1687_v27 = vpack.c.bf16 %v1113_v41, %v1112_v53  ;;  %v2520_v32 = vpop.f32.mrb[32].mxu0  ;;  %v2522_v50 = vpop.f32.mrb[32].mxu1  ;;  %v1050_v12 = vadd.f32 1.0, %v1865_v19  ;;  %1880 = verf.f32 %v922_v63 }
 0x161   : > { %v1867_v52 = vpop.eup %1866  ;;  %v1116_v26 = vmul.f32 %v1048_v42, %v844_v45  ;;  %v2524_v39 = vpop.f32.mrb[33].mxu0  ;;  %v2538_v54 = vadd.f32 %v2397_v60, %v2223_v34  ;;  %1882 = verf.f32 %v921_v33  ;;  %v923_v45 = vmul.f32 0.70710677, %v2532_v51 }
 0x162   : > { %v1688_v13 = vpack.c.bf16 %v1115_v22, %v1114_v21  ;;  %v2526_v20 = vpop.f32.mrb[33].mxu1  ;;  %1374 = vst [vmem:[%s2283_s12 + $0x70] sm:$0xff] %v1687_v27  ;;  %v1049_v10 = vadd.f32 1.0, %v1867_v52  ;;  %v688_v53 = vpop.f32.mrb[34].mxu0  ;;  %v1118_v48 = vmul.f32 %v1050_v12, %v846_v49  ;;  %v848_v22 = vmul.f32 0.5, %v2458_v59 }
 0x163   : > { %v809_v43 = vpop.f32.mrb[34].mxu1  ;;  %v1869_v46 = vpop.eup %1868  ;;  %v924_v60 = vmul.f32 0.70710677, %v2538_v54  ;;  %v850_v61 = vmul.f32 0.5, %v2469_v28  ;;  %v926_v19 = vmul.f32 0.70710677, %v2542_v4  ;;  %1884 = verf.f32 %v923_v45 }
 0x164   : > { %1375 = vst [vmem:[%s2283_s12 + $0x78] sm:$0xff] %v1688_v13  ;;  %v689_v55 = vpop.f32.mrb[35].mxu0  ;;  %v810_v21 = vpop.f32.mrb[35].mxu1  ;;  %v1117_v41 = vmul.f32 %v1049_v10, %v845_v62  ;;  %v1051_v42 = vadd.f32 1.0, %v1869_v46  ;;  %v849_v49 = vmul.f32 0.5, %v2477_v8  ;;  %v2552_v62 = vadd.f32 %v2409_v47, %v2227_v36 }
 0x165   : > { %v1871_v14 = vpop.eup %1870  ;;  %v2556_v59 = vadd.f32 %v2411_v2, %v2229_v37  ;;  %1886 = verf.f32 %v924_v60  ;;  %v2561_v28 = vadd.f32 %v2425_v16, %v2223_v34  ;;  %v851_v10 = vmul.f32 0.5, %v2499_v5 }
 0x166   : > { %v1052_v6 = vadd.f32 1.0, %v1871_v14  ;;  %v1689_v9 = vpack.c.bf16 %v1117_v41, %v1116_v26  ;;  %v1119_v11 = vmul.f32 %v1051_v42, %v847_v23  ;;  %v1873_v27 = vpop.eup %1872  ;;  %1888 = verf.f32 %v926_v19 }
 0x167   : > { %v1875_v63 = vpop.eup %1874  ;;  %v1054_v13 = vadd.f32 1.0, %v1873_v27  ;;  %v925_v12 = vmul.f32 0.70710677, %v2552_v62  ;;  %v852_v2 = vmul.f32 0.5, %v2503_v7  ;;  %v927_v33 = vmul.f32 0.70710677, %v2556_v59 }
 0x168   : > { %1376 = vst [vmem:[%s2283_s12 + $0x80] sm:$0xff] %v1689_v9  ;;  %v1690_v52 = vpack.c.bf16 %v1119_v11, %v1118_v48  ;;  %v1120_v26 = vmul.f32 %v1052_v6, %v848_v22  ;;  %v1053_v8 = vadd.f32 1.0, %v1875_v63  ;;  %v1877_v53 = vpop.eup %1876  ;;  %v928_v46 = vmul.f32 0.70710677, %v2561_v28 }
 0x169   : > { %v1122_v47 = vmul.f32 %v1054_v13, %v850_v61  ;;  %1890 = verf.f32 %v925_v12  ;;  %v2571_v16 = vadd.f32 %v2427_v29, %v2225_v35  ;;  %v1879_v23 = vpop.eup %1878  ;;  %v1055_v55 = vadd.f32 1.0, %v1877_v53 }
 0x16a   : > { %1377 = vst [vmem:[%s2283_s12 + $0x88] sm:$0xff] %v1690_v52  ;;  %v1121_v43 = vmul.f32 %v1053_v8, %v849_v49  ;;  %1892 = verf.f32 %v927_v33  ;;  %v2575_v5 = vadd.f32 %v2437_v40, %v2227_v36  ;;  %v2579_v7 = vadd.f32 %v2439_v17, %v2229_v37  ;;  %v1881_v21 = vpop.eup %1880 }
 0x16b   : > { %v1056_v48 = vadd.f32 1.0, %v1879_v23  ;;  %v854_v41 = vmul.f32 0.5, %v2508_v58  ;;  %1894 = verf.f32 %v928_v46  ;;  %v1883_v29 = vpop.eup %1882  ;;  %v1123_v42 = vmul.f32 %v1055_v55, %v851_v10 }
 0x16c   : > { %v1691_v14 = vpack.c.bf16 %v1121_v43, %v1120_v26  ;;  %v1058_v22 = vadd.f32 1.0, %v1881_v21  ;;  %v853_v6 = vmul.f32 0.5, %v2512_v18  ;;  %v930_v45 = vmul.f32 0.70710677, %v2571_v16 }
 0x16d   : > { %v1124_v40 = vmul.f32 %v1056_v48, %v852_v2  ;;  %v1057_v60 = vadd.f32 1.0, %v1883_v29  ;;  %v855_v17 = vmul.f32 0.5, %v2532_v51  ;;  %v929_v9 = vmul.f32 0.70710677, %v2575_v5  ;;  %v1885_v19 = vpop.eup %1884 }
 0x16e   : > { %1378 = vst [vmem:[%s2283_s12 + $0x90] sm:$0xff] %v1691_v14  ;;  %v1692_v11 = vpack.c.bf16 %v1123_v42, %v1122_v47  ;;  %v856_v61 = vmul.f32 0.5, %v2538_v54  ;;  %1896 = verf.f32 %v930_v45  ;;  %v931_v58 = vmul.f32 0.70710677, %v2579_v7 }
 0x16f   : > { %v1125_v27 = vmul.f32 %v1057_v60, %v853_v6  ;;  %1898 = verf.f32 %v929_v9  ;;  %v2591_v18 = vadd.f32 %v2443_v24, %v2223_v34  ;;  %v2595_v49 = vadd.f32 %v2445_v31, %v2225_v35  ;;  %v1887_v51 = vpop.eup %1886 }
 0x170   : > { %1379 = vst [vmem:[%s2283_s12 + $0x98] sm:$0xff] %v1692_v11  ;;  %v1126_v63 = vmul.f32 %v1058_v22, %v854_v41  ;;  %v1059_v52 = vadd.f32 1.0, %v1885_v19  ;;  %1900 = verf.f32 %v931_v58  ;;  %v2600_v54 = vadd.f32 %v2451_v56, %v2227_v36  ;;  %v1889_v13 = vpop.eup %1888 }
 0x171   : > { %v1693_v26 = vpack.c.bf16 %v1125_v27, %v1124_v40  ;;  %v1060_v8 = vadd.f32 1.0, %v1887_v51  ;;  %v932_v24 = vmul.f32 0.70710677, %v2591_v18  ;;  %v2605_v12 = vadd.f32 %v2453_v57, %v2229_v37 }
 0x172   : > { %v1127_v31 = vmul.f32 %v1059_v52, %v855_v17  ;;  %v858_v47 = vmul.f32 0.5, %v2542_v4  ;;  %v1062_v10 = vadd.f32 1.0, %v1889_v13  ;;  %v934_v2 = vmul.f32 0.70710677, %v2595_v49 }
 0x173   : > { %v1891_v33 = vpop.eup %1890  ;;  %1380 = vst [vmem:[%s2283_s12 + $0xa0] sm:$0xff] %v1693_v26  ;;  %v857_v56 = vmul.f32 0.5, %v2552_v62  ;;  %v859_v53 = vmul.f32 0.5, %v2556_v59  ;;  %1902 = verf.f32 %v932_v24  ;;  %v933_v43 = vmul.f32 0.70710677, %v2600_v54 }
 0x174   : > { %v1893_v46 = vpop.eup %1892  ;;  %v1694_v23 = vpack.c.bf16 %v1127_v31, %v1126_v63  ;;  %v1128_v57 = vmul.f32 %v1060_v8, %v856_v61  ;;  %v1061_v55 = vadd.f32 1.0, %v1891_v33  ;;  %1904 = verf.f32 %v934_v2 }
 0x175   : > { %v1895_v21 = vpop.eup %1894  ;;  %v1130_v4 = vmul.f32 %v1062_v10, %v858_v47  ;;  %v1063_v14 = vadd.f32 1.0, %v1893_v46  ;;  %1906 = verf.f32 %v933_v43  ;;  %v935_v48 = vmul.f32 0.70710677, %v2605_v12 }
 0x176   : > { %1381 = vst [vmem:[%s2283_s12 + $0xa8] sm:$0xff] %v1694_v23  ;;  %v1129_v41 = vmul.f32 %v1061_v55, %v857_v56  ;;  %v1064_v29 = vadd.f32 1.0, %v1895_v21  ;;  %v2617_v62 = vadd.f32 %v2471_v15, %v2223_v34  ;;  %v2621_v59 = vadd.f32 %v2473_v30, %v2225_v35 }
 0x177   : > { %v1131_v42 = vmul.f32 %v1063_v14, %v859_v53  ;;  %v860_v22 = vmul.f32 0.5, %v2561_v28  ;;  %1908 = verf.f32 %v935_v48  ;;  %v2626_v6 = vadd.f32 %v2479_v44, %v2227_v36 }
 0x178   : > { %v1897_v45 = vpop.eup %1896  ;;  %v1695_v40 = vpack.c.bf16 %v1129_v41, %v1128_v57  ;;  %v862_v60 = vmul.f32 0.5, %v2571_v16  ;;  %v936_v15 = vmul.f32 0.70710677, %v2617_v62  ;;  %v2632_v30 = vadd.f32 %v2481_v38, %v2229_v37 }
 0x179   : > { %v1899_v17 = vpop.eup %1898  ;;  %v1696_v9 = vpack.c.bf16 %v1131_v42, %v1130_v4  ;;  %v1066_v11 = vadd.f32 1.0, %v1897_v45  ;;  %v861_v28 = vmul.f32 0.5, %v2575_v5  ;;  %v938_v61 = vmul.f32 0.70710677, %v2621_v59 }
 0x17a   : > { %v1901_v44 = vpop.eup %1900  ;;  %1382 = vst [vmem:[%s2283_s12 + $0xb0] sm:$0xff] %v1695_v40  ;;  %v1132_v58 = vmul.f32 %v1064_v29, %v860_v22  ;;  %v1065_v19 = vadd.f32 1.0, %v1899_v17  ;;  %1910 = verf.f32 %v936_v15  ;;  %v937_v16 = vmul.f32 0.70710677, %v2626_v6 }
 0x17b   : > { %1383 = vst [vmem:[%s2283_s12 + $0xb8] sm:$0xff] %v1696_v9  ;;  %v1134_v27 = vmul.f32 %v1066_v11, %v862_v60  ;;  %v863_v51 = vmul.f32 0.5, %v2579_v7  ;;  %v1067_v38 = vadd.f32 1.0, %v1901_v44  ;;  %1912 = verf.f32 %v938_v61 }
 0x17c   : > { %v1133_v63 = vmul.f32 %v1065_v19, %v861_v28  ;;  %1914 = verf.f32 %v937_v16  ;;  %v939_v52 = vmul.f32 0.70710677, %v2632_v30  ;;  %v2643_v5 = vadd.f32 %v2485_v3, %v2223_v34 }
 0x17d   : > { %v1903_v13 = vpop.eup %1902  ;;  %v1135_v26 = vmul.f32 %v1067_v38, %v863_v51  ;;  %v864_v8 = vmul.f32 0.5, %v2591_v18  ;;  %v2648_v24 = vadd.f32 %v2487_v25, %v2225_v35  ;;  %v2652_v7 = vadd.f32 %v2491_v0, %v2227_v36 }
 0x17e   : > { %v1905_v31 = vpop.eup %1904  ;;  %v1697_v47 = vpack.c.bf16 %v1133_v63, %v1132_v58  ;;  %v1068_v10 = vadd.f32 1.0, %v1903_v13  ;;  %1916 = verf.f32 %v939_v52  ;;  %v2656_v3 = vadd.f32 %v2493_v1, %v2229_v37 }
 0x17f   : > { %v1907_v2 = vpop.eup %1906  ;;  %v1698_v33 = vpack.c.bf16 %v1135_v26, %v1134_v27  ;;  %v866_v18 = vmul.f32 0.5, %v2595_v49  ;;  %v1070_v56 = vadd.f32 1.0, %v1905_v31  ;;  %v940_v25 = vmul.f32 0.70710677, %v2643_v5 }
 0x180   : > { %1384 = vst [vmem:[%s2283_s12 + $0xc0] sm:$0xff] %v1697_v47  ;;  %v1136_v53 = vmul.f32 %v1068_v10, %v864_v8  ;;  %v865_v0 = vmul.f32 0.5, %v2600_v54  ;;  %v1069_v43 = vadd.f32 1.0, %v1907_v2  ;;  %v942_v46 = vmul.f32 0.70710677, %v2648_v24 }
 0x181   : > { %v1909_v23 = vpop.eup %1908  ;;  %1385 = vst [vmem:[%s2283_s12 + $0xc8] sm:$0xff] %v1698_v33  ;;  %v1138_v57 = vmul.f32 %v1070_v56, %v866_v18  ;;  %v867_v1 = vmul.f32 0.5, %v2605_v12  ;;  %1918 = verf.f32 %v940_v25  ;;  %v941_v55 = vmul.f32 0.70710677, %v2652_v7 }
 0x182   : > { %v1137_v21 = vmul.f32 %v1069_v43, %v865_v0  ;;  %v1071_v49 = vadd.f32 1.0, %v1909_v23  ;;  %1920 = verf.f32 %v942_v46  ;;  %v943_v4 = vmul.f32 0.70710677, %v2656_v3 }
 0x183   : > { %1922 = verf.f32 %v941_v55  ;;  %v685_v54 = vadd.f32 %v2520_v32, %v2223_v34  ;;  %v806_v14 = vadd.f32 %v2522_v50, %v2225_v35  ;;  %v2673_v48 = vadd.f32 %v2524_v39, %v2227_v36 }
 0x184   : > { %v1911_v12 = vpop.eup %1910  ;;  %v1699_v41 = vpack.c.bf16 %v1137_v21, %v1136_v53  ;;  %v1139_v29 = vmul.f32 %v1071_v49, %v867_v1  ;;  %1924 = verf.f32 %v943_v4  ;;  %v2677_v42 = vadd.f32 %v2526_v20, %v2229_v37 }
 0x185   : > { %v1913_v22 = vpop.eup %1912  ;;  %v868_v45 = vmul.f32 0.5, %v2617_v62  ;;  %v1072_v34 = vadd.f32 1.0, %v1911_v12  ;;  %v870_v32 = vmul.f32 0.5, %v2621_v59  ;;  %v944_v35 = vmul.f32 0.70710677, %v685_v54  ;;  %v1423_v12 = vld [vmem:[%s2283_s12 + $0x10] sm:$0xff] (%p2030_p6) }
 0x186   : > { %v1915_v50 = vpop.eup %1914  ;;  %1386 = vst [vmem:[%s2283_s12 + $0xd0] sm:$0xff] %v1699_v41  ;;  %v1700_v36 = vpack.c.bf16 %v1139_v29, %v1138_v57  ;;  %v1074_v39 = vadd.f32 1.0, %v1913_v22  ;;  %v869_v40 = vmul.f32 0.5, %v2626_v6  ;;  %v946_v60 = vmul.f32 0.70710677, %v806_v14  ;;  %v1425_v41 = vld [vmem:[%s2283_s12 + $0x18] sm:$0xff] (%p2030_p6) }
 0x187   : > { %v1140_v15 = vmul.f32 %v1072_v34, %v868_v45  ;;  %v1073_v17 = vadd.f32 1.0, %v1915_v50  ;;  %1926 = verf.f32 %v944_v35  ;;  %v945_v37 = vmul.f32 0.70710677, %v2673_v48  ;;  %v1427_v29 = vld [vmem:[%s2283_s12 + $0x20] sm:$0xff] (%p2030_p6)  ;;  %1424 = vst [vmem:[%s2708_s11 + $0x40] sm:$0xff] (%p2030_p6), %v1423_v12  ;;  %1426 = vst [vmem:[%s2708_s11 + $0x48] sm:$0xff] (%p2030_p6), %v1425_v41 }
 0x188   : > { %v1917_v20 = vpop.eup %1916  ;;  %1387 = vst [vmem:[%s2283_s12 + $0xd8] sm:$0xff] %v1700_v36  ;;  %v871_v62 = vmul.f32 0.5, %v2632_v30  ;;  %1928 = verf.f32 %v946_v60  ;;  %v947_v59 = vmul.f32 0.70710677, %v2677_v42  ;;  %v1142_v9 = vmul.f32 %v1074_v39, %v870_v32  ;;  %1428 = vst [vmem:[%s2708_s11 + $0x80] sm:$0xff] (%p2030_p6), %v1427_v29  ;;  %v1431_v22 = vld [vmem:[%s2283_s12 + $0x30] sm:$0xff] (%p2030_p6) }
 0x189   : > { %v1141_v11 = vmul.f32 %v1073_v17, %v869_v40  ;;  %v1075_v28 = vadd.f32 1.0, %v1917_v20  ;;  %1930 = verf.f32 %v945_v37  ;;  %v872_v19 = vmul.f32 0.5, %v2643_v5  ;;  %v1433_v45 = vld [vmem:[%s2283_s12 + $0x38] sm:$0xff] (%p2030_p6)  ;;  %v1435_v34 = vld [vmem:[%s2283_s12 + $0x40] sm:$0xff] (%p2030_p6)  ;;  %1432 = vst [vmem:[%s2708_s11 + $0xc0] sm:$0xff] (%p2030_p6), %v1431_v22  ;;  %v1437_v32 = vld [vmem:[%s2283_s12 + $0x48] sm:$0xff] (%p2030_p6) }
 0x18a   : > { %1932 = verf.f32 %v947_v59  ;;  %v874_v30 = vmul.f32 0.5, %v2648_v24  ;;  %v873_v13 = vmul.f32 0.5, %v2652_v7  ;;  %v875_v31 = vmul.f32 0.5, %v2656_v3  ;;  %1434 = vst [vmem:[%s2708_s11 + $0xc8] sm:$0xff] (%p2030_p6), %v1433_v45  ;;  %1436 = vst [vmem:[%s2708_s11 + $0x100] sm:$0xff] (%p2030_p6), %v1435_v34  ;;  %v1439_v35 = vld [vmem:[%s2283_s12 + $0x50] sm:$0xff] (%p2030_p6) }
 0x18b   : > { %v1919_v6 = vpop.eup %1918  ;;  %v1701_v61 = vpack.c.bf16 %v1141_v11, %v1140_v15  ;;  %v1143_v44 = vmul.f32 %v1075_v28, %v871_v62  ;;  %v876_v56 = vmul.f32 0.5, %v685_v54  ;;  %v878_v0 = vmul.f32 0.5, %v806_v14  ;;  %v1419_v14 = vld [vmem:[%s2283_s12] sm:$0xff] (%p2030_p6)  ;;  %v1441_v50 = vld [vmem:[%s2283_s12 + $0x58] sm:$0xff] (%p2030_p6)  ;;  %1438 = vst [vmem:[%s2708_s11 + $0x108] sm:$0xff] (%p2030_p6), %v1437_v32  ;;  %1440 = vst [vmem:[%s2708_s11 + $0x140] sm:$0xff] (%p2030_p6), %v1439_v35 }
 0x18c   : > { %v1921_v58 = vpop.eup %1920  ;;  %v1076_v16 = vadd.f32 1.0, %v1919_v6  ;;  %v877_v3 = vmul.f32 0.5, %v2673_v48  ;;  %v879_v1 = vmul.f32 0.5, %v2677_v42  ;;  %v1421_v48 = vld [vmem:[%s2283_s12 + $0x8] sm:$0xff] (%p2030_p6)  ;;  %1420 = vst [vmem:[%s2708_s11] sm:$0xff] (%p2030_p6), %v1419_v14  ;;  %1442 = vst [vmem:[%s2708_s11 + $0x148] sm:$0xff] (%p2030_p6), %v1441_v50  ;;  %v1443_v36 = vld [vmem:[%s2283_s12 + $0x60] sm:$0xff] (%p2030_p6) }
 0x18d   : > { %v1923_v27 = vpop.eup %1922  ;;  %1388 = vst [vmem:[%s2283_s12 + $0xe0] sm:$0xff] %v1701_v61  ;;  %v1702_v51 = vpack.c.bf16 %v1143_v44, %v1142_v9  ;;  %v1078_v38 = vadd.f32 1.0, %v1921_v58  ;;  %v1429_v42 = vld [vmem:[%s2283_s12 + $0x28] sm:$0xff] (%p2030_p6)  ;;  %1422 = vst [vmem:[%s2708_s11 + $0x8] sm:$0xff] (%p2030_p6), %v1421_v48  ;;  %v1447_v40 = vld [vmem:[%s2283_s12 + $0x70] sm:$0xff] (%p2030_p6) }
 0x18e   : > { %v1925_v63 = vpop.eup %1924  ;;  %v1144_v52 = vmul.f32 %v1076_v16, %v872_v19  ;;  %v1077_v26 = vadd.f32 1.0, %v1923_v27  ;;  %1430 = vst [vmem:[%s2708_s11 + $0x88] sm:$0xff] (%p2030_p6), %v1429_v42  ;;  %v1445_v39 = vld [vmem:[%s2283_s12 + $0x68] sm:$0xff] (%p2030_p6)  ;;  %1444 = vst [vmem:[%s2708_s11 + $0x180] sm:$0xff] (%p2030_p6), %v1443_v36  ;;  %v1449_v60 = vld [vmem:[%s2283_s12 + $0x78] sm:$0xff] (%p2030_p6) }
 0x18f   : > { %1389 = vst [vmem:[%s2283_s12 + $0xe8] sm:$0xff] %v1702_v51  ;;  %v1146_v8 = vmul.f32 %v1078_v38, %v874_v30  ;;  %v1079_v47 = vadd.f32 1.0, %v1925_v63  ;;  %1446 = vst [vmem:[%s2708_s11 + $0x188] sm:$0xff] (%p2030_p6), %v1445_v39  ;;  %v1451_v15 = vld [vmem:[%s2283_s12 + $0x80] sm:$0xff] (%p2030_p6)  ;;  %v1453_v17 = vld [vmem:[%s2283_s12 + $0x88] sm:$0xff] (%p2030_p6) }
 0x190   : > { %v1145_v10 = vmul.f32 %v1077_v26, %v873_v13  ;;  %1448 = vst [vmem:[%s2708_s11 + $0x1c0] sm:$0xff] (%p2030_p6), %v1447_v40  ;;  %1450 = vst [vmem:[%s2708_s11 + $0x1c8] sm:$0xff] (%p2030_p6), %v1449_v60  ;;  %v1455_v37 = vld [vmem:[%s2283_s12 + $0x90] sm:$0xff] (%p2030_p6)  ;;  %v1457_v20 = vld [vmem:[%s2283_s12 + $0x98] sm:$0xff] (%p2030_p6) }
 0x191   : > { %v1927_v5 = vpop.eup %1926  ;;  %v1147_v2 = vmul.f32 %v1079_v47, %v875_v31  ;;  %1452 = vst [vmem:[%s2708_s11 + $0x200] sm:$0xff] (%p2030_p6), %v1451_v15  ;;  %1454 = vst [vmem:[%s2708_s11 + $0x208] sm:$0xff] (%p2030_p6), %v1453_v17  ;;  %v1459_v62 = vld [vmem:[%s2283_s12 + $0xa0] sm:$0xff] (%p2030_p6)  ;;  %v1461_v59 = vld [vmem:[%s2283_s12 + $0xa8] sm:$0xff] (%p2030_p6) }
 0x192   : > { %v1929_v33 = vpop.eup %1928  ;;  %v1703_v18 = vpack.c.bf16 %v1145_v10, %v1144_v52  ;;  %v1080_v24 = vadd.f32 1.0, %v1927_v5  ;;  %1456 = vst [vmem:[%s2708_s11 + $0x240] sm:$0xff] (%p2030_p6), %v1455_v37  ;;  %1458 = vst [vmem:[%s2708_s11 + $0x248] sm:$0xff] (%p2030_p6), %v1457_v20  ;;  %v1463_v9 = vld [vmem:[%s2283_s12 + $0xb0] sm:$0xff] (%p2030_p6)  ;;  %v1465_v11 = vld [vmem:[%s2283_s12 + $0xb8] sm:$0xff] (%p2030_p6) }
 0x193   : > { %v1931_v25 = vpop.eup %1930  ;;  %v1704_v53 = vpack.c.bf16 %v1147_v2, %v1146_v8  ;;  %v1082_v7 = vadd.f32 1.0, %v1929_v33  ;;  %1460 = vst [vmem:[%s2708_s11 + $0x280] sm:$0xff] (%p2030_p6), %v1459_v62  ;;  %1462 = vst [vmem:[%s2708_s11 + $0x288] sm:$0xff] (%p2030_p6), %v1461_v59  ;;  %v1467_v28 = vld [vmem:[%s2283_s12 + $0xc0] sm:$0xff] (%p2030_p6)  ;;  %v1469_v6 = vld [vmem:[%s2283_s12 + $0xc8] sm:$0xff] (%p2030_p6) }
 0x194   : > { %v1933_v43 = vpop.eup %1932  ;;  %1390 = vst [vmem:[%s2283_s12 + $0xf0] sm:$0xff] %v1703_v18  ;;  %v1148_v46 = vmul.f32 %v1080_v24, %v876_v56  ;;  %v1081_v23 = vadd.f32 1.0, %v1931_v25  ;;  %1464 = vst [vmem:[%s2708_s11 + $0x2c0] sm:$0xff] (%p2030_p6), %v1463_v9  ;;  %v1471_v61 = vld [vmem:[%s2283_s12 + $0xd0] sm:$0xff] (%p2030_p6)  ;;  %v1473_v44 = vld [vmem:[%s2283_s12 + $0xd8] sm:$0xff] (%p2030_p6) }
 0x195   : > { %1391 = vst [vmem:[%s2283_s12 + $0xf8] sm:$0xff] %v1704_v53  ;;  %v1150_v57 = vmul.f32 %v1082_v7, %v878_v0  ;;  %v1083_v55 = vadd.f32 1.0, %v1933_v43  ;;  %1400 = sbr.rel (!%p2030_p6) target bundleno = 420 (0x1a4), region = 59  ;;  %1466 = vst [vmem:[%s2708_s11 + $0x2c8] sm:$0xff] (%p2030_p6), %v1465_v11  ;;  %v1475_v58 = vld [vmem:[%s2283_s12 + $0xe0] sm:$0xff] (%p2030_p6) }
 0x196   : > { %v1149_v21 = vmul.f32 %v1081_v23, %v877_v3  ;;  %1468 = vst [vmem:[%s2708_s11 + $0x300] sm:$0xff] (%p2030_p6), %v1467_v28  ;;  %1470 = vst [vmem:[%s2708_s11 + $0x308] sm:$0xff] (%p2030_p6), %v1469_v6  ;;  %v1477_v19 = vld [vmem:[%s2283_s12 + $0xe8] sm:$0xff] (%p2030_p6) }
 0x197   : > { %v1151_v49 = vmul.f32 %v1083_v55, %v879_v1  ;;  %1472 = vst [vmem:[%s2708_s11 + $0x340] sm:$0xff] (%p2030_p6), %v1471_v61  ;;  %1474 = vst [vmem:[%s2708_s11 + $0x348] sm:$0xff] (%p2030_p6), %v1473_v44 }
 0x198   : > { %v1705_v4 = vpack.c.bf16 %v1149_v21, %v1148_v46  ;;  %1476 = vst [vmem:[%s2708_s11 + $0x380] sm:$0xff] (%p2030_p6), %v1475_v58  ;;  %1478 = vst [vmem:[%s2708_s11 + $0x388] sm:$0xff] (%p2030_p6), %v1477_v19 }
 0x199   : > { %v1706_v54 = vpack.c.bf16 %v1151_v49, %v1150_v57 }
 0x19a   : > { %1392 = vst [vmem:[%s2283_s12 + $0x100] sm:$0x33] %v1705_v4 }
 0x19b   : > { %1393 = vst [vmem:[%s2283_s12 + $0x108] sm:$0x33] %v1706_v54  ;;  %v1479_v16 = vld [vmem:[%s2283_s12 + $0xf0] sm:$0xff] (%p2030_p6) }
 0x19c   : > { %v1481_v27 = vld [vmem:[%s2283_s12 + $0xf8] sm:$0xff]  ;;  %1480 = vst [vmem:[%s2708_s11 + $0x3c0] sm:$0xff] %v1479_v16 }
 0x19d   : > { %1482 = vst [vmem:[%s2708_s11 + $0x3c8] sm:$0xff] %v1481_v27 }
 0x1a1   : > { %v1483_v51 = vld [vmem:[%s2283_s12 + $0x100] sm:$0xff] }
 0x1a2   : > { %1484 = vst [vmem:[%s2708_s11 + $0x400] sm:$0xff] %v1483_v51  ;;  %v1485_v30 = vld [vmem:[%s2283_s12 + $0x108] sm:$0xff] }
 0x1a3   : > { %1486 = vst [vmem:[%s2708_s11 + $0x408] sm:$0xff] %v1485_v30 }
 0x1a4 PF: > { %s13_s16 = sadd.s32 1, %s1972_s16   ;;  %s2795_s12 = smov %s1960_s13 }
 0x1a5   : > { %p10_p12 = scmp.ge.s32.totalorder %s13_s16, 6   ;;  %s2796_s13 = smov %s2035_s22 }
 0x1a6   : > { %s2797_s14 = smov %s1968_s15  ;;  %s2798_s15 = smov %s2800_s17 }
 0x1a7   :  { %12 = sbr.rel (!%p10_p12) target bundleno = 3 (0x3), region = 119 }

// kernel: ofa_vit_forward.29
= control target key start
LH: loop header
LB: loop body
LE: loop exit
PB: predicated region body
PF: predicated region fallthrough
CT: control target
= control target key end

     0   :  { %s2724_s15 = smov 0   ;;  %s2726_s16 = smov 0   ;;  %s3309_s0 = inlined_call_operand.vmem [shape: bf16[132,2048], index: 0, kind: input, shape index: {}]   ;;  %s3310_s1 = inlined_call_operand.vmem [shape: bf16[2048,128], index: 1, kind: input, shape index: {}]   ;;  %s3311_s2 = inlined_call_operand.vmem [shape: f32[1,128], index: 2, kind: input, shape index: {}]   ;;  %s3312_s3 = inlined_call_operand.vmem [shape: f32[132,128], index: 3, kind: input, shape index: {}]   ;;  %s3313_s4 = inlined_call_operand.vmem [shape: f32[132,128], index: 4, kind: output, shape index: {}]  }
   0x1   :  { %s2728_s17 = smov 0   ;;  %s2730_s18 = smov 0  }
   0x2   :  { %s2732_s19 = smov 0  }
   0x3 LB: > { %s26_s20 = sadd.s32 1, %s2692_s18  ;;  %p49_p1 = scmp.ne.s32.totalorder %s2684_s16, %s2680_s15  ;;  %s2696_s19 = sphi %s2732_s19, %s14_s19   ;;  %s2692_s18 = sphi %s2730_s18, %s3317_s18   ;;  %s2688_s17 = sphi %s2728_s17, %s3316_s17   ;;  %s2684_s16 = sphi %s2726_s16, %s3315_s16   ;;  %s2680_s15 = sphi %s2724_s15, %s3314_s15  }
   0x4   : > { %p27_p0 = scmp.ge.s32.totalorder %s26_s20, 2  ;;  %p50_p2 = scmp.eq.s32.totalorder %s2696_s19, 0 }
   0x5   : > { %s42_s22 = sadd.s32 1, %s2684_s16  ;;  %p2113_p5 = scmp.ge.s32.totalorder %s2696_s19, 2 }
   0x6   : > { %s3319_s20 = smov (%p27_p0, %s26_s20), 0  ;;  %p51_p3 = por %p50_p2, %p49_p1 }
   0x7   : > { %s38_s21 = ssub.s32 %s2692_s18, %s3319_s20  ;;  %203 = sbr.rel (%p2113_p5) target bundleno = 53 (0x35), region = 24 }
   0x8   : > { %p40_p4 = scmp.eq.s32.totalorder %s38_s21, 0 }
   0xa   : > { %s2759_s23 = scalar_select %p40_p4, %s2684_s16, %s42_s22  }
   0xe   : > { %206 = sbr.rel (!%p51_p3) target bundleno = 53 (0x35), region = 28  ;;  %s208_s24 = sand.u32 (%p51_p3), 1, %s2684_s16  }
   0xf   : > { %s2262_s25 = sshll.u32 (%p51_p3), %s2692_s18, 5  ;;  %s2543_s26 = smul.u32 (%p51_p3), 544, %s208_s24 }
  0x10   : > { %s2767_s29 = scalar_lea.vmem (%p51_p3), %s3309_s0, %s2262_s25 }
  0x11   : > { %v229_v0 = vld [vmem:[%s2767_s29] sm:$0xff] (%p51_p3)  ;;  %v231_v1 = vld [vmem:[%s2767_s29 + $0x8] sm:$0xff] (%p51_p3)  ;;  %v233_v2 = vld [vmem:[%s2767_s29 + $0x10] sm:$0xff] (%p51_p3)  ;;  %s2775_s30 = scalar_lea.vmem (%p51_p3), [#allocation3], %s2543_s26 }
  0x12   : > { %v235_v3 = vld [vmem:[%s2767_s29 + $0x18] sm:$0xff] (%p51_p3)  ;;  %v237_v4 = vld [vmem:[%s2767_s29 + $0x40] sm:$0xff] (%p51_p3)  ;;  %v239_v5 = vld [vmem:[%s2767_s29 + $0x48] sm:$0xff] (%p51_p3)  ;;  %230 = vst [vmem:[%s2775_s30] sm:$0xff] (%p51_p3), %v229_v0 }
  0x13   : > { %232 = vst [vmem:[%s2775_s30 + $0x8] sm:$0xff] (%p51_p3), %v231_v1  ;;  %234 = vst [vmem:[%s2775_s30 + $0x10] sm:$0xff] (%p51_p3), %v233_v2  ;;  %v241_v6 = vld [vmem:[%s2767_s29 + $0x50] sm:$0xff] (%p51_p3)  ;;  %v243_v7 = vld [vmem:[%s2767_s29 + $0x58] sm:$0xff] (%p51_p3) }
  0x14   : > { %236 = vst [vmem:[%s2775_s30 + $0x18] sm:$0xff] (%p51_p3), %v235_v3  ;;  %238 = vst [vmem:[%s2775_s30 + $0x20] sm:$0xff] (%p51_p3), %v237_v4  ;;  %v245_v8 = vld [vmem:[%s2767_s29 + $0x80] sm:$0xff] (%p51_p3)  ;;  %v247_v9 = vld [vmem:[%s2767_s29 + $0x88] sm:$0xff] (%p51_p3) }
  0x15   : > { %240 = vst [vmem:[%s2775_s30 + $0x28] sm:$0xff] %v239_v5  ;;  %242 = vst [vmem:[%s2775_s30 + $0x30] sm:$0xff] %v241_v6  ;;  %v249_v10 = vld [vmem:[%s2767_s29 + $0x90] sm:$0xff]  ;;  %v251_v11 = vld [vmem:[%s2767_s29 + $0x98] sm:$0xff] }
  0x16   : > { %244 = vst [vmem:[%s2775_s30 + $0x38] sm:$0xff] %v243_v7  ;;  %246 = vst [vmem:[%s2775_s30 + $0x40] sm:$0xff] %v245_v8  ;;  %v253_v12 = vld [vmem:[%s2767_s29 + $0xc0] sm:$0xff]  ;;  %v255_v13 = vld [vmem:[%s2767_s29 + $0xc8] sm:$0xff] }
  0x17   : > { %248 = vst [vmem:[%s2775_s30 + $0x48] sm:$0xff] %v247_v9  ;;  %250 = vst [vmem:[%s2775_s30 + $0x50] sm:$0xff] %v249_v10  ;;  %v257_v14 = vld [vmem:[%s2767_s29 + $0xd0] sm:$0xff]  ;;  %v259_v15 = vld [vmem:[%s2767_s29 + $0xd8] sm:$0xff] }
  0x18   : > { %252 = vst [vmem:[%s2775_s30 + $0x58] sm:$0xff] %v251_v11  ;;  %254 = vst [vmem:[%s2775_s30 + $0x60] sm:$0xff] %v253_v12  ;;  %v261_v16 = vld [vmem:[%s2767_s29 + $0x100] sm:$0xff]  ;;  %v263_v17 = vld [vmem:[%s2767_s29 + $0x108] sm:$0xff] }
  0x19   : > { %256 = vst [vmem:[%s2775_s30 + $0x68] sm:$0xff] %v255_v13  ;;  %258 = vst [vmem:[%s2775_s30 + $0x70] sm:$0xff] %v257_v14  ;;  %v265_v18 = vld [vmem:[%s2767_s29 + $0x110] sm:$0xff]  ;;  %v267_v19 = vld [vmem:[%s2767_s29 + $0x118] sm:$0xff] }
  0x1a   : > { %260 = vst [vmem:[%s2775_s30 + $0x78] sm:$0xff] %v259_v15  ;;  %262 = vst [vmem:[%s2775_s30 + $0x80] sm:$0xff] %v261_v16  ;;  %v269_v20 = vld [vmem:[%s2767_s29 + $0x140] sm:$0xff]  ;;  %v271_v21 = vld [vmem:[%s2767_s29 + $0x148] sm:$0xff] }
  0x1b   : > { %264 = vst [vmem:[%s2775_s30 + $0x88] sm:$0xff] %v263_v17  ;;  %266 = vst [vmem:[%s2775_s30 + $0x90] sm:$0xff] %v265_v18  ;;  %v273_v22 = vld [vmem:[%s2767_s29 + $0x150] sm:$0xff]  ;;  %v275_v23 = vld [vmem:[%s2767_s29 + $0x158] sm:$0xff] }
  0x1c   : > { %268 = vst [vmem:[%s2775_s30 + $0x98] sm:$0xff] %v267_v19  ;;  %270 = vst [vmem:[%s2775_s30 + $0xa0] sm:$0xff] %v269_v20  ;;  %v277_v24 = vld [vmem:[%s2767_s29 + $0x180] sm:$0xff]  ;;  %v279_v25 = vld [vmem:[%s2767_s29 + $0x188] sm:$0xff] }
  0x1d   : > { %272 = vst [vmem:[%s2775_s30 + $0xa8] sm:$0xff] %v271_v21  ;;  %274 = vst [vmem:[%s2775_s30 + $0xb0] sm:$0xff] %v273_v22  ;;  %v281_v26 = vld [vmem:[%s2767_s29 + $0x190] sm:$0xff]  ;;  %v283_v27 = vld [vmem:[%s2767_s29 + $0x198] sm:$0xff] }
  0x1e   : > { %276 = vst [vmem:[%s2775_s30 + $0xb8] sm:$0xff] %v275_v23  ;;  %278 = vst [vmem:[%s2775_s30 + $0xc0] sm:$0xff] %v277_v24  ;;  %v285_v28 = vld [vmem:[%s2767_s29 + $0x1c0] sm:$0xff]  ;;  %v287_v29 = vld [vmem:[%s2767_s29 + $0x1c8] sm:$0xff] }
  0x1f   : > { %280 = vst [vmem:[%s2775_s30 + $0xc8] sm:$0xff] %v279_v25  ;;  %282 = vst [vmem:[%s2775_s30 + $0xd0] sm:$0xff] %v281_v26  ;;  %v289_v30 = vld [vmem:[%s2767_s29 + $0x1d0] sm:$0xff]  ;;  %v291_v31 = vld [vmem:[%s2767_s29 + $0x1d8] sm:$0xff] }
  0x20   : > { %284 = vst [vmem:[%s2775_s30 + $0xd8] sm:$0xff] %v283_v27  ;;  %286 = vst [vmem:[%s2775_s30 + $0xe0] sm:$0xff] %v285_v28  ;;  %v293_v32 = vld [vmem:[%s2767_s29 + $0x200] sm:$0xff]  ;;  %v295_v33 = vld [vmem:[%s2767_s29 + $0x208] sm:$0xff] }
  0x21   : > { %288 = vst [vmem:[%s2775_s30 + $0xe8] sm:$0xff] %v287_v29  ;;  %290 = vst [vmem:[%s2775_s30 + $0xf0] sm:$0xff] %v289_v30  ;;  %v297_v34 = vld [vmem:[%s2767_s29 + $0x210] sm:$0xff]  ;;  %v299_v35 = vld [vmem:[%s2767_s29 + $0x218] sm:$0xff] }
  0x22   : > { %292 = vst [vmem:[%s2775_s30 + $0xf8] sm:$0xff] %v291_v31  ;;  %294 = vst [vmem:[%s2775_s30 + $0x100] sm:$0xff] %v293_v32  ;;  %v301_v36 = vld [vmem:[%s2767_s29 + $0x240] sm:$0xff]  ;;  %v303_v37 = vld [vmem:[%s2767_s29 + $0x248] sm:$0xff] }
  0x23   : > { %296 = vst [vmem:[%s2775_s30 + $0x108] sm:$0xff] %v295_v33  ;;  %298 = vst [vmem:[%s2775_s30 + $0x110] sm:$0xff] %v297_v34  ;;  %v305_v38 = vld [vmem:[%s2767_s29 + $0x250] sm:$0xff]  ;;  %v307_v39 = vld [vmem:[%s2767_s29 + $0x258] sm:$0xff] }
  0x24   : > { %300 = vst [vmem:[%s2775_s30 + $0x118] sm:$0xff] %v299_v35  ;;  %302 = vst [vmem:[%s2775_s30 + $0x120] sm:$0xff] %v301_v36  ;;  %v309_v40 = vld [vmem:[%s2767_s29 + $0x280] sm:$0xff]  ;;  %v311_v41 = vld [vmem:[%s2767_s29 + $0x288] sm:$0xff] }
  0x25   : > { %304 = vst [vmem:[%s2775_s30 + $0x128] sm:$0xff] %v303_v37  ;;  %306 = vst [vmem:[%s2775_s30 + $0x130] sm:$0xff] %v305_v38  ;;  %v313_v42 = vld [vmem:[%s2767_s29 + $0x290] sm:$0xff]  ;;  %v315_v43 = vld [vmem:[%s2767_s29 + $0x298] sm:$0xff] }
  0x26   : > { %308 = vst [vmem:[%s2775_s30 + $0x138] sm:$0xff] %v307_v39  ;;  %310 = vst [vmem:[%s2775_s30 + $0x140] sm:$0xff] %v309_v40  ;;  %v317_v44 = vld [vmem:[%s2767_s29 + $0x2c0] sm:$0xff]  ;;  %v319_v45 = vld [vmem:[%s2767_s29 + $0x2c8] sm:$0xff] }
  0x27   : > { %312 = vst [vmem:[%s2775_s30 + $0x148] sm:$0xff] %v311_v41  ;;  %314 = vst [vmem:[%s2775_s30 + $0x150] sm:$0xff] %v313_v42  ;;  %v321_v46 = vld [vmem:[%s2767_s29 + $0x2d0] sm:$0xff]  ;;  %v323_v47 = vld [vmem:[%s2767_s29 + $0x2d8] sm:$0xff] }
  0x28   : > { %316 = vst [vmem:[%s2775_s30 + $0x158] sm:$0xff] %v315_v43  ;;  %318 = vst [vmem:[%s2775_s30 + $0x160] sm:$0xff] %v317_v44  ;;  %v325_v48 = vld [vmem:[%s2767_s29 + $0x300] sm:$0xff]  ;;  %v327_v49 = vld [vmem:[%s2767_s29 + $0x308] sm:$0xff] }
  0x29   : > { %320 = vst [vmem:[%s2775_s30 + $0x168] sm:$0xff] %v319_v45  ;;  %322 = vst [vmem:[%s2775_s30 + $0x170] sm:$0xff] %v321_v46  ;;  %v329_v50 = vld [vmem:[%s2767_s29 + $0x310] sm:$0xff]  ;;  %v331_v51 = vld [vmem:[%s2767_s29 + $0x318] sm:$0xff] }
  0x2a   : > { %324 = vst [vmem:[%s2775_s30 + $0x178] sm:$0xff] %v323_v47  ;;  %326 = vst [vmem:[%s2775_s30 + $0x180] sm:$0xff] %v325_v48  ;;  %v333_v52 = vld [vmem:[%s2767_s29 + $0x340] sm:$0xff]  ;;  %v335_v53 = vld [vmem:[%s2767_s29 + $0x348] sm:$0xff] }
  0x2b   : > { %328 = vst [vmem:[%s2775_s30 + $0x188] sm:$0xff] %v327_v49  ;;  %330 = vst [vmem:[%s2775_s30 + $0x190] sm:$0xff] %v329_v50  ;;  %v337_v54 = vld [vmem:[%s2767_s29 + $0x350] sm:$0xff]  ;;  %v339_v55 = vld [vmem:[%s2767_s29 + $0x358] sm:$0xff] }
  0x2c   : > { %332 = vst [vmem:[%s2775_s30 + $0x198] sm:$0xff] %v331_v51  ;;  %334 = vst [vmem:[%s2775_s30 + $0x1a0] sm:$0xff] %v333_v52  ;;  %v341_v56 = vld [vmem:[%s2767_s29 + $0x380] sm:$0xff]  ;;  %v343_v57 = vld [vmem:[%s2767_s29 + $0x388] sm:$0xff] }
  0x2d   : > { %336 = vst [vmem:[%s2775_s30 + $0x1a8] sm:$0xff] %v335_v53  ;;  %338 = vst [vmem:[%s2775_s30 + $0x1b0] sm:$0xff] %v337_v54  ;;  %v345_v58 = vld [vmem:[%s2767_s29 + $0x390] sm:$0xff]  ;;  %v347_v59 = vld [vmem:[%s2767_s29 + $0x398] sm:$0xff] }
  0x2e   : > { %340 = vst [vmem:[%s2775_s30 + $0x1b8] sm:$0xff] %v339_v55  ;;  %342 = vst [vmem:[%s2775_s30 + $0x1c0] sm:$0xff] %v341_v56  ;;  %v349_v60 = vld [vmem:[%s2767_s29 + $0x3c0] sm:$0xff]  ;;  %v351_v61 = vld [vmem:[%s2767_s29 + $0x3c8] sm:$0xff] }
  0x2f   : > { %344 = vst [vmem:[%s2775_s30 + $0x1c8] sm:$0xff] %v343_v57  ;;  %346 = vst [vmem:[%s2775_s30 + $0x1d0] sm:$0xff] %v345_v58  ;;  %v353_v62 = vld [vmem:[%s2767_s29 + $0x3d0] sm:$0xff]  ;;  %v355_v63 = vld [vmem:[%s2767_s29 + $0x3d8] sm:$0xff] }
  0x30   : > { %348 = vst [vmem:[%s2775_s30 + $0x1d8] sm:$0xff] %v347_v59  ;;  %350 = vst [vmem:[%s2775_s30 + $0x1e0] sm:$0xff] %v349_v60  ;;  %v357_v0 = vld [vmem:[%s2767_s29 + $0x400] sm:$0xff]  ;;  %v359_v1 = vld [vmem:[%s2767_s29 + $0x408] sm:$0xff] }
  0x31   : > { %352 = vst [vmem:[%s2775_s30 + $0x1e8] sm:$0xff] %v351_v61  ;;  %354 = vst [vmem:[%s2775_s30 + $0x1f0] sm:$0xff] %v353_v62  ;;  %v361_v2 = vld [vmem:[%s2767_s29 + $0x410] sm:$0xff]  ;;  %v363_v3 = vld [vmem:[%s2767_s29 + $0x418] sm:$0xff] }
  0x32   : > { %356 = vst [vmem:[%s2775_s30 + $0x1f8] sm:$0xff] %v355_v63  ;;  %358 = vst [vmem:[%s2775_s30 + $0x200] sm:$0xff] %v357_v0 }
  0x33   : > { %360 = vst [vmem:[%s2775_s30 + $0x208] sm:$0xff] %v359_v1  ;;  %362 = vst [vmem:[%s2775_s30 + $0x210] sm:$0xff] %v361_v2 }
  0x34   : > { %364 = vst [vmem:[%s2775_s30 + $0x218] sm:$0xff] %v363_v3 }
  0x35 PF: > { %p2116_p6 = scmp.ge.s32.totalorder %s2696_s19, 1  ;;  %p381_p7 = scmp.lt.s32.totalorder %s2696_s19, 3 }
  0x37   : > { %p382_p8 = pnand %p2116_p6, %p381_p7 }
  0x38   : > { %s2117_s5 = sshll.u32 (!%p382_p8), %s2688_s17, 7  ;;  %s388_s6 = sand.u32 (!%p382_p8), 1, %s2680_s15  }
  0x39   : > { %385 = sbr.rel (%p382_p8) target bundleno = 482 (0x1e2), region = 55  ;;  %p438_p9 = scmp.lt.s32.totalorder (!%p382_p8), %s2117_s5, 255 }
  0x3a   : > { %s2544_s7 = smul.u32 (!%p382_p8), 544, %s388_s6  ;;  %p2255_p10 = scmp.ne.s32.totalorder (!%p382_p8), %s2688_s17, 0 }
  0x3c   : > { %s2911_s9 = scalar_lea.vmem (!%p382_p8), [#allocation3], %s2544_s7 }
  0x3d   : > { %v2914_v4 = vld [vmem:[%s2911_s9] sm:$0xff] (!%p382_p8)  ;;  %v2920_v6 = vld [vmem:[%s2911_s9 + $0x8] sm:$0xff] (!%p382_p8) }
  0x3e   : > { %v2917_v5 = vld [vmem:[%s2911_s9 + $0x20] sm:$0xff] (!%p382_p8)  ;;  %v2930_v8 = vld [vmem:[%s2911_s9 + $0x28] sm:$0xff] (!%p382_p8) }
  0x3f   : > { %v2120_v7 = vcombine.high (!%p382_p8), %v2914_v4, %v2917_v5  ;;  %v2122_v10 = vcombine.high (!%p382_p8), %v2920_v6, %v2930_v8  ;;  %v476_v39 = vld [vmem:[%s2911_s9 + $0x40] sm:$0xff] (!%p382_p8)  ;;  %v2119_v44 = vcombine.low (!%p382_p8), %v2914_v4, %v2917_v5  ;;  %v2121_v45 = vcombine.low (!%p382_p8), %v2920_v6, %v2930_v8  ;;  %v477_v51 = vld [vmem:[%s2911_s9 + $0x48] sm:$0xff] (!%p382_p8) }
  0x40   : > { %s3321_s5 = smov (!%p438_p9, %s2117_s5), 255  ;;  %v480_v40 = vld [vmem:[%s2911_s9 + $0x60] sm:$0xff]  ;;  %v481_v52 = vld [vmem:[%s2911_s9 + $0x68] sm:$0xff] }
  0x41   : > { %s2118_s8 = sshll.u32 %s3321_s5, 2  ;;  %1428 = vmatprep.mubr.bf16.mxu0 %v2120_v7  ;;  %1532 = vmatprep.mubr.bf16.mxu1 %v2122_v10  ;;  %v2128_v48 = vcombine.high %v476_v39, %v480_v40  ;;  %v2130_v53 = vcombine.high %v477_v51, %v481_v52  ;;  %v2127_v56 = vcombine.low %v476_v39, %v480_v40  ;;  %v484_v60 = vld [vmem:[%s2911_s9 + $0x80] sm:$0xff]  ;;  %v485_v62 = vld [vmem:[%s2911_s9 + $0x88] sm:$0xff] }
  0x42   : > { %s2925_s12 = scalar_lea.vmem %s3310_s1, %s2118_s8  ;;  %v2129_v58 = vcombine.low %v477_v51, %v481_v52  ;;  %v488_v61 = vld [vmem:[%s2911_s9 + $0xa0] sm:$0xff]  ;;  %v489_v63 = vld [vmem:[%s2911_s9 + $0xa8] sm:$0xff] }
  0x43   : > { %v2586_v9 = vld [vmem:[%s2925_s12 + $0x40] sm:$0xff]   ;;  %v2590_v14 = vld [vmem:[%s2925_s12 + $0x48] sm:$0xff]   ;;  %v2594_v18 = vld [vmem:[%s2925_s12 + $0x50] sm:$0xff]   ;;  %v2136_v0 = vcombine.high %v484_v60, %v488_v61  ;;  %v2138_v1 = vcombine.high %v485_v62, %v489_v63 }
  0x44   : > { %v2587_v11 = vld [vmem:[%s2925_s12 + $0xc0] sm:$0xff]   ;;  %2263 = vmatprep.subr.bf16.mxu0 %v2586_v9  ;;  %v2591_v15 = vld [vmem:[%s2925_s12 + $0xc8] sm:$0xff]   ;;  %v2595_v19 = vld [vmem:[%s2925_s12 + $0xd0] sm:$0xff]   ;;  %v2135_v9 = vcombine.low %v484_v60, %v488_v61 }
  0x45   : > { %v2588_v12 = vld [vmem:[%s2925_s12] sm:$0xff]   ;;  %2333 = vmatprep.subr.bf16.mxu1 %v2587_v11  ;;  %v2592_v16 = vld [vmem:[%s2925_s12 + $0x8] sm:$0xff]   ;;  %v2596_v20 = vld [vmem:[%s2925_s12 + $0x10] sm:$0xff]   ;;  %v2137_v11 = vcombine.low %v485_v62, %v489_v63 }
  0x46   : > { %v2589_v13 = vld [vmem:[%s2925_s12 + $0x80] sm:$0xff]   ;;  %2264 = vmatpush3.bf16.msra.mxu0 %v2588_v12  ;;  %v2593_v17 = vld [vmem:[%s2925_s12 + $0x88] sm:$0xff]   ;;  %v2597_v21 = vld [vmem:[%s2925_s12 + $0x90] sm:$0xff]  }
  0x47   : > { %2334 = vmatpush3.bf16.msra.mxu1 %v2589_v13  ;;  %2265 = vmatprep.subr.bf16.mxu0 %v2590_v14  ;;  %v2598_v22 = vld [vmem:[%s2925_s12 + $0x58] sm:$0xff]   ;;  %v2602_v26 = vld [vmem:[%s2925_s12 + $0x60] sm:$0xff]   ;;  %v2606_v30 = vld [vmem:[%s2925_s12 + $0x68] sm:$0xff]  }
  0x48   : > { %2335 = vmatprep.subr.bf16.mxu1 %v2591_v15  ;;  %v2599_v23 = vld [vmem:[%s2925_s12 + $0xd8] sm:$0xff]   ;;  %v2603_v27 = vld [vmem:[%s2925_s12 + $0xe0] sm:$0xff]   ;;  %v2607_v31 = vld [vmem:[%s2925_s12 + $0xe8] sm:$0xff]  }
  0x49   : > { %v2600_v24 = vld [vmem:[%s2925_s12 + $0x18] sm:$0xff]   ;;  %v2604_v28 = vld [vmem:[%s2925_s12 + $0x20] sm:$0xff]   ;;  %v2608_v32 = vld [vmem:[%s2925_s12 + $0x28] sm:$0xff]  }
  0x4a   : > { %2266 = vmatpush3.bf16.msra.mxu0 %v2592_v16  ;;  %v2601_v25 = vld [vmem:[%s2925_s12 + $0x98] sm:$0xff]   ;;  %v2605_v29 = vld [vmem:[%s2925_s12 + $0xa0] sm:$0xff]   ;;  %v2609_v33 = vld [vmem:[%s2925_s12 + $0xa8] sm:$0xff]  }
  0x4b   : > { %2336 = vmatpush3.bf16.msra.mxu1 %v2593_v17  ;;  %2267 = vmatprep.subr.bf16.mxu0 %v2594_v18  ;;  %v2610_v34 = vld [vmem:[%s2925_s12 + $0x70] sm:$0xff]   ;;  %v2614_v38 = vld [vmem:[%s2925_s12 + $0x78] sm:$0xff]   ;;  %v2618_v46 = vld [vmem:[%s2925_s12 + $0x140] sm:$0xff]  }
  0x4c   : > { %2337 = vmatprep.subr.bf16.mxu1 %v2595_v19  ;;  %v2611_v35 = vld [vmem:[%s2925_s12 + $0xf0] sm:$0xff]   ;;  %v2615_v41 = vld [vmem:[%s2925_s12 + $0xf8] sm:$0xff]   ;;  %v2619_v47 = vld [vmem:[%s2925_s12 + $0x100] sm:$0xff]  }
  0x4d   : > { %v2612_v36 = vld [vmem:[%s2925_s12 + $0x30] sm:$0xff]   ;;  %v2616_v42 = vld [vmem:[%s2925_s12 + $0x38] sm:$0xff]   ;;  %v2620_v49 = vld [vmem:[%s2925_s12 + $0x1c0] sm:$0xff]  }
  0x4e   : > { %2268 = vmatpush3.bf16.msra.mxu0 %v2596_v20  ;;  %v2613_v37 = vld [vmem:[%s2925_s12 + $0xb0] sm:$0xff]   ;;  %v2617_v43 = vld [vmem:[%s2925_s12 + $0xb8] sm:$0xff]   ;;  %v2621_v50 = vld [vmem:[%s2925_s12 + $0x180] sm:$0xff]  }
  0x4f   : > { %2338 = vmatpush3.bf16.msra.mxu1 %v2597_v21  ;;  %2269 = vmatprep.subr.bf16.mxu0 %v2598_v22  ;;  %v2622_v54 = vld [vmem:[%s2925_s12 + $0x148] sm:$0xff]   ;;  %v2626_v2 = vld [vmem:[%s2925_s12 + $0x150] sm:$0xff]   ;;  %v2630_v13 = vld [vmem:[%s2925_s12 + $0x158] sm:$0xff]  }
  0x50   : > { %2339 = vmatprep.subr.bf16.mxu1 %v2599_v23  ;;  %v2623_v55 = vld [vmem:[%s2925_s12 + $0x108] sm:$0xff]   ;;  %v2627_v3 = vld [vmem:[%s2925_s12 + $0x110] sm:$0xff]   ;;  %v2631_v15 = vld [vmem:[%s2925_s12 + $0x118] sm:$0xff]  }
  0x51   : > { %v2624_v57 = vld [vmem:[%s2925_s12 + $0x1c8] sm:$0xff]   ;;  %v2628_v4 = vld [vmem:[%s2925_s12 + $0x1d0] sm:$0xff]   ;;  %v2632_v16 = vld [vmem:[%s2925_s12 + $0x1d8] sm:$0xff]  }
  0x52   : > { %2270 = vmatpush3.bf16.msra.mxu0 %v2600_v24  ;;  %v2625_v59 = vld [vmem:[%s2925_s12 + $0x188] sm:$0xff]   ;;  %v2629_v5 = vld [vmem:[%s2925_s12 + $0x190] sm:$0xff]   ;;  %v2633_v17 = vld [vmem:[%s2925_s12 + $0x198] sm:$0xff]  }
  0x53   : > { %2340 = vmatpush3.bf16.msra.mxu1 %v2601_v25  ;;  %2271 = vmatprep.subr.bf16.mxu0 %v2602_v26  ;;  %v492_v6 = vld [vmem:[%s2911_s9 + $0xc0] sm:$0xff]  ;;  %v493_v8 = vld [vmem:[%s2911_s9 + $0xc8] sm:$0xff]  ;;  %v2634_v22 = vld [vmem:[%s2925_s12 + $0x160] sm:$0xff]  }
  0x54   : > { %2341 = vmatprep.subr.bf16.mxu1 %v2603_v27  ;;  %v496_v7 = vld [vmem:[%s2911_s9 + $0xe0] sm:$0xff]  ;;  %v497_v10 = vld [vmem:[%s2911_s9 + $0xe8] sm:$0xff]  ;;  %v2635_v23 = vld [vmem:[%s2925_s12 + $0x120] sm:$0xff]  }
  0x55   : > { %v2144_v12 = vcombine.high %v492_v6, %v496_v7  ;;  %v2146_v14 = vcombine.high %v493_v8, %v497_v10  ;;  %v500_v18 = vld [vmem:[%s2911_s9 + $0x100] sm:$0xff]  ;;  %v501_v20 = vld [vmem:[%s2911_s9 + $0x108] sm:$0xff]  ;;  %v2143_v24 = vcombine.low %v492_v6, %v496_v7  ;;  %v2636_v25 = vld [vmem:[%s2925_s12 + $0x1e0] sm:$0xff]   ;;  %v2145_v26 = vcombine.low %v493_v8, %v497_v10 }
  0x56   : > { %2272 = vmatpush3.bf16.msra.mxu0 %v2604_v28  ;;  %v504_v19 = vld [vmem:[%s2911_s9 + $0x120] sm:$0xff]  ;;  %v505_v21 = vld [vmem:[%s2911_s9 + $0x128] sm:$0xff]  ;;  %v2651_v52 = vld [vmem:[%s2925_s12 + $0x138] sm:$0xff]  }
  0x57   : > { %2342 = vmatpush3.bf16.msra.mxu1 %v2605_v29  ;;  %2273 = vmatprep.subr.bf16.mxu0 %v2606_v30  ;;  %v2152_v27 = vcombine.high %v500_v18, %v504_v19  ;;  %v2154_v28 = vcombine.high %v501_v20, %v505_v21  ;;  %v2637_v29 = vld [vmem:[%s2925_s12 + $0x1a0] sm:$0xff]   ;;  %v2638_v30 = vld [vmem:[%s2925_s12 + $0x168] sm:$0xff]   ;;  %v2153_v39 = vcombine.low %v501_v20, %v505_v21  ;;  %v525_v60 = vld [vmem:[%s2911_s9 + $0x1c8] sm:$0xff] }
  0x58   : > { %2343 = vmatprep.subr.bf16.mxu1 %v2607_v31  ;;  %v2639_v31 = vld [vmem:[%s2925_s12 + $0x128] sm:$0xff]   ;;  %v529_v61 = vld [vmem:[%s2911_s9 + $0x1e8] sm:$0xff]  ;;  %v470_v8 = vld [vmem:[%s2911_s9 + $0x10] sm:$0xff] }
  0x59   : > { %v471_v10 = vld [vmem:[%s2911_s9 + $0x18] sm:$0xff] }
  0x5a   : > { %2274 = vmatpush3.bf16.msra.mxu0 %v2608_v32  ;;  %v508_v32 = vld [vmem:[%s2911_s9 + $0x140] sm:$0xff] }
  0x5b   : > { %2344 = vmatpush3.bf16.msra.mxu1 %v2609_v33  ;;  %2275 = vmatprep.subr.bf16.mxu0 %v2610_v34  ;;  %v512_v33 = vld [vmem:[%s2911_s9 + $0x160] sm:$0xff]  ;;  %v509_v34 = vld [vmem:[%s2911_s9 + $0x148] sm:$0xff] }
  0x5c   : > { %2345 = vmatprep.subr.bf16.mxu1 %v2611_v35  ;;  %v513_v35 = vld [vmem:[%s2911_s9 + $0x168] sm:$0xff]  ;;  %v2160_v40 = vcombine.high %v508_v32, %v512_v33  ;;  %v2159_v51 = vcombine.low %v508_v32, %v512_v33  ;;  %v494_v32 = vld [vmem:[%s2911_s9 + $0xd0] sm:$0xff] }
  0x5d   : > { %v498_v33 = vld [vmem:[%s2911_s9 + $0xf0] sm:$0xff] }
  0x5e   : > { %2276 = vmatpush3.bf16.msra.mxu0 %v2612_v36  ;;  %v2640_v36 = vld [vmem:[%s2925_s12 + $0x1e8] sm:$0xff]  }
  0x5f   : > { %2346 = vmatpush3.bf16.msra.mxu1 %v2613_v37  ;;  %2277 = vmatprep.subr.bf16.mxu0 %v2614_v38  ;;  %v2151_v37 = vcombine.low %v500_v18, %v504_v19  ;;  %v2641_v38 = vld [vmem:[%s2925_s12 + $0x1a8] sm:$0xff]   ;;  %v479_v18 = vld [vmem:[%s2911_s9 + $0x58] sm:$0xff] }
  0x60   : > { %2347 = vmatprep.subr.bf16.mxu1 %v2615_v41  ;;  %v2642_v41 = vld [vmem:[%s2925_s12 + $0x170] sm:$0xff]   ;;  %v483_v19 = vld [vmem:[%s2911_s9 + $0x78] sm:$0xff] }
  0x62   : > { %2278 = vmatpush3.bf16.msra.mxu0 %v2616_v42  ;;  %v2162_v42 = vcombine.high %v509_v34, %v513_v35 }
  0x63   : > { %2348 = vmatpush3.bf16.msra.mxu1 %v2617_v43  ;;  %2403 = vmatprep.subr.bf16.mxu0 %v2618_v46  ;;  %v2643_v43 = vld [vmem:[%s2925_s12 + $0x130] sm:$0xff]  }
  0x64   : > { %2473 = vmatprep.subr.bf16.mxu1 %v2620_v49  ;;  %v2644_v46 = vld [vmem:[%s2925_s12 + $0x1f0] sm:$0xff]  }
  0x65   : > { %1429 = vmatmul.mubr.bf16.vlgmr.msra.gmra.mrb[0].mxu0 %v2119_v44  ;;  %v516_v44 = vld [vmem:[%s2911_s9 + $0x180] sm:$0xff]  ;;  %v521_v49 = vld [vmem:[%s2911_s9 + $0x1a8] sm:$0xff] }
  0x66   : > { %1533 = vmatmul.mubr.bf16.vlgmr.msra.gmra.mrb[0].mxu1 %v2121_v45  ;;  %2404 = vmatpush3.bf16.msra.mxu0 %v2619_v47  ;;  %v520_v45 = vld [vmem:[%s2911_s9 + $0x1a0] sm:$0xff]  ;;  %v517_v47 = vld [vmem:[%s2911_s9 + $0x188] sm:$0xff] }
  0x67   : > { %1436 = vmatprep.mubr.bf16.mxu0 %v2128_v48  ;;  %2474 = vmatpush3.bf16.msra.mxu1 %v2621_v50  ;;  %v2645_v48 = vld [vmem:[%s2925_s12 + $0x1b0] sm:$0xff]   ;;  %v2648_v50 = vld [vmem:[%s2925_s12 + $0x178] sm:$0xff]   ;;  %v2167_v62 = vcombine.low %v516_v44, %v520_v45  ;;  %v2169_v63 = vcombine.low %v517_v47, %v521_v49 }
  0x68   : > { %1540 = vmatprep.mubr.bf16.mxu1 %v2130_v53  ;;  %2405 = vmatprep.subr.bf16.mxu0 %v2622_v54  ;;  %v2161_v53 = vcombine.low %v509_v34, %v513_v35  ;;  %v2168_v54 = vcombine.high %v516_v44, %v520_v45  ;;  %v495_v34 = vld [vmem:[%s2911_s9 + $0xd8] sm:$0xff]  ;;  %v2147_v44 = vcombine.low %v494_v32, %v498_v33 }
  0x69   : > { %2475 = vmatprep.subr.bf16.mxu1 %v2624_v57  ;;  %v2653_v57 = vld [vmem:[%s2925_s12 + $0x1b8] sm:$0xff]   ;;  %v499_v35 = vld [vmem:[%s2911_s9 + $0xf8] sm:$0xff] }
  0x6a   : > { %2406 = vmatpush3.bf16.msra.mxu0 %v2623_v55  ;;  %v2652_v55 = vld [vmem:[%s2925_s12 + $0x1f8] sm:$0xff]   ;;  %v2149_v45 = vcombine.low %v495_v34, %v499_v35 }
  0x6b   : > { %2476 = vmatpush3.bf16.msra.mxu1 %v2625_v59  ;;  %2407 = vmatprep.subr.bf16.mxu0 %v2626_v2  ;;  %v528_v59 = vld [vmem:[%s2911_s9 + $0x1e0] sm:$0xff] }
  0x6c   : > { %2477 = vmatprep.subr.bf16.mxu1 %v2628_v4  ;;  %v532_v2 = vld [vmem:[%s2911_s9 + $0x200] sm:$0x33] }
  0x6d   : > { %1437 = vmatmul.mubr.bf16.gmra.mrb[4].mxu0 %v2127_v56  ;;  %v2170_v56 = vcombine.high %v517_v47, %v521_v49  ;;  %v2184_v6 = vcombine.high %v532_v2, %v532_v2  ;;  %v514_v49 = vld [vmem:[%s2911_s9 + $0x170] sm:$0xff] }
  0x6e   : > { %1541 = vmatmul.mubr.bf16.gmra.mrb[4].mxu1 %v2129_v58  ;;  %1444 = vmatprep.mubr.bf16.mxu0 %v2136_v0  ;;  %v524_v58 = vld [vmem:[%s2911_s9 + $0x1c0] sm:$0xff] }
  0x6f   : > { %1548 = vmatprep.mubr.bf16.mxu1 %v2138_v1  ;;  %2408 = vmatpush3.bf16.msra.mxu0 %v2627_v3  ;;  %v2176_v0 = vcombine.high %v524_v58, %v528_v59  ;;  %v2178_v1 = vcombine.high %v525_v60, %v529_v61  ;;  %v533_v3 = vld [vmem:[%s2911_s9 + $0x208] sm:$0x33]  ;;  %v2175_v4 = vcombine.low %v524_v58, %v528_v59  ;;  %v519_v58 = vld [vmem:[%s2911_s9 + $0x198] sm:$0xff] }
  0x70   : > { %2478 = vmatpush3.bf16.msra.mxu1 %v2629_v5  ;;  %2409 = vmatprep.subr.bf16.mxu0 %v2630_v13  ;;  %v2177_v5 = vcombine.low %v525_v60, %v529_v61  ;;  %v2186_v7 = vcombine.high %v533_v3, %v533_v3  ;;  %v2185_v13 = vcombine.low %v533_v3, %v533_v3  ;;  %v523_v59 = vld [vmem:[%s2911_s9 + $0x1b8] sm:$0xff] }
  0x71   : > { %2479 = vmatprep.subr.bf16.mxu1 %v2632_v16  ;;  %v478_v16 = vld [vmem:[%s2911_s9 + $0x50] sm:$0xff]  ;;  %v531_v3 = vld [vmem:[%s2911_s9 + $0x1f8] sm:$0xff] }
  0x73   : > { %2410 = vmatpush3.bf16.msra.mxu0 %v2631_v15 }
  0x74   : > { %2480 = vmatpush3.bf16.msra.mxu1 %v2633_v17  ;;  %2411 = vmatprep.subr.bf16.mxu0 %v2634_v22  ;;  %v482_v17 = vld [vmem:[%s2911_s9 + $0x70] sm:$0xff] }
  0x75   : > { %1445 = vmatmul.mubr.bf16.gmra.mrb[8].mxu0 %v2135_v9  ;;  %2481 = vmatprep.subr.bf16.mxu1 %v2636_v25  ;;  %v474_v9 = vld [vmem:[%s2911_s9 + $0x30] sm:$0xff]  ;;  %v2132_v22 = vcombine.high %v478_v16, %v482_v17 }
  0x76   : > { %1549 = vmatmul.mubr.bf16.gmra.mrb[8].mxu1 %v2137_v11  ;;  %1452 = vmatprep.mubr.bf16.mxu0 %v2144_v12  ;;  %v475_v11 = vld [vmem:[%s2911_s9 + $0x38] sm:$0xff]  ;;  %v2183_v12 = vcombine.low %v532_v2, %v532_v2  ;;  %v2123_v20 = vcombine.low %v470_v8, %v474_v9  ;;  %v490_v25 = vld [vmem:[%s2911_s9 + $0xb0] sm:$0xff] }
  0x77   : > { %1556 = vmatprep.mubr.bf16.mxu1 %v2146_v14  ;;  %2412 = vmatpush3.bf16.msra.mxu0 %v2635_v23  ;;  %v2124_v14 = vcombine.high %v470_v8, %v474_v9  ;;  %v2126_v15 = vcombine.high %v471_v10, %v475_v11  ;;  %v2125_v21 = vcombine.low %v471_v10, %v475_v11  ;;  %v527_v2 = vld [vmem:[%s2911_s9 + $0x1d8] sm:$0xff]  ;;  %v534_v8 = vld [vmem:[%s2911_s9 + $0x210] sm:$0x33] }
  0x78   : > { %2482 = vmatpush3.bf16.msra.mxu1 %v2637_v29  ;;  %2413 = vmatprep.subr.bf16.mxu0 %v2638_v30  ;;  %v2134_v23 = vcombine.high %v479_v18, %v483_v19  ;;  %v2133_v29 = vcombine.low %v479_v18, %v483_v19  ;;  %v535_v9 = vld [vmem:[%s2911_s9 + $0x218] sm:$0x33]  ;;  %v2181_v11 = vcombine.low %v527_v2, %v531_v3 }
  0x79   : > { %2483 = vmatprep.subr.bf16.mxu1 %v2640_v36 }
  0x7b   : > { %2414 = vmatpush3.bf16.msra.mxu0 %v2639_v31 }
  0x7c   : > { %2484 = vmatpush3.bf16.msra.mxu1 %v2641_v38  ;;  %2415 = vmatprep.subr.bf16.mxu0 %v2642_v41  ;;  %v2148_v38 = vcombine.high %v494_v32, %v498_v33  ;;  %v506_v41 = vld [vmem:[%s2911_s9 + $0x130] sm:$0xff] }
  0x7d   : > { %1453 = vmatmul.mubr.bf16.gmra.mrb[12].mxu0 %v2143_v24  ;;  %2485 = vmatprep.subr.bf16.mxu1 %v2644_v46  ;;  %v486_v24 = vld [vmem:[%s2911_s9 + $0x90] sm:$0xff] }
  0x7e   : > { %1557 = vmatmul.mubr.bf16.gmra.mrb[12].mxu1 %v2145_v26  ;;  %1460 = vmatprep.mubr.bf16.mxu0 %v2152_v27  ;;  %v487_v26 = vld [vmem:[%s2911_s9 + $0x98] sm:$0xff]  ;;  %v2140_v30 = vcombine.high %v486_v24, %v490_v25  ;;  %v2139_v36 = vcombine.low %v486_v24, %v490_v25 }
  0x7f   : > { %1564 = vmatprep.mubr.bf16.mxu1 %v2154_v28  ;;  %2416 = vmatpush3.bf16.msra.mxu0 %v2643_v43  ;;  %v491_v27 = vld [vmem:[%s2911_s9 + $0xb8] sm:$0xff]  ;;  %v2131_v28 = vcombine.low %v478_v16, %v482_v17 }
  0x80   : > { %2486 = vmatpush3.bf16.msra.mxu1 %v2645_v48  ;;  %2417 = vmatprep.subr.bf16.mxu0 %v2648_v50  ;;  %v2142_v31 = vcombine.high %v487_v26, %v491_v27  ;;  %v507_v43 = vld [vmem:[%s2911_s9 + $0x138] sm:$0xff]  ;;  %v510_v48 = vld [vmem:[%s2911_s9 + $0x150] sm:$0xff] }
  0x81   : > { %2487 = vmatprep.subr.bf16.mxu1 %v2652_v55  ;;  %v511_v50 = vld [vmem:[%s2911_s9 + $0x158] sm:$0xff]  ;;  %v2163_v60 = vcombine.low %v510_v48, %v514_v49 }
  0x83   : > { %2418 = vmatpush3.bf16.msra.mxu0 %v2651_v52 }
  0x84   : > { %2488 = vmatpush3.bf16.msra.mxu1 %v2653_v57  ;;  %v522_v57 = vld [vmem:[%s2911_s9 + $0x1b0] sm:$0xff] }
  0x85   : > { %1461 = vmatmul.mubr.bf16.gmra.mrb[16].mxu0 %v2151_v37  ;;  %v2141_v37 = vcombine.low %v487_v26, %v491_v27 }
  0x86   : > { %1565 = vmatmul.mubr.bf16.gmra.mrb[16].mxu1 %v2153_v39  ;;  %1468 = vmatprep.mubr.bf16.mxu0 %v2160_v40  ;;  %v2150_v39 = vcombine.high %v495_v34, %v499_v35  ;;  %v502_v40 = vld [vmem:[%s2911_s9 + $0x110] sm:$0xff] }
  0x87   : > { %1572 = vmatprep.mubr.bf16.mxu1 %v2162_v42  ;;  %v503_v42 = vld [vmem:[%s2911_s9 + $0x118] sm:$0xff]  ;;  %v2156_v46 = vcombine.high %v502_v40, %v506_v41  ;;  %v2155_v52 = vcombine.low %v502_v40, %v506_v41 }
  0x88   : > { %v2158_v47 = vcombine.high %v503_v42, %v507_v43 }
  0x8d   : > { %1469 = vmatmul.mubr.bf16.gmra.mrb[20].mxu0 %v2159_v51  ;;  %v515_v51 = vld [vmem:[%s2911_s9 + $0x178] sm:$0xff] }
  0x8e   : > { %1573 = vmatmul.mubr.bf16.gmra.mrb[20].mxu1 %v2161_v53  ;;  %1476 = vmatprep.mubr.bf16.mxu0 %v2168_v54  ;;  %v2157_v53 = vcombine.low %v503_v42, %v507_v43  ;;  %v2164_v54 = vcombine.high %v510_v48, %v514_v49  ;;  %v2166_v55 = vcombine.high %v511_v50, %v515_v51 }
  0x8f   : > { %1580 = vmatprep.mubr.bf16.mxu1 %v2170_v56  ;;  %v518_v56 = vld [vmem:[%s2911_s9 + $0x190] sm:$0xff]  ;;  %v2165_v61 = vcombine.low %v511_v50, %v515_v51 }
  0x95   : > { %1477 = vmatmul.mubr.bf16.gmra.mrb[24].mxu0 %v2167_v62  ;;  %v2172_v62 = vcombine.high %v518_v56, %v522_v57 }
  0x96   : > { %1581 = vmatmul.mubr.bf16.gmra.mrb[24].mxu1 %v2169_v63  ;;  %1484 = vmatprep.mubr.bf16.mxu0 %v2176_v0  ;;  %v2174_v63 = vcombine.high %v519_v58, %v523_v59  ;;  %v526_v0 = vld [vmem:[%s2911_s9 + $0x1d0] sm:$0xff] }
  0x97   : > { %1588 = vmatprep.mubr.bf16.mxu1 %v2178_v1  ;;  %v530_v1 = vld [vmem:[%s2911_s9 + $0x1f0] sm:$0xff] }
  0x98   : > { %v2179_v10 = vcombine.low %v526_v0, %v530_v1 }
  0x9d   : > { %1485 = vmatmul.mubr.bf16.gmra.mrb[28].mxu0 %v2175_v4  ;;  %v2171_v4 = vcombine.low %v518_v56, %v522_v57 }
  0x9e   : > { %1589 = vmatmul.mubr.bf16.gmra.mrb[28].mxu1 %v2177_v5  ;;  %1492 = vmatprep.mubr.bf16.mxu0 %v2184_v6  ;;  %v2173_v5 = vcombine.low %v519_v58, %v523_v59  ;;  %v2180_v6 = vcombine.high %v526_v0, %v530_v1 }
  0x9f   : > { %1596 = vmatprep.mubr.bf16.mxu1 %v2186_v7  ;;  %v2182_v7 = vcombine.high %v527_v2, %v531_v3 }
  0xa5   : > { %1493 = vmatmul.mubr.bf16.gmra.mrb[32].mxu0 %v2183_v12  ;;  %v2188_v12 = vcombine.high %v534_v8, %v534_v8 }
  0xa6   : > { %1597 = vmatmul.mubr.bf16.gmra.mrb[32].mxu1 %v2185_v13  ;;  %1636 = vmatprep.mubr.bf16.mxu0 %v2124_v14  ;;  %v2190_v13 = vcombine.high %v535_v9, %v535_v9  ;;  %v2187_v14 = vcombine.low %v534_v8, %v534_v8 }
  0xa7   : > { %1740 = vmatprep.mubr.bf16.mxu1 %v2126_v15  ;;  %v2189_v15 = vcombine.low %v535_v9, %v535_v9 }
  0xad   : > { %1637 = vmatmul.mubr.bf16.vlgmr.msra.gmra.mrb[36].mxu0 %v2123_v20 }
  0xae   : > { %1741 = vmatmul.mubr.bf16.vlgmr.msra.gmra.mrb[36].mxu1 %v2125_v21  ;;  %1644 = vmatprep.mubr.bf16.mxu0 %v2132_v22 }
  0xaf   : > { %1748 = vmatprep.mubr.bf16.mxu1 %v2134_v23 }
  0xb5   : > { %1645 = vmatmul.mubr.bf16.gmra.mrb[40].mxu0 %v2131_v28 }
  0xb6   : > { %1749 = vmatmul.mubr.bf16.gmra.mrb[40].mxu1 %v2133_v29  ;;  %1652 = vmatprep.mubr.bf16.mxu0 %v2140_v30 }
  0xb7   : > { %1756 = vmatprep.mubr.bf16.mxu1 %v2142_v31 }
  0xbd   : > { %1653 = vmatmul.mubr.bf16.gmra.mrb[44].mxu0 %v2139_v36 }
  0xbe   : > { %1757 = vmatmul.mubr.bf16.gmra.mrb[44].mxu1 %v2141_v37  ;;  %1660 = vmatprep.mubr.bf16.mxu0 %v2148_v38 }
  0xbf   : > { %1764 = vmatprep.mubr.bf16.mxu1 %v2150_v39 }
  0xc5   : > { %1661 = vmatmul.mubr.bf16.gmra.mrb[48].mxu0 %v2147_v44 }
  0xc6   : > { %1765 = vmatmul.mubr.bf16.gmra.mrb[48].mxu1 %v2149_v45  ;;  %1668 = vmatprep.mubr.bf16.mxu0 %v2156_v46 }
  0xc7   : > { %1772 = vmatprep.mubr.bf16.mxu1 %v2158_v47 }
  0xcd   : > { %1669 = vmatmul.mubr.bf16.gmra.mrb[52].mxu0 %v2155_v52 }
  0xce   : > { %1773 = vmatmul.mubr.bf16.gmra.mrb[52].mxu1 %v2157_v53  ;;  %1676 = vmatprep.mubr.bf16.mxu0 %v2164_v54 }
  0xcf   : > { %1780 = vmatprep.mubr.bf16.mxu1 %v2166_v55 }
  0xd5   : > { %1677 = vmatmul.mubr.bf16.gmra.mrb[56].mxu0 %v2163_v60 }
  0xd6   : > { %1781 = vmatmul.mubr.bf16.gmra.mrb[56].mxu1 %v2165_v61  ;;  %1684 = vmatprep.mubr.bf16.mxu0 %v2172_v62 }
  0xd7   : > { %1788 = vmatprep.mubr.bf16.mxu1 %v2174_v63 }
  0xdd   : > { %1685 = vmatmul.mubr.bf16.gmra.mrb[60].mxu0 %v2171_v4 }
  0xde   : > { %1789 = vmatmul.mubr.bf16.gmra.mrb[60].mxu1 %v2173_v5  ;;  %1692 = vmatprep.mubr.bf16.mxu0 %v2180_v6 }
  0xdf   : > { %1796 = vmatprep.mubr.bf16.mxu1 %v2182_v7 }
  0xe5   : > { %1693 = vmatmul.mubr.bf16.gmra.mrb[64].mxu0 %v2179_v10 }
  0xe6   : > { %1797 = vmatmul.mubr.bf16.gmra.mrb[64].mxu1 %v2181_v11  ;;  %1700 = vmatprep.mubr.bf16.mxu0 %v2188_v12 }
  0xe7   : > { %1804 = vmatprep.mubr.bf16.mxu1 %v2190_v13 }
  0xed   : > { %1701 = vmatmul.mubr.bf16.gmra.mrb[68].mxu0 %v2187_v14 }
  0xee   : > { %1805 = vmatmul.mubr.bf16.gmra.mrb[68].mxu1 %v2189_v15 }
 0x138   : > { %v2279_v16 = vpop.f32.mrb[0].mxu0 }
 0x139   : > { %v2349_v17 = vpop.f32.mrb[0].mxu1  ;;  %v2280_v18 = vpop.f32.mrb[1].mxu0 }
 0x13a   : > { %v2281_v19 = vadd.f32 %v2280_v18, %v2279_v16  ;;  %v2350_v20 = vpop.f32.mrb[1].mxu1  ;;  %v2282_v21 = vpop.f32.mrb[2].mxu0 }
 0x13b   : > { %v2351_v22 = vadd.f32 %v2350_v20, %v2349_v17  ;;  %v2352_v23 = vpop.f32.mrb[2].mxu1  ;;  %v2283_v24 = vpop.f32.mrb[3].mxu0 }
 0x13c   : > { %v2284_v25 = vadd.f32 %v2283_v24, %v2282_v21  ;;  %v2353_v26 = vpop.f32.mrb[3].mxu1 }
 0x13d   : > { %v3066_v27 = vadd.f32 %v2351_v22, %v2281_v19  ;;  %v2354_v28 = vadd.f32 %v2353_v26, %v2352_v23 }
 0x13f   : > { %v3068_v29 = vadd.f32 %v2354_v28, %v2284_v25 }
 0x140   : > { %v2285_v30 = vpop.f32.mrb[4].mxu0 }
 0x141   : > { %v2355_v31 = vpop.f32.mrb[4].mxu1  ;;  %v2286_v32 = vpop.f32.mrb[5].mxu0 }
 0x142   : > { %v2287_v33 = vadd.f32 %v2286_v32, %v2285_v30  ;;  %v2356_v34 = vpop.f32.mrb[5].mxu1  ;;  %v2288_v35 = vpop.f32.mrb[6].mxu0 }
 0x143   : > { %v2357_v36 = vadd.f32 %v2356_v34, %v2355_v31  ;;  %v2358_v37 = vpop.f32.mrb[6].mxu1  ;;  %v2289_v38 = vpop.f32.mrb[7].mxu0 }
 0x144   : > { %v2290_v39 = vadd.f32 %v2289_v38, %v2288_v35  ;;  %v2359_v40 = vpop.f32.mrb[7].mxu1 }
 0x145   : > { %v3070_v41 = vadd.f32 %v2357_v36, %v2287_v33  ;;  %v2360_v42 = vadd.f32 %v2359_v40, %v2358_v37 }
 0x147   : > { %v3072_v43 = vadd.f32 %v2360_v42, %v2290_v39 }
 0x148   : > { %v2291_v44 = vpop.f32.mrb[8].mxu0 }
 0x149   : > { %v2361_v45 = vpop.f32.mrb[8].mxu1  ;;  %v2292_v46 = vpop.f32.mrb[9].mxu0 }
 0x14a   : > { %v2293_v47 = vadd.f32 %v2292_v46, %v2291_v44  ;;  %v2362_v48 = vpop.f32.mrb[9].mxu1  ;;  %v2294_v49 = vpop.f32.mrb[10].mxu0 }
 0x14b   : > { %v2363_v50 = vadd.f32 %v2362_v48, %v2361_v45  ;;  %v2364_v51 = vpop.f32.mrb[10].mxu1  ;;  %v2295_v52 = vpop.f32.mrb[11].mxu0 }
 0x14c   : > { %v2296_v53 = vadd.f32 %v2295_v52, %v2294_v49  ;;  %v2365_v54 = vpop.f32.mrb[11].mxu1 }
 0x14d   : > { %v3074_v55 = vadd.f32 %v2363_v50, %v2293_v47  ;;  %v2366_v56 = vadd.f32 %v2365_v54, %v2364_v51 }
 0x14f   : > { %v3076_v57 = vadd.f32 %v2366_v56, %v2296_v53 }
 0x150   : > { %v2297_v58 = vpop.f32.mrb[12].mxu0 }
 0x151   : > { %v2367_v59 = vpop.f32.mrb[12].mxu1  ;;  %v2298_v60 = vpop.f32.mrb[13].mxu0 }
 0x152   : > { %v2299_v61 = vadd.f32 %v2298_v60, %v2297_v58  ;;  %v2368_v62 = vpop.f32.mrb[13].mxu1  ;;  %v2300_v63 = vpop.f32.mrb[14].mxu0 }
 0x153   : > { %v2369_v0 = vadd.f32 %v2368_v62, %v2367_v59  ;;  %v2370_v1 = vpop.f32.mrb[14].mxu1  ;;  %v2301_v2 = vpop.f32.mrb[15].mxu0 }
 0x154   : > { %v2302_v3 = vadd.f32 %v2301_v2, %v2300_v63  ;;  %v2371_v4 = vpop.f32.mrb[15].mxu1 }
 0x155   : > { %v3078_v5 = vadd.f32 %v2369_v0, %v2299_v61  ;;  %v2372_v6 = vadd.f32 %v2371_v4, %v2370_v1 }
 0x157   : > { %v3080_v7 = vadd.f32 %v2372_v6, %v2302_v3 }
 0x158   : > { %v2303_v8 = vpop.f32.mrb[16].mxu0 }
 0x159   : > { %v2373_v9 = vpop.f32.mrb[16].mxu1  ;;  %v2304_v10 = vpop.f32.mrb[17].mxu0 }
 0x15a   : > { %v2305_v11 = vadd.f32 %v2304_v10, %v2303_v8  ;;  %v2374_v12 = vpop.f32.mrb[17].mxu1  ;;  %v2306_v13 = vpop.f32.mrb[18].mxu0 }
 0x15b   : > { %v2375_v14 = vadd.f32 %v2374_v12, %v2373_v9  ;;  %v2376_v15 = vpop.f32.mrb[18].mxu1  ;;  %v2307_v16 = vpop.f32.mrb[19].mxu0 }
 0x15c   : > { %v2308_v17 = vadd.f32 %v2307_v16, %v2306_v13  ;;  %v2377_v18 = vpop.f32.mrb[19].mxu1 }
 0x15d   : > { %v3082_v19 = vadd.f32 %v2375_v14, %v2305_v11  ;;  %v2378_v20 = vadd.f32 %v2377_v18, %v2376_v15 }
 0x15f   : > { %v3084_v21 = vadd.f32 %v2378_v20, %v2308_v17 }
 0x160   : > { %v2309_v22 = vpop.f32.mrb[20].mxu0 }
 0x161   : > { %v2379_v23 = vpop.f32.mrb[20].mxu1  ;;  %v2310_v24 = vpop.f32.mrb[21].mxu0 }
 0x162   : > { %v2311_v25 = vadd.f32 %v2310_v24, %v2309_v22  ;;  %v2380_v26 = vpop.f32.mrb[21].mxu1  ;;  %v2312_v28 = vpop.f32.mrb[22].mxu0 }
 0x163   : > { %v2381_v30 = vadd.f32 %v2380_v26, %v2379_v23  ;;  %v2382_v31 = vpop.f32.mrb[22].mxu1  ;;  %v2313_v32 = vpop.f32.mrb[23].mxu0 }
 0x164   : > { %v2314_v33 = vadd.f32 %v2313_v32, %v2312_v28  ;;  %v2383_v34 = vpop.f32.mrb[23].mxu1 }
 0x165   : > { %v3086_v35 = vadd.f32 %v2381_v30, %v2311_v25  ;;  %v2384_v36 = vadd.f32 %v2383_v34, %v2382_v31 }
 0x167   : > { %v3088_v37 = vadd.f32 %v2384_v36, %v2314_v33 }
 0x168   : > { %v2315_v38 = vpop.f32.mrb[24].mxu0 }
 0x169   : > { %v2385_v39 = vpop.f32.mrb[24].mxu1  ;;  %v2316_v40 = vpop.f32.mrb[25].mxu0 }
 0x16a   : > { %v2317_v42 = vadd.f32 %v2316_v40, %v2315_v38  ;;  %v2386_v44 = vpop.f32.mrb[25].mxu1  ;;  %v2318_v45 = vpop.f32.mrb[26].mxu0 }
 0x16b   : > { %v2387_v46 = vadd.f32 %v2386_v44, %v2385_v39  ;;  %v2388_v47 = vpop.f32.mrb[26].mxu1  ;;  %v2319_v48 = vpop.f32.mrb[27].mxu0 }
 0x16c   : > { %v2320_v49 = vadd.f32 %v2319_v48, %v2318_v45  ;;  %v2389_v50 = vpop.f32.mrb[27].mxu1 }
 0x16d   : > { %v3090_v51 = vadd.f32 %v2387_v46, %v2317_v42  ;;  %v2390_v52 = vadd.f32 %v2389_v50, %v2388_v47 }
 0x16f   : > { %v3092_v53 = vadd.f32 %v2390_v52, %v2320_v49 }
 0x170   : > { %v2321_v54 = vpop.f32.mrb[28].mxu0 }
 0x171   : > { %v2391_v56 = vpop.f32.mrb[28].mxu1  ;;  %v2322_v58 = vpop.f32.mrb[29].mxu0 }
 0x172   : > { %v2323_v59 = vadd.f32 %v2322_v58, %v2321_v54  ;;  %v2392_v60 = vpop.f32.mrb[29].mxu1  ;;  %v2324_v61 = vpop.f32.mrb[30].mxu0 }
 0x173   : > { %v2393_v62 = vadd.f32 %v2392_v60, %v2391_v56  ;;  %v2394_v63 = vpop.f32.mrb[30].mxu1  ;;  %v2325_v0 = vpop.f32.mrb[31].mxu0 }
 0x174   : > { %v2326_v1 = vadd.f32 %v2325_v0, %v2324_v61  ;;  %v2395_v2 = vpop.f32.mrb[31].mxu1 }
 0x175   : > { %v3094_v3 = vadd.f32 %v2393_v62, %v2323_v59  ;;  %v2396_v4 = vadd.f32 %v2395_v2, %v2394_v63 }
 0x177   : > { %v3096_v6 = vadd.f32 %v2396_v4, %v2326_v1 }
 0x178   : > { %v2327_v8 = vpop.f32.mrb[32].mxu0 }
 0x179   : > { %v2397_v9 = vpop.f32.mrb[32].mxu1  ;;  %v2328_v10 = vpop.f32.mrb[33].mxu0 }
 0x17a   : > { %v2329_v11 = vadd.f32 %v2328_v10, %v2327_v8  ;;  %v2398_v12 = vpop.f32.mrb[33].mxu1  ;;  %v2330_v13 = vpop.f32.mrb[34].mxu0 }
 0x17b   : > { %v2399_v14 = vadd.f32 %v2398_v12, %v2397_v9  ;;  %v2400_v15 = vpop.f32.mrb[34].mxu1  ;;  %v2331_v16 = vpop.f32.mrb[35].mxu0 }
 0x17c   : > { %v2401_v17 = vpop.f32.mrb[35].mxu1 }
 0x17d   : > { %v3098_v18 = vadd.f32 %v2399_v14, %v2329_v11 }
 0x180   : > { %v2419_v20 = vpop.f32.mrb[36].mxu0 }
 0x181   : > { %v2489_v22 = vpop.f32.mrb[36].mxu1  ;;  %v2420_v23 = vpop.f32.mrb[37].mxu0 }
 0x182   : > { %v2421_v24 = vadd.f32 %v2420_v23, %v2419_v20  ;;  %v2490_v25 = vpop.f32.mrb[37].mxu1  ;;  %v2422_v26 = vpop.f32.mrb[38].mxu0 }
 0x183   : > { %v2491_v28 = vadd.f32 %v2490_v25, %v2489_v22  ;;  %v2492_v30 = vpop.f32.mrb[38].mxu1  ;;  %v2423_v31 = vpop.f32.mrb[39].mxu0 }
 0x184   : > { %v1639_v32 = vadd.f32 %v2421_v24, %v3066_v27  ;;  %v2424_v33 = vadd.f32 %v2423_v31, %v2422_v26  ;;  %v2493_v34 = vpop.f32.mrb[39].mxu1 }
 0x185   : > { %v2494_v36 = vadd.f32 %v2493_v34, %v2492_v30 }
 0x186   : > { %v3101_v38 = vadd.f32 %v2491_v28, %v1639_v32  ;;  %v1642_v39 = vadd.f32 %v2424_v33, %v3068_v29 }
 0x188   : > { %v3104_v40 = vadd.f32 %v2494_v36, %v1642_v39  ;;  %v2425_v42 = vpop.f32.mrb[40].mxu0 }
 0x189   : > { %v2495_v44 = vpop.f32.mrb[40].mxu1  ;;  %v2426_v45 = vpop.f32.mrb[41].mxu0 }
 0x18a   : > { %v2427_v46 = vadd.f32 %v2426_v45, %v2425_v42  ;;  %v2496_v47 = vpop.f32.mrb[41].mxu1  ;;  %v2428_v48 = vpop.f32.mrb[42].mxu0 }
 0x18b   : > { %v2497_v49 = vadd.f32 %v2496_v47, %v2495_v44  ;;  %v2498_v50 = vpop.f32.mrb[42].mxu1  ;;  %v2429_v52 = vpop.f32.mrb[43].mxu0 }
 0x18c   : > { %v1647_v27 = vadd.f32 %v2427_v46, %v3070_v41  ;;  %v2430_v54 = vadd.f32 %v2429_v52, %v2428_v48  ;;  %v2499_v56 = vpop.f32.mrb[43].mxu1 }
 0x18d   : > { %v2500_v58 = vadd.f32 %v2499_v56, %v2498_v50 }
 0x18e   : > { %v3107_v59 = vadd.f32 %v2497_v49, %v1647_v27  ;;  %v1650_v29 = vadd.f32 %v2430_v54, %v3072_v43 }
 0x190   : > { %v3110_v60 = vadd.f32 %v2500_v58, %v1650_v29  ;;  %v2431_v61 = vpop.f32.mrb[44].mxu0 }
 0x191   : > { %v2501_v62 = vpop.f32.mrb[44].mxu1  ;;  %v2432_v63 = vpop.f32.mrb[45].mxu0 }
 0x192   : > { %v2433_v0 = vadd.f32 %v2432_v63, %v2431_v61  ;;  %v2502_v1 = vpop.f32.mrb[45].mxu1  ;;  %v2434_v2 = vpop.f32.mrb[46].mxu0 }
 0x193   : > { %v2503_v4 = vadd.f32 %v2502_v1, %v2501_v62  ;;  %v2504_v8 = vpop.f32.mrb[46].mxu1  ;;  %v2435_v9 = vpop.f32.mrb[47].mxu0 }
 0x194   : > { %v1655_v41 = vadd.f32 %v2433_v0, %v3074_v55  ;;  %v2436_v10 = vadd.f32 %v2435_v9, %v2434_v2  ;;  %v2505_v11 = vpop.f32.mrb[47].mxu1 }
 0x195   : > { %v2506_v12 = vadd.f32 %v2505_v11, %v2504_v8 }
 0x196   : > { %v3113_v13 = vadd.f32 %v2503_v4, %v1655_v41  ;;  %v1658_v43 = vadd.f32 %v2436_v10, %v3076_v57 }
 0x198   : > { %v3116_v14 = vadd.f32 %v2506_v12, %v1658_v43  ;;  %v2437_v15 = vpop.f32.mrb[48].mxu0 }
 0x199   : > { %v2507_v16 = vpop.f32.mrb[48].mxu1  ;;  %v2438_v17 = vpop.f32.mrb[49].mxu0 }
 0x19a   : > { %v2439_v20 = vadd.f32 %v2438_v17, %v2437_v15  ;;  %v2508_v22 = vpop.f32.mrb[49].mxu1  ;;  %v2440_v23 = vpop.f32.mrb[50].mxu0 }
 0x19b   : > { %v2509_v24 = vadd.f32 %v2508_v22, %v2507_v16  ;;  %v2510_v25 = vpop.f32.mrb[50].mxu1  ;;  %v2441_v26 = vpop.f32.mrb[51].mxu0 }
 0x19c   : > { %v1663_v55 = vadd.f32 %v2439_v20, %v3078_v5  ;;  %v2442_v28 = vadd.f32 %v2441_v26, %v2440_v23  ;;  %v2511_v30 = vpop.f32.mrb[51].mxu1 }
 0x19d   : > { %v2512_v31 = vadd.f32 %v2511_v30, %v2510_v25 }
 0x19e   : > { %v3119_v32 = vadd.f32 %v2509_v24, %v1663_v55  ;;  %v1666_v57 = vadd.f32 %v2442_v28, %v3080_v7 }
 0x1a0   : > { %v3122_v33 = vadd.f32 %v2512_v31, %v1666_v57  ;;  %v2443_v34 = vpop.f32.mrb[52].mxu0 }
 0x1a1   : > { %v2513_v36 = vpop.f32.mrb[52].mxu1  ;;  %v2444_v39 = vpop.f32.mrb[53].mxu0 }
 0x1a2   : > { %v2445_v42 = vadd.f32 %v2444_v39, %v2443_v34  ;;  %v2514_v44 = vpop.f32.mrb[53].mxu1  ;;  %v2446_v45 = vpop.f32.mrb[54].mxu0 }
 0x1a3   : > { %v2515_v46 = vadd.f32 %v2514_v44, %v2513_v36  ;;  %v2516_v47 = vpop.f32.mrb[54].mxu1  ;;  %v2447_v48 = vpop.f32.mrb[55].mxu0 }
 0x1a4   : > { %v1671_v5 = vadd.f32 %v2445_v42, %v3082_v19  ;;  %v2448_v49 = vadd.f32 %v2447_v48, %v2446_v45  ;;  %v2517_v50 = vpop.f32.mrb[55].mxu1 }
 0x1a5   : > { %v2518_v52 = vadd.f32 %v2517_v50, %v2516_v47 }
 0x1a6   : > { %v3125_v27 = vadd.f32 %v2515_v46, %v1671_v5  ;;  %v1674_v7 = vadd.f32 %v2448_v49, %v3084_v21 }
 0x1a8   : > { %v3128_v54 = vadd.f32 %v2518_v52, %v1674_v7  ;;  %v2449_v56 = vpop.f32.mrb[56].mxu0 }
 0x1a9   : > { %v2519_v58 = vpop.f32.mrb[56].mxu1  ;;  %v2450_v29 = vpop.f32.mrb[57].mxu0 }
 0x1aa   : > { %v2451_v61 = vadd.f32 %v2450_v29, %v2449_v56  ;;  %v2520_v62 = vpop.f32.mrb[57].mxu1  ;;  %v2452_v63 = vpop.f32.mrb[58].mxu0 }
 0x1ab   : > { %v2521_v0 = vadd.f32 %v2520_v62, %v2519_v58  ;;  %v2522_v1 = vpop.f32.mrb[58].mxu1  ;;  %v2453_v2 = vpop.f32.mrb[59].mxu0 }
 0x1ac   : > { %v1679_v19 = vadd.f32 %v2451_v61, %v3086_v35  ;;  %v2454_v4 = vadd.f32 %v2453_v2, %v2452_v63  ;;  %v2523_v8 = vpop.f32.mrb[59].mxu1 }
 0x1ad   : > { %v2524_v9 = vadd.f32 %v2523_v8, %v2522_v1 }
 0x1ae   : > { %v3131_v41 = vadd.f32 %v2521_v0, %v1679_v19  ;;  %v1682_v21 = vadd.f32 %v2454_v4, %v3088_v37 }
 0x1b0   : > { %v3134_v10 = vadd.f32 %v2524_v9, %v1682_v21  ;;  %v2455_v11 = vpop.f32.mrb[60].mxu0 }
 0x1b1   : > { %v2525_v12 = vpop.f32.mrb[60].mxu1  ;;  %v2456_v43 = vpop.f32.mrb[61].mxu0 }
 0x1b2   : > { %v2457_v15 = vadd.f32 %v2456_v43, %v2455_v11  ;;  %v2526_v16 = vpop.f32.mrb[61].mxu1  ;;  %v2458_v17 = vpop.f32.mrb[62].mxu0 }
 0x1b3   : > { %v2527_v20 = vadd.f32 %v2526_v16, %v2525_v12  ;;  %v2528_v22 = vpop.f32.mrb[62].mxu1  ;;  %v2459_v23 = vpop.f32.mrb[63].mxu0 }
 0x1b4   : > { %v1687_v35 = vadd.f32 %v2457_v15, %v3090_v51  ;;  %v2460_v24 = vadd.f32 %v2459_v23, %v2458_v17  ;;  %v2529_v25 = vpop.f32.mrb[63].mxu1 }
 0x1b5   : > { %v2530_v26 = vadd.f32 %v2529_v25, %v2528_v22 }
 0x1b6   : > { %v3137_v55 = vadd.f32 %v2527_v20, %v1687_v35  ;;  %v1690_v37 = vadd.f32 %v2460_v24, %v3092_v53 }
 0x1b8   : > { %v3140_v28 = vadd.f32 %v2530_v26, %v1690_v37  ;;  %v2461_v30 = vpop.f32.mrb[64].mxu0 }
 0x1b9   : > { %v2531_v31 = vpop.f32.mrb[64].mxu1  ;;  %v2462_v57 = vpop.f32.mrb[65].mxu0 }
 0x1ba   : > { %v2463_v34 = vadd.f32 %v2462_v57, %v2461_v30  ;;  %v2532_v36 = vpop.f32.mrb[65].mxu1  ;;  %v2464_v39 = vpop.f32.mrb[66].mxu0 }
 0x1bb   : > { %v2533_v42 = vadd.f32 %v2532_v36, %v2531_v31  ;;  %v2534_v44 = vpop.f32.mrb[66].mxu1  ;;  %v2465_v45 = vpop.f32.mrb[67].mxu0 }
 0x1bc   : > { %v1695_v51 = vadd.f32 %v2463_v34, %v3094_v3  ;;  %v2466_v46 = vadd.f32 %v2465_v45, %v2464_v39  ;;  %v2535_v47 = vpop.f32.mrb[67].mxu1 }
 0x1bd   : > { %v2536_v48 = vadd.f32 %v2535_v47, %v2534_v44 }
 0x1be   : > { %v3143_v5 = vadd.f32 %v2533_v42, %v1695_v51  ;;  %v1698_v53 = vadd.f32 %v2466_v46, %v3096_v6  ;;  %v2698_v6 = vmov (!%p2255_p10), 0.0  }
 0x1bf   : > { %1816 = vst [vmem:[#allocation2] sm:$0xff] (!%p2255_p10), %v2698_v6  ;;  %1817 = vst [vmem:[#allocation2 + $0x8] sm:$0xff] (!%p2255_p10), %v2698_v6 }
 0x1c0   : > { %v3146_v49 = vadd.f32 %v2536_v48, %v1698_v53  ;;  %v2467_v50 = vpop.f32.mrb[68].mxu0  ;;  %1815 = sbr.rel (%p2255_p10) target bundleno = 456 (0x1c8), region = 63  ;;  %1818 = vst [vmem:[#allocation2 + $0x10] sm:$0xff] (!%p2255_p10), %v2698_v6  ;;  %1819 = vst [vmem:[#allocation2 + $0x18] sm:$0xff] (!%p2255_p10), %v2698_v6 }
 0x1c1   : > { %v2537_v52 = vpop.f32.mrb[68].mxu1  ;;  %v2468_v7 = vpop.f32.mrb[69].mxu0  ;;  %1820 = vst [vmem:[#allocation2 + $0x20] sm:$0xff] (!%p2255_p10), %v2698_v6  ;;  %1821 = vst [vmem:[#allocation2 + $0x28] sm:$0xff] (!%p2255_p10), %v2698_v6 }
 0x1c2   : > { %v2469_v56 = vadd.f32 %v2468_v7, %v2467_v50  ;;  %v2538_v58 = vpop.f32.mrb[69].mxu1  ;;  %v2470_v29 = vpop.f32.mrb[70].mxu0  ;;  %1822 = vst [vmem:[#allocation2 + $0x30] sm:$0xff] (!%p2255_p10), %v2698_v6  ;;  %1823 = vst [vmem:[#allocation2 + $0x38] sm:$0xff] (!%p2255_p10), %v2698_v6 }
 0x1c3   : > { %v2539_v61 = vadd.f32 %v2538_v58, %v2537_v52  ;;  %v2540_v62 = vpop.f32.mrb[70].mxu1  ;;  %v2471_v63 = vpop.f32.mrb[71].mxu0  ;;  %1824 = vst [vmem:[#allocation2 + $0x40] sm:$0xff] (!%p2255_p10), %v2698_v6  ;;  %1825 = vst [vmem:[#allocation2 + $0x48] sm:$0xff] (!%p2255_p10), %v2698_v6 }
 0x1c4   : > { %v1703_v3 = vadd.f32 %v2469_v56, %v3098_v18  ;;  %v2541_v0 = vpop.f32.mrb[71].mxu1  ;;  %1826 = vst [vmem:[#allocation2 + $0x50] sm:$0xff] (!%p2255_p10), %v2698_v6  ;;  %1827 = vst [vmem:[#allocation2 + $0x58] sm:$0xff] (!%p2255_p10), %v2698_v6 }
 0x1c5   : > { %1828 = vst [vmem:[#allocation2 + $0x60] sm:$0xff] (!%p2255_p10), %v2698_v6  ;;  %1829 = vst [vmem:[#allocation2 + $0x68] sm:$0xff] (!%p2255_p10), %v2698_v6 }
 0x1c6   : > { %v3149_v1 = vadd.f32 %v2539_v61, %v1703_v3  ;;  %1830 = vst [vmem:[#allocation2 + $0x70] sm:$0xff] (!%p2255_p10), %v2698_v6  ;;  %1831 = vst [vmem:[#allocation2 + $0x78] sm:$0xff] (!%p2255_p10), %v2698_v6 }
 0x1c7   : > { %1832 = vst [vmem:[#allocation2 + $0x80] sm:$0xf] %v2698_v6 }
 0x1c8 PF: > { %v1833_v18 = vld [vmem:[#allocation2] sm:$0xff]  ;;  %v1834_v2 = vld [vmem:[#allocation2 + $0x8] sm:$0xff]  ;;  %v1835_v19 = vld [vmem:[#allocation2 + $0x10] sm:$0xff]  ;;  %p2256_p11 = scmp.ne.s32.totalorder %s2688_s17, 1 }
 0x1c9   : > { %v1850_v4 = vadd.f32 %v1833_v18, %v3101_v38  ;;  %v1851_v8 = vadd.f32 %v1834_v2, %v3104_v40  ;;  %v1852_v9 = vadd.f32 %v1835_v19, %v3107_v59  ;;  %v1836_v21 = vld [vmem:[#allocation2 + $0x18] sm:$0xff]  ;;  %v1837_v11 = vld [vmem:[#allocation2 + $0x20] sm:$0xff]  ;;  %v1838_v12 = vld [vmem:[#allocation2 + $0x28] sm:$0xff] }
 0x1ca   : > { %v1853_v43 = vadd.f32 %v1836_v21, %v3110_v60  ;;  %v1854_v15 = vadd.f32 %v1837_v11, %v3113_v13  ;;  %v1855_v16 = vadd.f32 %v1838_v12, %v3116_v14  ;;  %v1839_v17 = vld [vmem:[#allocation2 + $0x30] sm:$0xff]  ;;  %v1840_v20 = vld [vmem:[#allocation2 + $0x38] sm:$0xff]  ;;  %v1930_v36 = vld [vmem:[%s3312_s3 + $0x8] sm:$0xff] (!%p2256_p11) }
 0x1cb   : > { %v1841_v22 = vld [vmem:[#allocation2 + $0x40] sm:$0xff]  ;;  %1867 = vst [vmem:[#allocation2] sm:$0xff] %v1850_v4  ;;  %1868 = vst [vmem:[#allocation2 + $0x8] sm:$0xff] %v1851_v8  ;;  %v1856_v38 = vadd.f32 %v1839_v17, %v3119_v32  ;;  %v1857_v40 = vadd.f32 %v1840_v20, %v3122_v33  ;;  %v1842_v23 = vld [vmem:[#allocation2 + $0x48] sm:$0xff] }
 0x1cc   : > { %1869 = vst [vmem:[#allocation2 + $0x10] sm:$0xff] %v1852_v9  ;;  %v1858_v59 = vadd.f32 %v1841_v22, %v3125_v27  ;;  %v1843_v35 = vld [vmem:[#allocation2 + $0x50] sm:$0xff]  ;;  %v1844_v24 = vld [vmem:[#allocation2 + $0x58] sm:$0xff]  ;;  %1870 = vst [vmem:[#allocation2 + $0x18] sm:$0xff] %v1853_v43  ;;  %v1859_v60 = vadd.f32 %v1842_v23, %v3128_v54 }
 0x1cd   : > { %1871 = vst [vmem:[#allocation2 + $0x20] sm:$0xff] %v1854_v15  ;;  %1872 = vst [vmem:[#allocation2 + $0x28] sm:$0xff] %v1855_v16  ;;  %v1860_v13 = vadd.f32 %v1843_v35, %v3131_v41  ;;  %v1861_v14 = vadd.f32 %v1844_v24, %v3134_v10  ;;  %v1845_v25 = vld [vmem:[#allocation2 + $0x60] sm:$0xff]  ;;  %v1846_v26 = vld [vmem:[#allocation2 + $0x68] sm:$0xff]  ;;  %1887 = sbr.rel (%p2256_p11) target bundleno = 482 (0x1e2), region = 67 }
 0x1ce   : > { %v1847_v37 = vld [vmem:[#allocation2 + $0x70] sm:$0xff]  ;;  %1873 = vst [vmem:[#allocation2 + $0x30] sm:$0xff] %v1856_v38  ;;  %1874 = vst [vmem:[#allocation2 + $0x38] sm:$0xff] %v1857_v40  ;;  %v1862_v32 = vadd.f32 %v1845_v25, %v3137_v55  ;;  %v1863_v33 = vadd.f32 %v1846_v26, %v3140_v28  ;;  %v1848_v30 = vld [vmem:[#allocation2 + $0x78] sm:$0xff] }
 0x1cf   : > { %1875 = vst [vmem:[#allocation2 + $0x40] sm:$0xff] %v1858_v59  ;;  %v1864_v27 = vadd.f32 %v1847_v37, %v3143_v5  ;;  %v1849_v31 = vld [vmem:[#allocation2 + $0x80] sm:$0xf]  ;;  %1876 = vst [vmem:[#allocation2 + $0x48] sm:$0xff] %v1859_v60  ;;  %v1865_v54 = vadd.f32 %v1848_v30, %v3146_v49  ;;  %v1931_v45 = vld [vmem:[%s3312_s3 + $0x10] sm:$0xff] (!%p2256_p11) }
 0x1d0   : > { %1877 = vst [vmem:[#allocation2 + $0x50] sm:$0xff] %v1860_v13  ;;  %1878 = vst [vmem:[#allocation2 + $0x58] sm:$0xff] %v1861_v14  ;;  %v1866_v41 = vadd.f32 %v1849_v31, %v3149_v1  ;;  %v3173_v55 = vld [vmem:[%s3311_s2] ss:$0 sm:$0xff] (!%p2256_p11)  ;;  %v1932_v46 = vld [vmem:[%s3312_s3 + $0x18] sm:$0xff] (!%p2256_p11) }
 0x1d1   : > { %1879 = vst [vmem:[#allocation2 + $0x60] sm:$0xff] %v1862_v32  ;;  %1880 = vst [vmem:[#allocation2 + $0x68] sm:$0xff] %v1863_v33  ;;  %v1929_v28 = vld [vmem:[%s3312_s3] sm:$0xff] (!%p2256_p11)  ;;  %v1934_v58 = vld [vmem:[%s3312_s3 + $0x28] sm:$0xff] (!%p2256_p11) }
 0x1d2   : > { %1881 = vst [vmem:[#allocation2 + $0x70] sm:$0xff] %v1864_v27  ;;  %1882 = vst [vmem:[#allocation2 + $0x78] sm:$0xff] %v1865_v54  ;;  %v1888_v10 = vld [vmem:[#allocation2] sm:$0xff] (!%p2256_p11)  ;;  %v1889_v34 = vld [vmem:[#allocation2 + $0x8] sm:$0xff] (!%p2256_p11) }
 0x1d3   : > { %1883 = vst [vmem:[#allocation2 + $0x80] sm:$0xf] %v1866_v41  ;;  %v1912_v57 = vadd.f32 (!%p2256_p11), %v3173_v55, %v1888_v10  ;;  %v1890_v39 = vld [vmem:[#allocation2 + $0x10] sm:$0xff] (!%p2256_p11)  ;;  %v1913_v42 = vadd.f32 (!%p2256_p11), %v3173_v55, %v1889_v34  ;;  %v1891_v51 = vld [vmem:[#allocation2 + $0x18] sm:$0xff] (!%p2256_p11)  ;;  %v1933_v53 = vld [vmem:[%s3312_s3 + $0x20] sm:$0xff] (!%p2256_p11) }
 0x1d4   : > { %v1914_v44 = vadd.f32 %v3173_v55, %v1890_v39  ;;  %v1915_v48 = vadd.f32 %v3173_v55, %v1891_v51  ;;  %v1892_v5 = vld [vmem:[#allocation2 + $0x20] sm:$0xff]  ;;  %v1893_v49 = vld [vmem:[#allocation2 + $0x28] sm:$0xff]  ;;  %v1935_v61 = vld [vmem:[%s3312_s3 + $0x30] sm:$0xff] }
 0x1d5   : > { %v1946_v47 = vadd.f32 %v1929_v28, %v1912_v57  ;;  %v1947_v50 = vadd.f32 %v1930_v36, %v1913_v42  ;;  %v1916_v7 = vadd.f32 %v3173_v55, %v1892_v5  ;;  %v1917_v56 = vadd.f32 %v3173_v55, %v1893_v49  ;;  %v1894_v29 = vld [vmem:[#allocation2 + $0x30] sm:$0xff]  ;;  %v1895_v3 = vld [vmem:[#allocation2 + $0x38] sm:$0xff]  ;;  %v1937_v4 = vld [vmem:[%s3312_s3 + $0x40] sm:$0xff] }
 0x1d6   : > { %v1948_v52 = vadd.f32 %v1931_v45, %v1914_v44  ;;  %v1949_v62 = vadd.f32 %v1932_v46, %v1915_v48  ;;  %v1918_v63 = vadd.f32 %v3173_v55, %v1894_v29  ;;  %v1936_v0 = vld [vmem:[%s3312_s3 + $0x38] sm:$0xff]  ;;  %v1896_v1 = vld [vmem:[#allocation2 + $0x40] sm:$0xff]  ;;  %v1919_v2 = vadd.f32 %v3173_v55, %v1895_v3  ;;  %v1897_v8 = vld [vmem:[#allocation2 + $0x48] sm:$0xff] }
 0x1d7   : > { %1963 = vst [vmem:[%s3313_s4] sm:$0xff] %v1946_v47  ;;  %1964 = vst [vmem:[%s3313_s4 + $0x8] sm:$0xff] %v1947_v50  ;;  %v1950_v6 = vadd.f32 %v1933_v53, %v1916_v7  ;;  %v1951_v18 = vadd.f32 %v1934_v58, %v1917_v56  ;;  %v1920_v19 = vadd.f32 %v3173_v55, %v1896_v1  ;;  %v1938_v9 = vld [vmem:[%s3312_s3 + $0x48] sm:$0xff]  ;;  %v1898_v12 = vld [vmem:[#allocation2 + $0x50] sm:$0xff] }
 0x1d8   : > { %1965 = vst [vmem:[%s3313_s4 + $0x10] sm:$0xff] %v1948_v52  ;;  %1966 = vst [vmem:[%s3313_s4 + $0x18] sm:$0xff] %v1949_v62  ;;  %v1952_v21 = vadd.f32 %v1935_v61, %v1918_v63  ;;  %v1921_v11 = vadd.f32 %v3173_v55, %v1897_v8  ;;  %v1939_v43 = vld [vmem:[%s3312_s3 + $0x50] sm:$0xff]  ;;  %v1899_v15 = vld [vmem:[#allocation2 + $0x58] sm:$0xff]  ;;  %v1953_v16 = vadd.f32 %v1936_v0, %v1919_v2 }
 0x1d9   : > { %1967 = vst [vmem:[%s3313_s4 + $0x20] sm:$0xff] %v1950_v6  ;;  %1968 = vst [vmem:[%s3313_s4 + $0x28] sm:$0xff] %v1951_v18  ;;  %v1954_v17 = vadd.f32 %v1937_v4, %v1920_v19  ;;  %v1922_v20 = vadd.f32 %v3173_v55, %v1898_v12  ;;  %v1923_v22 = vadd.f32 %v3173_v55, %v1899_v15  ;;  %v1940_v38 = vld [vmem:[%s3312_s3 + $0x58] sm:$0xff]  ;;  %v1900_v40 = vld [vmem:[#allocation2 + $0x60] sm:$0xff] }
 0x1da   : > { %v1941_v59 = vld [vmem:[%s3312_s3 + $0x60] sm:$0xff]  ;;  %1969 = vst [vmem:[%s3313_s4 + $0x30] sm:$0xff] %v1952_v21  ;;  %v1955_v23 = vadd.f32 %v1938_v9, %v1921_v11  ;;  %v1924_v35 = vadd.f32 %v3173_v55, %v1900_v40  ;;  %v1901_v24 = vld [vmem:[#allocation2 + $0x68] sm:$0xff]  ;;  %v1902_v13 = vld [vmem:[#allocation2 + $0x70] sm:$0xff] }
 0x1db   : > { %v1942_v60 = vld [vmem:[%s3312_s3 + $0x68] sm:$0xff]  ;;  %1970 = vst [vmem:[%s3313_s4 + $0x38] sm:$0xff] %v1953_v16  ;;  %1971 = vst [vmem:[%s3313_s4 + $0x40] sm:$0xff] %v1954_v17  ;;  %v1956_v14 = vadd.f32 %v1939_v43, %v1922_v20  ;;  %v1957_v25 = vadd.f32 %v1940_v38, %v1923_v22  ;;  %v1925_v26 = vadd.f32 %v3173_v55, %v1901_v24  ;;  %v1943_v32 = vld [vmem:[%s3312_s3 + $0x70] sm:$0xff] }
 0x1dc   : > { %v1926_v37 = vadd.f32 %v3173_v55, %v1902_v13  ;;  %v1903_v33 = vld [vmem:[#allocation2 + $0x78] sm:$0xff]  ;;  %1972 = vst [vmem:[%s3313_s4 + $0x48] sm:$0xff] %v1955_v23  ;;  %v1958_v30 = vadd.f32 %v1941_v59, %v1924_v35  ;;  %v1904_v54 = vld [vmem:[#allocation2 + $0x80] sm:$0xf] }
 0x1dd   : > { %v1944_v27 = vld [vmem:[%s3312_s3 + $0x78] sm:$0xff]  ;;  %v1927_v31 = vadd.f32 %v3173_v55, %v1903_v33  ;;  %v1945_v41 = vld [vmem:[%s3312_s3 + $0x80] sm:$0xf]  ;;  %1973 = vst [vmem:[%s3313_s4 + $0x50] sm:$0xff] %v1956_v14  ;;  %1974 = vst [vmem:[%s3313_s4 + $0x58] sm:$0xff] %v1957_v25  ;;  %v1959_v10 = vadd.f32 %v1942_v60, %v1925_v26  ;;  %v1928_v57 = vadd.f32 %v3173_v55, %v1904_v54 }
 0x1de   : > { %v1960_v28 = vadd.f32 %v1943_v32, %v1926_v37  ;;  %1975 = vst [vmem:[%s3313_s4 + $0x60] sm:$0xff] %v1958_v30 }
 0x1df   : > { %v1961_v34 = vadd.f32 %v1944_v27, %v1927_v31  ;;  %1976 = vst [vmem:[%s3313_s4 + $0x68] sm:$0xff] %v1959_v10  ;;  %v1962_v36 = vadd.f32 %v1945_v41, %v1928_v57 }
 0x1e0   : > { %1977 = vst [vmem:[%s3313_s4 + $0x70] sm:$0xff] %v1960_v28 }
 0x1e1   : > { %1978 = vst [vmem:[%s3313_s4 + $0x78] sm:$0xff] %v1961_v34  ;;  %1979 = vst [vmem:[%s3313_s4 + $0x80] sm:$0xf] %v1962_v36 }
 0x1e2 PF: > { %s14_s19 = sadd.s32 1, %s2696_s19   ;;  %s3314_s15 = smov %s2684_s16 }
 0x1e3   : > { %p11_p12 = scmp.ge.s32.totalorder %s14_s19, 4   ;;  %s3315_s16 = smov %s2759_s23 }
 0x1e4   : > { %s3316_s17 = smov %s2692_s18  ;;  %s3317_s18 = smov %s3319_s20 }
 0x1e5   :  { %13 = sbr.rel (!%p11_p12) target bundleno = 3 (0x3), region = 111 }

// kernel: ofa_vit_forward.32
= control target key start
LH: loop header
LB: loop body
LE: loop exit
PB: predicated region body
PF: predicated region fallthrough
CT: control target
= control target key end

     0   :  { %v174_v0 = vmov 0.0   ;;  %vm175_vm0 = vmmov 0   ;;  %s229_s1 = inlined_call_operand.vmem [shape: bf16[128,128], index: 1, kind: input, shape index: {}]   ;;  %s230_s0 = inlined_call_operand.vmem [shape: f32[1,128], index: 0, kind: input, shape index: {}]   ;;  %s231_s2 = inlined_call_operand.vmem [shape: f32[1,128], index: 2, kind: input, shape index: {}]   ;;  %s232_s3 = inlined_call_operand.vmem [shape: f32[1,128], index: 3, kind: output, shape index: {}]  }
   0x1   :  { %144 = vmatprep.subr.bf16.mxu0 %v174_v0  ;;  %v166_v1 = vld [vmem:[%s229_s1] sm:$0xff]   ;;  %160 = vmatprep.mubr.msk.bf16.mxu0 %vm175_vm0, %v174_v0  ;;  %v167_v2 = vld [vmem:[%s229_s1 + $0x8] sm:$0xff]   ;;  %v168_v3 = vld [vmem:[%s229_s1 + $0x10] sm:$0xff]  }
   0x2   :  { %145 = vmatpush3.bf16.msra.mxu0 %v166_v1  ;;  %v169_v4 = vld [vmem:[%s229_s1 + $0x18] sm:$0xff]   ;;  %v170_v5 = vld [vmem:[%s229_s1 + $0x20] sm:$0xff]   ;;  %v171_v6 = vld [vmem:[%s229_s1 + $0x28] sm:$0xff]  }
   0x3   :  { %146 = vmatprep.subr.bf16.mxu0 %v174_v0  ;;  %v172_v7 = vld [vmem:[%s229_s1 + $0x30] sm:$0xff]   ;;  %v173_v8 = vld [vmem:[%s229_s1 + $0x38] sm:$0xff]   ;;  %v15_v9 = vld [vmem:[%s230_s0] sm:$0x1] }
   0x4   :  { %v16_v10 = vpack.c.bf16 %v15_v9, %v15_v9  ;;  %v33_v11 = vld [vmem:[%s231_s2] sm:$0x1] }
   0x6   :  { %147 = vmatpush3.bf16.msra.mxu0 %v167_v2 }
   0x7   :  { %148 = vmatprep.subr.bf16.mxu0 %v174_v0 }
   0xa   :  { %149 = vmatpush3.bf16.msra.mxu0 %v168_v3 }
   0xb   :  { %150 = vmatprep.subr.bf16.mxu0 %v174_v0 }
   0xe   :  { %151 = vmatpush3.bf16.msra.mxu0 %v169_v4 }
   0xf   :  { %152 = vmatprep.subr.bf16.mxu0 %v174_v0 }
  0x12   :  { %153 = vmatpush3.bf16.msra.mxu0 %v170_v5 }
  0x13   :  { %154 = vmatprep.subr.bf16.mxu0 %v174_v0 }
  0x16   :  { %155 = vmatpush3.bf16.msra.mxu0 %v171_v6 }
  0x17   :  { %156 = vmatprep.subr.bf16.mxu0 %v174_v0 }
  0x1a   :  { %157 = vmatpush3.bf16.msra.mxu0 %v172_v7 }
  0x1b   :  { %158 = vmatprep.subr.bf16.mxu0 %v174_v0 }
  0x1e   :  { %159 = vmatpush3.bf16.msra.mxu0 %v173_v8 }
  0x21   :  { %161 = vmatmul.mubr.bf16.vlgmr.msra.gmra.mrb[0].mxu0 %v16_v10 }
  0xf4   :  { %v116_v12 = vpop.f32.mrb[0].mxu0 }
  0xf5   :  { %v117_v13 = vadd.f32 %v116_v12, %v33_v11  ;;  %v162_v14 = vpop.f32.mrb[1].mxu0 }
  0xf6   :  { %v119_v15 = vpop.f32.mrb[2].mxu0 }
  0xf7   :  { %122 = vst [vmem:[%s232_s3] sm:$0x1] %v117_v13  ;;  %v163_v16 = vpop.f32.mrb[3].mxu0 }

// kernel: ofa_vit_forward.33
= control target key start
LH: loop header
LB: loop body
LE: loop exit
PB: predicated region body
PF: predicated region fallthrough
CT: control target
= control target key end

     0   :  { %s909_s1 = inlined_call_operand.vmem [shape: bf16[768,128], index: 1, kind: input, shape index: {}]   ;;  %s910_s0 = inlined_call_operand.vmem [shape: bf16[8,768], index: 0, kind: input, shape index: {}]   ;;  %s911_s2 = inlined_call_operand.vmem [shape: f32[1,128], index: 2, kind: input, shape index: {}]   ;;  %s912_s3 = inlined_call_operand.vmem [shape: f32[8,128], index: 3, kind: output, shape index: {}]  }
   0x1   :  { %v676_v0 = vld [vmem:[%s909_s1 + $0x40] sm:$0xff]   ;;  %v680_v4 = vld [vmem:[%s909_s1 + $0x48] sm:$0xff]   ;;  %v684_v8 = vld [vmem:[%s909_s1 + $0x50] sm:$0xff]  }
   0x2   :  { %v677_v1 = vld [vmem:[%s909_s1] sm:$0xff]   ;;  %610 = vmatprep.subr.bf16.mxu0 %v676_v0  ;;  %v681_v5 = vld [vmem:[%s909_s1 + $0x8] sm:$0xff]   ;;  %v685_v9 = vld [vmem:[%s909_s1 + $0x10] sm:$0xff]  }
   0x3   :  { %v678_v2 = vld [vmem:[%s909_s1 + $0xc0] sm:$0xff]   ;;  %611 = vmatpush3.bf16.msra.mxu0 %v677_v1  ;;  %v682_v6 = vld [vmem:[%s909_s1 + $0xc8] sm:$0xff]   ;;  %v686_v10 = vld [vmem:[%s909_s1 + $0xd0] sm:$0xff]  }
   0x4   :  { %v679_v3 = vld [vmem:[%s909_s1 + $0x80] sm:$0xff]   ;;  %632 = vmatprep.subr.bf16.mxu1 %v678_v2  ;;  %612 = vmatprep.subr.bf16.mxu0 %v680_v4  ;;  %v683_v7 = vld [vmem:[%s909_s1 + $0x88] sm:$0xff]   ;;  %v687_v11 = vld [vmem:[%s909_s1 + $0x90] sm:$0xff]  }
   0x5   :  { %633 = vmatpush3.bf16.msra.mxu1 %v679_v3  ;;  %v688_v12 = vld [vmem:[%s909_s1 + $0x58] sm:$0xff]   ;;  %v692_v16 = vld [vmem:[%s909_s1 + $0x60] sm:$0xff]   ;;  %v696_v20 = vld [vmem:[%s909_s1 + $0x68] sm:$0xff]  }
   0x6   :  { %634 = vmatprep.subr.bf16.mxu1 %v682_v6  ;;  %v689_v13 = vld [vmem:[%s909_s1 + $0x18] sm:$0xff]   ;;  %v693_v17 = vld [vmem:[%s909_s1 + $0x20] sm:$0xff]   ;;  %v697_v21 = vld [vmem:[%s909_s1 + $0x28] sm:$0xff]  }
   0x7   :  { %613 = vmatpush3.bf16.msra.mxu0 %v681_v5  ;;  %v690_v14 = vld [vmem:[%s909_s1 + $0xd8] sm:$0xff]   ;;  %v694_v18 = vld [vmem:[%s909_s1 + $0xe0] sm:$0xff]   ;;  %v698_v22 = vld [vmem:[%s909_s1 + $0xe8] sm:$0xff]  }
   0x8   :  { %614 = vmatprep.subr.bf16.mxu0 %v684_v8  ;;  %v691_v15 = vld [vmem:[%s909_s1 + $0x98] sm:$0xff]   ;;  %v695_v19 = vld [vmem:[%s909_s1 + $0xa0] sm:$0xff]   ;;  %v699_v23 = vld [vmem:[%s909_s1 + $0xa8] sm:$0xff]  }
   0x9   :  { %635 = vmatpush3.bf16.msra.mxu1 %v683_v7  ;;  %v700_v24 = vld [vmem:[%s909_s1 + $0x70] sm:$0xff]   ;;  %v704_v28 = vld [vmem:[%s909_s1 + $0x78] sm:$0xff]   ;;  %v15_v31 = vld [vmem:[%s910_s0] sm:$0xff] }
   0xa   :  { %636 = vmatprep.subr.bf16.mxu1 %v686_v10  ;;  %v701_v25 = vld [vmem:[%s909_s1 + $0x30] sm:$0xff]   ;;  %v705_v29 = vld [vmem:[%s909_s1 + $0x38] sm:$0xff]   ;;  %v556_v32 = vcombine.low %v15_v31, %v15_v31  ;;  %v557_v33 = vcombine.high %v15_v31, %v15_v31  ;;  %v710_v35 = vld [vmem:[%s909_s1 + $0x140] sm:$0xff]  }
   0xb   :  { %615 = vmatpush3.bf16.msra.mxu0 %v685_v9  ;;  %v702_v26 = vld [vmem:[%s909_s1 + $0xf0] sm:$0xff]   ;;  %v706_v30 = vld [vmem:[%s909_s1 + $0xf8] sm:$0xff]   ;;  %v16_v36 = vld [vmem:[%s910_s0 + $0x8] sm:$0xff] }
   0xc   :  { %616 = vmatprep.subr.bf16.mxu0 %v688_v12  ;;  %v703_v27 = vld [vmem:[%s909_s1 + $0xb0] sm:$0xff]   ;;  %v709_v34 = vld [vmem:[%s909_s1 + $0xb8] sm:$0xff]   ;;  %462 = vmatprep.mubr.bf16.mxu0 %v557_v33  ;;  %v558_v37 = vcombine.low %v16_v36, %v16_v36  ;;  %v559_v38 = vcombine.high %v16_v36, %v16_v36  ;;  %v713_v39 = vld [vmem:[%s909_s1 + $0x100] sm:$0xff]  }
   0xd   :  { %637 = vmatpush3.bf16.msra.mxu1 %v687_v11  ;;  %v714_v40 = vld [vmem:[%s909_s1 + $0x148] sm:$0xff]   ;;  %v716_v42 = vld [vmem:[%s909_s1 + $0x150] sm:$0xff]   ;;  %v718_v44 = vld [vmem:[%s909_s1 + $0x158] sm:$0xff]  }
   0xe   :  { %638 = vmatprep.subr.bf16.mxu1 %v690_v14  ;;  %502 = vmatprep.mubr.bf16.mxu1 %v559_v38  ;;  %v715_v41 = vld [vmem:[%s909_s1 + $0x108] sm:$0xff]   ;;  %v717_v43 = vld [vmem:[%s909_s1 + $0x110] sm:$0xff]   ;;  %v719_v45 = vld [vmem:[%s909_s1 + $0x118] sm:$0xff]  }
   0xf   :  { %617 = vmatpush3.bf16.msra.mxu0 %v689_v13  ;;  %v720_v46 = vld [vmem:[%s909_s1 + $0x160] sm:$0xff]   ;;  %v17_v48 = vld [vmem:[%s910_s0 + $0x10] sm:$0xff]  ;;  %v722_v49 = vld [vmem:[%s909_s1 + $0x168] sm:$0xff]  }
  0x10   :  { %618 = vmatprep.subr.bf16.mxu0 %v692_v16  ;;  %v721_v47 = vld [vmem:[%s909_s1 + $0x120] sm:$0xff]   ;;  %v561_v50 = vcombine.high %v17_v48, %v17_v48  ;;  %v723_v51 = vld [vmem:[%s909_s1 + $0x128] sm:$0xff]   ;;  %v724_v52 = vld [vmem:[%s909_s1 + $0x170] sm:$0xff]   ;;  %v560_v56 = vcombine.low %v17_v48, %v17_v48 }
  0x11   :  { %639 = vmatpush3.bf16.msra.mxu1 %v691_v15  ;;  %v725_v53 = vld [vmem:[%s909_s1 + $0x130] sm:$0xff]   ;;  %v726_v54 = vld [vmem:[%s909_s1 + $0x178] sm:$0xff]   ;;  %v555_v58 = vld [vmem:[%s911_s2] ss:$0 sm:$0xff] }
  0x12   :  { %640 = vmatprep.subr.bf16.mxu1 %v694_v18  ;;  %v727_v55 = vld [vmem:[%s909_s1 + $0x138] sm:$0xff]  }
  0x13   :  { %619 = vmatpush3.bf16.msra.mxu0 %v693_v17 }
  0x14   :  { %620 = vmatprep.subr.bf16.mxu0 %v696_v20 }
  0x15   :  { %641 = vmatpush3.bf16.msra.mxu1 %v695_v19 }
  0x16   :  { %642 = vmatprep.subr.bf16.mxu1 %v698_v22 }
  0x17   :  { %621 = vmatpush3.bf16.msra.mxu0 %v697_v21 }
  0x18   :  { %622 = vmatprep.subr.bf16.mxu0 %v700_v24 }
  0x19   :  { %643 = vmatpush3.bf16.msra.mxu1 %v699_v23 }
  0x1a   :  { %644 = vmatprep.subr.bf16.mxu1 %v702_v26 }
  0x1b   :  { %623 = vmatpush3.bf16.msra.mxu0 %v701_v25 }
  0x1c   :  { %624 = vmatprep.subr.bf16.mxu0 %v704_v28 }
  0x1d   :  { %645 = vmatpush3.bf16.msra.mxu1 %v703_v27 }
  0x1e   :  { %646 = vmatprep.subr.bf16.mxu1 %v706_v30 }
  0x1f   :  { %625 = vmatpush3.bf16.msra.mxu0 %v705_v29 }
  0x20   :  { %654 = vmatprep.subr.bf16.mxu0 %v710_v35 }
  0x21   :  { %647 = vmatpush3.bf16.msra.mxu1 %v709_v34 }
  0x22   :  { %463 = vmatmul.mubr.bf16.vlgmr.msra.gmra.mrb[0].mxu0 %v556_v32 }
  0x23   :  { %655 = vmatpush3.bf16.msra.mxu0 %v713_v39  ;;  %542 = vmatprep.mubr.bf16.mxu0 %v561_v50 }
  0x24   :  { %503 = vmatmul.mubr.bf16.vlgmr.msra.gmra.mrb[0].mxu1 %v558_v37  ;;  %656 = vmatprep.subr.bf16.mxu0 %v714_v40 }
  0x27   :  { %657 = vmatpush3.bf16.msra.mxu0 %v715_v41 }
  0x28   :  { %658 = vmatprep.subr.bf16.mxu0 %v716_v42 }
  0x2b   :  { %659 = vmatpush3.bf16.msra.mxu0 %v717_v43 }
  0x2c   :  { %660 = vmatprep.subr.bf16.mxu0 %v718_v44 }
  0x2f   :  { %661 = vmatpush3.bf16.msra.mxu0 %v719_v45 }
  0x30   :  { %662 = vmatprep.subr.bf16.mxu0 %v720_v46 }
  0x33   :  { %663 = vmatpush3.bf16.msra.mxu0 %v721_v47 }
  0x34   :  { %664 = vmatprep.subr.bf16.mxu0 %v722_v49 }
  0x37   :  { %665 = vmatpush3.bf16.msra.mxu0 %v723_v51 }
  0x38   :  { %666 = vmatprep.subr.bf16.mxu0 %v724_v52 }
  0x3b   :  { %667 = vmatpush3.bf16.msra.mxu0 %v725_v53 }
  0x3c   :  { %668 = vmatprep.subr.bf16.mxu0 %v726_v54 }
  0x3f   :  { %669 = vmatpush3.bf16.msra.mxu0 %v727_v55 }
  0x42   :  { %543 = vmatmul.mubr.bf16.vlgmr.msra.gmra.mrb[4].mxu0 %v560_v56 }
  0xf5   :  { %v626_v57 = vpop.f32.mrb[0].mxu0 }
  0xf6   :  { %v627_v59 = vpop.f32.mrb[1].mxu0 }
  0xf7   :  { %v628_v60 = vadd.f32 %v627_v59, %v626_v57  ;;  %v629_v61 = vpop.f32.mrb[2].mxu0  ;;  %v648_v62 = vpop.f32.mrb[0].mxu1 }
  0xf8   :  { %v630_v63 = vpop.f32.mrb[3].mxu0  ;;  %v649_v0 = vpop.f32.mrb[1].mxu1 }
  0xf9   :  { %v465_v1 = vadd.f32 %v628_v60, %v555_v58  ;;  %v650_v2 = vadd.f32 %v649_v0, %v648_v62  ;;  %v651_v3 = vpop.f32.mrb[2].mxu1 }
  0xfa   :  { %v652_v4 = vpop.f32.mrb[3].mxu1 }
  0xfb   :  { %v505_v5 = vadd.f32 %v650_v2, %v465_v1 }
 0x115   :  { %v670_v6 = vpop.f32.mrb[4].mxu0 }
 0x116   :  { %v671_v7 = vpop.f32.mrb[5].mxu0 }
 0x117   :  { %v672_v8 = vadd.f32 %v671_v7, %v670_v6  ;;  %v673_v9 = vpop.f32.mrb[6].mxu0 }
 0x118   :  { %v674_v10 = vpop.f32.mrb[7].mxu0 }
 0x119   :  { %v545_v11 = vadd.f32 %v672_v8, %v505_v5 }
 0x11b   :  { %550 = vst [vmem:[%s912_s3] sm:$0xff] %v545_v11 }

// kernel: ofa_vit_forward.34
= control target key start
LH: loop header
LB: loop body
LE: loop exit
PB: predicated region body
PF: predicated region fallthrough
CT: control target
= control target key end

     0   :  { %vm23_vm0 = vcmask 261120   ;;  %vm27_vm1 = vcmask 254976   ;;  %v181_v15 = vmov 0.0   ;;  %vm182_vm2 = vmmov 0   ;;  %s243_s0 = inlined_call_operand.vmem [shape: f32[10,32], index: 0, kind: input, shape index: {}]   ;;  %s244_s1 = inlined_call_operand.vmem [shape: bf16[32,128], index: 1, kind: input, shape index: {}]   ;;  %s245_s3 = inlined_call_operand.vmem [shape: f32[1,32], index: 3, kind: input, shape index: {}]   ;;  %s246_s4 = inlined_call_operand.vmem [shape: f32[1,32], index: 4, kind: input, shape index: {}]   ;;  %s247_s2 = inlined_call_operand.vmem [shape: f32[1,128], index: 2, kind: input, shape index: {}]   ;;  %s248_s5 = inlined_call_operand.vmem [shape: bf16[10,128], index: 5, kind: output, shape index: {}]  }
   0x1   :  { %v21_v0 = vld [vmem:[%s243_s0] sm:$0xff]  ;;  %v22_v1 = vld [vmem:[%s243_s0 + $0x8] sm:$0x3]  ;;  %165 = vmatprep.subr.bf16.mxu0 %v181_v15  ;;  %169 = vmatprep.mubr.msk.bf16.mxu0 %vm182_vm2, %v181_v15 }
   0x2   :  { %v24_v2 = vsel %vm23_vm0, %v21_v0, 0.0  ;;  %v28_v3 = vsel %vm27_vm1, %v22_v1, 0.0  ;;  %v175_v14 = vld [vmem:[%s244_s1] sm:$0xff]   ;;  %v176_v16 = vld [vmem:[%s244_s1 + $0x8] sm:$0xff]  }
   0x3   :  { %25 = vadd.xlane.f32.xlu0 %v24_v2  ;;  %166 = vmatpush3.bf16.msra.mxu0 %v175_v14  ;;  %v152_v25 = vld [vmem:[%s245_s3] ss:$0 sm:$0xff] }
   0x4   :  { %167 = vmatprep.subr.bf16.mxu0 %v181_v15  ;;  %v153_v29 = vld [vmem:[%s246_s4] ss:$0 sm:$0xff] }
   0x5   :  { %v154_v34 = vld [vmem:[%s247_s2] ss:$0 sm:$0xff] }
   0x7   :  { %29 = vadd.xlane.f32.xlu0 %v28_v3  ;;  %168 = vmatpush3.bf16.msra.mxu0 %v176_v16 }
  0x90   :  { %v26_v4 = vpop.xlane.xlu0 %25 }
  0x91   :  { %v32_v5 = vmul.f32 0.03125, %v26_v4 }
  0x93   :  { %v34_v6 = vsub.f32 %v21_v0, %v32_v5 }
  0x94   :  { %v30_v7 = vpop.xlane.xlu0 %29 }
  0x95   :  { %v33_v8 = vmul.f32 0.03125, %v30_v7  ;;  %v36_v9 = vmul.f32 %v34_v6, %v34_v6 }
  0x97   :  { %v35_v10 = vsub.f32 %v22_v1, %v33_v8  ;;  %v38_v11 = vsel %vm23_vm0, %v36_v9, 0.0 }
  0x98   :  { %39 = vadd.xlane.f32.xlu1 %v38_v11 }
  0x99   :  { %v37_v12 = vmul.f32 %v35_v10, %v35_v10 }
  0x9b   :  { %v41_v13 = vsel %vm27_vm1, %v37_v12, 0.0 }
  0x9c   :  { %42 = vadd.xlane.f32.xlu1 %v41_v13 }
 0x125   :  { %v40_v17 = vpop.xlane.xlu1 %39 }
 0x126   :  { %v44_v18 = vmul.f32 0.03125, %v40_v17 }
 0x128   :  { %v46_v19 = vadd.f32 1e-05, %v44_v18 }
 0x129   :  { %v43_v20 = vpop.xlane.xlu1 %42 }
 0x12a   :  { %177 = vrsqrt.f32 %v46_v19  ;;  %v45_v21 = vmul.f32 0.03125, %v43_v20 }
 0x12c   :  { %v47_v22 = vadd.f32 1e-05, %v45_v21 }
 0x12e   :  { %179 = vrsqrt.f32 %v47_v22 }
 0x134   :  { %v178_v23 = vpop.eup %177 }
 0x135   :  { %v50_v24 = vmul.f32 %v178_v23, %v34_v6 }
 0x137   :  { %v59_v28 = vmul.f32 %v152_v25, %v50_v24 }
 0x138   :  { %v180_v26 = vpop.eup %179 }
 0x139   :  { %v51_v27 = vmul.f32 %v180_v26, %v35_v10  ;;  %v68_v31 = vadd.f32 %v153_v29, %v59_v28 }
 0x13b   :  { %v60_v30 = vmul.f32 %v152_v25, %v51_v27 }
 0x13d   :  { %v69_v32 = vadd.f32 %v153_v29, %v60_v30 }
 0x13f   :  { %v70_v33 = vpack.c.bf16 %v69_v32, %v68_v31 }
 0x141   :  { %170 = vmatmul.mubr.msk.bf16.vlgmr.msra.gmra.mrb[0].mxu0 %vm23_vm0, %v70_v33 }
 0x214   :  { %v131_v35 = vpop.f32.mrb[0].mxu0 }
 0x215   :  { %v132_v36 = vadd.f32 %v154_v34, %v131_v35  ;;  %v171_v37 = vpop.f32.mrb[1].mxu0 }
 0x216   :  { %v134_v38 = vpop.f32.mrb[2].mxu0 }
 0x217   :  { %v160_v39 = vpack.c.bf16 %v132_v36, %v132_v36  ;;  %v135_v40 = vadd.f32 %v154_v34, %v134_v38  ;;  %v172_v41 = vpop.f32.mrb[3].mxu0 }
 0x219   :  { %146 = vst [vmem:[%s248_s5] sm:$0xf] %v160_v39  ;;  %v161_v42 = vpack.c.bf16 %v135_v40, %v135_v40 }
 0x21b   :  { %147 = vst [vmem:[%s248_s5 + $0x4] sm:$0x1] %v161_v42 }

// kernel: ofa_vit_forward.35
= control target key start
LH: loop header
LB: loop body
LE: loop exit
PB: predicated region body
PF: predicated region fallthrough
CT: control target
= control target key end

     0   :  { %s651_s12 = smov 0   ;;  %s653_s13 = smov 0   ;;  %s714_s0 = inlined_call_operand.vmem [shape: bf16[2,4,5,8], index: 0, kind: input, shape index: {}]   ;;  %s715_s1 = inlined_call_operand.vmem [shape: bf16[2,4,5,8], index: 1, kind: input, shape index: {}]   ;;  %s716_s2 = inlined_call_operand.vmem [shape: bf16[2,4,5,8], index: 2, kind: input, shape index: {}]   ;;  %s717_s3 = inlined_call_operand.vmem [shape: bf16[2,4,5,8], index: 3, kind: output, shape index: {}]  }
   0x1   :  { %s655_s14 = smov 0   ;;  %s657_s15 = smov 0  }
   0x2   :  { %s659_s16 = smov 0  }
   0x3 LB: > { %s22_s17 = sadd.s32 1, %s618_s14  ;;  %s25_s18 = sadd.s32 1, %s622_s15  ;;  %s626_s16 = sphi %s659_s16, %s13_s16   ;;  %s622_s15 = sphi %s657_s15, %s721_s15   ;;  %s618_s14 = sphi %s655_s14, %s720_s14   ;;  %s614_s13 = sphi %s653_s13, %s719_s13   ;;  %s610_s12 = sphi %s651_s12, %s718_s12  }
   0x4   : > { %p23_p0 = scmp.ge.s32.totalorder %s22_s17, 4  ;;  %p512_p1 = scmp.ge.s32.totalorder %s626_s16, 1 }
   0x5   : > { %p186_p2 = scmp.lt.s32.totalorder %s626_s16, 9 }
   0x6   : > { %s723_s17 = smov (%p23_p0, %s22_s17), 0  ;;  %s725_s18 = smov (!%p23_p0, %s25_s18), %s622_s15 }
   0x7   : > { %p187_p3 = pnand %p512_p1, %p186_p2  ;;  %p27_p4 = scmp.ge.s32.totalorder %s725_s18, 2 }
   0x8   : > { %p232_p5 = scmp.lt.s32.totalorder (!%p187_p3), %s614_s13, 1  ;;  %p234_p6 = scmp.lt.s32.totalorder (!%p187_p3), %s610_s12, 3  ;;  %v628_v0 = vmov (!%p187_p3), 0.0   ;;  %vm629_vm0 = vmmov (!%p187_p3), 0   ;;  %vm268_vm1 = vcmask (!%p187_p3), 64512   ;;  %vm315_vm2 = vcmask (!%p187_p3), 36864  }
   0x9   : > { %s727_s18 = smov (%p27_p4, %s725_s18), 0  ;;  %190 = sbr.rel (%p187_p3) target bundleno = 774 (0x306), region = 32 }
   0xa   : > { %529 = vmatprep.subr.bf16.mxu0 (!%p187_p3), %v628_v0  ;;  %531 = vmatprep.mubr.msk.bf16.mxu0 (!%p187_p3), %vm629_vm0, %v628_v0  ;;  %vm332_vm3 = vcmask (!%p187_p3), 1041408   ;;  %vm333_vm4 = vcmask (!%p187_p3), 1042432   ;;  %v630_v15 = vmov (!%p187_p3), 65535   ;;  %vm328_vm5 = vcmask (!%p187_p3), 39936  }
   0xb   : > { %535 = vmatprep.subr.bf16.mxu1 (!%p187_p3), %v628_v0  ;;  %537 = vmatprep.mubr.msk.bf16.mxu1 (!%p187_p3), %vm629_vm0, %v628_v0  ;;  %v334_v16 = vsel (!%p187_p3), %vm332_vm3, 4294967295, %v630_v15  ;;  %vm380_vm6 = vcmask (!%p187_p3), 59392   ;;  %vm381_vm7 = vsmask.f32 (!%p187_p3), 2304 }
   0xc   : > { %v335_v17 = vsel (!%p187_p3), %vm333_vm4, %v334_v16, 0  ;;  %vm382_vm8 = vmand (!%p187_p3), %vm380_vm6, %vm381_vm7 }
  0x10   : > { %s729_s13 = smov (!%p232_p5, %s614_s13), 1  ;;  %s731_s12 = smov (!%p234_p6, %s610_s12), 3 }
  0x11   : > { %s513_s19 = sshll.u32 %s729_s13, 2 }
  0x12   : > { %s237_s20 = sadd.s32 %s513_s19, %s731_s12 }
  0x13   : > { %s681_s21 = sshll.u32 %s237_s20, 2 }
  0x14   : > { %s247_s24 = scalar_lea.vmem %s715_s1, %s681_s21  ;;  %s239_s27 = scalar_lea.vmem %s714_s0, %s681_s21 }
  0x15   : > { %v266_v1 = vld [vmem:[%s247_s24] sm:$0x7]  ;;  %s255_s30 = scalar_lea.vmem %s716_s2, %s681_s21  ;;  %s263_s6 = scalar_lea.vmem %s717_s3, %s681_s21 }
  0x16   : > { %v273_v2 = vsel %vm268_vm1, %v266_v1, 0  ;;  %v265_v3 = vld [vmem:[%s239_s27] sm:$0x7] }
  0x17   : > { %530 = vmatpush3.bf16.xpose.msra.mxu0 %v273_v2  ;;  %v267_v14 = vld [vmem:[%s255_s30] sm:$0x7] }
  0x18   : > { %v337_v18 = vand.u32 %v335_v17, %v267_v14  ;;  %v383_v24 = vld [vmem:[%s263_s6] sm:$0x7] }
  0x1a   : > { %536 = vmatpush3.bf16.msra.mxu1 %v337_v18 }
  0x1e   : > { %532 = vmatmul.mubr.msk.bf16.vlgmr.msra.gmra.mrb[0].mxu0 %vm268_vm1, %v265_v3 }
  0xf1   : > { %v309_v4 = vpop.f32.mrb[0].mxu0 }
  0xf2   : > { %v533_v5 = vpop.f32.mrb[1].mxu0  ;;  %v316_v6 = vsel %vm315_vm2, %v309_v4, -inf }
  0xf3   : > { %317 = vmax.xlane.f32.xlu0 %v316_v6  ;;  %v312_v7 = vpop.f32.mrb[2].mxu0 }
  0xf4   : > { %v534_v8 = vpop.f32.mrb[3].mxu0 }
 0x180   : > { %v318_v9 = vpop.xlane.xlu0 %317 }
 0x181   : > { %v319_v10 = vsub.f32 %v309_v4, %v318_v9 }
 0x183   : > { %v320_v11 = vmul.f32 1.442695, %v319_v10 }
 0x185   : > { %584 = vpow2.f32 %v320_v11 }
 0x18f   : > { %v585_v12 = vpop.eup %584 }
 0x190   : > { %v322_v13 = vsel %vm315_vm2, %v585_v12, 0.0 }
 0x191   : > { %323 = vadd.xlane.f32.xlu0 %v322_v13 }
 0x21e   : > { %v324_v19 = vpop.xlane.xlu0 %323 }
 0x21f   : > { %586 = vrcp.f32 %v324_v19 }
 0x229   : > { %v587_v20 = vpop.eup %586 }
 0x22a   : > { %v326_v21 = vmul.f32 %v587_v20, %v585_v12 }
 0x22c   : > { %v327_v22 = vpack.c.bf16 %v326_v21, %v326_v21 }
 0x22e   : > { %538 = vmatmul.mubr.msk.bf16.vlgmr.msra.gmra.mrb[0].mxu1 %vm328_vm5, %v327_v22 }
 0x301   : > { %v373_v23 = vpop.f32.mrb[0].mxu1 }
 0x302   : > { %v379_v25 = vpack.c.bf16 %v373_v23, %v373_v23  ;;  %v539_v26 = vpop.f32.mrb[1].mxu1 }
 0x303   : > { %v376_v27 = vpop.f32.mrb[2].mxu1 }
 0x304   : > { %v384_v28 = vsel %vm382_vm8, %v379_v25, %v383_v24  ;;  %v540_v29 = vpop.f32.mrb[3].mxu1 }
 0x305   : > { %385 = vst [vmem:[%s263_s6] sm:$0x7] %v384_v28 }
 0x306 PF: > { %s13_s16 = sadd.s32 1, %s626_s16   ;;  %s718_s12 = smov %s618_s14 }
 0x307   : > { %p10_p7 = scmp.ge.s32.totalorder %s13_s16, 10   ;;  %s719_s13 = smov %s622_s15 }
 0x308   : > { %s720_s14 = smov %s723_s17  ;;  %s721_s15 = smov %s727_s18 }
 0x309   :  { %12 = sbr.rel (!%p10_p7) target bundleno = 3 (0x3), region = 68 }

// kernel: ofa_vit_forward.36
= control target key start
LH: loop header
LB: loop body
LE: loop exit
PB: predicated region body
PF: predicated region fallthrough
CT: control target
= control target key end

     0   :  { %v124_v0 = vmov 0.0   ;;  %vm125_vm0 = vmmov 0   ;;  %vm48_vm1 = vcmask 261120   ;;  %s175_s1 = inlined_call_operand.vmem [shape: bf16[32,128], index: 1, kind: input, shape index: {}]   ;;  %s176_s0 = inlined_call_operand.vmem [shape: bf16[10,32], index: 0, kind: input, shape index: {}]   ;;  %s177_s2 = inlined_call_operand.vmem [shape: f32[1,128], index: 2, kind: input, shape index: {}]   ;;  %s178_s3 = inlined_call_operand.vmem [shape: f32[10,128], index: 3, kind: input, shape index: {}]   ;;  %s179_s4 = inlined_call_operand.vmem [shape: f32[10,128], index: 4, kind: output, shape index: {}]  }
   0x1   :  { %111 = vmatprep.subr.bf16.mxu0 %v124_v0  ;;  %v121_v1 = vld [vmem:[%s175_s1] sm:$0xff]   ;;  %115 = vmatprep.mubr.msk.bf16.mxu0 %vm125_vm0, %v124_v0  ;;  %v122_v2 = vld [vmem:[%s175_s1 + $0x8] sm:$0xff]  }
   0x2   :  { %112 = vmatpush3.bf16.msra.mxu0 %v121_v1  ;;  %v123_v3 = vld [vmem:[%s176_s0] sm:$0x1f]   ;;  %v94_v10 = vld [vmem:[%s178_s3 + $0x8] sm:$0x3] }
   0x3   :  { %113 = vmatprep.subr.bf16.mxu0 %v124_v0  ;;  %v103_v4 = vld [vmem:[%s177_s2] ss:$0 sm:$0xff] }
   0x4   :  { %v93_v6 = vld [vmem:[%s178_s3] sm:$0xff] }
   0x6   :  { %114 = vmatpush3.bf16.msra.mxu0 %v122_v2 }
   0x9   :  { %116 = vmatmul.mubr.msk.bf16.vlgmr.msra.gmra.mrb[0].mxu0 %vm48_vm1, %v123_v3 }
  0xdc   :  { %v86_v5 = vpop.f32.mrb[0].mxu0 }
  0xdd   :  { %v87_v7 = vadd.f32 %v103_v4, %v86_v5  ;;  %v117_v8 = vpop.f32.mrb[1].mxu0 }
  0xde   :  { %v89_v9 = vpop.f32.mrb[2].mxu0 }
  0xdf   :  { %v95_v11 = vadd.f32 %v93_v6, %v87_v7  ;;  %v90_v12 = vadd.f32 %v103_v4, %v89_v9  ;;  %v118_v13 = vpop.f32.mrb[3].mxu0 }
  0xe1   :  { %97 = vst [vmem:[%s179_s4] sm:$0xff] %v95_v11  ;;  %v96_v14 = vadd.f32 %v94_v10, %v90_v12 }
  0xe3   :  { %98 = vst [vmem:[%s179_s4 + $0x8] sm:$0x3] %v96_v14 }

// kernel: ofa_vit_forward.37
= control target key start
LH: loop header
LB: loop body
LE: loop exit
PB: predicated region body
PF: predicated region fallthrough
CT: control target
= control target key end

     0   :  { %vm23_vm0 = vcmask 261120   ;;  %vm27_vm1 = vcmask 254976   ;;  %v195_v15 = vmov 0.0   ;;  %vm196_vm2 = vmmov 0   ;;  %s257_s0 = inlined_call_operand.vmem [shape: f32[10,32], index: 0, kind: input, shape index: {}]   ;;  %s258_s1 = inlined_call_operand.vmem [shape: bf16[32,128], index: 1, kind: input, shape index: {}]   ;;  %s259_s3 = inlined_call_operand.vmem [shape: f32[1,32], index: 3, kind: input, shape index: {}]   ;;  %s260_s4 = inlined_call_operand.vmem [shape: f32[1,32], index: 4, kind: input, shape index: {}]   ;;  %s261_s2 = inlined_call_operand.vmem [shape: f32[1,128], index: 2, kind: input, shape index: {}]   ;;  %s262_s5 = inlined_call_operand.vmem [shape: bf16[10,128], index: 5, kind: output, shape index: {}]  }
   0x1   :  { %v21_v0 = vld [vmem:[%s257_s0] sm:$0xff]  ;;  %v22_v1 = vld [vmem:[%s257_s0 + $0x8] sm:$0x3]  ;;  %175 = vmatprep.subr.bf16.mxu0 %v195_v15  ;;  %179 = vmatprep.mubr.msk.bf16.mxu0 %vm196_vm2, %v195_v15 }
   0x2   :  { %v24_v2 = vsel %vm23_vm0, %v21_v0, 0.0  ;;  %v28_v3 = vsel %vm27_vm1, %v22_v1, 0.0  ;;  %v185_v14 = vld [vmem:[%s258_s1] sm:$0xff]   ;;  %v186_v16 = vld [vmem:[%s258_s1 + $0x8] sm:$0xff]  }
   0x3   :  { %25 = vadd.xlane.f32.xlu0 %v24_v2  ;;  %176 = vmatpush3.bf16.msra.mxu0 %v185_v14  ;;  %v162_v25 = vld [vmem:[%s259_s3] ss:$0 sm:$0xff] }
   0x4   :  { %177 = vmatprep.subr.bf16.mxu0 %v195_v15  ;;  %v163_v29 = vld [vmem:[%s260_s4] ss:$0 sm:$0xff] }
   0x5   :  { %v164_v34 = vld [vmem:[%s261_s2] ss:$0 sm:$0xff] }
   0x7   :  { %29 = vadd.xlane.f32.xlu0 %v28_v3  ;;  %178 = vmatpush3.bf16.msra.mxu0 %v186_v16 }
  0x90   :  { %v26_v4 = vpop.xlane.xlu0 %25 }
  0x91   :  { %v32_v5 = vmul.f32 0.03125, %v26_v4 }
  0x93   :  { %v34_v6 = vsub.f32 %v21_v0, %v32_v5 }
  0x94   :  { %v30_v7 = vpop.xlane.xlu0 %29 }
  0x95   :  { %v33_v8 = vmul.f32 0.03125, %v30_v7  ;;  %v36_v9 = vmul.f32 %v34_v6, %v34_v6 }
  0x97   :  { %v35_v10 = vsub.f32 %v22_v1, %v33_v8  ;;  %v38_v11 = vsel %vm23_vm0, %v36_v9, 0.0 }
  0x98   :  { %39 = vadd.xlane.f32.xlu1 %v38_v11 }
  0x99   :  { %v37_v12 = vmul.f32 %v35_v10, %v35_v10 }
  0x9b   :  { %v41_v13 = vsel %vm27_vm1, %v37_v12, 0.0 }
  0x9c   :  { %42 = vadd.xlane.f32.xlu1 %v41_v13 }
 0x125   :  { %v40_v17 = vpop.xlane.xlu1 %39 }
 0x126   :  { %v44_v18 = vmul.f32 0.03125, %v40_v17 }
 0x128   :  { %v46_v19 = vadd.f32 1e-05, %v44_v18 }
 0x129   :  { %v43_v20 = vpop.xlane.xlu1 %42 }
 0x12a   :  { %187 = vrsqrt.f32 %v46_v19  ;;  %v45_v21 = vmul.f32 0.03125, %v43_v20 }
 0x12c   :  { %v47_v22 = vadd.f32 1e-05, %v45_v21 }
 0x12e   :  { %189 = vrsqrt.f32 %v47_v22 }
 0x134   :  { %v188_v23 = vpop.eup %187 }
 0x135   :  { %v50_v24 = vmul.f32 %v188_v23, %v34_v6 }
 0x137   :  { %v59_v28 = vmul.f32 %v162_v25, %v50_v24 }
 0x138   :  { %v190_v26 = vpop.eup %189 }
 0x139   :  { %v51_v27 = vmul.f32 %v190_v26, %v35_v10  ;;  %v68_v31 = vadd.f32 %v163_v29, %v59_v28 }
 0x13b   :  { %v60_v30 = vmul.f32 %v162_v25, %v51_v27 }
 0x13d   :  { %v69_v32 = vadd.f32 %v163_v29, %v60_v30 }
 0x13f   :  { %v70_v33 = vpack.c.bf16 %v69_v32, %v68_v31 }
 0x141   :  { %180 = vmatmul.mubr.msk.bf16.vlgmr.msra.gmra.mrb[0].mxu0 %vm23_vm0, %v70_v33 }
 0x214   :  { %v131_v35 = vpop.f32.mrb[0].mxu0 }
 0x215   :  { %v132_v36 = vadd.f32 %v164_v34, %v131_v35  ;;  %v181_v37 = vpop.f32.mrb[1].mxu0 }
 0x216   :  { %v134_v38 = vpop.f32.mrb[2].mxu0 }
 0x217   :  { %v140_v39 = vmul.f32 0.70710677, %v132_v36  ;;  %v135_v40 = vadd.f32 %v164_v34, %v134_v38  ;;  %v182_v41 = vpop.f32.mrb[3].mxu0  ;;  %v138_v44 = vmul.f32 0.5, %v132_v36 }
 0x219   :  { %191 = verf.f32 %v140_v39  ;;  %v141_v42 = vmul.f32 0.70710677, %v135_v40  ;;  %v139_v48 = vmul.f32 0.5, %v135_v40 }
 0x21b   :  { %193 = verf.f32 %v141_v42 }
 0x223   :  { %v192_v43 = vpop.eup %191 }
 0x224   :  { %v144_v45 = vadd.f32 1.0, %v192_v43 }
 0x225   :  { %v194_v46 = vpop.eup %193 }
 0x226   :  { %v146_v47 = vmul.f32 %v144_v45, %v138_v44  ;;  %v145_v49 = vadd.f32 1.0, %v194_v46 }
 0x228   :  { %v170_v50 = vpack.c.bf16 %v146_v47, %v146_v47  ;;  %v147_v51 = vmul.f32 %v145_v49, %v139_v48 }
 0x22a   :  { %156 = vst [vmem:[%s262_s5] sm:$0xf] %v170_v50  ;;  %v171_v52 = vpack.c.bf16 %v147_v51, %v147_v51 }
 0x22c   :  { %157 = vst [vmem:[%s262_s5 + $0x4] sm:$0x1] %v171_v52 }

// kernel: ofa_vit_forward.38
= control target key start
LH: loop header
LB: loop body
LE: loop exit
PB: predicated region body
PF: predicated region fallthrough
CT: control target
= control target key end

     0   :  { %v198_v0 = vmov 0.0   ;;  %vm199_vm0 = vmmov 0   ;;  %s267_s1 = inlined_call_operand.vmem [shape: bf16[128,128], index: 1, kind: input, shape index: {}]   ;;  %s268_s0 = inlined_call_operand.vmem [shape: bf16[10,128], index: 0, kind: input, shape index: {}]   ;;  %s269_s2 = inlined_call_operand.vmem [shape: f32[1,128], index: 2, kind: input, shape index: {}]   ;;  %s270_s3 = inlined_call_operand.vmem [shape: f32[10,128], index: 3, kind: input, shape index: {}]   ;;  %s271_s4 = inlined_call_operand.vmem [shape: f32[10,128], index: 4, kind: output, shape index: {}]  }
   0x1   :  { %167 = vmatprep.subr.bf16.mxu0 %v198_v0  ;;  %v189_v1 = vld [vmem:[%s267_s1] sm:$0xff]   ;;  %183 = vmatprep.mubr.msk.bf16.mxu0 %vm199_vm0, %v198_v0  ;;  %v190_v2 = vld [vmem:[%s267_s1 + $0x8] sm:$0xff]   ;;  %v191_v3 = vld [vmem:[%s267_s1 + $0x10] sm:$0xff]  }
   0x2   :  { %168 = vmatpush3.bf16.msra.mxu0 %v189_v1  ;;  %v192_v4 = vld [vmem:[%s267_s1 + $0x18] sm:$0xff]   ;;  %v193_v5 = vld [vmem:[%s267_s1 + $0x20] sm:$0xff]   ;;  %v194_v6 = vld [vmem:[%s267_s1 + $0x28] sm:$0xff]  }
   0x3   :  { %169 = vmatprep.subr.bf16.mxu0 %v198_v0  ;;  %v195_v7 = vld [vmem:[%s267_s1 + $0x30] sm:$0xff]   ;;  %v196_v8 = vld [vmem:[%s267_s1 + $0x38] sm:$0xff]   ;;  %v197_v9 = vld [vmem:[%s268_s0] sm:$0x1f]  }
   0x4   :  { %v148_v10 = vld [vmem:[%s269_s2] ss:$0 sm:$0xff]  ;;  %v139_v16 = vld [vmem:[%s270_s3 + $0x8] sm:$0x3] }
   0x5   :  { %v138_v12 = vld [vmem:[%s270_s3] sm:$0xff] }
   0x6   :  { %170 = vmatpush3.bf16.msra.mxu0 %v190_v2 }
   0x7   :  { %171 = vmatprep.subr.bf16.mxu0 %v198_v0 }
   0xa   :  { %172 = vmatpush3.bf16.msra.mxu0 %v191_v3 }
   0xb   :  { %173 = vmatprep.subr.bf16.mxu0 %v198_v0 }
   0xe   :  { %174 = vmatpush3.bf16.msra.mxu0 %v192_v4 }
   0xf   :  { %175 = vmatprep.subr.bf16.mxu0 %v198_v0 }
  0x12   :  { %176 = vmatpush3.bf16.msra.mxu0 %v193_v5 }
  0x13   :  { %177 = vmatprep.subr.bf16.mxu0 %v198_v0 }
  0x16   :  { %178 = vmatpush3.bf16.msra.mxu0 %v194_v6 }
  0x17   :  { %179 = vmatprep.subr.bf16.mxu0 %v198_v0 }
  0x1a   :  { %180 = vmatpush3.bf16.msra.mxu0 %v195_v7 }
  0x1b   :  { %181 = vmatprep.subr.bf16.mxu0 %v198_v0 }
  0x1e   :  { %182 = vmatpush3.bf16.msra.mxu0 %v196_v8 }
  0x21   :  { %184 = vmatmul.mubr.bf16.vlgmr.msra.gmra.mrb[0].mxu0 %v197_v9 }
  0xf4   :  { %v131_v11 = vpop.f32.mrb[0].mxu0 }
  0xf5   :  { %v132_v13 = vadd.f32 %v148_v10, %v131_v11  ;;  %v185_v14 = vpop.f32.mrb[1].mxu0 }
  0xf6   :  { %v134_v15 = vpop.f32.mrb[2].mxu0 }
  0xf7   :  { %v140_v17 = vadd.f32 %v138_v12, %v132_v13  ;;  %v135_v18 = vadd.f32 %v148_v10, %v134_v15  ;;  %v186_v19 = vpop.f32.mrb[3].mxu0 }
  0xf9   :  { %142 = vst [vmem:[%s271_s4] sm:$0xff] %v140_v17  ;;  %v141_v20 = vadd.f32 %v139_v16, %v135_v18 }
  0xfb   :  { %143 = vst [vmem:[%s271_s4 + $0x8] sm:$0x3] %v141_v20 }

</bundles_post_ra>
